<compile_context>
chip_gen: v5e
topology: v5e:2x2
jax: 0.10.0
libtpu: 0.0.40
codegen_flags: <defaults>
</compile_context>

<pallas_src>
import functools

import jax
import jax.numpy as jnp
from jax import lax
from jax.experimental import pallas as pl
from jax.experimental.pallas import tpu as pltpu


def _round_up(x, m):
    return ((x + m - 1) // m) * m


def _left_pad(p, W):
    # Lane-aligned left halo: at least p*(W+1) zero lanes before the image so
    # every shifted-window slice start stays >= 0; rounded up to 128 so the
    # interior store is a lane-aligned, unmasked vector store.
    return _round_up(p * (W + 1), 128)


def maxhead_kernel(x_ref, w1_ref, b1_ref, w2_ref, w3_ref, w4_ref, b4_ref,
                   o_ref, pad1, pad2, pad3, col, *, H, W, NB):
    L = H * W
    LB = NB * L

    left1 = _left_pad(2, W)          # conv1: 5x5, pad 2
    right1 = 2 * (W + 1)
    left2 = _left_pad(1, W)          # conv2/conv3: 3x3, pad 1
    right2 = W + 1

    # Hoisted horizontal-border masks: one iota + 4 compares for the whole
    # kernel, reused across every tap, layer and image (per-image lane index).
    w_idx = lax.broadcasted_iota(jnp.int32, (1, L), 1) % W
    masks = {-2: w_idx >= 2, -1: w_idx >= 1, 1: w_idx < W - 1, 2: w_idx < W - 2}

    def masked(win, dw):
        return jnp.where(masks[dw], win, 0.0) if dw != 0 else win

    # Re-zero only the halo flanks (scratch persists across grid steps; the
    # interiors are fully overwritten below each step).
    for b in range(NB):
        pad1[b, :, 0:left1] = jnp.zeros((1, left1), jnp.float32)
        pad1[b, :, left1 + L:left1 + L + right1] = jnp.zeros((1, right1), jnp.float32)
        pad2[b, :, 0:left2] = jnp.zeros((32, left2), jnp.float32)
        pad2[b, :, left2 + L:left2 + L + right2] = jnp.zeros((32, right2), jnp.float32)
        pad3[b, :, 0:left2] = jnp.zeros((16, left2), jnp.float32)
        pad3[b, :, left2 + L:left2 + L + right2] = jnp.zeros((16, right2), jnp.float32)

    # ----- conv1: 1 -> 32, 5x5, pad 2 (+ folded BN + ReLU) -----
    # Cin == 1, so skip im2col: 25 shifted multiply-adds accumulated in vregs
    # (no single-sublane masked col stores).  Bias pre-broadcast on the host
    # to (32, L) and used as the accumulator init (no epilogue add).
    x = x_ref[0, :, :]                                     # (1, NB*L)
    for b in range(NB):
        pad1[b, :, left1:left1 + L] = x[:, b * L:(b + 1) * L]
    w1 = w1_ref[...]                                       # (32, 25)
    for b in range(NB):
        acc = b1_ref[...]                                  # (32, L)
        for kh in range(5):
            for kw in range(5):
                dw = kw - 2
                start = left1 + (kh - 2) * W + dw
                win = masked(pad1[b, :, start:start + L], dw)       # (1, L)
                acc = acc + w1[:, kh * 5 + kw:kh * 5 + kw + 1] * win
        # Store ReLU'd activation directly into conv2's padded-buffer interior.
        pad2[b, :, left2:left2 + L] = jnp.maximum(acc, 0.0)

    # ----- conv2 / conv3: one im2col matmul each -----
    # Bias folded into the MXU contraction: weights carry a trailing bias
    # column, col carries a constant ones row at row K*K*Cin (tap-row offsets
    # stay multiples of Cin, so all fills are sublane/lane-aligned stores).
    def im2col_conv(pad_ref, w_ref, Cin):
        kkc = 9 * Cin
        for kh in range(3):
            for kw in range(3):
                dw = kw - 1
                start = left2 + (kh - 1) * W + dw
                row0 = (kh * 3 + kw) * Cin
                for b in range(NB):
                    col[row0:row0 + Cin, b * L:(b + 1) * L] = masked(
                        pad_ref[b, :, start:start + L], dw)
        col[kkc:kkc + 1, :] = jnp.ones((1, LB), jnp.float32)         # bias row
        y = jnp.dot(w_ref[...], col[0:kkc + 1, :],
                    preferred_element_type=jnp.float32)
        return jnp.maximum(y, 0.0)

    y2 = im2col_conv(pad2, w2_ref, 32)                     # (16, NB*L)
    for b in range(NB):
        pad3[b, :, left2:left2 + L] = y2[:, b * L:(b + 1) * L]
    y3 = im2col_conv(pad3, w3_ref, 16)                     # (8, NB*L)

    # ----- conv4: 8 -> 1, 1x1 (no BN / ReLU), lane-dense output store -----
    y4 = jnp.dot(w4_ref[...], y3, preferred_element_type=jnp.float32)
    o_ref[...] = (y4 + b4_ref[...]).reshape(1, 1, LB)      # b4 pre-broadcast


def maxhead_forward(x_nchw, kernel_params, nb=2):
    """x_nchw: (N, 1, H, W) float32 (PyTorch layout). Returns (N, 1, H, W)."""
    N, C, H, W = x_nchw.shape
    assert C == 1
    assert N % nb == 0, "batch must be divisible by nb (images per grid step)"
    L = H * W
    LB = nb * L
    # C == 1: NCHW -> (N//nb, 1, nb*H*W) is a free, image-major reshape that
    # folds the batch into the lane axis; no transposes anywhere.
    x = x_nchw.reshape(N // nb, 1, LB).astype(jnp.float32)
    w1, b1, w2, w3, w4, b4 = kernel_params

    pad1_lanes = _left_pad(2, W) + L + 2 * (W + 1)         # 5x5, pad 2
    pad2_lanes = _left_pad(1, W) + L + (W + 1)             # 3x3, pad 1

    def full(arr):   # whole (tiny) parameter array as one resident block
        nd = arr.ndim
        return pl.BlockSpec(arr.shape, lambda s, _nd=nd: (0,) * _nd)

    out = pl.pallas_call(
        functools.partial(maxhead_kernel, H=H, W=W, NB=nb),
        out_shape=jax.ShapeDtypeStruct((N // nb, 1, LB), jnp.float32),
        grid_spec=pltpu.PrefetchScalarGridSpec(
            num_scalar_prefetch=0,
            grid=(N // nb,),                               # NB images per step
            in_specs=[
                pl.BlockSpec((1, 1, LB), lambda s: (s, 0, 0)),      # x
                full(w1), full(b1), full(w2), full(w3), full(w4), full(b4),
            ],
            out_specs=pl.BlockSpec((1, 1, LB), lambda s: (s, 0, 0)),
            scratch_shapes=[
                pltpu.VMEM((nb, 1, pad1_lanes), jnp.float32),       # conv1 pad
                pltpu.VMEM((nb, 32, pad2_lanes), jnp.float32),      # conv2 pad
                pltpu.VMEM((nb, 16, pad2_lanes), jnp.float32),      # conv3 pad
                pltpu.VMEM((9 * 32 + 1, LB), jnp.float32),          # im2col+ones
            ],
        ),
        compiler_params=pltpu.CompilerParams(
            dimension_semantics=("parallel",),   # steps split across TCs (v7x)
            vmem_limit_bytes=32 * 1024 * 1024,   # working set < 1 MiB anyway
        ),
    )(x, w1, b1, w2, w3, w4, b4)

    return out.reshape(N, 1, H, W)               # NCHW, free reshape (C == 1)


# ---------------- deterministic parameter setup (plain-JAX glue) ------------

def _make_layer(key, K, Cin, Cout, with_bn, eps=1e-5):
    ks = jax.random.split(key, 6)
    w = 0.1 * jax.random.normal(ks[0], (K, K, Cin, Cout), jnp.float32)  # HWIO
    b = 0.1 * jax.random.normal(ks[1], (Cout,), jnp.float32)
    if with_bn:
        gamma = 1.0 + 0.1 * jax.random.normal(ks[2], (Cout,), jnp.float32)
        beta = 0.1 * jax.random.normal(ks[3], (Cout,), jnp.float32)
        mean = 0.1 * jax.random.normal(ks[4], (Cout,), jnp.float32)
        var = 0.5 + jax.random.uniform(ks[5], (Cout,), jnp.float32)
        s = gamma / jnp.sqrt(var + eps)
        w = w * s                       # fold BN scale into conv weight
        b = s * b + beta - s * mean     # fold BN shift into conv bias
    return w, b


def make_params(key, H, W, nb):
    k1, k2, k3, k4 = jax.random.split(key, 4)
    layers = [
        _make_layer(k1, 5, 1, 32, with_bn=True),
        _make_layer(k2, 3, 32, 16, with_bn=True),
        _make_layer(k3, 3, 16, 8, with_bn=True),
        _make_layer(k4, 1, 8, 1, with_bn=False),
    ]

    def pack_w(w):  # (K,K,Cin,Cout) -> (Cout, K*K*Cin), row order (kh, kw, ci)
        K, _, Cin, Cout = w.shape
        return jnp.transpose(w, (3, 0, 1, 2)).reshape(Cout, K * K * Cin)

    L = H * W
    (w1, b1), (w2, b2), (w3, b3), (w4, b4) = layers
    kernel_params = (
        pack_w(w1),                                           # (32, 25)
        jnp.broadcast_to(b1.reshape(32, 1), (32, L)),         # conv1 bias, pre-broadcast
        jnp.concatenate([pack_w(w2), b2.reshape(16, 1)], 1),  # (16, 289) taps|bias
        jnp.concatenate([pack_w(w3), b3.reshape(8, 1)], 1),   # (8, 145)  taps|bias
        pack_w(w4),                                           # (1, 8)
        jnp.broadcast_to(b4.reshape(1, 1), (1, nb * L)),      # conv4 bias, pre-broadcast
    )
    return layers, kernel_params


def ref_forward(x_nchw, layers):
    """Pure-JAX reference (lax.conv, NHWC) for validation."""
    y = jnp.transpose(x_nchw, (0, 2, 3, 1)).astype(jnp.float32)
    for i, (w, b) in enumerate(layers):
        y = lax.conv_general_dilated(
            y, w, window_strides=(1, 1), padding="SAME",
            dimension_numbers=("NHWC", "HWIO", "NHWC"))
        y = y + b.reshape(1, 1, 1, -1)
        if i < 3:
            y = jnp.maximum(y, 0.0)
    return jnp.transpose(y, (0, 3, 1, 2))


if __name__ == "__main__":
    key = jax.random.PRNGKey(0)
    k_x, k_p = jax.random.split(key)

    N, H, W = 4, 16, 16        # H*W = 256: lane-dense output stores
    NB = 2                     # images per grid step; grid = (2,) stays >= 2
    x = jax.random.normal(k_x, (N, 1, H, W), jnp.float32)  # NCHW like PyTorch

    layers, kernel_params = make_params(k_p, H, W, NB)

    out = jax.block_until_ready(maxhead_forward(x, kernel_params, nb=NB))
    ref = jax.block_until_ready(ref_forward(x, layers))

    assert out.shape == (N, 1, H, W)
    err = jnp.max(jnp.abs(out - ref))
    assert jnp.allclose(out, ref, atol=1e-4, rtol=1e-4), f"max abs err {err}"

    print("KERNEL_OK")
</pallas_src>

<mosaic_0001>
module attributes {stable_mosaic.version = 11 : i64} {
  func.func @maxhead_kernel(%arg0: i32, %arg1: memref<1x1x512xf32, #tpu.memory_space<vmem>>, %arg2: memref<32x25xf32, #tpu.memory_space<vmem>>, %arg3: memref<32x256xf32, #tpu.memory_space<vmem>>, %arg4: memref<16x289xf32, #tpu.memory_space<vmem>>, %arg5: memref<8x145xf32, #tpu.memory_space<vmem>>, %arg6: memref<1x8xf32, #tpu.memory_space<vmem>>, %arg7: memref<1x512xf32, #tpu.memory_space<vmem>>, %arg8: memref<1x1x512xf32, #tpu.memory_space<vmem>>, %arg9: memref<2x1x418xf32, #tpu.memory_space<vmem>>, %arg10: memref<2x32x401xf32, #tpu.memory_space<vmem>>, %arg11: memref<2x16x401xf32, #tpu.memory_space<vmem>>, %arg12: memref<289x512xf32, #tpu.memory_space<vmem>>) attributes {dimension_semantics = [#tpu.dimension_semantics<parallel>], iteration_bounds = array<i64: 2>, scalar_prefetch = 0 : i64, scratch_operands = 4 : i64, tpu.core_type = #tpu.core_type<tc>, window_params = [{transform_indices = @transform_0, window_bounds = array<i64: 1, 1, 512>}, {pipeline_mode = #tpu.pipeline_mode<synchronous>, transform_indices = @transform_1, window_bounds = array<i64: 32, 25>}, {pipeline_mode = #tpu.pipeline_mode<synchronous>, transform_indices = @transform_2, window_bounds = array<i64: 32, 256>}, {pipeline_mode = #tpu.pipeline_mode<synchronous>, transform_indices = @transform_3, window_bounds = array<i64: 16, 289>}, {pipeline_mode = #tpu.pipeline_mode<synchronous>, transform_indices = @transform_4, window_bounds = array<i64: 8, 145>}, {pipeline_mode = #tpu.pipeline_mode<synchronous>, transform_indices = @transform_5, window_bounds = array<i64: 1, 8>}, {pipeline_mode = #tpu.pipeline_mode<synchronous>, transform_indices = @transform_6, window_bounds = array<i64: 1, 512>}, {transform_indices = @transform_7, window_bounds = array<i64: 1, 1, 512>}]} {
    %0 = tpu.iota {dimensions = array<i32: 1>} : vector<1x256xi32>
    %c16_i32 = arith.constant 16 : i32
    %c0_i32 = arith.constant 0 : i32
    %1 = arith.cmpi eq, %c16_i32, %c0_i32 : i32
    %c1_i32 = arith.constant 1 : i32
    %2 = arith.select %1, %c1_i32, %c16_i32 : i32
    %3 = vector.broadcast %2 : i32 to vector<1x256xi32>
    %4 = arith.remsi %0, %3 : vector<1x256xi32>
    %c0_i32_0 = arith.constant 0 : i32
    %5 = vector.broadcast %c0_i32_0 : i32 to vector<1x256xi32>
    %6 = arith.cmpi ne, %4, %5 : vector<1x256xi32>
    %c0_i32_1 = arith.constant 0 : i32
    %7 = vector.broadcast %c0_i32_1 : i32 to vector<1x256xi32>
    %8 = arith.cmpi slt, %4, %7 : vector<1x256xi32>
    %c0_i32_2 = arith.constant 0 : i32
    %9 = arith.cmpi slt, %2, %c0_i32_2 : i32
    %10 = vector.broadcast %9 : i1 to vector<1x256xi1>
    %11 = vector.broadcast %10 : vector<1x256xi1> to vector<1x256xi1>
    %12 = arith.xori %8, %11 : vector<1x256xi1>
    %13 = arith.andi %12, %6 : vector<1x256xi1>
    %14 = vector.broadcast %2 : i32 to vector<1x256xi32>
    %15 = arith.addi %4, %14 : vector<1x256xi32>
    %16 = arith.select %13, %15, %4 : vector<1x256xi1>, vector<1x256xi32>
    %c2_i32 = arith.constant 2 : i32
    %17 = vector.broadcast %c2_i32 : i32 to vector<1x256xi32>
    %18 = arith.cmpi sge, %16, %17 : vector<1x256xi32>
    %c1_i32_3 = arith.constant 1 : i32
    %19 = vector.broadcast %c1_i32_3 : i32 to vector<1x256xi32>
    %20 = arith.cmpi sge, %16, %19 : vector<1x256xi32>
    %c15_i32 = arith.constant 15 : i32
    %21 = vector.broadcast %c15_i32 : i32 to vector<1x256xi32>
    %22 = arith.cmpi slt, %16, %21 : vector<1x256xi32>
    %c14_i32 = arith.constant 14 : i32
    %23 = vector.broadcast %c14_i32 : i32 to vector<1x256xi32>
    %24 = arith.cmpi slt, %16, %23 : vector<1x256xi32>
    %cst = arith.constant 0.000000e+00 : f32
    %25 = vector.broadcast %cst : f32 to vector<1x128xf32>
    %c0 = arith.constant 0 : index
    %c0_4 = arith.constant 0 : index
    %c0_5 = arith.constant 0 : index
    %26 = vector.load %arg9[%c0, %c0_4, %c0_5] : memref<2x1x418xf32, #tpu.memory_space<vmem>>, vector<1x1x128xf32>
    %27 = vector.shape_cast %26 : vector<1x1x128xf32> to vector<1x128xf32>
    %28 = vector.shape_cast %25 : vector<1x128xf32> to vector<1x1x128xf32>
    tpu.vector_store %arg9[%c0, %c0_4, %c0_5], %28 {strides = array<i32>} : memref<2x1x418xf32, #tpu.memory_space<vmem>>, vector<1x1x128xf32>,
    %cst_6 = arith.constant 0.000000e+00 : f32
    %29 = vector.broadcast %cst_6 : f32 to vector<1x34xf32>
    %c0_7 = arith.constant 0 : index
    %c0_8 = arith.constant 0 : index
    %c384 = arith.constant 384 : index
    %30 = vector.load %arg9[%c0_7, %c0_8, %c384] : memref<2x1x418xf32, #tpu.memory_space<vmem>>, vector<1x1x34xf32>
    %31 = vector.shape_cast %30 : vector<1x1x34xf32> to vector<1x34xf32>
    %32 = vector.shape_cast %29 : vector<1x34xf32> to vector<1x1x34xf32>
    tpu.vector_store %arg9[%c0_7, %c0_8, %c384], %32 {strides = array<i32>} : memref<2x1x418xf32, #tpu.memory_space<vmem>>, vector<1x1x34xf32>,
    %cst_9 = arith.constant 0.000000e+00 : f32
    %33 = vector.broadcast %cst_9 : f32 to vector<32x128xf32>
    %c0_10 = arith.constant 0 : index
    %c0_11 = arith.constant 0 : index
    %c0_12 = arith.constant 0 : index
    %34 = vector.load %arg10[%c0_10, %c0_11, %c0_12] : memref<2x32x401xf32, #tpu.memory_space<vmem>>, vector<1x32x128xf32>
    %35 = vector.shape_cast %34 : vector<1x32x128xf32> to vector<32x128xf32>
    %36 = vector.shape_cast %33 : vector<32x128xf32> to vector<1x32x128xf32>
    tpu.vector_store %arg10[%c0_10, %c0_11, %c0_12], %36 {strides = array<i32>} : memref<2x32x401xf32, #tpu.memory_space<vmem>>, vector<1x32x128xf32>,
    %cst_13 = arith.constant 0.000000e+00 : f32
    %37 = vector.broadcast %cst_13 : f32 to vector<32x17xf32>
    %c0_14 = arith.constant 0 : index
    %c0_15 = arith.constant 0 : index
    %c384_16 = arith.constant 384 : index
    %38 = vector.load %arg10[%c0_14, %c0_15, %c384_16] : memref<2x32x401xf32, #tpu.memory_space<vmem>>, vector<1x32x17xf32>
    %39 = vector.shape_cast %38 : vector<1x32x17xf32> to vector<32x17xf32>
    %40 = vector.shape_cast %37 : vector<32x17xf32> to vector<1x32x17xf32>
    tpu.vector_store %arg10[%c0_14, %c0_15, %c384_16], %40 {strides = array<i32>} : memref<2x32x401xf32, #tpu.memory_space<vmem>>, vector<1x32x17xf32>,
    %cst_17 = arith.constant 0.000000e+00 : f32
    %41 = vector.broadcast %cst_17 : f32 to vector<16x128xf32>
    %c0_18 = arith.constant 0 : index
    %c0_19 = arith.constant 0 : index
    %c0_20 = arith.constant 0 : index
    %42 = vector.load %arg11[%c0_18, %c0_19, %c0_20] : memref<2x16x401xf32, #tpu.memory_space<vmem>>, vector<1x16x128xf32>
    %43 = vector.shape_cast %42 : vector<1x16x128xf32> to vector<16x128xf32>
    %44 = vector.shape_cast %41 : vector<16x128xf32> to vector<1x16x128xf32>
    tpu.vector_store %arg11[%c0_18, %c0_19, %c0_20], %44 {strides = array<i32>} : memref<2x16x401xf32, #tpu.memory_space<vmem>>, vector<1x16x128xf32>,
    %cst_21 = arith.constant 0.000000e+00 : f32
    %45 = vector.broadcast %cst_21 : f32 to vector<16x17xf32>
    %c0_22 = arith.constant 0 : index
    %c0_23 = arith.constant 0 : index
    %c384_24 = arith.constant 384 : index
    %46 = vector.load %arg11[%c0_22, %c0_23, %c384_24] : memref<2x16x401xf32, #tpu.memory_space<vmem>>, vector<1x16x17xf32>
    %47 = vector.shape_cast %46 : vector<1x16x17xf32> to vector<16x17xf32>
    %48 = vector.shape_cast %45 : vector<16x17xf32> to vector<1x16x17xf32>
    tpu.vector_store %arg11[%c0_22, %c0_23, %c384_24], %48 {strides = array<i32>} : memref<2x16x401xf32, #tpu.memory_space<vmem>>, vector<1x16x17xf32>,
    %cst_25 = arith.constant 0.000000e+00 : f32
    %49 = vector.broadcast %cst_25 : f32 to vector<1x128xf32>
    %c1 = arith.constant 1 : index
    %c0_26 = arith.constant 0 : index
    %c0_27 = arith.constant 0 : index
    %50 = vector.load %arg9[%c1, %c0_26, %c0_27] : memref<2x1x418xf32, #tpu.memory_space<vmem>>, vector<1x1x128xf32>
    %51 = vector.shape_cast %50 : vector<1x1x128xf32> to vector<1x128xf32>
    %52 = vector.shape_cast %49 : vector<1x128xf32> to vector<1x1x128xf32>
    tpu.vector_store %arg9[%c1, %c0_26, %c0_27], %52 {strides = array<i32>} : memref<2x1x418xf32, #tpu.memory_space<vmem>>, vector<1x1x128xf32>,
    %cst_28 = arith.constant 0.000000e+00 : f32
    %53 = vector.broadcast %cst_28 : f32 to vector<1x34xf32>
    %c1_29 = arith.constant 1 : index
    %c0_30 = arith.constant 0 : index
    %c384_31 = arith.constant 384 : index
    %54 = vector.load %arg9[%c1_29, %c0_30, %c384_31] : memref<2x1x418xf32, #tpu.memory_space<vmem>>, vector<1x1x34xf32>
    %55 = vector.shape_cast %54 : vector<1x1x34xf32> to vector<1x34xf32>
    %56 = vector.shape_cast %53 : vector<1x34xf32> to vector<1x1x34xf32>
    tpu.vector_store %arg9[%c1_29, %c0_30, %c384_31], %56 {strides = array<i32>} : memref<2x1x418xf32, #tpu.memory_space<vmem>>, vector<1x1x34xf32>,
    %cst_32 = arith.constant 0.000000e+00 : f32
    %57 = vector.broadcast %cst_32 : f32 to vector<32x128xf32>
    %c1_33 = arith.constant 1 : index
    %c0_34 = arith.constant 0 : index
    %c0_35 = arith.constant 0 : index
    %58 = vector.load %arg10[%c1_33, %c0_34, %c0_35] : memref<2x32x401xf32, #tpu.memory_space<vmem>>, vector<1x32x128xf32>
    %59 = vector.shape_cast %58 : vector<1x32x128xf32> to vector<32x128xf32>
    %60 = vector.shape_cast %57 : vector<32x128xf32> to vector<1x32x128xf32>
    tpu.vector_store %arg10[%c1_33, %c0_34, %c0_35], %60 {strides = array<i32>} : memref<2x32x401xf32, #tpu.memory_space<vmem>>, vector<1x32x128xf32>,
    %cst_36 = arith.constant 0.000000e+00 : f32
    %61 = vector.broadcast %cst_36 : f32 to vector<32x17xf32>
    %c1_37 = arith.constant 1 : index
    %c0_38 = arith.constant 0 : index
    %c384_39 = arith.constant 384 : index
    %62 = vector.load %arg10[%c1_37, %c0_38, %c384_39] : memref<2x32x401xf32, #tpu.memory_space<vmem>>, vector<1x32x17xf32>
    %63 = vector.shape_cast %62 : vector<1x32x17xf32> to vector<32x17xf32>
    %64 = vector.shape_cast %61 : vector<32x17xf32> to vector<1x32x17xf32>
    tpu.vector_store %arg10[%c1_37, %c0_38, %c384_39], %64 {strides = array<i32>} : memref<2x32x401xf32, #tpu.memory_space<vmem>>, vector<1x32x17xf32>,
    %cst_40 = arith.constant 0.000000e+00 : f32
    %65 = vector.broadcast %cst_40 : f32 to vector<16x128xf32>
    %c1_41 = arith.constant 1 : index
    %c0_42 = arith.constant 0 : index
    %c0_43 = arith.constant 0 : index
    %66 = vector.load %arg11[%c1_41, %c0_42, %c0_43] : memref<2x16x401xf32, #tpu.memory_space<vmem>>, vector<1x16x128xf32>
    %67 = vector.shape_cast %66 : vector<1x16x128xf32> to vector<16x128xf32>
    %68 = vector.shape_cast %65 : vector<16x128xf32> to vector<1x16x128xf32>
    tpu.vector_store %arg11[%c1_41, %c0_42, %c0_43], %68 {strides = array<i32>} : memref<2x16x401xf32, #tpu.memory_space<vmem>>, vector<1x16x128xf32>,
    %cst_44 = arith.constant 0.000000e+00 : f32
    %69 = vector.broadcast %cst_44 : f32 to vector<16x17xf32>
    %c1_45 = arith.constant 1 : index
    %c0_46 = arith.constant 0 : index
    %c384_47 = arith.constant 384 : index
    %70 = vector.load %arg11[%c1_45, %c0_46, %c384_47] : memref<2x16x401xf32, #tpu.memory_space<vmem>>, vector<1x16x17xf32>
    %71 = vector.shape_cast %70 : vector<1x16x17xf32> to vector<16x17xf32>
    %72 = vector.shape_cast %69 : vector<16x17xf32> to vector<1x16x17xf32>
    tpu.vector_store %arg11[%c1_45, %c0_46, %c384_47], %72 {strides = array<i32>} : memref<2x16x401xf32, #tpu.memory_space<vmem>>, vector<1x16x17xf32>,
    %c0_48 = arith.constant 0 : index
    %c0_49 = arith.constant 0 : index
    %c0_50 = arith.constant 0 : index
    %73 = vector.load %arg1[%c0_48, %c0_49, %c0_50] : memref<1x1x512xf32, #tpu.memory_space<vmem>>, vector<1x1x512xf32>
    %74 = vector.shape_cast %73 : vector<1x1x512xf32> to vector<1x512xf32>
    %75 = vector.extract_strided_slice %74 {offsets = [0, 0], sizes = [1, 256], strides = [1, 1]} : vector<1x512xf32> to vector<1x256xf32>
    %c0_51 = arith.constant 0 : index
    %c0_52 = arith.constant 0 : index
    %c128 = arith.constant 128 : index
    %76 = vector.load %arg9[%c0_51, %c0_52, %c128] : memref<2x1x418xf32, #tpu.memory_space<vmem>>, vector<1x1x256xf32>
    %77 = vector.shape_cast %76 : vector<1x1x256xf32> to vector<1x256xf32>
    %78 = vector.shape_cast %75 : vector<1x256xf32> to vector<1x1x256xf32>
    tpu.vector_store %arg9[%c0_51, %c0_52, %c128], %78 {strides = array<i32>} : memref<2x1x418xf32, #tpu.memory_space<vmem>>, vector<1x1x256xf32>,
    %79 = vector.extract_strided_slice %74 {offsets = [0, 256], sizes = [1, 256], strides = [1, 1]} : vector<1x512xf32> to vector<1x256xf32>
    %c1_53 = arith.constant 1 : index
    %c0_54 = arith.constant 0 : index
    %c128_55 = arith.constant 128 : index
    %80 = vector.load %arg9[%c1_53, %c0_54, %c128_55] : memref<2x1x418xf32, #tpu.memory_space<vmem>>, vector<1x1x256xf32>
    %81 = vector.shape_cast %80 : vector<1x1x256xf32> to vector<1x256xf32>
    %82 = vector.shape_cast %79 : vector<1x256xf32> to vector<1x1x256xf32>
    tpu.vector_store %arg9[%c1_53, %c0_54, %c128_55], %82 {strides = array<i32>} : memref<2x1x418xf32, #tpu.memory_space<vmem>>, vector<1x1x256xf32>,
    %c0_56 = arith.constant 0 : index
    %c0_57 = arith.constant 0 : index
    %83 = vector.load %arg2[%c0_56, %c0_57] : memref<32x25xf32, #tpu.memory_space<vmem>>, vector<32x25xf32>
    %c0_58 = arith.constant 0 : index
    %c0_59 = arith.constant 0 : index
    %84 = vector.load %arg3[%c0_58, %c0_59] : memref<32x256xf32, #tpu.memory_space<vmem>>, vector<32x256xf32>
    %c0_60 = arith.constant 0 : index
    %c0_61 = arith.constant 0 : index
    %c94 = arith.constant 94 : index
    %85 = vector.load %arg9[%c0_60, %c0_61, %c94] : memref<2x1x418xf32, #tpu.memory_space<vmem>>, vector<1x1x256xf32>
    %86 = vector.shape_cast %85 : vector<1x1x256xf32> to vector<1x256xf32>
    %cst_62 = arith.constant 0.000000e+00 : f32
    %87 = vector.broadcast %cst_62 : f32 to vector<1x256xf32>
    %88 = arith.select %18, %86, %87 : vector<1x256xi1>, vector<1x256xf32>
    %89 = vector.extract_strided_slice %83 {offsets = [0, 0], sizes = [32, 1], strides = [1, 1]} : vector<32x25xf32> to vector<32x1xf32>
    %90 = vector.broadcast %89 : vector<32x1xf32> to vector<32x256xf32>
    %91 = vector.broadcast %88 : vector<1x256xf32> to vector<32x256xf32>
    %92 = arith.mulf %90, %91 : vector<32x256xf32>
    %93 = arith.addf %84, %92 : vector<32x256xf32>
    %c0_63 = arith.constant 0 : index
    %c0_64 = arith.constant 0 : index
    %c95 = arith.constant 95 : index
    %94 = vector.load %arg9[%c0_63, %c0_64, %c95] : memref<2x1x418xf32, #tpu.memory_space<vmem>>, vector<1x1x256xf32>
    %95 = vector.shape_cast %94 : vector<1x1x256xf32> to vector<1x256xf32>
    %cst_65 = arith.constant 0.000000e+00 : f32
    %96 = vector.broadcast %cst_65 : f32 to vector<1x256xf32>
    %97 = arith.select %20, %95, %96 : vector<1x256xi1>, vector<1x256xf32>
    %98 = vector.extract_strided_slice %83 {offsets = [0, 1], sizes = [32, 1], strides = [1, 1]} : vector<32x25xf32> to vector<32x1xf32>
    %99 = vector.broadcast %98 : vector<32x1xf32> to vector<32x256xf32>
    %100 = vector.broadcast %97 : vector<1x256xf32> to vector<32x256xf32>
    %101 = arith.mulf %99, %100 : vector<32x256xf32>
    %102 = arith.addf %93, %101 : vector<32x256xf32>
    %c0_66 = arith.constant 0 : index
    %c0_67 = arith.constant 0 : index
    %c96 = arith.constant 96 : index
    %103 = vector.load %arg9[%c0_66, %c0_67, %c96] : memref<2x1x418xf32, #tpu.memory_space<vmem>>, vector<1x1x256xf32>
    %104 = vector.shape_cast %103 : vector<1x1x256xf32> to vector<1x256xf32>
    %105 = vector.extract_strided_slice %83 {offsets = [0, 2], sizes = [32, 1], strides = [1, 1]} : vector<32x25xf32> to vector<32x1xf32>
    %106 = vector.broadcast %105 : vector<32x1xf32> to vector<32x256xf32>
    %107 = vector.broadcast %104 : vector<1x256xf32> to vector<32x256xf32>
    %108 = arith.mulf %106, %107 : vector<32x256xf32>
    %109 = arith.addf %102, %108 : vector<32x256xf32>
    %c0_68 = arith.constant 0 : index
    %c0_69 = arith.constant 0 : index
    %c97 = arith.constant 97 : index
    %110 = vector.load %arg9[%c0_68, %c0_69, %c97] : memref<2x1x418xf32, #tpu.memory_space<vmem>>, vector<1x1x256xf32>
    %111 = vector.shape_cast %110 : vector<1x1x256xf32> to vector<1x256xf32>
    %cst_70 = arith.constant 0.000000e+00 : f32
    %112 = vector.broadcast %cst_70 : f32 to vector<1x256xf32>
    %113 = arith.select %22, %111, %112 : vector<1x256xi1>, vector<1x256xf32>
    %114 = vector.extract_strided_slice %83 {offsets = [0, 3], sizes = [32, 1], strides = [1, 1]} : vector<32x25xf32> to vector<32x1xf32>
    %115 = vector.broadcast %114 : vector<32x1xf32> to vector<32x256xf32>
    %116 = vector.broadcast %113 : vector<1x256xf32> to vector<32x256xf32>
    %117 = arith.mulf %115, %116 : vector<32x256xf32>
    %118 = arith.addf %109, %117 : vector<32x256xf32>
    %c0_71 = arith.constant 0 : index
    %c0_72 = arith.constant 0 : index
    %c98 = arith.constant 98 : index
    %119 = vector.load %arg9[%c0_71, %c0_72, %c98] : memref<2x1x418xf32, #tpu.memory_space<vmem>>, vector<1x1x256xf32>
    %120 = vector.shape_cast %119 : vector<1x1x256xf32> to vector<1x256xf32>
    %cst_73 = arith.constant 0.000000e+00 : f32
    %121 = vector.broadcast %cst_73 : f32 to vector<1x256xf32>
    %122 = arith.select %24, %120, %121 : vector<1x256xi1>, vector<1x256xf32>
    %123 = vector.extract_strided_slice %83 {offsets = [0, 4], sizes = [32, 1], strides = [1, 1]} : vector<32x25xf32> to vector<32x1xf32>
    %124 = vector.broadcast %123 : vector<32x1xf32> to vector<32x256xf32>
    %125 = vector.broadcast %122 : vector<1x256xf32> to vector<32x256xf32>
    %126 = arith.mulf %124, %125 : vector<32x256xf32>
    %127 = arith.addf %118, %126 : vector<32x256xf32>
    %c0_74 = arith.constant 0 : index
    %c0_75 = arith.constant 0 : index
    %c110 = arith.constant 110 : index
    %128 = vector.load %arg9[%c0_74, %c0_75, %c110] : memref<2x1x418xf32, #tpu.memory_space<vmem>>, vector<1x1x256xf32>
    %129 = vector.shape_cast %128 : vector<1x1x256xf32> to vector<1x256xf32>
    %cst_76 = arith.constant 0.000000e+00 : f32
    %130 = vector.broadcast %cst_76 : f32 to vector<1x256xf32>
    %131 = arith.select %18, %129, %130 : vector<1x256xi1>, vector<1x256xf32>
    %132 = vector.extract_strided_slice %83 {offsets = [0, 5], sizes = [32, 1], strides = [1, 1]} : vector<32x25xf32> to vector<32x1xf32>
    %133 = vector.broadcast %132 : vector<32x1xf32> to vector<32x256xf32>
    %134 = vector.broadcast %131 : vector<1x256xf32> to vector<32x256xf32>
    %135 = arith.mulf %133, %134 : vector<32x256xf32>
    %136 = arith.addf %127, %135 : vector<32x256xf32>
    %c0_77 = arith.constant 0 : index
    %c0_78 = arith.constant 0 : index
    %c111 = arith.constant 111 : index
    %137 = vector.load %arg9[%c0_77, %c0_78, %c111] : memref<2x1x418xf32, #tpu.memory_space<vmem>>, vector<1x1x256xf32>
    %138 = vector.shape_cast %137 : vector<1x1x256xf32> to vector<1x256xf32>
    %cst_79 = arith.constant 0.000000e+00 : f32
    %139 = vector.broadcast %cst_79 : f32 to vector<1x256xf32>
    %140 = arith.select %20, %138, %139 : vector<1x256xi1>, vector<1x256xf32>
    %141 = vector.extract_strided_slice %83 {offsets = [0, 6], sizes = [32, 1], strides = [1, 1]} : vector<32x25xf32> to vector<32x1xf32>
    %142 = vector.broadcast %141 : vector<32x1xf32> to vector<32x256xf32>
    %143 = vector.broadcast %140 : vector<1x256xf32> to vector<32x256xf32>
    %144 = arith.mulf %142, %143 : vector<32x256xf32>
    %145 = arith.addf %136, %144 : vector<32x256xf32>
    %c0_80 = arith.constant 0 : index
    %c0_81 = arith.constant 0 : index
    %c112 = arith.constant 112 : index
    %146 = vector.load %arg9[%c0_80, %c0_81, %c112] : memref<2x1x418xf32, #tpu.memory_space<vmem>>, vector<1x1x256xf32>
    %147 = vector.shape_cast %146 : vector<1x1x256xf32> to vector<1x256xf32>
    %148 = vector.extract_strided_slice %83 {offsets = [0, 7], sizes = [32, 1], strides = [1, 1]} : vector<32x25xf32> to vector<32x1xf32>
    %149 = vector.broadcast %148 : vector<32x1xf32> to vector<32x256xf32>
    %150 = vector.broadcast %147 : vector<1x256xf32> to vector<32x256xf32>
    %151 = arith.mulf %149, %150 : vector<32x256xf32>
    %152 = arith.addf %145, %151 : vector<32x256xf32>
    %c0_82 = arith.constant 0 : index
    %c0_83 = arith.constant 0 : index
    %c113 = arith.constant 113 : index
    %153 = vector.load %arg9[%c0_82, %c0_83, %c113] : memref<2x1x418xf32, #tpu.memory_space<vmem>>, vector<1x1x256xf32>
    %154 = vector.shape_cast %153 : vector<1x1x256xf32> to vector<1x256xf32>
    %cst_84 = arith.constant 0.000000e+00 : f32
    %155 = vector.broadcast %cst_84 : f32 to vector<1x256xf32>
    %156 = arith.select %22, %154, %155 : vector<1x256xi1>, vector<1x256xf32>
    %157 = vector.extract_strided_slice %83 {offsets = [0, 8], sizes = [32, 1], strides = [1, 1]} : vector<32x25xf32> to vector<32x1xf32>
    %158 = vector.broadcast %157 : vector<32x1xf32> to vector<32x256xf32>
    %159 = vector.broadcast %156 : vector<1x256xf32> to vector<32x256xf32>
    %160 = arith.mulf %158, %159 : vector<32x256xf32>
    %161 = arith.addf %152, %160 : vector<32x256xf32>
    %c0_85 = arith.constant 0 : index
    %c0_86 = arith.constant 0 : index
    %c114 = arith.constant 114 : index
    %162 = vector.load %arg9[%c0_85, %c0_86, %c114] : memref<2x1x418xf32, #tpu.memory_space<vmem>>, vector<1x1x256xf32>
    %163 = vector.shape_cast %162 : vector<1x1x256xf32> to vector<1x256xf32>
    %cst_87 = arith.constant 0.000000e+00 : f32
    %164 = vector.broadcast %cst_87 : f32 to vector<1x256xf32>
    %165 = arith.select %24, %163, %164 : vector<1x256xi1>, vector<1x256xf32>
    %166 = vector.extract_strided_slice %83 {offsets = [0, 9], sizes = [32, 1], strides = [1, 1]} : vector<32x25xf32> to vector<32x1xf32>
    %167 = vector.broadcast %166 : vector<32x1xf32> to vector<32x256xf32>
    %168 = vector.broadcast %165 : vector<1x256xf32> to vector<32x256xf32>
    %169 = arith.mulf %167, %168 : vector<32x256xf32>
    %170 = arith.addf %161, %169 : vector<32x256xf32>
    %c0_88 = arith.constant 0 : index
    %c0_89 = arith.constant 0 : index
    %c126 = arith.constant 126 : index
    %171 = vector.load %arg9[%c0_88, %c0_89, %c126] : memref<2x1x418xf32, #tpu.memory_space<vmem>>, vector<1x1x256xf32>
    %172 = vector.shape_cast %171 : vector<1x1x256xf32> to vector<1x256xf32>
    %cst_90 = arith.constant 0.000000e+00 : f32
    %173 = vector.broadcast %cst_90 : f32 to vector<1x256xf32>
    %174 = arith.select %18, %172, %173 : vector<1x256xi1>, vector<1x256xf32>
    %175 = vector.extract_strided_slice %83 {offsets = [0, 10], sizes = [32, 1], strides = [1, 1]} : vector<32x25xf32> to vector<32x1xf32>
    %176 = vector.broadcast %175 : vector<32x1xf32> to vector<32x256xf32>
    %177 = vector.broadcast %174 : vector<1x256xf32> to vector<32x256xf32>
    %178 = arith.mulf %176, %177 : vector<32x256xf32>
    %179 = arith.addf %170, %178 : vector<32x256xf32>
    %c0_91 = arith.constant 0 : index
    %c0_92 = arith.constant 0 : index
    %c127 = arith.constant 127 : index
    %180 = vector.load %arg9[%c0_91, %c0_92, %c127] : memref<2x1x418xf32, #tpu.memory_space<vmem>>, vector<1x1x256xf32>
    %181 = vector.shape_cast %180 : vector<1x1x256xf32> to vector<1x256xf32>
    %cst_93 = arith.constant 0.000000e+00 : f32
    %182 = vector.broadcast %cst_93 : f32 to vector<1x256xf32>
    %183 = arith.select %20, %181, %182 : vector<1x256xi1>, vector<1x256xf32>
    %184 = vector.extract_strided_slice %83 {offsets = [0, 11], sizes = [32, 1], strides = [1, 1]} : vector<32x25xf32> to vector<32x1xf32>
    %185 = vector.broadcast %184 : vector<32x1xf32> to vector<32x256xf32>
    %186 = vector.broadcast %183 : vector<1x256xf32> to vector<32x256xf32>
    %187 = arith.mulf %185, %186 : vector<32x256xf32>
    %188 = arith.addf %179, %187 : vector<32x256xf32>
    %c0_94 = arith.constant 0 : index
    %c0_95 = arith.constant 0 : index
    %c128_96 = arith.constant 128 : index
    %189 = vector.load %arg9[%c0_94, %c0_95, %c128_96] : memref<2x1x418xf32, #tpu.memory_space<vmem>>, vector<1x1x256xf32>
    %190 = vector.shape_cast %189 : vector<1x1x256xf32> to vector<1x256xf32>
    %191 = vector.extract_strided_slice %83 {offsets = [0, 12], sizes = [32, 1], strides = [1, 1]} : vector<32x25xf32> to vector<32x1xf32>
    %192 = vector.broadcast %191 : vector<32x1xf32> to vector<32x256xf32>
    %193 = vector.broadcast %190 : vector<1x256xf32> to vector<32x256xf32>
    %194 = arith.mulf %192, %193 : vector<32x256xf32>
    %195 = arith.addf %188, %194 : vector<32x256xf32>
    %c0_97 = arith.constant 0 : index
    %c0_98 = arith.constant 0 : index
    %c129 = arith.constant 129 : index
    %196 = vector.load %arg9[%c0_97, %c0_98, %c129] : memref<2x1x418xf32, #tpu.memory_space<vmem>>, vector<1x1x256xf32>
    %197 = vector.shape_cast %196 : vector<1x1x256xf32> to vector<1x256xf32>
    %cst_99 = arith.constant 0.000000e+00 : f32
    %198 = vector.broadcast %cst_99 : f32 to vector<1x256xf32>
    %199 = arith.select %22, %197, %198 : vector<1x256xi1>, vector<1x256xf32>
    %200 = vector.extract_strided_slice %83 {offsets = [0, 13], sizes = [32, 1], strides = [1, 1]} : vector<32x25xf32> to vector<32x1xf32>
    %201 = vector.broadcast %200 : vector<32x1xf32> to vector<32x256xf32>
    %202 = vector.broadcast %199 : vector<1x256xf32> to vector<32x256xf32>
    %203 = arith.mulf %201, %202 : vector<32x256xf32>
    %204 = arith.addf %195, %203 : vector<32x256xf32>
    %c0_100 = arith.constant 0 : index
    %c0_101 = arith.constant 0 : index
    %c130 = arith.constant 130 : index
    %205 = vector.load %arg9[%c0_100, %c0_101, %c130] : memref<2x1x418xf32, #tpu.memory_space<vmem>>, vector<1x1x256xf32>
    %206 = vector.shape_cast %205 : vector<1x1x256xf32> to vector<1x256xf32>
    %cst_102 = arith.constant 0.000000e+00 : f32
    %207 = vector.broadcast %cst_102 : f32 to vector<1x256xf32>
    %208 = arith.select %24, %206, %207 : vector<1x256xi1>, vector<1x256xf32>
    %209 = vector.extract_strided_slice %83 {offsets = [0, 14], sizes = [32, 1], strides = [1, 1]} : vector<32x25xf32> to vector<32x1xf32>
    %210 = vector.broadcast %209 : vector<32x1xf32> to vector<32x256xf32>
    %211 = vector.broadcast %208 : vector<1x256xf32> to vector<32x256xf32>
    %212 = arith.mulf %210, %211 : vector<32x256xf32>
    %213 = arith.addf %204, %212 : vector<32x256xf32>
    %c0_103 = arith.constant 0 : index
    %c0_104 = arith.constant 0 : index
    %c142 = arith.constant 142 : index
    %214 = vector.load %arg9[%c0_103, %c0_104, %c142] : memref<2x1x418xf32, #tpu.memory_space<vmem>>, vector<1x1x256xf32>
    %215 = vector.shape_cast %214 : vector<1x1x256xf32> to vector<1x256xf32>
    %cst_105 = arith.constant 0.000000e+00 : f32
    %216 = vector.broadcast %cst_105 : f32 to vector<1x256xf32>
    %217 = arith.select %18, %215, %216 : vector<1x256xi1>, vector<1x256xf32>
    %218 = vector.extract_strided_slice %83 {offsets = [0, 15], sizes = [32, 1], strides = [1, 1]} : vector<32x25xf32> to vector<32x1xf32>
    %219 = vector.broadcast %218 : vector<32x1xf32> to vector<32x256xf32>
    %220 = vector.broadcast %217 : vector<1x256xf32> to vector<32x256xf32>
    %221 = arith.mulf %219, %220 : vector<32x256xf32>
    %222 = arith.addf %213, %221 : vector<32x256xf32>
    %c0_106 = arith.constant 0 : index
    %c0_107 = arith.constant 0 : index
    %c143 = arith.constant 143 : index
    %223 = vector.load %arg9[%c0_106, %c0_107, %c143] : memref<2x1x418xf32, #tpu.memory_space<vmem>>, vector<1x1x256xf32>
    %224 = vector.shape_cast %223 : vector<1x1x256xf32> to vector<1x256xf32>
    %cst_108 = arith.constant 0.000000e+00 : f32
    %225 = vector.broadcast %cst_108 : f32 to vector<1x256xf32>
    %226 = arith.select %20, %224, %225 : vector<1x256xi1>, vector<1x256xf32>
    %227 = vector.extract_strided_slice %83 {offsets = [0, 16], sizes = [32, 1], strides = [1, 1]} : vector<32x25xf32> to vector<32x1xf32>
    %228 = vector.broadcast %227 : vector<32x1xf32> to vector<32x256xf32>
    %229 = vector.broadcast %226 : vector<1x256xf32> to vector<32x256xf32>
    %230 = arith.mulf %228, %229 : vector<32x256xf32>
    %231 = arith.addf %222, %230 : vector<32x256xf32>
    %c0_109 = arith.constant 0 : index
    %c0_110 = arith.constant 0 : index
    %c144 = arith.constant 144 : index
    %232 = vector.load %arg9[%c0_109, %c0_110, %c144] : memref<2x1x418xf32, #tpu.memory_space<vmem>>, vector<1x1x256xf32>
    %233 = vector.shape_cast %232 : vector<1x1x256xf32> to vector<1x256xf32>
    %234 = vector.extract_strided_slice %83 {offsets = [0, 17], sizes = [32, 1], strides = [1, 1]} : vector<32x25xf32> to vector<32x1xf32>
    %235 = vector.broadcast %234 : vector<32x1xf32> to vector<32x256xf32>
    %236 = vector.broadcast %233 : vector<1x256xf32> to vector<32x256xf32>
    %237 = arith.mulf %235, %236 : vector<32x256xf32>
    %238 = arith.addf %231, %237 : vector<32x256xf32>
    %c0_111 = arith.constant 0 : index
    %c0_112 = arith.constant 0 : index
    %c145 = arith.constant 145 : index
    %239 = vector.load %arg9[%c0_111, %c0_112, %c145] : memref<2x1x418xf32, #tpu.memory_space<vmem>>, vector<1x1x256xf32>
    %240 = vector.shape_cast %239 : vector<1x1x256xf32> to vector<1x256xf32>
    %cst_113 = arith.constant 0.000000e+00 : f32
    %241 = vector.broadcast %cst_113 : f32 to vector<1x256xf32>
    %242 = arith.select %22, %240, %241 : vector<1x256xi1>, vector<1x256xf32>
    %243 = vector.extract_strided_slice %83 {offsets = [0, 18], sizes = [32, 1], strides = [1, 1]} : vector<32x25xf32> to vector<32x1xf32>
    %244 = vector.broadcast %243 : vector<32x1xf32> to vector<32x256xf32>
    %245 = vector.broadcast %242 : vector<1x256xf32> to vector<32x256xf32>
    %246 = arith.mulf %244, %245 : vector<32x256xf32>
    %247 = arith.addf %238, %246 : vector<32x256xf32>
    %c0_114 = arith.constant 0 : index
    %c0_115 = arith.constant 0 : index
    %c146 = arith.constant 146 : index
    %248 = vector.load %arg9[%c0_114, %c0_115, %c146] : memref<2x1x418xf32, #tpu.memory_space<vmem>>, vector<1x1x256xf32>
    %249 = vector.shape_cast %248 : vector<1x1x256xf32> to vector<1x256xf32>
    %cst_116 = arith.constant 0.000000e+00 : f32
    %250 = vector.broadcast %cst_116 : f32 to vector<1x256xf32>
    %251 = arith.select %24, %249, %250 : vector<1x256xi1>, vector<1x256xf32>
    %252 = vector.extract_strided_slice %83 {offsets = [0, 19], sizes = [32, 1], strides = [1, 1]} : vector<32x25xf32> to vector<32x1xf32>
    %253 = vector.broadcast %252 : vector<32x1xf32> to vector<32x256xf32>
    %254 = vector.broadcast %251 : vector<1x256xf32> to vector<32x256xf32>
    %255 = arith.mulf %253, %254 : vector<32x256xf32>
    %256 = arith.addf %247, %255 : vector<32x256xf32>
    %c0_117 = arith.constant 0 : index
    %c0_118 = arith.constant 0 : index
    %c158 = arith.constant 158 : index
    %257 = vector.load %arg9[%c0_117, %c0_118, %c158] : memref<2x1x418xf32, #tpu.memory_space<vmem>>, vector<1x1x256xf32>
    %258 = vector.shape_cast %257 : vector<1x1x256xf32> to vector<1x256xf32>
    %cst_119 = arith.constant 0.000000e+00 : f32
    %259 = vector.broadcast %cst_119 : f32 to vector<1x256xf32>
    %260 = arith.select %18, %258, %259 : vector<1x256xi1>, vector<1x256xf32>
    %261 = vector.extract_strided_slice %83 {offsets = [0, 20], sizes = [32, 1], strides = [1, 1]} : vector<32x25xf32> to vector<32x1xf32>
    %262 = vector.broadcast %261 : vector<32x1xf32> to vector<32x256xf32>
    %263 = vector.broadcast %260 : vector<1x256xf32> to vector<32x256xf32>
    %264 = arith.mulf %262, %263 : vector<32x256xf32>
    %265 = arith.addf %256, %264 : vector<32x256xf32>
    %c0_120 = arith.constant 0 : index
    %c0_121 = arith.constant 0 : index
    %c159 = arith.constant 159 : index
    %266 = vector.load %arg9[%c0_120, %c0_121, %c159] : memref<2x1x418xf32, #tpu.memory_space<vmem>>, vector<1x1x256xf32>
    %267 = vector.shape_cast %266 : vector<1x1x256xf32> to vector<1x256xf32>
    %cst_122 = arith.constant 0.000000e+00 : f32
    %268 = vector.broadcast %cst_122 : f32 to vector<1x256xf32>
    %269 = arith.select %20, %267, %268 : vector<1x256xi1>, vector<1x256xf32>
    %270 = vector.extract_strided_slice %83 {offsets = [0, 21], sizes = [32, 1], strides = [1, 1]} : vector<32x25xf32> to vector<32x1xf32>
    %271 = vector.broadcast %270 : vector<32x1xf32> to vector<32x256xf32>
    %272 = vector.broadcast %269 : vector<1x256xf32> to vector<32x256xf32>
    %273 = arith.mulf %271, %272 : vector<32x256xf32>
    %274 = arith.addf %265, %273 : vector<32x256xf32>
    %c0_123 = arith.constant 0 : index
    %c0_124 = arith.constant 0 : index
    %c160 = arith.constant 160 : index
    %275 = vector.load %arg9[%c0_123, %c0_124, %c160] : memref<2x1x418xf32, #tpu.memory_space<vmem>>, vector<1x1x256xf32>
    %276 = vector.shape_cast %275 : vector<1x1x256xf32> to vector<1x256xf32>
    %277 = vector.extract_strided_slice %83 {offsets = [0, 22], sizes = [32, 1], strides = [1, 1]} : vector<32x25xf32> to vector<32x1xf32>
    %278 = vector.broadcast %277 : vector<32x1xf32> to vector<32x256xf32>
    %279 = vector.broadcast %276 : vector<1x256xf32> to vector<32x256xf32>
    %280 = arith.mulf %278, %279 : vector<32x256xf32>
    %281 = arith.addf %274, %280 : vector<32x256xf32>
    %c0_125 = arith.constant 0 : index
    %c0_126 = arith.constant 0 : index
    %c161 = arith.constant 161 : index
    %282 = vector.load %arg9[%c0_125, %c0_126, %c161] : memref<2x1x418xf32, #tpu.memory_space<vmem>>, vector<1x1x256xf32>
    %283 = vector.shape_cast %282 : vector<1x1x256xf32> to vector<1x256xf32>
    %cst_127 = arith.constant 0.000000e+00 : f32
    %284 = vector.broadcast %cst_127 : f32 to vector<1x256xf32>
    %285 = arith.select %22, %283, %284 : vector<1x256xi1>, vector<1x256xf32>
    %286 = vector.extract_strided_slice %83 {offsets = [0, 23], sizes = [32, 1], strides = [1, 1]} : vector<32x25xf32> to vector<32x1xf32>
    %287 = vector.broadcast %286 : vector<32x1xf32> to vector<32x256xf32>
    %288 = vector.broadcast %285 : vector<1x256xf32> to vector<32x256xf32>
    %289 = arith.mulf %287, %288 : vector<32x256xf32>
    %290 = arith.addf %281, %289 : vector<32x256xf32>
    %c0_128 = arith.constant 0 : index
    %c0_129 = arith.constant 0 : index
    %c162 = arith.constant 162 : index
    %291 = vector.load %arg9[%c0_128, %c0_129, %c162] : memref<2x1x418xf32, #tpu.memory_space<vmem>>, vector<1x1x256xf32>
    %292 = vector.shape_cast %291 : vector<1x1x256xf32> to vector<1x256xf32>
    %cst_130 = arith.constant 0.000000e+00 : f32
    %293 = vector.broadcast %cst_130 : f32 to vector<1x256xf32>
    %294 = arith.select %24, %292, %293 : vector<1x256xi1>, vector<1x256xf32>
    %295 = vector.extract_strided_slice %83 {offsets = [0, 24], sizes = [32, 1], strides = [1, 1]} : vector<32x25xf32> to vector<32x1xf32>
    %296 = vector.broadcast %295 : vector<32x1xf32> to vector<32x256xf32>
    %297 = vector.broadcast %294 : vector<1x256xf32> to vector<32x256xf32>
    %298 = arith.mulf %296, %297 : vector<32x256xf32>
    %299 = arith.addf %290, %298 : vector<32x256xf32>
    %cst_131 = arith.constant 0.000000e+00 : f32
    %300 = vector.broadcast %cst_131 : f32 to vector<32x256xf32>
    %301 = arith.maximumf %299, %300 : vector<32x256xf32>
    %c0_132 = arith.constant 0 : index
    %c0_133 = arith.constant 0 : index
    %c128_134 = arith.constant 128 : index
    %302 = vector.load %arg10[%c0_132, %c0_133, %c128_134] : memref<2x32x401xf32, #tpu.memory_space<vmem>>, vector<1x32x256xf32>
    %303 = vector.shape_cast %302 : vector<1x32x256xf32> to vector<32x256xf32>
    %304 = vector.shape_cast %301 : vector<32x256xf32> to vector<1x32x256xf32>
    tpu.vector_store %arg10[%c0_132, %c0_133, %c128_134], %304 {strides = array<i32>} : memref<2x32x401xf32, #tpu.memory_space<vmem>>, vector<1x32x256xf32>,
    %c0_135 = arith.constant 0 : index
    %c0_136 = arith.constant 0 : index
    %305 = vector.load %arg3[%c0_135, %c0_136] : memref<32x256xf32, #tpu.memory_space<vmem>>, vector<32x256xf32>
    %c1_137 = arith.constant 1 : index
    %c0_138 = arith.constant 0 : index
    %c94_139 = arith.constant 94 : index
    %306 = vector.load %arg9[%c1_137, %c0_138, %c94_139] : memref<2x1x418xf32, #tpu.memory_space<vmem>>, vector<1x1x256xf32>
    %307 = vector.shape_cast %306 : vector<1x1x256xf32> to vector<1x256xf32>
    %cst_140 = arith.constant 0.000000e+00 : f32
    %308 = vector.broadcast %cst_140 : f32 to vector<1x256xf32>
    %309 = arith.select %18, %307, %308 : vector<1x256xi1>, vector<1x256xf32>
    %310 = vector.extract_strided_slice %83 {offsets = [0, 0], sizes = [32, 1], strides = [1, 1]} : vector<32x25xf32> to vector<32x1xf32>
    %311 = vector.broadcast %310 : vector<32x1xf32> to vector<32x256xf32>
    %312 = vector.broadcast %309 : vector<1x256xf32> to vector<32x256xf32>
    %313 = arith.mulf %311, %312 : vector<32x256xf32>
    %314 = arith.addf %305, %313 : vector<32x256xf32>
    %c1_141 = arith.constant 1 : index
    %c0_142 = arith.constant 0 : index
    %c95_143 = arith.constant 95 : index
    %315 = vector.load %arg9[%c1_141, %c0_142, %c95_143] : memref<2x1x418xf32, #tpu.memory_space<vmem>>, vector<1x1x256xf32>
    %316 = vector.shape_cast %315 : vector<1x1x256xf32> to vector<1x256xf32>
    %cst_144 = arith.constant 0.000000e+00 : f32
    %317 = vector.broadcast %cst_144 : f32 to vector<1x256xf32>
    %318 = arith.select %20, %316, %317 : vector<1x256xi1>, vector<1x256xf32>
    %319 = vector.extract_strided_slice %83 {offsets = [0, 1], sizes = [32, 1], strides = [1, 1]} : vector<32x25xf32> to vector<32x1xf32>
    %320 = vector.broadcast %319 : vector<32x1xf32> to vector<32x256xf32>
    %321 = vector.broadcast %318 : vector<1x256xf32> to vector<32x256xf32>
    %322 = arith.mulf %320, %321 : vector<32x256xf32>
    %323 = arith.addf %314, %322 : vector<32x256xf32>
    %c1_145 = arith.constant 1 : index
    %c0_146 = arith.constant 0 : index
    %c96_147 = arith.constant 96 : index
    %324 = vector.load %arg9[%c1_145, %c0_146, %c96_147] : memref<2x1x418xf32, #tpu.memory_space<vmem>>, vector<1x1x256xf32>
    %325 = vector.shape_cast %324 : vector<1x1x256xf32> to vector<1x256xf32>
    %326 = vector.extract_strided_slice %83 {offsets = [0, 2], sizes = [32, 1], strides = [1, 1]} : vector<32x25xf32> to vector<32x1xf32>
    %327 = vector.broadcast %326 : vector<32x1xf32> to vector<32x256xf32>
    %328 = vector.broadcast %325 : vector<1x256xf32> to vector<32x256xf32>
    %329 = arith.mulf %327, %328 : vector<32x256xf32>
    %330 = arith.addf %323, %329 : vector<32x256xf32>
    %c1_148 = arith.constant 1 : index
    %c0_149 = arith.constant 0 : index
    %c97_150 = arith.constant 97 : index
    %331 = vector.load %arg9[%c1_148, %c0_149, %c97_150] : memref<2x1x418xf32, #tpu.memory_space<vmem>>, vector<1x1x256xf32>
    %332 = vector.shape_cast %331 : vector<1x1x256xf32> to vector<1x256xf32>
    %cst_151 = arith.constant 0.000000e+00 : f32
    %333 = vector.broadcast %cst_151 : f32 to vector<1x256xf32>
    %334 = arith.select %22, %332, %333 : vector<1x256xi1>, vector<1x256xf32>
    %335 = vector.extract_strided_slice %83 {offsets = [0, 3], sizes = [32, 1], strides = [1, 1]} : vector<32x25xf32> to vector<32x1xf32>
    %336 = vector.broadcast %335 : vector<32x1xf32> to vector<32x256xf32>
    %337 = vector.broadcast %334 : vector<1x256xf32> to vector<32x256xf32>
    %338 = arith.mulf %336, %337 : vector<32x256xf32>
    %339 = arith.addf %330, %338 : vector<32x256xf32>
    %c1_152 = arith.constant 1 : index
    %c0_153 = arith.constant 0 : index
    %c98_154 = arith.constant 98 : index
    %340 = vector.load %arg9[%c1_152, %c0_153, %c98_154] : memref<2x1x418xf32, #tpu.memory_space<vmem>>, vector<1x1x256xf32>
    %341 = vector.shape_cast %340 : vector<1x1x256xf32> to vector<1x256xf32>
    %cst_155 = arith.constant 0.000000e+00 : f32
    %342 = vector.broadcast %cst_155 : f32 to vector<1x256xf32>
    %343 = arith.select %24, %341, %342 : vector<1x256xi1>, vector<1x256xf32>
    %344 = vector.extract_strided_slice %83 {offsets = [0, 4], sizes = [32, 1], strides = [1, 1]} : vector<32x25xf32> to vector<32x1xf32>
    %345 = vector.broadcast %344 : vector<32x1xf32> to vector<32x256xf32>
    %346 = vector.broadcast %343 : vector<1x256xf32> to vector<32x256xf32>
    %347 = arith.mulf %345, %346 : vector<32x256xf32>
    %348 = arith.addf %339, %347 : vector<32x256xf32>
    %c1_156 = arith.constant 1 : index
    %c0_157 = arith.constant 0 : index
    %c110_158 = arith.constant 110 : index
    %349 = vector.load %arg9[%c1_156, %c0_157, %c110_158] : memref<2x1x418xf32, #tpu.memory_space<vmem>>, vector<1x1x256xf32>
    %350 = vector.shape_cast %349 : vector<1x1x256xf32> to vector<1x256xf32>
    %cst_159 = arith.constant 0.000000e+00 : f32
    %351 = vector.broadcast %cst_159 : f32 to vector<1x256xf32>
    %352 = arith.select %18, %350, %351 : vector<1x256xi1>, vector<1x256xf32>
    %353 = vector.extract_strided_slice %83 {offsets = [0, 5], sizes = [32, 1], strides = [1, 1]} : vector<32x25xf32> to vector<32x1xf32>
    %354 = vector.broadcast %353 : vector<32x1xf32> to vector<32x256xf32>
    %355 = vector.broadcast %352 : vector<1x256xf32> to vector<32x256xf32>
    %356 = arith.mulf %354, %355 : vector<32x256xf32>
    %357 = arith.addf %348, %356 : vector<32x256xf32>
    %c1_160 = arith.constant 1 : index
    %c0_161 = arith.constant 0 : index
    %c111_162 = arith.constant 111 : index
    %358 = vector.load %arg9[%c1_160, %c0_161, %c111_162] : memref<2x1x418xf32, #tpu.memory_space<vmem>>, vector<1x1x256xf32>
    %359 = vector.shape_cast %358 : vector<1x1x256xf32> to vector<1x256xf32>
    %cst_163 = arith.constant 0.000000e+00 : f32
    %360 = vector.broadcast %cst_163 : f32 to vector<1x256xf32>
    %361 = arith.select %20, %359, %360 : vector<1x256xi1>, vector<1x256xf32>
    %362 = vector.extract_strided_slice %83 {offsets = [0, 6], sizes = [32, 1], strides = [1, 1]} : vector<32x25xf32> to vector<32x1xf32>
    %363 = vector.broadcast %362 : vector<32x1xf32> to vector<32x256xf32>
    %364 = vector.broadcast %361 : vector<1x256xf32> to vector<32x256xf32>
    %365 = arith.mulf %363, %364 : vector<32x256xf32>
    %366 = arith.addf %357, %365 : vector<32x256xf32>
    %c1_164 = arith.constant 1 : index
    %c0_165 = arith.constant 0 : index
    %c112_166 = arith.constant 112 : index
    %367 = vector.load %arg9[%c1_164, %c0_165, %c112_166] : memref<2x1x418xf32, #tpu.memory_space<vmem>>, vector<1x1x256xf32>
    %368 = vector.shape_cast %367 : vector<1x1x256xf32> to vector<1x256xf32>
    %369 = vector.extract_strided_slice %83 {offsets = [0, 7], sizes = [32, 1], strides = [1, 1]} : vector<32x25xf32> to vector<32x1xf32>
    %370 = vector.broadcast %369 : vector<32x1xf32> to vector<32x256xf32>
    %371 = vector.broadcast %368 : vector<1x256xf32> to vector<32x256xf32>
    %372 = arith.mulf %370, %371 : vector<32x256xf32>
    %373 = arith.addf %366, %372 : vector<32x256xf32>
    %c1_167 = arith.constant 1 : index
    %c0_168 = arith.constant 0 : index
    %c113_169 = arith.constant 113 : index
    %374 = vector.load %arg9[%c1_167, %c0_168, %c113_169] : memref<2x1x418xf32, #tpu.memory_space<vmem>>, vector<1x1x256xf32>
    %375 = vector.shape_cast %374 : vector<1x1x256xf32> to vector<1x256xf32>
    %cst_170 = arith.constant 0.000000e+00 : f32
    %376 = vector.broadcast %cst_170 : f32 to vector<1x256xf32>
    %377 = arith.select %22, %375, %376 : vector<1x256xi1>, vector<1x256xf32>
    %378 = vector.extract_strided_slice %83 {offsets = [0, 8], sizes = [32, 1], strides = [1, 1]} : vector<32x25xf32> to vector<32x1xf32>
    %379 = vector.broadcast %378 : vector<32x1xf32> to vector<32x256xf32>
    %380 = vector.broadcast %377 : vector<1x256xf32> to vector<32x256xf32>
    %381 = arith.mulf %379, %380 : vector<32x256xf32>
    %382 = arith.addf %373, %381 : vector<32x256xf32>
    %c1_171 = arith.constant 1 : index
    %c0_172 = arith.constant 0 : index
    %c114_173 = arith.constant 114 : index
    %383 = vector.load %arg9[%c1_171, %c0_172, %c114_173] : memref<2x1x418xf32, #tpu.memory_space<vmem>>, vector<1x1x256xf32>
    %384 = vector.shape_cast %383 : vector<1x1x256xf32> to vector<1x256xf32>
    %cst_174 = arith.constant 0.000000e+00 : f32
    %385 = vector.broadcast %cst_174 : f32 to vector<1x256xf32>
    %386 = arith.select %24, %384, %385 : vector<1x256xi1>, vector<1x256xf32>
    %387 = vector.extract_strided_slice %83 {offsets = [0, 9], sizes = [32, 1], strides = [1, 1]} : vector<32x25xf32> to vector<32x1xf32>
    %388 = vector.broadcast %387 : vector<32x1xf32> to vector<32x256xf32>
    %389 = vector.broadcast %386 : vector<1x256xf32> to vector<32x256xf32>
    %390 = arith.mulf %388, %389 : vector<32x256xf32>
    %391 = arith.addf %382, %390 : vector<32x256xf32>
    %c1_175 = arith.constant 1 : index
    %c0_176 = arith.constant 0 : index
    %c126_177 = arith.constant 126 : index
    %392 = vector.load %arg9[%c1_175, %c0_176, %c126_177] : memref<2x1x418xf32, #tpu.memory_space<vmem>>, vector<1x1x256xf32>
    %393 = vector.shape_cast %392 : vector<1x1x256xf32> to vector<1x256xf32>
    %cst_178 = arith.constant 0.000000e+00 : f32
    %394 = vector.broadcast %cst_178 : f32 to vector<1x256xf32>
    %395 = arith.select %18, %393, %394 : vector<1x256xi1>, vector<1x256xf32>
    %396 = vector.extract_strided_slice %83 {offsets = [0, 10], sizes = [32, 1], strides = [1, 1]} : vector<32x25xf32> to vector<32x1xf32>
    %397 = vector.broadcast %396 : vector<32x1xf32> to vector<32x256xf32>
    %398 = vector.broadcast %395 : vector<1x256xf32> to vector<32x256xf32>
    %399 = arith.mulf %397, %398 : vector<32x256xf32>
    %400 = arith.addf %391, %399 : vector<32x256xf32>
    %c1_179 = arith.constant 1 : index
    %c0_180 = arith.constant 0 : index
    %c127_181 = arith.constant 127 : index
    %401 = vector.load %arg9[%c1_179, %c0_180, %c127_181] : memref<2x1x418xf32, #tpu.memory_space<vmem>>, vector<1x1x256xf32>
    %402 = vector.shape_cast %401 : vector<1x1x256xf32> to vector<1x256xf32>
    %cst_182 = arith.constant 0.000000e+00 : f32
    %403 = vector.broadcast %cst_182 : f32 to vector<1x256xf32>
    %404 = arith.select %20, %402, %403 : vector<1x256xi1>, vector<1x256xf32>
    %405 = vector.extract_strided_slice %83 {offsets = [0, 11], sizes = [32, 1], strides = [1, 1]} : vector<32x25xf32> to vector<32x1xf32>
    %406 = vector.broadcast %405 : vector<32x1xf32> to vector<32x256xf32>
    %407 = vector.broadcast %404 : vector<1x256xf32> to vector<32x256xf32>
    %408 = arith.mulf %406, %407 : vector<32x256xf32>
    %409 = arith.addf %400, %408 : vector<32x256xf32>
    %c1_183 = arith.constant 1 : index
    %c0_184 = arith.constant 0 : index
    %c128_185 = arith.constant 128 : index
    %410 = vector.load %arg9[%c1_183, %c0_184, %c128_185] : memref<2x1x418xf32, #tpu.memory_space<vmem>>, vector<1x1x256xf32>
    %411 = vector.shape_cast %410 : vector<1x1x256xf32> to vector<1x256xf32>
    %412 = vector.extract_strided_slice %83 {offsets = [0, 12], sizes = [32, 1], strides = [1, 1]} : vector<32x25xf32> to vector<32x1xf32>
    %413 = vector.broadcast %412 : vector<32x1xf32> to vector<32x256xf32>
    %414 = vector.broadcast %411 : vector<1x256xf32> to vector<32x256xf32>
    %415 = arith.mulf %413, %414 : vector<32x256xf32>
    %416 = arith.addf %409, %415 : vector<32x256xf32>
    %c1_186 = arith.constant 1 : index
    %c0_187 = arith.constant 0 : index
    %c129_188 = arith.constant 129 : index
    %417 = vector.load %arg9[%c1_186, %c0_187, %c129_188] : memref<2x1x418xf32, #tpu.memory_space<vmem>>, vector<1x1x256xf32>
    %418 = vector.shape_cast %417 : vector<1x1x256xf32> to vector<1x256xf32>
    %cst_189 = arith.constant 0.000000e+00 : f32
    %419 = vector.broadcast %cst_189 : f32 to vector<1x256xf32>
    %420 = arith.select %22, %418, %419 : vector<1x256xi1>, vector<1x256xf32>
    %421 = vector.extract_strided_slice %83 {offsets = [0, 13], sizes = [32, 1], strides = [1, 1]} : vector<32x25xf32> to vector<32x1xf32>
    %422 = vector.broadcast %421 : vector<32x1xf32> to vector<32x256xf32>
    %423 = vector.broadcast %420 : vector<1x256xf32> to vector<32x256xf32>
    %424 = arith.mulf %422, %423 : vector<32x256xf32>
    %425 = arith.addf %416, %424 : vector<32x256xf32>
    %c1_190 = arith.constant 1 : index
    %c0_191 = arith.constant 0 : index
    %c130_192 = arith.constant 130 : index
    %426 = vector.load %arg9[%c1_190, %c0_191, %c130_192] : memref<2x1x418xf32, #tpu.memory_space<vmem>>, vector<1x1x256xf32>
    %427 = vector.shape_cast %426 : vector<1x1x256xf32> to vector<1x256xf32>
    %cst_193 = arith.constant 0.000000e+00 : f32
    %428 = vector.broadcast %cst_193 : f32 to vector<1x256xf32>
    %429 = arith.select %24, %427, %428 : vector<1x256xi1>, vector<1x256xf32>
    %430 = vector.extract_strided_slice %83 {offsets = [0, 14], sizes = [32, 1], strides = [1, 1]} : vector<32x25xf32> to vector<32x1xf32>
    %431 = vector.broadcast %430 : vector<32x1xf32> to vector<32x256xf32>
    %432 = vector.broadcast %429 : vector<1x256xf32> to vector<32x256xf32>
    %433 = arith.mulf %431, %432 : vector<32x256xf32>
    %434 = arith.addf %425, %433 : vector<32x256xf32>
    %c1_194 = arith.constant 1 : index
    %c0_195 = arith.constant 0 : index
    %c142_196 = arith.constant 142 : index
    %435 = vector.load %arg9[%c1_194, %c0_195, %c142_196] : memref<2x1x418xf32, #tpu.memory_space<vmem>>, vector<1x1x256xf32>
    %436 = vector.shape_cast %435 : vector<1x1x256xf32> to vector<1x256xf32>
    %cst_197 = arith.constant 0.000000e+00 : f32
    %437 = vector.broadcast %cst_197 : f32 to vector<1x256xf32>
    %438 = arith.select %18, %436, %437 : vector<1x256xi1>, vector<1x256xf32>
    %439 = vector.extract_strided_slice %83 {offsets = [0, 15], sizes = [32, 1], strides = [1, 1]} : vector<32x25xf32> to vector<32x1xf32>
    %440 = vector.broadcast %439 : vector<32x1xf32> to vector<32x256xf32>
    %441 = vector.broadcast %438 : vector<1x256xf32> to vector<32x256xf32>
    %442 = arith.mulf %440, %441 : vector<32x256xf32>
    %443 = arith.addf %434, %442 : vector<32x256xf32>
    %c1_198 = arith.constant 1 : index
    %c0_199 = arith.constant 0 : index
    %c143_200 = arith.constant 143 : index
    %444 = vector.load %arg9[%c1_198, %c0_199, %c143_200] : memref<2x1x418xf32, #tpu.memory_space<vmem>>, vector<1x1x256xf32>
    %445 = vector.shape_cast %444 : vector<1x1x256xf32> to vector<1x256xf32>
    %cst_201 = arith.constant 0.000000e+00 : f32
    %446 = vector.broadcast %cst_201 : f32 to vector<1x256xf32>
    %447 = arith.select %20, %445, %446 : vector<1x256xi1>, vector<1x256xf32>
    %448 = vector.extract_strided_slice %83 {offsets = [0, 16], sizes = [32, 1], strides = [1, 1]} : vector<32x25xf32> to vector<32x1xf32>
    %449 = vector.broadcast %448 : vector<32x1xf32> to vector<32x256xf32>
    %450 = vector.broadcast %447 : vector<1x256xf32> to vector<32x256xf32>
    %451 = arith.mulf %449, %450 : vector<32x256xf32>
    %452 = arith.addf %443, %451 : vector<32x256xf32>
    %c1_202 = arith.constant 1 : index
    %c0_203 = arith.constant 0 : index
    %c144_204 = arith.constant 144 : index
    %453 = vector.load %arg9[%c1_202, %c0_203, %c144_204] : memref<2x1x418xf32, #tpu.memory_space<vmem>>, vector<1x1x256xf32>
    %454 = vector.shape_cast %453 : vector<1x1x256xf32> to vector<1x256xf32>
    %455 = vector.extract_strided_slice %83 {offsets = [0, 17], sizes = [32, 1], strides = [1, 1]} : vector<32x25xf32> to vector<32x1xf32>
    %456 = vector.broadcast %455 : vector<32x1xf32> to vector<32x256xf32>
    %457 = vector.broadcast %454 : vector<1x256xf32> to vector<32x256xf32>
    %458 = arith.mulf %456, %457 : vector<32x256xf32>
    %459 = arith.addf %452, %458 : vector<32x256xf32>
    %c1_205 = arith.constant 1 : index
    %c0_206 = arith.constant 0 : index
    %c145_207 = arith.constant 145 : index
    %460 = vector.load %arg9[%c1_205, %c0_206, %c145_207] : memref<2x1x418xf32, #tpu.memory_space<vmem>>, vector<1x1x256xf32>
    %461 = vector.shape_cast %460 : vector<1x1x256xf32> to vector<1x256xf32>
    %cst_208 = arith.constant 0.000000e+00 : f32
    %462 = vector.broadcast %cst_208 : f32 to vector<1x256xf32>
    %463 = arith.select %22, %461, %462 : vector<1x256xi1>, vector<1x256xf32>
    %464 = vector.extract_strided_slice %83 {offsets = [0, 18], sizes = [32, 1], strides = [1, 1]} : vector<32x25xf32> to vector<32x1xf32>
    %465 = vector.broadcast %464 : vector<32x1xf32> to vector<32x256xf32>
    %466 = vector.broadcast %463 : vector<1x256xf32> to vector<32x256xf32>
    %467 = arith.mulf %465, %466 : vector<32x256xf32>
    %468 = arith.addf %459, %467 : vector<32x256xf32>
    %c1_209 = arith.constant 1 : index
    %c0_210 = arith.constant 0 : index
    %c146_211 = arith.constant 146 : index
    %469 = vector.load %arg9[%c1_209, %c0_210, %c146_211] : memref<2x1x418xf32, #tpu.memory_space<vmem>>, vector<1x1x256xf32>
    %470 = vector.shape_cast %469 : vector<1x1x256xf32> to vector<1x256xf32>
    %cst_212 = arith.constant 0.000000e+00 : f32
    %471 = vector.broadcast %cst_212 : f32 to vector<1x256xf32>
    %472 = arith.select %24, %470, %471 : vector<1x256xi1>, vector<1x256xf32>
    %473 = vector.extract_strided_slice %83 {offsets = [0, 19], sizes = [32, 1], strides = [1, 1]} : vector<32x25xf32> to vector<32x1xf32>
    %474 = vector.broadcast %473 : vector<32x1xf32> to vector<32x256xf32>
    %475 = vector.broadcast %472 : vector<1x256xf32> to vector<32x256xf32>
    %476 = arith.mulf %474, %475 : vector<32x256xf32>
    %477 = arith.addf %468, %476 : vector<32x256xf32>
    %c1_213 = arith.constant 1 : index
    %c0_214 = arith.constant 0 : index
    %c158_215 = arith.constant 158 : index
    %478 = vector.load %arg9[%c1_213, %c0_214, %c158_215] : memref<2x1x418xf32, #tpu.memory_space<vmem>>, vector<1x1x256xf32>
    %479 = vector.shape_cast %478 : vector<1x1x256xf32> to vector<1x256xf32>
    %cst_216 = arith.constant 0.000000e+00 : f32
    %480 = vector.broadcast %cst_216 : f32 to vector<1x256xf32>
    %481 = arith.select %18, %479, %480 : vector<1x256xi1>, vector<1x256xf32>
    %482 = vector.extract_strided_slice %83 {offsets = [0, 20], sizes = [32, 1], strides = [1, 1]} : vector<32x25xf32> to vector<32x1xf32>
    %483 = vector.broadcast %482 : vector<32x1xf32> to vector<32x256xf32>
    %484 = vector.broadcast %481 : vector<1x256xf32> to vector<32x256xf32>
    %485 = arith.mulf %483, %484 : vector<32x256xf32>
    %486 = arith.addf %477, %485 : vector<32x256xf32>
    %c1_217 = arith.constant 1 : index
    %c0_218 = arith.constant 0 : index
    %c159_219 = arith.constant 159 : index
    %487 = vector.load %arg9[%c1_217, %c0_218, %c159_219] : memref<2x1x418xf32, #tpu.memory_space<vmem>>, vector<1x1x256xf32>
    %488 = vector.shape_cast %487 : vector<1x1x256xf32> to vector<1x256xf32>
    %cst_220 = arith.constant 0.000000e+00 : f32
    %489 = vector.broadcast %cst_220 : f32 to vector<1x256xf32>
    %490 = arith.select %20, %488, %489 : vector<1x256xi1>, vector<1x256xf32>
    %491 = vector.extract_strided_slice %83 {offsets = [0, 21], sizes = [32, 1], strides = [1, 1]} : vector<32x25xf32> to vector<32x1xf32>
    %492 = vector.broadcast %491 : vector<32x1xf32> to vector<32x256xf32>
    %493 = vector.broadcast %490 : vector<1x256xf32> to vector<32x256xf32>
    %494 = arith.mulf %492, %493 : vector<32x256xf32>
    %495 = arith.addf %486, %494 : vector<32x256xf32>
    %c1_221 = arith.constant 1 : index
    %c0_222 = arith.constant 0 : index
    %c160_223 = arith.constant 160 : index
    %496 = vector.load %arg9[%c1_221, %c0_222, %c160_223] : memref<2x1x418xf32, #tpu.memory_space<vmem>>, vector<1x1x256xf32>
    %497 = vector.shape_cast %496 : vector<1x1x256xf32> to vector<1x256xf32>
    %498 = vector.extract_strided_slice %83 {offsets = [0, 22], sizes = [32, 1], strides = [1, 1]} : vector<32x25xf32> to vector<32x1xf32>
    %499 = vector.broadcast %498 : vector<32x1xf32> to vector<32x256xf32>
    %500 = vector.broadcast %497 : vector<1x256xf32> to vector<32x256xf32>
    %501 = arith.mulf %499, %500 : vector<32x256xf32>
    %502 = arith.addf %495, %501 : vector<32x256xf32>
    %c1_224 = arith.constant 1 : index
    %c0_225 = arith.constant 0 : index
    %c161_226 = arith.constant 161 : index
    %503 = vector.load %arg9[%c1_224, %c0_225, %c161_226] : memref<2x1x418xf32, #tpu.memory_space<vmem>>, vector<1x1x256xf32>
    %504 = vector.shape_cast %503 : vector<1x1x256xf32> to vector<1x256xf32>
    %cst_227 = arith.constant 0.000000e+00 : f32
    %505 = vector.broadcast %cst_227 : f32 to vector<1x256xf32>
    %506 = arith.select %22, %504, %505 : vector<1x256xi1>, vector<1x256xf32>
    %507 = vector.extract_strided_slice %83 {offsets = [0, 23], sizes = [32, 1], strides = [1, 1]} : vector<32x25xf32> to vector<32x1xf32>
    %508 = vector.broadcast %507 : vector<32x1xf32> to vector<32x256xf32>
    %509 = vector.broadcast %506 : vector<1x256xf32> to vector<32x256xf32>
    %510 = arith.mulf %508, %509 : vector<32x256xf32>
    %511 = arith.addf %502, %510 : vector<32x256xf32>
    %c1_228 = arith.constant 1 : index
    %c0_229 = arith.constant 0 : index
    %c162_230 = arith.constant 162 : index
    %512 = vector.load %arg9[%c1_228, %c0_229, %c162_230] : memref<2x1x418xf32, #tpu.memory_space<vmem>>, vector<1x1x256xf32>
    %513 = vector.shape_cast %512 : vector<1x1x256xf32> to vector<1x256xf32>
    %cst_231 = arith.constant 0.000000e+00 : f32
    %514 = vector.broadcast %cst_231 : f32 to vector<1x256xf32>
    %515 = arith.select %24, %513, %514 : vector<1x256xi1>, vector<1x256xf32>
    %516 = vector.extract_strided_slice %83 {offsets = [0, 24], sizes = [32, 1], strides = [1, 1]} : vector<32x25xf32> to vector<32x1xf32>
    %517 = vector.broadcast %516 : vector<32x1xf32> to vector<32x256xf32>
    %518 = vector.broadcast %515 : vector<1x256xf32> to vector<32x256xf32>
    %519 = arith.mulf %517, %518 : vector<32x256xf32>
    %520 = arith.addf %511, %519 : vector<32x256xf32>
    %cst_232 = arith.constant 0.000000e+00 : f32
    %521 = vector.broadcast %cst_232 : f32 to vector<32x256xf32>
    %522 = arith.maximumf %520, %521 : vector<32x256xf32>
    %c1_233 = arith.constant 1 : index
    %c0_234 = arith.constant 0 : index
    %c128_235 = arith.constant 128 : index
    %523 = vector.load %arg10[%c1_233, %c0_234, %c128_235] : memref<2x32x401xf32, #tpu.memory_space<vmem>>, vector<1x32x256xf32>
    %524 = vector.shape_cast %523 : vector<1x32x256xf32> to vector<32x256xf32>
    %525 = vector.shape_cast %522 : vector<32x256xf32> to vector<1x32x256xf32>
    tpu.vector_store %arg10[%c1_233, %c0_234, %c128_235], %525 {strides = array<i32>} : memref<2x32x401xf32, #tpu.memory_space<vmem>>, vector<1x32x256xf32>,
    %c0_236 = arith.constant 0 : index
    %c0_237 = arith.constant 0 : index
    %c111_238 = arith.constant 111 : index
    %526 = vector.load %arg10[%c0_236, %c0_237, %c111_238] : memref<2x32x401xf32, #tpu.memory_space<vmem>>, vector<1x32x256xf32>
    %527 = vector.shape_cast %526 : vector<1x32x256xf32> to vector<32x256xf32>
    %cst_239 = arith.constant 0.000000e+00 : f32
    %528 = vector.shape_cast %20 : vector<1x256xi1> to vector<1x256xi1>
    %529 = vector.broadcast %528 : vector<1x256xi1> to vector<32x256xi1>
    %530 = vector.broadcast %cst_239 : f32 to vector<32x256xf32>
    %531 = arith.select %529, %527, %530 : vector<32x256xi1>, vector<32x256xf32>
    %c0_240 = arith.constant 0 : index
    %c0_241 = arith.constant 0 : index
    %532 = vector.load %arg12[%c0_240, %c0_241] : memref<289x512xf32, #tpu.memory_space<vmem>>, vector<32x256xf32>
    tpu.vector_store %arg12[%c0_240, %c0_241], %531 {strides = array<i32>} : memref<289x512xf32, #tpu.memory_space<vmem>>, vector<32x256xf32>,
    %c1_242 = arith.constant 1 : index
    %c0_243 = arith.constant 0 : index
    %c111_244 = arith.constant 111 : index
    %533 = vector.load %arg10[%c1_242, %c0_243, %c111_244] : memref<2x32x401xf32, #tpu.memory_space<vmem>>, vector<1x32x256xf32>
    %534 = vector.shape_cast %533 : vector<1x32x256xf32> to vector<32x256xf32>
    %cst_245 = arith.constant 0.000000e+00 : f32
    %535 = vector.shape_cast %20 : vector<1x256xi1> to vector<1x256xi1>
    %536 = vector.broadcast %535 : vector<1x256xi1> to vector<32x256xi1>
    %537 = vector.broadcast %cst_245 : f32 to vector<32x256xf32>
    %538 = arith.select %536, %534, %537 : vector<32x256xi1>, vector<32x256xf32>
    %c0_246 = arith.constant 0 : index
    %c256 = arith.constant 256 : index
    %539 = vector.load %arg12[%c0_246, %c256] : memref<289x512xf32, #tpu.memory_space<vmem>>, vector<32x256xf32>
    tpu.vector_store %arg12[%c0_246, %c256], %538 {strides = array<i32>} : memref<289x512xf32, #tpu.memory_space<vmem>>, vector<32x256xf32>,
    %c0_247 = arith.constant 0 : index
    %c0_248 = arith.constant 0 : index
    %c112_249 = arith.constant 112 : index
    %540 = vector.load %arg10[%c0_247, %c0_248, %c112_249] : memref<2x32x401xf32, #tpu.memory_space<vmem>>, vector<1x32x256xf32>
    %541 = vector.shape_cast %540 : vector<1x32x256xf32> to vector<32x256xf32>
    %c32 = arith.constant 32 : index
    %c0_250 = arith.constant 0 : index
    %542 = vector.load %arg12[%c32, %c0_250] : memref<289x512xf32, #tpu.memory_space<vmem>>, vector<32x256xf32>
    tpu.vector_store %arg12[%c32, %c0_250], %541 {strides = array<i32>} : memref<289x512xf32, #tpu.memory_space<vmem>>, vector<32x256xf32>,
    %c1_251 = arith.constant 1 : index
    %c0_252 = arith.constant 0 : index
    %c112_253 = arith.constant 112 : index
    %543 = vector.load %arg10[%c1_251, %c0_252, %c112_253] : memref<2x32x401xf32, #tpu.memory_space<vmem>>, vector<1x32x256xf32>
    %544 = vector.shape_cast %543 : vector<1x32x256xf32> to vector<32x256xf32>
    %c32_254 = arith.constant 32 : index
    %c256_255 = arith.constant 256 : index
    %545 = vector.load %arg12[%c32_254, %c256_255] : memref<289x512xf32, #tpu.memory_space<vmem>>, vector<32x256xf32>
    tpu.vector_store %arg12[%c32_254, %c256_255], %544 {strides = array<i32>} : memref<289x512xf32, #tpu.memory_space<vmem>>, vector<32x256xf32>,
    %c0_256 = arith.constant 0 : index
    %c0_257 = arith.constant 0 : index
    %c113_258 = arith.constant 113 : index
    %546 = vector.load %arg10[%c0_256, %c0_257, %c113_258] : memref<2x32x401xf32, #tpu.memory_space<vmem>>, vector<1x32x256xf32>
    %547 = vector.shape_cast %546 : vector<1x32x256xf32> to vector<32x256xf32>
    %cst_259 = arith.constant 0.000000e+00 : f32
    %548 = vector.shape_cast %22 : vector<1x256xi1> to vector<1x256xi1>
    %549 = vector.broadcast %548 : vector<1x256xi1> to vector<32x256xi1>
    %550 = vector.broadcast %cst_259 : f32 to vector<32x256xf32>
    %551 = arith.select %549, %547, %550 : vector<32x256xi1>, vector<32x256xf32>
    %c64 = arith.constant 64 : index
    %c0_260 = arith.constant 0 : index
    %552 = vector.load %arg12[%c64, %c0_260] : memref<289x512xf32, #tpu.memory_space<vmem>>, vector<32x256xf32>
    tpu.vector_store %arg12[%c64, %c0_260], %551 {strides = array<i32>} : memref<289x512xf32, #tpu.memory_space<vmem>>, vector<32x256xf32>,
    %c1_261 = arith.constant 1 : index
    %c0_262 = arith.constant 0 : index
    %c113_263 = arith.constant 113 : index
    %553 = vector.load %arg10[%c1_261, %c0_262, %c113_263] : memref<2x32x401xf32, #tpu.memory_space<vmem>>, vector<1x32x256xf32>
    %554 = vector.shape_cast %553 : vector<1x32x256xf32> to vector<32x256xf32>
    %cst_264 = arith.constant 0.000000e+00 : f32
    %555 = vector.shape_cast %22 : vector<1x256xi1> to vector<1x256xi1>
    %556 = vector.broadcast %555 : vector<1x256xi1> to vector<32x256xi1>
    %557 = vector.broadcast %cst_264 : f32 to vector<32x256xf32>
    %558 = arith.select %556, %554, %557 : vector<32x256xi1>, vector<32x256xf32>
    %c64_265 = arith.constant 64 : index
    %c256_266 = arith.constant 256 : index
    %559 = vector.load %arg12[%c64_265, %c256_266] : memref<289x512xf32, #tpu.memory_space<vmem>>, vector<32x256xf32>
    tpu.vector_store %arg12[%c64_265, %c256_266], %558 {strides = array<i32>} : memref<289x512xf32, #tpu.memory_space<vmem>>, vector<32x256xf32>,
    %c0_267 = arith.constant 0 : index
    %c0_268 = arith.constant 0 : index
    %c127_269 = arith.constant 127 : index
    %560 = vector.load %arg10[%c0_267, %c0_268, %c127_269] : memref<2x32x401xf32, #tpu.memory_space<vmem>>, vector<1x32x256xf32>
    %561 = vector.shape_cast %560 : vector<1x32x256xf32> to vector<32x256xf32>
    %cst_270 = arith.constant 0.000000e+00 : f32
    %562 = vector.shape_cast %20 : vector<1x256xi1> to vector<1x256xi1>
    %563 = vector.broadcast %562 : vector<1x256xi1> to vector<32x256xi1>
    %564 = vector.broadcast %cst_270 : f32 to vector<32x256xf32>
    %565 = arith.select %563, %561, %564 : vector<32x256xi1>, vector<32x256xf32>
    %c96_271 = arith.constant 96 : index
    %c0_272 = arith.constant 0 : index
    %566 = vector.load %arg12[%c96_271, %c0_272] : memref<289x512xf32, #tpu.memory_space<vmem>>, vector<32x256xf32>
    tpu.vector_store %arg12[%c96_271, %c0_272], %565 {strides = array<i32>} : memref<289x512xf32, #tpu.memory_space<vmem>>, vector<32x256xf32>,
    %c1_273 = arith.constant 1 : index
    %c0_274 = arith.constant 0 : index
    %c127_275 = arith.constant 127 : index
    %567 = vector.load %arg10[%c1_273, %c0_274, %c127_275] : memref<2x32x401xf32, #tpu.memory_space<vmem>>, vector<1x32x256xf32>
    %568 = vector.shape_cast %567 : vector<1x32x256xf32> to vector<32x256xf32>
    %cst_276 = arith.constant 0.000000e+00 : f32
    %569 = vector.shape_cast %20 : vector<1x256xi1> to vector<1x256xi1>
    %570 = vector.broadcast %569 : vector<1x256xi1> to vector<32x256xi1>
    %571 = vector.broadcast %cst_276 : f32 to vector<32x256xf32>
    %572 = arith.select %570, %568, %571 : vector<32x256xi1>, vector<32x256xf32>
    %c96_277 = arith.constant 96 : index
    %c256_278 = arith.constant 256 : index
    %573 = vector.load %arg12[%c96_277, %c256_278] : memref<289x512xf32, #tpu.memory_space<vmem>>, vector<32x256xf32>
    tpu.vector_store %arg12[%c96_277, %c256_278], %572 {strides = array<i32>} : memref<289x512xf32, #tpu.memory_space<vmem>>, vector<32x256xf32>,
    %c0_279 = arith.constant 0 : index
    %c0_280 = arith.constant 0 : index
    %c128_281 = arith.constant 128 : index
    %574 = vector.load %arg10[%c0_279, %c0_280, %c128_281] : memref<2x32x401xf32, #tpu.memory_space<vmem>>, vector<1x32x256xf32>
    %575 = vector.shape_cast %574 : vector<1x32x256xf32> to vector<32x256xf32>
    %c128_282 = arith.constant 128 : index
    %c0_283 = arith.constant 0 : index
    %576 = vector.load %arg12[%c128_282, %c0_283] : memref<289x512xf32, #tpu.memory_space<vmem>>, vector<32x256xf32>
    tpu.vector_store %arg12[%c128_282, %c0_283], %575 {strides = array<i32>} : memref<289x512xf32, #tpu.memory_space<vmem>>, vector<32x256xf32>,
    %c1_284 = arith.constant 1 : index
    %c0_285 = arith.constant 0 : index
    %c128_286 = arith.constant 128 : index
    %577 = vector.load %arg10[%c1_284, %c0_285, %c128_286] : memref<2x32x401xf32, #tpu.memory_space<vmem>>, vector<1x32x256xf32>
    %578 = vector.shape_cast %577 : vector<1x32x256xf32> to vector<32x256xf32>
    %c128_287 = arith.constant 128 : index
    %c256_288 = arith.constant 256 : index
    %579 = vector.load %arg12[%c128_287, %c256_288] : memref<289x512xf32, #tpu.memory_space<vmem>>, vector<32x256xf32>
    tpu.vector_store %arg12[%c128_287, %c256_288], %578 {strides = array<i32>} : memref<289x512xf32, #tpu.memory_space<vmem>>, vector<32x256xf32>,
    %c0_289 = arith.constant 0 : index
    %c0_290 = arith.constant 0 : index
    %c129_291 = arith.constant 129 : index
    %580 = vector.load %arg10[%c0_289, %c0_290, %c129_291] : memref<2x32x401xf32, #tpu.memory_space<vmem>>, vector<1x32x256xf32>
    %581 = vector.shape_cast %580 : vector<1x32x256xf32> to vector<32x256xf32>
    %cst_292 = arith.constant 0.000000e+00 : f32
    %582 = vector.shape_cast %22 : vector<1x256xi1> to vector<1x256xi1>
    %583 = vector.broadcast %582 : vector<1x256xi1> to vector<32x256xi1>
    %584 = vector.broadcast %cst_292 : f32 to vector<32x256xf32>
    %585 = arith.select %583, %581, %584 : vector<32x256xi1>, vector<32x256xf32>
    %c160_293 = arith.constant 160 : index
    %c0_294 = arith.constant 0 : index
    %586 = vector.load %arg12[%c160_293, %c0_294] : memref<289x512xf32, #tpu.memory_space<vmem>>, vector<32x256xf32>
    tpu.vector_store %arg12[%c160_293, %c0_294], %585 {strides = array<i32>} : memref<289x512xf32, #tpu.memory_space<vmem>>, vector<32x256xf32>,
    %c1_295 = arith.constant 1 : index
    %c0_296 = arith.constant 0 : index
    %c129_297 = arith.constant 129 : index
    %587 = vector.load %arg10[%c1_295, %c0_296, %c129_297] : memref<2x32x401xf32, #tpu.memory_space<vmem>>, vector<1x32x256xf32>
    %588 = vector.shape_cast %587 : vector<1x32x256xf32> to vector<32x256xf32>
    %cst_298 = arith.constant 0.000000e+00 : f32
    %589 = vector.shape_cast %22 : vector<1x256xi1> to vector<1x256xi1>
    %590 = vector.broadcast %589 : vector<1x256xi1> to vector<32x256xi1>
    %591 = vector.broadcast %cst_298 : f32 to vector<32x256xf32>
    %592 = arith.select %590, %588, %591 : vector<32x256xi1>, vector<32x256xf32>
    %c160_299 = arith.constant 160 : index
    %c256_300 = arith.constant 256 : index
    %593 = vector.load %arg12[%c160_299, %c256_300] : memref<289x512xf32, #tpu.memory_space<vmem>>, vector<32x256xf32>
    tpu.vector_store %arg12[%c160_299, %c256_300], %592 {strides = array<i32>} : memref<289x512xf32, #tpu.memory_space<vmem>>, vector<32x256xf32>,
    %c0_301 = arith.constant 0 : index
    %c0_302 = arith.constant 0 : index
    %c143_303 = arith.constant 143 : index
    %594 = vector.load %arg10[%c0_301, %c0_302, %c143_303] : memref<2x32x401xf32, #tpu.memory_space<vmem>>, vector<1x32x256xf32>
    %595 = vector.shape_cast %594 : vector<1x32x256xf32> to vector<32x256xf32>
    %cst_304 = arith.constant 0.000000e+00 : f32
    %596 = vector.shape_cast %20 : vector<1x256xi1> to vector<1x256xi1>
    %597 = vector.broadcast %596 : vector<1x256xi1> to vector<32x256xi1>
    %598 = vector.broadcast %cst_304 : f32 to vector<32x256xf32>
    %599 = arith.select %597, %595, %598 : vector<32x256xi1>, vector<32x256xf32>
    %c192 = arith.constant 192 : index
    %c0_305 = arith.constant 0 : index
    %600 = vector.load %arg12[%c192, %c0_305] : memref<289x512xf32, #tpu.memory_space<vmem>>, vector<32x256xf32>
    tpu.vector_store %arg12[%c192, %c0_305], %599 {strides = array<i32>} : memref<289x512xf32, #tpu.memory_space<vmem>>, vector<32x256xf32>,
    %c1_306 = arith.constant 1 : index
    %c0_307 = arith.constant 0 : index
    %c143_308 = arith.constant 143 : index
    %601 = vector.load %arg10[%c1_306, %c0_307, %c143_308] : memref<2x32x401xf32, #tpu.memory_space<vmem>>, vector<1x32x256xf32>
    %602 = vector.shape_cast %601 : vector<1x32x256xf32> to vector<32x256xf32>
    %cst_309 = arith.constant 0.000000e+00 : f32
    %603 = vector.shape_cast %20 : vector<1x256xi1> to vector<1x256xi1>
    %604 = vector.broadcast %603 : vector<1x256xi1> to vector<32x256xi1>
    %605 = vector.broadcast %cst_309 : f32 to vector<32x256xf32>
    %606 = arith.select %604, %602, %605 : vector<32x256xi1>, vector<32x256xf32>
    %c192_310 = arith.constant 192 : index
    %c256_311 = arith.constant 256 : index
    %607 = vector.load %arg12[%c192_310, %c256_311] : memref<289x512xf32, #tpu.memory_space<vmem>>, vector<32x256xf32>
    tpu.vector_store %arg12[%c192_310, %c256_311], %606 {strides = array<i32>} : memref<289x512xf32, #tpu.memory_space<vmem>>, vector<32x256xf32>,
    %c0_312 = arith.constant 0 : index
    %c0_313 = arith.constant 0 : index
    %c144_314 = arith.constant 144 : index
    %608 = vector.load %arg10[%c0_312, %c0_313, %c144_314] : memref<2x32x401xf32, #tpu.memory_space<vmem>>, vector<1x32x256xf32>
    %609 = vector.shape_cast %608 : vector<1x32x256xf32> to vector<32x256xf32>
    %c224 = arith.constant 224 : index
    %c0_315 = arith.constant 0 : index
    %610 = vector.load %arg12[%c224, %c0_315] : memref<289x512xf32, #tpu.memory_space<vmem>>, vector<32x256xf32>
    tpu.vector_store %arg12[%c224, %c0_315], %609 {strides = array<i32>} : memref<289x512xf32, #tpu.memory_space<vmem>>, vector<32x256xf32>,
    %c1_316 = arith.constant 1 : index
    %c0_317 = arith.constant 0 : index
    %c144_318 = arith.constant 144 : index
    %611 = vector.load %arg10[%c1_316, %c0_317, %c144_318] : memref<2x32x401xf32, #tpu.memory_space<vmem>>, vector<1x32x256xf32>
    %612 = vector.shape_cast %611 : vector<1x32x256xf32> to vector<32x256xf32>
    %c224_319 = arith.constant 224 : index
    %c256_320 = arith.constant 256 : index
    %613 = vector.load %arg12[%c224_319, %c256_320] : memref<289x512xf32, #tpu.memory_space<vmem>>, vector<32x256xf32>
    tpu.vector_store %arg12[%c224_319, %c256_320], %612 {strides = array<i32>} : memref<289x512xf32, #tpu.memory_space<vmem>>, vector<32x256xf32>,
    %c0_321 = arith.constant 0 : index
    %c0_322 = arith.constant 0 : index
    %c145_323 = arith.constant 145 : index
    %614 = vector.load %arg10[%c0_321, %c0_322, %c145_323] : memref<2x32x401xf32, #tpu.memory_space<vmem>>, vector<1x32x256xf32>
    %615 = vector.shape_cast %614 : vector<1x32x256xf32> to vector<32x256xf32>
    %cst_324 = arith.constant 0.000000e+00 : f32
    %616 = vector.shape_cast %22 : vector<1x256xi1> to vector<1x256xi1>
    %617 = vector.broadcast %616 : vector<1x256xi1> to vector<32x256xi1>
    %618 = vector.broadcast %cst_324 : f32 to vector<32x256xf32>
    %619 = arith.select %617, %615, %618 : vector<32x256xi1>, vector<32x256xf32>
    %c256_325 = arith.constant 256 : index
    %c0_326 = arith.constant 0 : index
    %620 = vector.load %arg12[%c256_325, %c0_326] : memref<289x512xf32, #tpu.memory_space<vmem>>, vector<32x256xf32>
    tpu.vector_store %arg12[%c256_325, %c0_326], %619 {strides = array<i32>} : memref<289x512xf32, #tpu.memory_space<vmem>>, vector<32x256xf32>,
    %c1_327 = arith.constant 1 : index
    %c0_328 = arith.constant 0 : index
    %c145_329 = arith.constant 145 : index
    %621 = vector.load %arg10[%c1_327, %c0_328, %c145_329] : memref<2x32x401xf32, #tpu.memory_space<vmem>>, vector<1x32x256xf32>
    %622 = vector.shape_cast %621 : vector<1x32x256xf32> to vector<32x256xf32>
    %cst_330 = arith.constant 0.000000e+00 : f32
    %623 = vector.shape_cast %22 : vector<1x256xi1> to vector<1x256xi1>
    %624 = vector.broadcast %623 : vector<1x256xi1> to vector<32x256xi1>
    %625 = vector.broadcast %cst_330 : f32 to vector<32x256xf32>
    %626 = arith.select %624, %622, %625 : vector<32x256xi1>, vector<32x256xf32>
    %c256_331 = arith.constant 256 : index
    %c256_332 = arith.constant 256 : index
    %627 = vector.load %arg12[%c256_331, %c256_332] : memref<289x512xf32, #tpu.memory_space<vmem>>, vector<32x256xf32>
    tpu.vector_store %arg12[%c256_331, %c256_332], %626 {strides = array<i32>} : memref<289x512xf32, #tpu.memory_space<vmem>>, vector<32x256xf32>,
    %cst_333 = arith.constant 1.000000e+00 : f32
    %628 = vector.broadcast %cst_333 : f32 to vector<1x512xf32>
    %c288 = arith.constant 288 : index
    %c0_334 = arith.constant 0 : index
    %629 = vector.load %arg12[%c288, %c0_334] : memref<289x512xf32, #tpu.memory_space<vmem>>, vector<1x512xf32>
    tpu.vector_store %arg12[%c288, %c0_334], %628 {strides = array<i32>} : memref<289x512xf32, #tpu.memory_space<vmem>>, vector<1x512xf32>,
    %c0_335 = arith.constant 0 : index
    %c0_336 = arith.constant 0 : index
    %630 = vector.load %arg4[%c0_335, %c0_336] : memref<16x289xf32, #tpu.memory_space<vmem>>, vector<16x289xf32>
    %c0_337 = arith.constant 0 : index
    %c0_338 = arith.constant 0 : index
    %631 = vector.load %arg12[%c0_337, %c0_338] : memref<289x512xf32, #tpu.memory_space<vmem>>, vector<289x512xf32>
    %cst_339 = arith.constant dense<0.000000e+00> : vector<16x512xf32>
    %632 = tpu.matmul %630, %631, %cst_339 {dimension_numbers = #tpu.dot_dimension_numbers<[1], [0], [0], [1], [0, 0, 1, 1], [], []>} : vector<16x289xf32>, vector<289x512xf32>, vector<16x512xf32> -> vector<16x512xf32>
    %cst_340 = arith.constant 0.000000e+00 : f32
    %633 = vector.broadcast %cst_340 : f32 to vector<16x512xf32>
    %634 = arith.maximumf %632, %633 : vector<16x512xf32>
    %635 = vector.extract_strided_slice %634 {offsets = [0, 0], sizes = [16, 256], strides = [1, 1]} : vector<16x512xf32> to vector<16x256xf32>
    %c0_341 = arith.constant 0 : index
    %c0_342 = arith.constant 0 : index
    %c128_343 = arith.constant 128 : index
    %636 = vector.load %arg11[%c0_341, %c0_342, %c128_343] : memref<2x16x401xf32, #tpu.memory_space<vmem>>, vector<1x16x256xf32>
    %637 = vector.shape_cast %636 : vector<1x16x256xf32> to vector<16x256xf32>
    %638 = vector.shape_cast %635 : vector<16x256xf32> to vector<1x16x256xf32>
    tpu.vector_store %arg11[%c0_341, %c0_342, %c128_343], %638 {strides = array<i32>} : memref<2x16x401xf32, #tpu.memory_space<vmem>>, vector<1x16x256xf32>,
    %639 = vector.extract_strided_slice %634 {offsets = [0, 256], sizes = [16, 256], strides = [1, 1]} : vector<16x512xf32> to vector<16x256xf32>
    %c1_344 = arith.constant 1 : index
    %c0_345 = arith.constant 0 : index
    %c128_346 = arith.constant 128 : index
    %640 = vector.load %arg11[%c1_344, %c0_345, %c128_346] : memref<2x16x401xf32, #tpu.memory_space<vmem>>, vector<1x16x256xf32>
    %641 = vector.shape_cast %640 : vector<1x16x256xf32> to vector<16x256xf32>
    %642 = vector.shape_cast %639 : vector<16x256xf32> to vector<1x16x256xf32>
    tpu.vector_store %arg11[%c1_344, %c0_345, %c128_346], %642 {strides = array<i32>} : memref<2x16x401xf32, #tpu.memory_space<vmem>>, vector<1x16x256xf32>,
    %c0_347 = arith.constant 0 : index
    %c0_348 = arith.constant 0 : index
    %c111_349 = arith.constant 111 : index
    %643 = vector.load %arg11[%c0_347, %c0_348, %c111_349] : memref<2x16x401xf32, #tpu.memory_space<vmem>>, vector<1x16x256xf32>
    %644 = vector.shape_cast %643 : vector<1x16x256xf32> to vector<16x256xf32>
    %cst_350 = arith.constant 0.000000e+00 : f32
    %645 = vector.shape_cast %20 : vector<1x256xi1> to vector<1x256xi1>
    %646 = vector.broadcast %645 : vector<1x256xi1> to vector<16x256xi1>
    %647 = vector.broadcast %cst_350 : f32 to vector<16x256xf32>
    %648 = arith.select %646, %644, %647 : vector<16x256xi1>, vector<16x256xf32>
    %c0_351 = arith.constant 0 : index
    %c0_352 = arith.constant 0 : index
    %649 = vector.load %arg12[%c0_351, %c0_352] : memref<289x512xf32, #tpu.memory_space<vmem>>, vector<16x256xf32>
    tpu.vector_store %arg12[%c0_351, %c0_352], %648 {strides = array<i32>} : memref<289x512xf32, #tpu.memory_space<vmem>>, vector<16x256xf32>,
    %c1_353 = arith.constant 1 : index
    %c0_354 = arith.constant 0 : index
    %c111_355 = arith.constant 111 : index
    %650 = vector.load %arg11[%c1_353, %c0_354, %c111_355] : memref<2x16x401xf32, #tpu.memory_space<vmem>>, vector<1x16x256xf32>
    %651 = vector.shape_cast %650 : vector<1x16x256xf32> to vector<16x256xf32>
    %cst_356 = arith.constant 0.000000e+00 : f32
    %652 = vector.shape_cast %20 : vector<1x256xi1> to vector<1x256xi1>
    %653 = vector.broadcast %652 : vector<1x256xi1> to vector<16x256xi1>
    %654 = vector.broadcast %cst_356 : f32 to vector<16x256xf32>
    %655 = arith.select %653, %651, %654 : vector<16x256xi1>, vector<16x256xf32>
    %c0_357 = arith.constant 0 : index
    %c256_358 = arith.constant 256 : index
    %656 = vector.load %arg12[%c0_357, %c256_358] : memref<289x512xf32, #tpu.memory_space<vmem>>, vector<16x256xf32>
    tpu.vector_store %arg12[%c0_357, %c256_358], %655 {strides = array<i32>} : memref<289x512xf32, #tpu.memory_space<vmem>>, vector<16x256xf32>,
    %c0_359 = arith.constant 0 : index
    %c0_360 = arith.constant 0 : index
    %c112_361 = arith.constant 112 : index
    %657 = vector.load %arg11[%c0_359, %c0_360, %c112_361] : memref<2x16x401xf32, #tpu.memory_space<vmem>>, vector<1x16x256xf32>
    %658 = vector.shape_cast %657 : vector<1x16x256xf32> to vector<16x256xf32>
    %c16 = arith.constant 16 : index
    %c0_362 = arith.constant 0 : index
    %659 = vector.load %arg12[%c16, %c0_362] : memref<289x512xf32, #tpu.memory_space<vmem>>, vector<16x256xf32>
    tpu.vector_store %arg12[%c16, %c0_362], %658 {strides = array<i32>} : memref<289x512xf32, #tpu.memory_space<vmem>>, vector<16x256xf32>,
    %c1_363 = arith.constant 1 : index
    %c0_364 = arith.constant 0 : index
    %c112_365 = arith.constant 112 : index
    %660 = vector.load %arg11[%c1_363, %c0_364, %c112_365] : memref<2x16x401xf32, #tpu.memory_space<vmem>>, vector<1x16x256xf32>
    %661 = vector.shape_cast %660 : vector<1x16x256xf32> to vector<16x256xf32>
    %c16_366 = arith.constant 16 : index
    %c256_367 = arith.constant 256 : index
    %662 = vector.load %arg12[%c16_366, %c256_367] : memref<289x512xf32, #tpu.memory_space<vmem>>, vector<16x256xf32>
    tpu.vector_store %arg12[%c16_366, %c256_367], %661 {strides = array<i32>} : memref<289x512xf32, #tpu.memory_space<vmem>>, vector<16x256xf32>,
    %c0_368 = arith.constant 0 : index
    %c0_369 = arith.constant 0 : index
    %c113_370 = arith.constant 113 : index
    %663 = vector.load %arg11[%c0_368, %c0_369, %c113_370] : memref<2x16x401xf32, #tpu.memory_space<vmem>>, vector<1x16x256xf32>
    %664 = vector.shape_cast %663 : vector<1x16x256xf32> to vector<16x256xf32>
    %cst_371 = arith.constant 0.000000e+00 : f32
    %665 = vector.shape_cast %22 : vector<1x256xi1> to vector<1x256xi1>
    %666 = vector.broadcast %665 : vector<1x256xi1> to vector<16x256xi1>
    %667 = vector.broadcast %cst_371 : f32 to vector<16x256xf32>
    %668 = arith.select %666, %664, %667 : vector<16x256xi1>, vector<16x256xf32>
    %c32_372 = arith.constant 32 : index
    %c0_373 = arith.constant 0 : index
    %669 = vector.load %arg12[%c32_372, %c0_373] : memref<289x512xf32, #tpu.memory_space<vmem>>, vector<16x256xf32>
    tpu.vector_store %arg12[%c32_372, %c0_373], %668 {strides = array<i32>} : memref<289x512xf32, #tpu.memory_space<vmem>>, vector<16x256xf32>,
    %c1_374 = arith.constant 1 : index
    %c0_375 = arith.constant 0 : index
    %c113_376 = arith.constant 113 : index
    %670 = vector.load %arg11[%c1_374, %c0_375, %c113_376] : memref<2x16x401xf32, #tpu.memory_space<vmem>>, vector<1x16x256xf32>
    %671 = vector.shape_cast %670 : vector<1x16x256xf32> to vector<16x256xf32>
    %cst_377 = arith.constant 0.000000e+00 : f32
    %672 = vector.shape_cast %22 : vector<1x256xi1> to vector<1x256xi1>
    %673 = vector.broadcast %672 : vector<1x256xi1> to vector<16x256xi1>
    %674 = vector.broadcast %cst_377 : f32 to vector<16x256xf32>
    %675 = arith.select %673, %671, %674 : vector<16x256xi1>, vector<16x256xf32>
    %c32_378 = arith.constant 32 : index
    %c256_379 = arith.constant 256 : index
    %676 = vector.load %arg12[%c32_378, %c256_379] : memref<289x512xf32, #tpu.memory_space<vmem>>, vector<16x256xf32>
    tpu.vector_store %arg12[%c32_378, %c256_379], %675 {strides = array<i32>} : memref<289x512xf32, #tpu.memory_space<vmem>>, vector<16x256xf32>,
    %c0_380 = arith.constant 0 : index
    %c0_381 = arith.constant 0 : index
    %c127_382 = arith.constant 127 : index
    %677 = vector.load %arg11[%c0_380, %c0_381, %c127_382] : memref<2x16x401xf32, #tpu.memory_space<vmem>>, vector<1x16x256xf32>
    %678 = vector.shape_cast %677 : vector<1x16x256xf32> to vector<16x256xf32>
    %cst_383 = arith.constant 0.000000e+00 : f32
    %679 = vector.shape_cast %20 : vector<1x256xi1> to vector<1x256xi1>
    %680 = vector.broadcast %679 : vector<1x256xi1> to vector<16x256xi1>
    %681 = vector.broadcast %cst_383 : f32 to vector<16x256xf32>
    %682 = arith.select %680, %678, %681 : vector<16x256xi1>, vector<16x256xf32>
    %c48 = arith.constant 48 : index
    %c0_384 = arith.constant 0 : index
    %683 = vector.load %arg12[%c48, %c0_384] : memref<289x512xf32, #tpu.memory_space<vmem>>, vector<16x256xf32>
    tpu.vector_store %arg12[%c48, %c0_384], %682 {strides = array<i32>} : memref<289x512xf32, #tpu.memory_space<vmem>>, vector<16x256xf32>,
    %c1_385 = arith.constant 1 : index
    %c0_386 = arith.constant 0 : index
    %c127_387 = arith.constant 127 : index
    %684 = vector.load %arg11[%c1_385, %c0_386, %c127_387] : memref<2x16x401xf32, #tpu.memory_space<vmem>>, vector<1x16x256xf32>
    %685 = vector.shape_cast %684 : vector<1x16x256xf32> to vector<16x256xf32>
    %cst_388 = arith.constant 0.000000e+00 : f32
    %686 = vector.shape_cast %20 : vector<1x256xi1> to vector<1x256xi1>
    %687 = vector.broadcast %686 : vector<1x256xi1> to vector<16x256xi1>
    %688 = vector.broadcast %cst_388 : f32 to vector<16x256xf32>
    %689 = arith.select %687, %685, %688 : vector<16x256xi1>, vector<16x256xf32>
    %c48_389 = arith.constant 48 : index
    %c256_390 = arith.constant 256 : index
    %690 = vector.load %arg12[%c48_389, %c256_390] : memref<289x512xf32, #tpu.memory_space<vmem>>, vector<16x256xf32>
    tpu.vector_store %arg12[%c48_389, %c256_390], %689 {strides = array<i32>} : memref<289x512xf32, #tpu.memory_space<vmem>>, vector<16x256xf32>,
    %c0_391 = arith.constant 0 : index
    %c0_392 = arith.constant 0 : index
    %c128_393 = arith.constant 128 : index
    %691 = vector.load %arg11[%c0_391, %c0_392, %c128_393] : memref<2x16x401xf32, #tpu.memory_space<vmem>>, vector<1x16x256xf32>
    %692 = vector.shape_cast %691 : vector<1x16x256xf32> to vector<16x256xf32>
    %c64_394 = arith.constant 64 : index
    %c0_395 = arith.constant 0 : index
    %693 = vector.load %arg12[%c64_394, %c0_395] : memref<289x512xf32, #tpu.memory_space<vmem>>, vector<16x256xf32>
    tpu.vector_store %arg12[%c64_394, %c0_395], %692 {strides = array<i32>} : memref<289x512xf32, #tpu.memory_space<vmem>>, vector<16x256xf32>,
    %c1_396 = arith.constant 1 : index
    %c0_397 = arith.constant 0 : index
    %c128_398 = arith.constant 128 : index
    %694 = vector.load %arg11[%c1_396, %c0_397, %c128_398] : memref<2x16x401xf32, #tpu.memory_space<vmem>>, vector<1x16x256xf32>
    %695 = vector.shape_cast %694 : vector<1x16x256xf32> to vector<16x256xf32>
    %c64_399 = arith.constant 64 : index
    %c256_400 = arith.constant 256 : index
    %696 = vector.load %arg12[%c64_399, %c256_400] : memref<289x512xf32, #tpu.memory_space<vmem>>, vector<16x256xf32>
    tpu.vector_store %arg12[%c64_399, %c256_400], %695 {strides = array<i32>} : memref<289x512xf32, #tpu.memory_space<vmem>>, vector<16x256xf32>,
    %c0_401 = arith.constant 0 : index
    %c0_402 = arith.constant 0 : index
    %c129_403 = arith.constant 129 : index
    %697 = vector.load %arg11[%c0_401, %c0_402, %c129_403] : memref<2x16x401xf32, #tpu.memory_space<vmem>>, vector<1x16x256xf32>
    %698 = vector.shape_cast %697 : vector<1x16x256xf32> to vector<16x256xf32>
    %cst_404 = arith.constant 0.000000e+00 : f32
    %699 = vector.shape_cast %22 : vector<1x256xi1> to vector<1x256xi1>
    %700 = vector.broadcast %699 : vector<1x256xi1> to vector<16x256xi1>
    %701 = vector.broadcast %cst_404 : f32 to vector<16x256xf32>
    %702 = arith.select %700, %698, %701 : vector<16x256xi1>, vector<16x256xf32>
    %c80 = arith.constant 80 : index
    %c0_405 = arith.constant 0 : index
    %703 = vector.load %arg12[%c80, %c0_405] : memref<289x512xf32, #tpu.memory_space<vmem>>, vector<16x256xf32>
    tpu.vector_store %arg12[%c80, %c0_405], %702 {strides = array<i32>} : memref<289x512xf32, #tpu.memory_space<vmem>>, vector<16x256xf32>,
    %c1_406 = arith.constant 1 : index
    %c0_407 = arith.constant 0 : index
    %c129_408 = arith.constant 129 : index
    %704 = vector.load %arg11[%c1_406, %c0_407, %c129_408] : memref<2x16x401xf32, #tpu.memory_space<vmem>>, vector<1x16x256xf32>
    %705 = vector.shape_cast %704 : vector<1x16x256xf32> to vector<16x256xf32>
    %cst_409 = arith.constant 0.000000e+00 : f32
    %706 = vector.shape_cast %22 : vector<1x256xi1> to vector<1x256xi1>
    %707 = vector.broadcast %706 : vector<1x256xi1> to vector<16x256xi1>
    %708 = vector.broadcast %cst_409 : f32 to vector<16x256xf32>
    %709 = arith.select %707, %705, %708 : vector<16x256xi1>, vector<16x256xf32>
    %c80_410 = arith.constant 80 : index
    %c256_411 = arith.constant 256 : index
    %710 = vector.load %arg12[%c80_410, %c256_411] : memref<289x512xf32, #tpu.memory_space<vmem>>, vector<16x256xf32>
    tpu.vector_store %arg12[%c80_410, %c256_411], %709 {strides = array<i32>} : memref<289x512xf32, #tpu.memory_space<vmem>>, vector<16x256xf32>,
    %c0_412 = arith.constant 0 : index
    %c0_413 = arith.constant 0 : index
    %c143_414 = arith.constant 143 : index
    %711 = vector.load %arg11[%c0_412, %c0_413, %c143_414] : memref<2x16x401xf32, #tpu.memory_space<vmem>>, vector<1x16x256xf32>
    %712 = vector.shape_cast %711 : vector<1x16x256xf32> to vector<16x256xf32>
    %cst_415 = arith.constant 0.000000e+00 : f32
    %713 = vector.shape_cast %20 : vector<1x256xi1> to vector<1x256xi1>
    %714 = vector.broadcast %713 : vector<1x256xi1> to vector<16x256xi1>
    %715 = vector.broadcast %cst_415 : f32 to vector<16x256xf32>
    %716 = arith.select %714, %712, %715 : vector<16x256xi1>, vector<16x256xf32>
    %c96_416 = arith.constant 96 : index
    %c0_417 = arith.constant 0 : index
    %717 = vector.load %arg12[%c96_416, %c0_417] : memref<289x512xf32, #tpu.memory_space<vmem>>, vector<16x256xf32>
    tpu.vector_store %arg12[%c96_416, %c0_417], %716 {strides = array<i32>} : memref<289x512xf32, #tpu.memory_space<vmem>>, vector<16x256xf32>,
    %c1_418 = arith.constant 1 : index
    %c0_419 = arith.constant 0 : index
    %c143_420 = arith.constant 143 : index
    %718 = vector.load %arg11[%c1_418, %c0_419, %c143_420] : memref<2x16x401xf32, #tpu.memory_space<vmem>>, vector<1x16x256xf32>
    %719 = vector.shape_cast %718 : vector<1x16x256xf32> to vector<16x256xf32>
    %cst_421 = arith.constant 0.000000e+00 : f32
    %720 = vector.shape_cast %20 : vector<1x256xi1> to vector<1x256xi1>
    %721 = vector.broadcast %720 : vector<1x256xi1> to vector<16x256xi1>
    %722 = vector.broadcast %cst_421 : f32 to vector<16x256xf32>
    %723 = arith.select %721, %719, %722 : vector<16x256xi1>, vector<16x256xf32>
    %c96_422 = arith.constant 96 : index
    %c256_423 = arith.constant 256 : index
    %724 = vector.load %arg12[%c96_422, %c256_423] : memref<289x512xf32, #tpu.memory_space<vmem>>, vector<16x256xf32>
    tpu.vector_store %arg12[%c96_422, %c256_423], %723 {strides = array<i32>} : memref<289x512xf32, #tpu.memory_space<vmem>>, vector<16x256xf32>,
    %c0_424 = arith.constant 0 : index
    %c0_425 = arith.constant 0 : index
    %c144_426 = arith.constant 144 : index
    %725 = vector.load %arg11[%c0_424, %c0_425, %c144_426] : memref<2x16x401xf32, #tpu.memory_space<vmem>>, vector<1x16x256xf32>
    %726 = vector.shape_cast %725 : vector<1x16x256xf32> to vector<16x256xf32>
    %c112_427 = arith.constant 112 : index
    %c0_428 = arith.constant 0 : index
    %727 = vector.load %arg12[%c112_427, %c0_428] : memref<289x512xf32, #tpu.memory_space<vmem>>, vector<16x256xf32>
    tpu.vector_store %arg12[%c112_427, %c0_428], %726 {strides = array<i32>} : memref<289x512xf32, #tpu.memory_space<vmem>>, vector<16x256xf32>,
    %c1_429 = arith.constant 1 : index
    %c0_430 = arith.constant 0 : index
    %c144_431 = arith.constant 144 : index
    %728 = vector.load %arg11[%c1_429, %c0_430, %c144_431] : memref<2x16x401xf32, #tpu.memory_space<vmem>>, vector<1x16x256xf32>
    %729 = vector.shape_cast %728 : vector<1x16x256xf32> to vector<16x256xf32>
    %c112_432 = arith.constant 112 : index
    %c256_433 = arith.constant 256 : index
    %730 = vector.load %arg12[%c112_432, %c256_433] : memref<289x512xf32, #tpu.memory_space<vmem>>, vector<16x256xf32>
    tpu.vector_store %arg12[%c112_432, %c256_433], %729 {strides = array<i32>} : memref<289x512xf32, #tpu.memory_space<vmem>>, vector<16x256xf32>,
    %c0_434 = arith.constant 0 : index
    %c0_435 = arith.constant 0 : index
    %c145_436 = arith.constant 145 : index
    %731 = vector.load %arg11[%c0_434, %c0_435, %c145_436] : memref<2x16x401xf32, #tpu.memory_space<vmem>>, vector<1x16x256xf32>
    %732 = vector.shape_cast %731 : vector<1x16x256xf32> to vector<16x256xf32>
    %cst_437 = arith.constant 0.000000e+00 : f32
    %733 = vector.shape_cast %22 : vector<1x256xi1> to vector<1x256xi1>
    %734 = vector.broadcast %733 : vector<1x256xi1> to vector<16x256xi1>
    %735 = vector.broadcast %cst_437 : f32 to vector<16x256xf32>
    %736 = arith.select %734, %732, %735 : vector<16x256xi1>, vector<16x256xf32>
    %c128_438 = arith.constant 128 : index
    %c0_439 = arith.constant 0 : index
    %737 = vector.load %arg12[%c128_438, %c0_439] : memref<289x512xf32, #tpu.memory_space<vmem>>, vector<16x256xf32>
    tpu.vector_store %arg12[%c128_438, %c0_439], %736 {strides = array<i32>} : memref<289x512xf32, #tpu.memory_space<vmem>>, vector<16x256xf32>,
    %c1_440 = arith.constant 1 : index
    %c0_441 = arith.constant 0 : index
    %c145_442 = arith.constant 145 : index
    %738 = vector.load %arg11[%c1_440, %c0_441, %c145_442] : memref<2x16x401xf32, #tpu.memory_space<vmem>>, vector<1x16x256xf32>
    %739 = vector.shape_cast %738 : vector<1x16x256xf32> to vector<16x256xf32>
    %cst_443 = arith.constant 0.000000e+00 : f32
    %740 = vector.shape_cast %22 : vector<1x256xi1> to vector<1x256xi1>
    %741 = vector.broadcast %740 : vector<1x256xi1> to vector<16x256xi1>
    %742 = vector.broadcast %cst_443 : f32 to vector<16x256xf32>
    %743 = arith.select %741, %739, %742 : vector<16x256xi1>, vector<16x256xf32>
    %c128_444 = arith.constant 128 : index
    %c256_445 = arith.constant 256 : index
    %744 = vector.load %arg12[%c128_444, %c256_445] : memref<289x512xf32, #tpu.memory_space<vmem>>, vector<16x256xf32>
    tpu.vector_store %arg12[%c128_444, %c256_445], %743 {strides = array<i32>} : memref<289x512xf32, #tpu.memory_space<vmem>>, vector<16x256xf32>,
    %cst_446 = arith.constant 1.000000e+00 : f32
    %745 = vector.broadcast %cst_446 : f32 to vector<1x512xf32>
    %c144_447 = arith.constant 144 : index
    %c0_448 = arith.constant 0 : index
    %746 = vector.load %arg12[%c144_447, %c0_448] : memref<289x512xf32, #tpu.memory_space<vmem>>, vector<1x512xf32>
    tpu.vector_store %arg12[%c144_447, %c0_448], %745 {strides = array<i32>} : memref<289x512xf32, #tpu.memory_space<vmem>>, vector<1x512xf32>,
    %c0_449 = arith.constant 0 : index
    %c0_450 = arith.constant 0 : index
    %747 = vector.load %arg5[%c0_449, %c0_450] : memref<8x145xf32, #tpu.memory_space<vmem>>, vector<8x145xf32>
    %c0_451 = arith.constant 0 : index
    %c0_452 = arith.constant 0 : index
    %748 = vector.load %arg12[%c0_451, %c0_452] : memref<289x512xf32, #tpu.memory_space<vmem>>, vector<145x512xf32>
    %cst_453 = arith.constant dense<0.000000e+00> : vector<8x512xf32>
    %749 = tpu.matmul %747, %748, %cst_453 {dimension_numbers = #tpu.dot_dimension_numbers<[1], [0], [0], [1], [0, 0, 1, 1], [], []>} : vector<8x145xf32>, vector<145x512xf32>, vector<8x512xf32> -> vector<8x512xf32>
    %cst_454 = arith.constant 0.000000e+00 : f32
    %750 = vector.broadcast %cst_454 : f32 to vector<8x512xf32>
    %751 = arith.maximumf %749, %750 : vector<8x512xf32>
    %c0_455 = arith.constant 0 : index
    %c0_456 = arith.constant 0 : index
    %752 = vector.load %arg6[%c0_455, %c0_456] : memref<1x8xf32, #tpu.memory_space<vmem>>, vector<1x8xf32>
    %cst_457 = arith.constant dense<0.000000e+00> : vector<1x512xf32>
    %753 = tpu.matmul %752, %751, %cst_457 {dimension_numbers = #tpu.dot_dimension_numbers<[1], [0], [0], [1], [0, 0, 1, 1], [], []>} : vector<1x8xf32>, vector<8x512xf32>, vector<1x512xf32> -> vector<1x512xf32>
    %c0_458 = arith.constant 0 : index
    %c0_459 = arith.constant 0 : index
    %754 = vector.load %arg7[%c0_458, %c0_459] : memref<1x512xf32, #tpu.memory_space<vmem>>, vector<1x512xf32>
    %755 = arith.addf %753, %754 : vector<1x512xf32>
    %756 = vector.shape_cast %755 : vector<1x512xf32> to vector<1x1x512xf32>
    %c0_460 = arith.constant 0 : index
    %c0_461 = arith.constant 0 : index
    %c0_462 = arith.constant 0 : index
    %757 = vector.load %arg8[%c0_460, %c0_461, %c0_462] : memref<1x1x512xf32, #tpu.memory_space<vmem>>, vector<1x1x512xf32>
    tpu.vector_store %arg8[%c0_460, %c0_461, %c0_462], %756 {strides = array<i32>} : memref<1x1x512xf32, #tpu.memory_space<vmem>>, vector<1x1x512xf32>,
    return
  }
  func.func @transform_0(%arg0: i32) -> (i32, i32, i32) {
    %c0_i32 = arith.constant 0 : i32
    %c0_i32_0 = arith.constant 0 : i32
    %c0_i32_1 = arith.constant 0 : i32
    return %arg0, %c0_i32, %c0_i32_0 : i32, i32, i32
  }
  func.func @transform_1(%arg0: i32) -> (i32, i32) {
    %c0_i32 = arith.constant 0 : i32
    %c0_i32_0 = arith.constant 0 : i32
    %c0_i32_1 = arith.constant 0 : i32
    return %c0_i32, %c0_i32_0 : i32, i32
  }
  func.func @transform_2(%arg0: i32) -> (i32, i32) {
    %c0_i32 = arith.constant 0 : i32
    %c0_i32_0 = arith.constant 0 : i32
    %c0_i32_1 = arith.constant 0 : i32
    return %c0_i32, %c0_i32_0 : i32, i32
  }
  func.func @transform_3(%arg0: i32) -> (i32, i32) {
    %c0_i32 = arith.constant 0 : i32
    %c0_i32_0 = arith.constant 0 : i32
    %c0_i32_1 = arith.constant 0 : i32
    return %c0_i32, %c0_i32_0 : i32, i32
  }
  func.func @transform_4(%arg0: i32) -> (i32, i32) {
    %c0_i32 = arith.constant 0 : i32
    %c0_i32_0 = arith.constant 0 : i32
    %c0_i32_1 = arith.constant 0 : i32
    return %c0_i32, %c0_i32_0 : i32, i32
  }
  func.func @transform_5(%arg0: i32) -> (i32, i32) {
    %c0_i32 = arith.constant 0 : i32
    %c0_i32_0 = arith.constant 0 : i32
    %c0_i32_1 = arith.constant 0 : i32
    return %c0_i32, %c0_i32_0 : i32, i32
  }
  func.func @transform_6(%arg0: i32) -> (i32, i32) {
    %c0_i32 = arith.constant 0 : i32
    %c0_i32_0 = arith.constant 0 : i32
    %c0_i32_1 = arith.constant 0 : i32
    return %c0_i32, %c0_i32_0 : i32, i32
  }
  func.func @transform_7(%arg0: i32) -> (i32, i32, i32) {
    %c0_i32 = arith.constant 0 : i32
    %c0_i32_0 = arith.constant 0 : i32
    %c0_i32_1 = arith.constant 0 : i32
    return %arg0, %c0_i32, %c0_i32_0 : i32, i32, i32
  }
}

</mosaic_0001>

<bundles_post_ra>
// kernel: tpu_custom_call.1
= control target key start
LH: loop header
LB: loop body
LE: loop exit
PB: predicated region body
PF: predicated region fallthrough
CT: control target
= control target key end

     0   :  { %s10754_s0 = inlined_call_operand.hbm [shape: f32[2,1,512], index: 0, kind: input, shape index: {}]   ;;  %s10755_s1 = inlined_call_operand.hbm [shape: f32[32,25], index: 1, kind: input, shape index: {}]   ;;  %s10756_s2 = inlined_call_operand.hbm [shape: f32[32,256], index: 2, kind: input, shape index: {}]   ;;  %s10757_s3 = inlined_call_operand.hbm [shape: f32[16,289], index: 3, kind: input, shape index: {}]   ;;  %s10758_s4 = inlined_call_operand.hbm [shape: f32[8,145], index: 4, kind: input, shape index: {}]   ;;  %s10759_s5 = inlined_call_operand.vmem [shape: f32[1,8], index: 5, kind: input, shape index: {}]   ;;  %s10760_s6 = inlined_call_operand.vmem [shape: f32[1,512], index: 6, kind: input, shape index: {}]   ;;  %s10761_s7 = inlined_call_operand.hbm [shape: f32[2,1,512], index: 7, kind: output, shape index: {}]  }
   0x1   :  { %11047 = sst [smem:[#allocation185_spill]] %s10755_s1 }
   0x2   :  { %11048 = sst [smem:[#allocation186_spill]] %s10756_s2 }
   0x3   :  { %12 = vsyncpa [#allocation7], 0 }
   0x4   :  { %14 = vsyncpa [#allocation7 + $0x1], 0 }
   0x5   :  { %15 = vsyncpa [#allocation10], 0 }
   0x6   :  { %16 = vsyncpa [#allocation13], 0 }
   0x7   :  { %17 = vsyncpa [#allocation8], 0 }
   0x8   :  { %19 = vsyncpa [#allocation8 + $0x1], 0  ;;  %s6389_s24 = smov 0   ;;  %s6391_s25 = smov 0  }
   0x9   :  { %s6393_s26 = smov 0   ;;  %s6395_s27 = smov 0  }
   0xa LB: > { %s11049_s1 = sld [smem:[#allocation185_spill]]  ;;  %s6413_s8 = sadd.s32 4294967295, %s6286_s27   ;;  %s6286_s27 = sphi %s6395_s27, %s11860_s27   ;;  %s6282_s26 = sphi %s6393_s26, %s11859_s26   ;;  %s6278_s25 = sphi %s6391_s25, %s11858_s25   ;;  %s6274_s24 = sphi %s6389_s24, %s11857_s24  }
   0xb   : > { %p5664_p0 = scmp.ge.s32.totalorder %s6286_s27, 1  ;;  %p46_p1 = scmp.eq.s32.totalorder %s6413_s8, 0 }
   0xc   : > { %p208_p2 = scmp.lt.s32.totalorder %s6286_s27, 3  ;;  %s6288_s10 = smov [#allocation9]  }
   0xd   : > { %s221_s11 = sshll.u32 %s6288_s10, 4  ;;  %s247_s14 = sshll.u32 %s10757_s3, 4  ;;  %s222_s11 = int_to_ptr.vmem [resolvable:$true] %s221_s11  ;;  %s248_s14 = int_to_ptr.hbm [resolvable:$true] %s247_s14 }
   0xe   : > { %p6418_p3 = pnand %p5664_p0, %p208_p2  ;;  %s6289_s16 = smov [#allocation12]  }
   0xf   : > { %s249_s17 = sshll.u32 %s6289_s16, 4  ;;  %s6290_s18 = smov 128   ;;  %s250_s17 = int_to_ptr.vmem [resolvable:$true] %s249_s17 }
  0x10   : > { %s219_s30 = sshll.u32 %s11049_s1, 4  ;;  %p5727_p4 = pneg %p6418_p3  ;;  %s220_s30 = int_to_ptr.hbm [resolvable:$true] %s219_s30 }
  0x11   : > { %s6291_s19 = smov 8   ;;  %s6292_s20 = smov 384  }
  0x12   : > { %p6430_p6 = pnand %p5727_p4, %p46_p1  ;;  %s6293_s21 = smov 24  }
  0x13   : > { %s11052_s2 = sld [smem:[#allocation186_spill]]  ;;  %s6294_s29 = smov [#allocation11]  }
  0x14   : > { %5730 = dma.hbm_to_vmem [thread:$0]  (!%p6430_p6), %s220_s30, 512, %s222_s11, [#allocation10], %s6290_s18, %s6290_s18, %s6291_s19  }
  0x15   : > { %5736 = dma.hbm_to_vmem [thread:$0]  (!%p6430_p6), %s248_s14, 768, %s250_s17, [#allocation13], %s6292_s20, %s6292_s20, %s6293_s21  }
  0x16   : > { %s235_s10 = sshll.u32 %s6294_s29, 4  ;;  %s262_s12 = sshll.u32 %s10758_s4, 4  ;;  %s236_s10 = int_to_ptr.vmem [resolvable:$true] %s235_s10  ;;  %s263_s12 = int_to_ptr.hbm [resolvable:$true] %s262_s12 }
  0x17   : > { %s6295_s13 = smov 256   ;;  %s6296_s14 = smov 16  }
  0x18   : > { %s6297_s16 = smov [#allocation14]   ;;  %s5663_s18 = sadd.s32 4294967294, %s6286_s27  }
  0x19   : > { %s233_s28 = sshll.u32 %s11052_s2, 4  ;;  %s264_s17 = sshll.u32 %s6297_s16, 4  ;;  %s234_s28 = int_to_ptr.hbm [resolvable:$true] %s233_s28  ;;  %s265_s17 = int_to_ptr.vmem [resolvable:$true] %s264_s17 }
  0x1a   : > { %5733 = dma.hbm_to_vmem [thread:$0]  (!%p6430_p6), %s234_s28, 1024, %s236_s10, [#allocation10], %s6295_s13, %s6295_s13, %s6296_s14  }
  0x1b   : > { %5739 = dma.hbm_to_vmem [thread:$0]  (!%p6430_p6), %s263_s12, 256, %s265_s17, [#allocation13]  }
  0x1c   : > { %s6450_s19 = sadd.s32 1, %s6286_s27   ;;  %s32_s21 = sadd.s32 1, %s6282_s26 }
  0x1d   : > { %s29_s20 = ssub.s32 %s6286_s27, %s6450_s19  ;;  %p39_p8 = scmp.ne.s32.totalorder %s6282_s26, %s6278_s25 }
  0x1e   : > { %p30_p7 = scmp.eq.s32.totalorder %s29_s20, 0  ;;  %p40_p9 = scmp.eq.s32.totalorder %s6286_s27, 0 }
  0x1f   : > { %p45_p10 = scmp.ne.s32.totalorder %s6278_s25, %s6274_s24  ;;  %p195_p13 = scmp.eq.s32.totalorder %s6413_s8, 1 }
  0x20   : > { %s6461_s22 = scalar_select %p30_p7, %s6282_s26, %s32_s21  }
  0x21   : > { %p6463_p11 = por %p40_p9, %p39_p8  ;;  %p6469_p12 = por %p46_p1, %p45_p10 }
  0x22   : > { %p201_p0 = scmp.eq.s32.totalorder %s5663_s18, 1  ;;  %p5752_p2 = scmp.lt.s32.totalorder %s6286_s27, 2 }
  0x23   : > { %s281_s28 = sand.u32 1, %s6282_s26   ;;  %p6476_p4 = por %p195_p13, %p39_p8 }
  0x24   : > { %p6480_p6 = por %p201_p0, %p45_p10  ;;  %s5670_s30 = sshll.u32 %s281_s28, 2 }
  0x25   : > { %s5671_s11 = sshll.u32 %s6286_s27, 2  ;;  %s285_s16 = scalar_lea.vmem [#allocation6], %s5670_s30 }
  0x26   : > { %s289_s14 = scalar_lea.hbm %s10754_s0, %s5671_s11  ;;  %s293_s17 = sshll.u32 %s285_s16, 4  ;;  %s294_s17 = int_to_ptr.vmem [resolvable:$true] %s293_s17 }
  0x27   : > { %s291_s20 = sshll.u32 %s289_s14, 4  ;;  %p6490_p7 = pnand %p5752_p2, %p6463_p11  ;;  %s292_s20 = int_to_ptr.hbm [resolvable:$true] %s291_s20 }
  0x28   : > { %s282_s21 = scalar_lea.sflag [#allocation7], %s281_s28  ;;  %s6182_s1 = sshra.s32 %s292_s20, 4  ;;  %s6183_s1 = int_to_ptr.hbm [resolvable:$true] %s6182_s1 }
  0x29   : > { %s6184_s2 = scalar_lea.hbm %s6183_s1, 4  ;;  %p6186_p9 = pneg %p6490_p7 }
  0x2a   : > { %p6185_p8 = scmp.ne.s32.totalorder %s6183_s1, %s6184_s2  ;;  %s6189_s12 = scalar_lea.hbm %s10754_s0, 8 }
  0x2b   : > { %p6190_p11 = scmp.lt.s32.totalorder %s6183_s1, %s10754_s0  ;;  %p6191_p0 = scmp.lt.s32.totalorder %s6189_s12, %s6184_s2 }
  0x2c   : > { %p6187_p10 = pnand %p6186_p9, %p6185_p8 }
  0x2d   : > { %p6192_p2 = por %p6191_p0, %p6190_p11 }
  0x2e   : > { %p6188_p13 = pneg %p6187_p10 }
  0x30   : > { %p6193_p5 = pnand %p6192_p2, %p6188_p13 }
  0x32   : > { %6196 = shalt.err (!%p6193_p5)
}
  0x33   : > { %5743 = dma.hbm_to_vmem [thread:$0]  (!%p6490_p7), %s292_s20, 64, %s294_s17, %s282_s21  }
  0x34   : > { %302 = sbr.rel (%p6418_p3) target bundleno = 2776 (0xad8), region = 48 }
  0x39   : > { %s6507_s28 = sand.u32 1, %s6278_s25  }
  0x3a   : > { %s10789_s14 = sshll.u32 %s6507_s28, 2  ;;  %s305_s16 = scalar_lea.sflag [#allocation7], %s6507_s28 }
  0x3b   : > { %s308_s1 = scalar_lea.vmem [#allocation6], %s10789_s14 }
  0x3c   : > { %6257 = dma.done.wait (%p6469_p12), %s305_s16, 64  }
  0x3d   : > { %6259 = vsyncadd (%p6469_p12), %s305_s16, 4294967232 }
  0x3e   : > { %6261 = dma.done.wait (%p46_p1), [#allocation10], 1536  }
  0x3f   : > { %6263 = vsyncadd (%p46_p1), [#allocation10], 4294965760 }
  0x40   : > { %6265 = dma.done.wait (%p46_p1), [#allocation13], 1024  }
  0x41   : > { %6267 = vsyncadd (%p46_p1), [#allocation13], 4294966272  ;;  %v10762_v0 = vlaneseq  ;;  %v6298_v1 = vmov 0   ;;  %v10764_v2 = vmov 0.0   ;;  %v6533_v4 = vld [vmem:[#allocation9] sm:$0xff]  ;;  %v6535_v6 = vld [vmem:[#allocation9 + $0x8] sm:$0xff] }
  0x42   : > { %5851 = vset.pattern.permute.xlu1 %v6298_v1  ;;  %403 = vst [vmem:[#allocation3] sm:$0xff] %v10764_v2  ;;  %5852 = vset.pattern.permute.xlu2 %v6298_v1  ;;  %v433_v5 = vld [vmem:[%s308_s1] sm:$0xf]  ;;  %v6542_v7 = vld [vmem:[#allocation9 + $0x10] sm:$0xff]  ;;  %v6300_v11 = vmov 1   ;;  %s6301_s2 = smov 34  }
  0x43   : > { %vm397_vm0 = vcmp.lt.s32.totalorder %v10762_v0, 128  ;;  %5853 = vset.pattern.permute.xlu0 %v6298_v1  ;;  %vm6529_vm1 = vcmp.lt.s32.totalorder %v10762_v0, 256  ;;  %473 = vperm.xlu1 %5851, %v6533_v4   ;;  %s6302_s9 = smov 33   ;;  %v6561_v13 = vld [vmem:[#allocation9 + $0x18] sm:$0xff]  ;;  %v6303_v14 = vmov 2   ;;  %s6304_s15 = smov 31  }
  0x44   : > { %399 = vst.msk [vmem:[#allocation2] sm:$0x1] %vm397_vm0, %v10764_v2  ;;  %478 = vperm.xlu2 %5852, %v6535_v6   ;;  %v6305_v15 = vmov 3   ;;  %s6306_s17 = smov 30   ;;  %v438_v21 = vrot.slane %v433_v5, 2  ;;  %v6307_v22 = vmov 4  }
  0x45   : > { %436 = vst.msk [vmem:[#allocation2 + $0x1] sm:$0x3] %vm6529_vm1, %v433_v5  ;;  %s6308_s20 = smov 32   ;;  %s6309_s18 = smov 18   ;;  %v6310_v46 = vmov 5   ;;  %v6311_v49 = vmov 6  }
  0x46   : > { %417 = vst.msk [vmem:[#allocation2 + $0x4] sm:$0x1] %vm397_vm0, %v10764_v2  ;;  %v6312_v51 = vmov 7   ;;  %s6313_s21 = smov 17   ;;  %vm10916_vm2 = vcmask 138240   ;;  %s6314_s30 = smov 16  }
  0x47   : > { %440 = vst.msk [vmem:[#allocation2 + $0x5] sm:$0x3] %vm6529_vm1, %v438_v21  ;;  %s6316_s11 = smov 15   ;;  %s6317_s12 = smov 14   ;;  %vm464_vm4 = vcmask 277504   ;;  %vm515_vm5 = vcmask 269312  }
  0x48   : > { %408 = vst.msk [vmem:[#allocation3 + $0x18] sm:$0xff] %vm10916_vm2, %v10764_v2  ;;  %s6319_s13 = smov 2   ;;  %s6321_s23 = smov 1   ;;  %vm654_vm10 = vcmask 252928   ;;  %vm701_vm11 = vcmask 244736   ;;  %vm623_vm15 = vcmask 261120  }
  0x49   : > { %409 = vst.msk [vmem:[#allocation3 + $0x38] sm:$0xff] %vm10916_vm2, %v10764_v2  ;;  %s10791_s16 = smov 126   ;;  %s10838_s1 = smov 127   ;;  %vm10919_vm1 = vcmask 146432  }
  0x4a   : > { %410 = vst.msk [vmem:[#allocation3 + $0x58] sm:$0xff] %vm10916_vm2, %v10764_v2  ;;  %s10827_s14 = smov 113  }
  0x4b   : > { %5856 = vset.pattern.permute.xlu1 %v6300_v11  ;;  %411 = vst.msk [vmem:[#allocation3 + $0x78] sm:$0xff] %vm10916_vm2, %v10764_v2 }
  0x4c   : > { %v453_v8 = vld [vmem:[#allocation2] sm:$0x7]  ;;  %483 = vperm.xlu2 %5852, %v6542_v7   ;;  %414 = vst.msk [vmem:[#allocation4 + $0x18] sm:$0xff] %vm10916_vm2, %v10764_v2 }
  0x4d   : > { %v6544_v9 = vperm.slane %v453_v8, 2  ;;  %v6546_v10 = vperm.slane %v453_v8, 0  ;;  %v6553_v12 = vperm.slane %v453_v8, 1  ;;  %415 = vst.msk [vmem:[#allocation4 + $0x38] sm:$0xff] %vm10916_vm2, %v10764_v2 }
  0x4e   : > { %424 = vst.msk [vmem:[#allocation3 + $0x98] sm:$0xff] %vm10916_vm2, %v10764_v2 }
  0x4f   : > { %462 = vrot.lane.b32.xlu1 %v6544_v9, %s6301_s2  ;;  %458 = vrot.lane.b32.xlu0 %v6546_v10, %s6301_s2  ;;  %425 = vst.msk [vmem:[#allocation3 + $0xb8] sm:$0xff] %vm10916_vm2, %v10764_v2 }
  0x50   : > { %426 = vst.msk [vmem:[#allocation3 + $0xd8] sm:$0xff] %vm10916_vm2, %v10764_v2 }
  0x51   : > { %427 = vst.msk [vmem:[#allocation3 + $0xf8] sm:$0xff] %vm10916_vm2, %v10764_v2 }
  0x52   : > { %431 = vst.msk [vmem:[#allocation4 + $0x58] sm:$0xff] %vm10916_vm2, %v10764_v2 }
  0x53   : > { %432 = vst.msk [vmem:[#allocation4 + $0x78] sm:$0xff] %vm10916_vm2, %v10764_v2 }
  0x54   : > { %511 = vrot.lane.b32.xlu2 %v6553_v12, %s6302_s9 }
  0x55   : > { %5854 = vset.pattern.permute.xlu2 %v6300_v11 }
  0x57   : > { %509 = vrot.lane.b32.xlu1 %v6546_v10, %s6302_s9  ;;  %460 = vrot.lane.b32.xlu0 %v6553_v12, %s6301_s2 }
  0x5c   : > { %523 = vperm.xlu2 %5854, %v6533_v4  }
  0x5f   : > { %513 = vrot.lane.b32.xlu1 %v6544_v9, %s6302_s9  ;;  %488 = vperm.xlu0 %5853, %v6561_v13  }
  0x64   : > { %535 = vperm.xlu2 %5854, %v6561_v13  }
  0x67   : > { %531 = vperm.xlu1 %5856, %v6542_v7   ;;  %5855 = vset.pattern.permute.xlu0 %v6300_v11 }
  0x68   : > { %527 = vperm.xlu0 %5855, %v6535_v6  }
  0x6c   : > { %5858 = vset.pattern.permute.xlu2 %v6303_v14 }
  0x6d   : > { %561 = vperm.xlu2 %5858, %v6535_v6  }
  0x6f   : > { %5857 = vset.pattern.permute.xlu1 %v6303_v14 }
  0x70   : > { %557 = vperm.xlu1 %5857, %v6533_v4   ;;  %5859 = vset.pattern.permute.xlu0 %v6303_v14 }
  0x71   : > { %565 = vperm.xlu0 %5859, %v6542_v7  }
  0x75   : > { %652 = vrot.lane.b32.xlu2 %v6544_v9, %s6304_s15 }
  0x76   : > { %5862 = vset.pattern.permute.xlu2 %v6305_v15 }
  0x78   : > { %569 = vperm.xlu1 %5857, %v6561_v13  }
  0x79   : > { %648 = vrot.lane.b32.xlu0 %v6546_v10, %s6304_s15 }
  0x7a   : > { %5860 = vset.pattern.permute.xlu0 %v6305_v15 }
  0x7d   : > { %670 = vperm.xlu2 %5862, %v6542_v7  }
  0x80   : > { %650 = vrot.lane.b32.xlu1 %v6553_v12, %s6304_s15 }
  0x81   : > { %5861 = vset.pattern.permute.xlu1 %v6305_v15  ;;  %662 = vperm.xlu0 %5860, %v6533_v4  }
  0x85   : > { %695 = vrot.lane.b32.xlu2 %v6546_v10, %s6306_s17 }
  0x86   : > { %5863 = vset.pattern.permute.xlu2 %v6307_v22 }
  0x88   : > { %666 = vperm.xlu1 %5861, %v6535_v6  }
  0x89   : > { %697 = vrot.lane.b32.xlu0 %v6553_v12, %s6306_s17 }
  0x8a   : > { %5864 = vset.pattern.permute.xlu0 %v6307_v22 }
  0x8d   : > { %709 = vperm.xlu2 %5863, %v6533_v4  }
  0x90   : > { %674 = vperm.xlu1 %5861, %v6561_v13  }
  0x98   : > { %699 = vrot.lane.b32.xlu1 %v6544_v9, %s6306_s17 }
  0x99   : > { %5865 = vset.pattern.permute.xlu1 %v6307_v22 }
  0x9e   : > { %v6590_v16 = vpop.permute.xlu2 %478 }
  0x9f   : > { %11060 = vst [vmem:[#allocation20_spill] sm:$0xff] %v6590_v16 }
  0xa6   : > { %v6592_v17 = vpop.permute.xlu2 %483 }
  0xa7   : > { %11061 = vst [vmem:[#allocation21_spill] sm:$0xff] %v6592_v17 }
  0xae   : > { %v6594_v18 = vpop.permute.xlu2 %511 }
  0xb5   : > { %v6596_v19 = vpop.permute.xlu1 %473 }
  0xb6   : > { %11062 = vst [vmem:[#allocation22_spill] sm:$0xff] %v6596_v19  ;;  %v6598_v20 = vpop.permute.xlu2 %523 }
  0xb7   : > { %11063 = vst [vmem:[#allocation23_spill] sm:$0xff] %v6598_v20 }
  0xbe   : > { %v6603_v23 = vpop.permute.xlu2 %535 }
  0xbf   : > { %11064 = vst [vmem:[#allocation24_spill] sm:$0xff] %v6603_v23 }
  0xc1   : > { %v6605_v24 = vpop.permute.xlu1 %462  ;;  %v6607_v25 = vpop.permute.xlu0 %458 }
  0xc7   : > { %v6609_v26 = vpop.permute.xlu2 %561 }
  0xc8   : > { %v578_v29 = vmul.f32 %v6609_v26, %v6546_v10  ;;  %v579_v39 = vmul.f32 %v6609_v26, %v6553_v12  ;;  %v580_v44 = vmul.f32 %v6609_v26, %v6544_v9 }
  0xc9   : > { %v6611_v27 = vpop.permute.xlu1 %509  ;;  %v6613_v28 = vpop.permute.xlu0 %460 }
  0xca   : > { %605 = vrot.lane.b32.xlu0 %v578_v29, %s6308_s20 }
  0xcf   : > { %v6677_v50 = vpop.permute.xlu2 %652 }
  0xd1   : > { %v6618_v30 = vpop.permute.xlu1 %513  ;;  %v6620_v31 = vpop.permute.xlu0 %488 }
  0xd2   : > { %11065 = vst [vmem:[#allocation25_spill] sm:$0xff] %v6620_v31 }
  0xd7   : > { %v6682_v52 = vpop.permute.xlu2 %670 }
  0xd8   : > { %11068 = vst [vmem:[#allocation28_spill] sm:$0xff] %v6682_v52 }
  0xd9   : > { %v6622_v32 = vpop.permute.xlu1 %531 }
  0xda   : > { %11066 = vst [vmem:[#allocation26_spill] sm:$0xff] %v6622_v32  ;;  %v6624_v33 = vpop.permute.xlu0 %527 }
  0xdb   : > { %11067 = vst [vmem:[#allocation27_spill] sm:$0xff] %v6624_v33 }
  0xdf   : > { %v6688_v53 = vpop.permute.xlu2 %695 }
  0xe2   : > { %v6626_v34 = vpop.permute.xlu1 %557 }
  0xe3   : > { %v6628_v35 = vpop.permute.xlu0 %565  ;;  %v576_v36 = vmul.f32 %v6626_v34, %v6553_v12  ;;  %v575_v37 = vmul.f32 %v6626_v34, %v6546_v10  ;;  %v577_v41 = vmul.f32 %v6626_v34, %v6544_v9 }
  0xe4   : > { %v581_v38 = vmul.f32 %v6628_v35, %v6546_v10  ;;  %v582_v43 = vmul.f32 %v6628_v35, %v6553_v12  ;;  %v583_v45 = vmul.f32 %v6628_v35, %v6544_v9 }
  0xe5   : > { %601 = vrot.lane.b32.xlu1 %v576_v36, %s6308_s20  ;;  %599 = vrot.lane.b32.xlu2 %v575_v37, %s6308_s20 }
  0xe6   : > { %611 = vrot.lane.b32.xlu0 %v581_v38, %s6308_s20 }
  0xe7   : > { %v6697_v55 = vpop.permute.xlu2 %709 }
  0xe8   : > { %11069 = vst [vmem:[#allocation29_spill] sm:$0xff] %v6697_v55  ;;  %v452_v55 = vld [vmem:[#allocation11 + $0x38] sm:$0xff] }
  0xea   : > { %v6641_v40 = vpop.permute.xlu1 %569 }
  0xeb   : > { %v584_v42 = vmul.f32 %v6641_v40, %v6546_v10  ;;  %v585_v47 = vmul.f32 %v6641_v40, %v6553_v12  ;;  %v586_v48 = vmul.f32 %v6641_v40, %v6544_v9  ;;  %v6701_v57 = vpop.permute.xlu0 %648 }
  0xed   : > { %607 = vrot.lane.b32.xlu1 %v579_v39, %s6308_s20  ;;  %603 = vrot.lane.b32.xlu2 %v577_v41, %s6308_s20 }
  0xee   : > { %617 = vrot.lane.b32.xlu0 %v584_v42, %s6308_s20 }
  0xf2   : > { %v6693_v54 = vpop.permute.xlu1 %650 }
  0xf3   : > { %v6712_v61 = vpop.permute.xlu0 %662 }
  0xf4   : > { %11072 = vst [vmem:[#allocation32_spill] sm:$0xff] %v6712_v61 }
  0xf5   : > { %609 = vrot.lane.b32.xlu2 %v580_v44, %s6308_s20  ;;  %613 = vrot.lane.b32.xlu1 %v582_v43, %s6308_s20 }
  0xf6   : > { %713 = vperm.xlu0 %5864, %v6535_v6  }
  0xfa   : > { %v6699_v56 = vpop.permute.xlu1 %666 }
  0xfb   : > { %11070 = vst [vmem:[#allocation30_spill] sm:$0xff] %v6699_v56  ;;  %v6718_v1 = vpop.permute.xlu0 %697 }
  0xfd   : > { %615 = vrot.lane.b32.xlu2 %v583_v45, %s6308_s20  ;;  %717 = vperm.xlu1 %5865, %v6542_v7  }
  0xfe   : > { %746 = vrot.lane.b32.xlu0 %v6544_v9, %s6309_s18 }
  0xff   : > { %5868 = vset.pattern.permute.xlu0 %v6310_v46 }
 0x102   : > { %v6708_v59 = vpop.permute.xlu1 %674 }
 0x103   : > { %11071 = vst [vmem:[#allocation31_spill] sm:$0xff] %v6708_v59 }
 0x105   : > { %721 = vperm.xlu2 %5863, %v6561_v13   ;;  %619 = vrot.lane.b32.xlu1 %v585_v47, %s6308_s20 }
 0x106   : > { %764 = vperm.xlu0 %5868, %v6542_v7   ;;  %5866 = vset.pattern.permute.xlu1 %v6310_v46 }
 0x10a   : > { %v6714_v62 = vpop.permute.xlu1 %699 }
 0x10d   : > { %621 = vrot.lane.b32.xlu2 %v586_v48, %s6308_s20  ;;  %742 = vrot.lane.b32.xlu1 %v6546_v10, %s6309_s18 }
 0x10e   : > { %5867 = vset.pattern.permute.xlu2 %v6310_v46  ;;  %5869 = vset.pattern.permute.xlu0 %v6311_v49 }
 0x10f   : > { %802 = vperm.xlu0 %5869, %v6533_v4  }
 0x115   : > { %744 = vrot.lane.b32.xlu2 %v6553_v12, %s6309_s18  ;;  %756 = vperm.xlu1 %5866, %v6533_v4  }
 0x117   : > { %5873 = vset.pattern.permute.xlu0 %v6312_v51 }
 0x118   : > { %840 = vperm.xlu0 %5873, %v6535_v6  }
 0x11d   : > { %760 = vperm.xlu2 %5867, %v6535_v6   ;;  %768 = vperm.xlu1 %5866, %v6561_v13  }
 0x125   : > { %789 = vrot.lane.b32.xlu2 %v6546_v10, %s6313_s21  ;;  %791 = vrot.lane.b32.xlu1 %v6553_v12, %s6313_s21 }
 0x126   : > { %5870 = vset.pattern.permute.xlu1 %v6311_v49  ;;  %5871 = vset.pattern.permute.xlu2 %v6311_v49 }
 0x12d   : > { %793 = vrot.lane.b32.xlu2 %v6544_v9, %s6313_s21  ;;  %806 = vperm.xlu1 %5870, %v6535_v6  }
 0x135   : > { %810 = vperm.xlu2 %5871, %v6542_v7   ;;  %814 = vperm.xlu1 %5870, %v6561_v13  }
 0x13c   : > { %v6724_v8 = vpop.permute.xlu0 %605 }
 0x13d   : > { %5872 = vset.pattern.permute.xlu2 %v6312_v51  ;;  %5874 = vset.pattern.permute.xlu1 %v6312_v51 }
 0x13e   : > { %836 = vperm.xlu2 %5872, %v6533_v4   ;;  %844 = vperm.xlu1 %5874, %v6542_v7  }
 0x13f   : > { %v6705_v58 = vpop.permute.xlu2 %599 }
 0x146   : > { %848 = vperm.xlu2 %5872, %v6561_v13  }
 0x147   : > { %v6710_v60 = vpop.permute.xlu2 %603 }
 0x14f   : > { %v6716_v63 = vpop.permute.xlu2 %609 }
 0x150   : > { %11073 = vst [vmem:[#allocation33_spill] sm:$0xff] %v6716_v63 }
 0x157   : > { %v6720_v3 = vpop.permute.xlu1 %601  ;;  %v6722_v5 = vpop.permute.xlu2 %615 }
 0x158   : > { %11074 = vst [vmem:[#allocation34_spill] sm:$0xff] %v6722_v5  ;;  %v6730_v15 = vpop.permute.xlu0 %611 }
 0x159   : > { %11076 = vst [vmem:[#allocation36_spill] sm:$0xff] %v6730_v15 }
 0x15f   : > { %v6726_v11 = vpop.permute.xlu1 %607  ;;  %v6728_v14 = vpop.permute.xlu2 %721 }
 0x160   : > { %11075 = vst [vmem:[#allocation35_spill] sm:$0xff] %v6728_v14  ;;  %v6736_v29 = vpop.permute.xlu0 %617 }
 0x161   : > { %11079 = vst [vmem:[#allocation39_spill] sm:$0xff] %v6736_v29 }
 0x167   : > { %v6732_v21 = vpop.permute.xlu2 %621  ;;  %v6734_v22 = vpop.permute.xlu1 %613 }
 0x168   : > { %11077 = vst [vmem:[#allocation37_spill] sm:$0xff] %v6732_v21  ;;  %v6752_v38 = vpop.permute.xlu0 %713  ;;  %v448_v21 = vld [vmem:[#allocation11 + $0x18] sm:$0xff] }
 0x169   : > { %11078 = vst [vmem:[#allocation38_spill] sm:$0xff] %v6734_v22 }
 0x16a   : > { %11082 = vst [vmem:[#allocation42_spill] sm:$0xff] %v6752_v38 }
 0x16f   : > { %v6738_v36 = vpop.permute.xlu2 %744  ;;  %v6740_v37 = vpop.permute.xlu1 %717 }
 0x170   : > { %11080 = vst [vmem:[#allocation40_spill] sm:$0xff] %v6738_v36  ;;  %v6776_v44 = vpop.permute.xlu0 %746 }
 0x171   : > { %11081 = vst [vmem:[#allocation41_spill] sm:$0xff] %v6740_v37 }
 0x177   : > { %v6756_v39 = vpop.permute.xlu2 %760  ;;  %v6758_v41 = vpop.permute.xlu1 %619 }
 0x178   : > { %11083 = vst [vmem:[#allocation43_spill] sm:$0xff] %v6756_v39  ;;  %v6782_v47 = vpop.permute.xlu0 %764 }
 0x179   : > { %11084 = vst [vmem:[#allocation44_spill] sm:$0xff] %v6758_v41 }
 0x17a   : > { %11089 = vst [vmem:[#allocation49_spill] sm:$0xff] %v6782_v47 }
 0x17f   : > { %v6772_v42 = vpop.permute.xlu1 %742  ;;  %v6774_v43 = vpop.permute.xlu2 %789 }
 0x180   : > { %11085 = vst [vmem:[#allocation45_spill] sm:$0xff] %v6772_v42 }
 0x181   : > { %11086 = vst [vmem:[#allocation46_spill] sm:$0xff] %v6774_v43  ;;  %v6788_v51 = vpop.permute.xlu0 %802 }
 0x182   : > { %11092 = vst [vmem:[#allocation52_spill] sm:$0xff] %v6788_v51 }
 0x187   : > { %v6778_v45 = vpop.permute.xlu1 %756  ;;  %v6780_v46 = vpop.permute.xlu2 %793 }
 0x188   : > { %11087 = vst [vmem:[#allocation47_spill] sm:$0xff] %v6778_v45 }
 0x189   : > { %11088 = vst [vmem:[#allocation48_spill] sm:$0xff] %v6780_v46 }
 0x18f   : > { %v6784_v48 = vpop.permute.xlu1 %768  ;;  %v6786_v49 = vpop.permute.xlu2 %810 }
 0x190   : > { %11090 = vst [vmem:[#allocation50_spill] sm:$0xff] %v6784_v48 }
 0x191   : > { %11091 = vst [vmem:[#allocation51_spill] sm:$0xff] %v6786_v49  ;;  %v6802_v49 = vpop.permute.xlu0 %840 }
 0x192   : > { %11095 = vst [vmem:[#allocation55_spill] sm:$0xff] %v6802_v49  ;;  %v856_v48 = vmul.f32 %v6802_v49, %v6544_v9  ;;  %v854_v47 = vmul.f32 %v6802_v49, %v6546_v10 }
 0x197   : > { %v6790_v0 = vpop.permute.xlu1 %791 }
 0x198   : > { %11093 = vst [vmem:[#allocation53_spill] sm:$0xff] %v6790_v0  ;;  %v6792_v2 = vpop.permute.xlu2 %836 }
 0x199   : > { %11094 = vst [vmem:[#allocation54_spill] sm:$0xff] %v6792_v2  ;;  %v851_v39 = vmul.f32 %v6792_v2, %v6546_v10  ;;  %v853_v45 = vmul.f32 %v6792_v2, %v6544_v9  ;;  %v852_v37 = vmul.f32 %v6792_v2, %v6553_v12  ;;  %v855_v2 = vmul.f32 %v6802_v49, %v6553_v12 }
 0x19b   : > { %875 = vrot.lane.b32.xlu1 %v851_v39, %s6314_s30  ;;  %879 = vrot.lane.b32.xlu0 %v853_v45, %s6314_s30  ;;  %v6315_v39 = vmov 8  }
 0x19c   : > { %877 = vrot.lane.b32.xlu2 %v852_v37, %s6314_s30  ;;  %5875 = vset.pattern.permute.xlu1 %v6315_v39 }
 0x19d   : > { %5876 = vset.pattern.permute.xlu2 %v6315_v39  ;;  %5877 = vset.pattern.permute.xlu0 %v6315_v39 }
 0x19f   : > { %v6805_v51 = vpop.permute.xlu1 %806 }
 0x1a0   : > { %11096 = vst [vmem:[#allocation56_spill] sm:$0xff] %v6805_v51 }
 0x1a3   : > { %885 = vrot.lane.b32.xlu0 %v856_v48, %s6314_s30  ;;  %881 = vrot.lane.b32.xlu1 %v854_v47, %s6314_s30 }
 0x1a4   : > { %883 = vrot.lane.b32.xlu2 %v855_v2, %s6314_s30  ;;  %v6829_v2 = vpop.permute.xlu2 %848 }
 0x1a5   : > { %11099 = vst [vmem:[#allocation59_spill] sm:$0xff] %v6829_v2  ;;  %v862_v47 = vmul.f32 %v6829_v2, %v6544_v9  ;;  %v861_v39 = vmul.f32 %v6829_v2, %v6553_v12 }
 0x1a7   : > { %v6816_v37 = vpop.permute.xlu1 %814 }
 0x1a8   : > { %11097 = vst [vmem:[#allocation57_spill] sm:$0xff] %v6816_v37  ;;  %v860_v37 = vmul.f32 %v6829_v2, %v6546_v10 }
 0x1b0   : > { %v6818_v45 = vpop.permute.xlu1 %844 }
 0x1b1   : > { %11098 = vst [vmem:[#allocation58_spill] sm:$0xff] %v6818_v45  ;;  %v859_v51 = vmul.f32 %v6818_v45, %v6544_v9  ;;  %v858_v49 = vmul.f32 %v6818_v45, %v6553_v12  ;;  %v857_v48 = vmul.f32 %v6818_v45, %v6546_v10 }
 0x1b3   : > { %891 = vrot.lane.b32.xlu0 %v859_v51, %s6314_s30  ;;  %889 = vrot.lane.b32.xlu2 %v858_v49, %s6314_s30  ;;  %v6318_v49 = vmov 9   ;;  %v6320_v51 = vmov 10  }
 0x1b4   : > { %887 = vrot.lane.b32.xlu1 %v857_v48, %s6314_s30 }
 0x1bb   : > { %897 = vrot.lane.b32.xlu0 %v862_v47, %s6314_s30  ;;  %895 = vrot.lane.b32.xlu2 %v861_v39, %s6314_s30  ;;  %v11101_v47 = vlaneseq  ;;  %v11102_v39 = vmov 0.0  }
 0x1bc   : > { %893 = vrot.lane.b32.xlu1 %v860_v37, %s6314_s30  ;;  %v6322_v37 = vmov 11  }
 0x1bd   : > { %vm400_vm3 = vcmp.lt.s32.totalorder %v11101_v47, 34 }
 0x1be   : > { %402 = vst.msk [vmem:[#allocation2 + $0x3] sm:$0x1] %vm400_vm3, %v11102_v39 }
 0x1bf   : > { %418 = vst.msk [vmem:[#allocation2 + $0x7] sm:$0x1] %vm400_vm3, %v11102_v39  ;;  %vm10917_vm3 = vcmask 121856  }
 0x1c3   : > { %928 = vrot.lane.b32.xlu0 %v6544_v9, %s6316_s11  ;;  %926 = vrot.lane.b32.xlu2 %v6553_v12, %s6316_s11 }
 0x1c4   : > { %924 = vrot.lane.b32.xlu1 %v6546_v10, %s6316_s11 }
 0x1c5   : > { %v1150_v39 = vld [vmem:[#allocation2 + $0x1] sm:$0x7] }
 0x1c6   : > { %v6909_v2 = vperm.slane %v1150_v39, 0 }
 0x1cb   : > { %946 = vperm.xlu0 %5877, %v6542_v7   ;;  %942 = vperm.xlu2 %5876, %v6535_v6  }
 0x1cc   : > { %938 = vperm.xlu1 %5875, %v6533_v4  }
 0x1d3   : > { %971 = vrot.lane.b32.xlu2 %v6546_v10, %s6317_s12  ;;  %5878 = vset.pattern.permute.xlu0 %v6318_v49 }
 0x1d4   : > { %950 = vperm.xlu1 %5875, %v6561_v13   ;;  %985 = vperm.xlu0 %5878, %v6533_v4  }
 0x1d5   : > { %5880 = vset.pattern.permute.xlu2 %v6318_v49 }
 0x1db   : > { %975 = vrot.lane.b32.xlu2 %v6544_v9, %s6317_s12 }
 0x1dc   : > { %973 = vrot.lane.b32.xlu1 %v6553_v12, %s6317_s12  ;;  %1020 = vrot.lane.b32.xlu0 %v6553_v12, %s6319_s13 }
 0x1dd   : > { %5879 = vset.pattern.permute.xlu1 %v6318_v49  ;;  %5882 = vset.pattern.permute.xlu0 %v6320_v51  ;;  %v6323_v49 = vmov 12  }
 0x1e3   : > { %993 = vperm.xlu2 %5880, %v6542_v7  }
 0x1e4   : > { %989 = vperm.xlu1 %5879, %v6535_v6   ;;  %1036 = vperm.xlu0 %5882, %v6535_v6  }
 0x1eb   : > { %1018 = vrot.lane.b32.xlu2 %v6546_v10, %s6319_s13 }
 0x1ec   : > { %997 = vperm.xlu1 %5879, %v6561_v13   ;;  %5881 = vset.pattern.permute.xlu2 %v6320_v51 }
 0x1ed   : > { %1069 = vrot.lane.b32.xlu0 %v6544_v9, %s6321_s23 }
 0x1ee   : > { %5886 = vset.pattern.permute.xlu0 %v6322_v37 }
 0x1f3   : > { %1032 = vperm.xlu2 %5881, %v6533_v4  }
 0x1f4   : > { %1022 = vrot.lane.b32.xlu1 %v6544_v9, %s6319_s13 }
 0x1f5   : > { %5883 = vset.pattern.permute.xlu1 %v6320_v51  ;;  %1087 = vperm.xlu0 %5886, %v6542_v7   ;;  %v6324_v51 = vmov 13  }
 0x1f6   : > { %v6871_v48 = vpop.permute.xlu2 %877 }
 0x1f7   : > { %11100 = vst [vmem:[#allocation60_spill] sm:$0xff] %v6871_v48  ;;  %v6890_v48 = vperm.slane %v1150_v39, 2 }
 0x1fb   : > { %1044 = vperm.xlu2 %5881, %v6561_v13  }
 0x1fc   : > { %1040 = vperm.xlu1 %5883, %v6542_v7  }
 0x1fd   : > { %5889 = vset.pattern.permute.xlu0 %v6323_v49 }
 0x1fe   : > { %1126 = vperm.xlu0 %5889, %v6561_v13   ;;  %v6881_v9 = vpop.permute.xlu2 %883 }
 0x1ff   : > { %11103 = vst [vmem:[#allocation61_spill] sm:$0xff] %v6881_v9 }
 0x203   : > { %1067 = vrot.lane.b32.xlu2 %v6553_v12, %s6321_s23 }
 0x204   : > { %1065 = vrot.lane.b32.xlu1 %v6546_v10, %s6321_s23  ;;  %5885 = vset.pattern.permute.xlu2 %v6322_v37 }
 0x205   : > { %5884 = vset.pattern.permute.xlu1 %v6322_v37  ;;  %v6326_v37 = vmov 14  }
 0x206   : > { %5891 = vset.pattern.permute.xlu0 %v6324_v51 }
 0x207   : > { %1173 = vperm.xlu0 %5891, %v6535_v6  }
 0x20b   : > { %1083 = vperm.xlu2 %5885, %v6535_v6  }
 0x20c   : > { %1079 = vperm.xlu1 %5884, %v6533_v4  }
 0x20d   : > { %v6888_v45 = vpop.permute.xlu2 %889  ;;  %v6894_v10 = vpop.permute.xlu1 %875 }
 0x20e   : > { %11104 = vst [vmem:[#allocation62_spill] sm:$0xff] %v6888_v45 }
 0x20f   : > { %1206 = vrot.lane.b32.xlu0 %v6890_v48, %s10791_s16  ;;  %11105 = vst [vmem:[#allocation63_spill] sm:$0xff] %v6894_v10  ;;  %v6907_v10 = vperm.slane %v1150_v39, 1 }
 0x210   : > { %5895 = vset.pattern.permute.xlu0 %v6326_v37 }
 0x213   : > { %5887 = vset.pattern.permute.xlu2 %v6323_v49 }
 0x214   : > { %1091 = vperm.xlu1 %5884, %v6561_v13   ;;  %1114 = vperm.xlu2 %5887, %v6533_v4  }
 0x215   : > { %v6898_v12 = vpop.permute.xlu2 %895  ;;  %v6905_v9 = vpop.permute.xlu1 %881 }
 0x216   : > { %11106 = vst [vmem:[#allocation64_spill] sm:$0xff] %v6898_v12 }
 0x217   : > { %1224 = vperm.xlu0 %5895, %v6542_v7   ;;  %11108 = vst [vmem:[#allocation66_spill] sm:$0xff] %v6905_v9 }
 0x21c   : > { %5888 = vset.pattern.permute.xlu1 %v6323_v49  ;;  %1122 = vperm.xlu2 %5887, %v6542_v7  }
 0x21d   : > { %1118 = vperm.xlu1 %5888, %v6535_v6   ;;  %v6903_v45 = vpop.permute.xlu2 %926 }
 0x21e   : > { %11107 = vst [vmem:[#allocation65_spill] sm:$0xff] %v6903_v45  ;;  %v6328_v45 = vmov 15  }
 0x21f   : > { %5896 = vset.pattern.permute.xlu0 %v6328_v45 }
 0x220   : > { %1263 = vperm.xlu0 %5896, %v6533_v4  }
 0x224   : > { %1157 = vrot.lane.b32.xlu2 %v6907_v10, %s10838_s1 }
 0x225   : > { %1155 = vrot.lane.b32.xlu1 %v6909_v2, %s10838_s1  ;;  %v6915_v49 = vpop.permute.xlu2 %942  ;;  %5890 = vset.pattern.permute.xlu2 %v6324_v51 }
 0x226   : > { %11109 = vst [vmem:[#allocation67_spill] sm:$0xff] %v6915_v49  ;;  %v6917_v12 = vpop.permute.xlu1 %887  ;;  %5892 = vset.pattern.permute.xlu1 %v6324_v51  ;;  %v6928_v49 = vpop.permute.xlu0 %879 }
 0x227   : > { %11110 = vst [vmem:[#allocation68_spill] sm:$0xff] %v6917_v12 }
 0x228   : > { %11113 = vst [vmem:[#allocation71_spill] sm:$0xff] %v6928_v49  ;;  %1298 = vrot.lane.b32.xlu0 %v6907_v10, %s10827_s14  ;;  %v6330_v49 = vmov 16  }
 0x229   : > { %5900 = vset.pattern.permute.xlu0 %v6330_v49 }
 0x22c   : > { %1169 = vperm.xlu2 %5890, %v6533_v4  }
 0x22d   : > { %1159 = vrot.lane.b32.xlu1 %v6890_v48, %s10838_s1  ;;  %v6922_v39 = vpop.permute.xlu2 %971  ;;  %s10842_s1 = smov 110  }
 0x22e   : > { %11111 = vst [vmem:[#allocation69_spill] sm:$0xff] %v6922_v39  ;;  %v6924_v9 = vpop.permute.xlu1 %893 }
 0x22f   : > { %11112 = vst [vmem:[#allocation70_spill] sm:$0xff] %v6924_v9 }
 0x230   : > { %1314 = vperm.xlu0 %5900, %v6535_v6  }
 0x234   : > { %1181 = vperm.xlu2 %5890, %v6561_v13  }
 0x235   : > { %1177 = vperm.xlu1 %5892, %v6542_v7   ;;  %v6931_v51 = vpop.permute.xlu2 %975 }
 0x236   : > { %11114 = vst [vmem:[#allocation72_spill] sm:$0xff] %v6931_v51  ;;  %v6933_v12 = vpop.permute.xlu1 %924  ;;  %v6945_v51 = vpop.permute.xlu0 %885 }
 0x237   : > { %11115 = vst [vmem:[#allocation73_spill] sm:$0xff] %v6933_v12 }
 0x238   : > { %11118 = vst [vmem:[#allocation76_spill] sm:$0xff] %v6945_v51 }
 0x23c   : > { %1204 = vrot.lane.b32.xlu2 %v6907_v10, %s10791_s16 }
 0x23d   : > { %1202 = vrot.lane.b32.xlu1 %v6909_v2, %s10791_s16  ;;  %v6941_v9 = vpop.permute.xlu2 %993  ;;  %5894 = vset.pattern.permute.xlu2 %v6326_v37  ;;  %s10836_s16 = smov 114  }
 0x23e   : > { %11116 = vst [vmem:[#allocation74_spill] sm:$0xff] %v6941_v9  ;;  %v6943_v39 = vpop.permute.xlu1 %938  ;;  %5893 = vset.pattern.permute.xlu1 %v6326_v37  ;;  %v6954_v46 = vpop.permute.xlu0 %891 }
 0x23f   : > { %11117 = vst [vmem:[#allocation75_spill] sm:$0xff] %v6943_v39 }
 0x240   : > { %11121 = vst [vmem:[#allocation79_spill] sm:$0xff] %v6954_v46 }
 0x244   : > { %1220 = vperm.xlu2 %5894, %v6535_v6  }
 0x245   : > { %1216 = vperm.xlu1 %5893, %v6533_v4   ;;  %v6950_v12 = vpop.permute.xlu2 %1018 }
 0x246   : > { %11119 = vst [vmem:[#allocation77_spill] sm:$0xff] %v6950_v12  ;;  %v6952_v38 = vpop.permute.xlu1 %950  ;;  %v6963_v39 = vpop.permute.xlu0 %897 }
 0x247   : > { %11120 = vst [vmem:[#allocation78_spill] sm:$0xff] %v6952_v38 }
 0x248   : > { %11124 = vst [vmem:[#allocation82_spill] sm:$0xff] %v6963_v39  ;;  %v6332_v39 = vmov 17  }
 0x249   : > { %5904 = vset.pattern.permute.xlu0 %v6332_v39 }
 0x24a   : > { %1352 = vperm.xlu0 %5904, %v6542_v7  }
 0x24c   : > { %1249 = vrot.lane.b32.xlu2 %v6909_v2, %s10836_s16 }
 0x24d   : > { %1228 = vperm.xlu1 %5893, %v6561_v13   ;;  %v6959_v37 = vpop.permute.xlu2 %1032  ;;  %5898 = vset.pattern.permute.xlu2 %v6328_v45 }
 0x24e   : > { %11122 = vst [vmem:[#allocation80_spill] sm:$0xff] %v6959_v37  ;;  %v6961_v9 = vpop.permute.xlu1 %973  ;;  %v6973_v46 = vpop.permute.xlu0 %928 }
 0x24f   : > { %11123 = vst [vmem:[#allocation81_spill] sm:$0xff] %v6961_v9 }
 0x250   : > { %11127 = vst [vmem:[#allocation85_spill] sm:$0xff] %v6973_v46 }
 0x254   : > { %1253 = vrot.lane.b32.xlu2 %v6890_v48, %s10836_s16 }
 0x255   : > { %1251 = vrot.lane.b32.xlu1 %v6907_v10, %s10836_s16  ;;  %v6969_v38 = vpop.permute.xlu2 %1044  ;;  %s6335_s16 = smov 111  }
 0x256   : > { %11125 = vst [vmem:[#allocation83_spill] sm:$0xff] %v6969_v38  ;;  %v6971_v12 = vpop.permute.xlu1 %989  ;;  %5897 = vset.pattern.permute.xlu1 %v6328_v45  ;;  %v6984_v38 = vpop.permute.xlu0 %946 }
 0x257   : > { %11126 = vst [vmem:[#allocation84_spill] sm:$0xff] %v6971_v12 }
 0x258   : > { %11130 = vst [vmem:[#allocation88_spill] sm:$0xff] %v6984_v38 }
 0x25c   : > { %1271 = vperm.xlu2 %5898, %v6542_v7  }
 0x25d   : > { %1267 = vperm.xlu1 %5897, %v6535_v6   ;;  %v6977_v37 = vpop.permute.xlu2 %1067 }
 0x25e   : > { %11128 = vst [vmem:[#allocation86_spill] sm:$0xff] %v6977_v37  ;;  %v6979_v9 = vpop.permute.xlu1 %997  ;;  %v6992_v37 = vpop.permute.xlu0 %985 }
 0x25f   : > { %11129 = vst [vmem:[#allocation87_spill] sm:$0xff] %v6979_v9 }
 0x260   : > { %11133 = vst [vmem:[#allocation91_spill] sm:$0xff] %v6992_v37 }
 0x264   : > { %1296 = vrot.lane.b32.xlu2 %v6909_v2, %s10827_s14 }
 0x265   : > { %1275 = vperm.xlu1 %5897, %v6561_v13   ;;  %v6987_v45 = vpop.permute.xlu2 %1083  ;;  %5899 = vset.pattern.permute.xlu2 %v6330_v49 }
 0x266   : > { %11131 = vst [vmem:[#allocation89_spill] sm:$0xff] %v6987_v45  ;;  %v6989_v12 = vpop.permute.xlu1 %1022 }
 0x267   : > { %11132 = vst [vmem:[#allocation90_spill] sm:$0xff] %v6989_v12  ;;  %v7006_v12 = vpop.permute.xlu0 %1020 }
 0x268   : > { %11138 = vst [vmem:[#allocation96_spill] sm:$0xff] %v7006_v12 }
 0x26c   : > { %1310 = vperm.xlu2 %5899, %v6533_v4  }
 0x26d   : > { %1300 = vrot.lane.b32.xlu1 %v6890_v48, %s10827_s14  ;;  %s10840_s14 = smov 112  }
 0x26e   : > { %v6996_v9 = vpop.permute.xlu1 %1040  ;;  %v6998_v51 = vpop.permute.xlu2 %1114  ;;  %5901 = vset.pattern.permute.xlu1 %v6330_v49 }
 0x26f   : > { %11134 = vst [vmem:[#allocation92_spill] sm:$0xff] %v6996_v9  ;;  %v7014_v49 = vpop.permute.xlu0 %1036 }
 0x270   : > { %11135 = vst [vmem:[#allocation93_spill] sm:$0xff] %v6998_v51 }
 0x271   : > { %11141 = vst [vmem:[#allocation99_spill] sm:$0xff] %v7014_v49 }
 0x274   : > { %1322 = vperm.xlu2 %5899, %v6561_v13  }
 0x275   : > { %1318 = vperm.xlu1 %5901, %v6542_v7  }
 0x276   : > { %v7002_v45 = vpop.permute.xlu1 %1065  ;;  %v7004_v38 = vpop.permute.xlu2 %1122 }
 0x277   : > { %11136 = vst [vmem:[#allocation94_spill] sm:$0xff] %v7002_v45 }
 0x278   : > { %11137 = vst [vmem:[#allocation95_spill] sm:$0xff] %v7004_v38  ;;  %v7021_v38 = vpop.permute.xlu0 %1069 }
 0x279   : > { %11144 = vst [vmem:[#allocation102_spill] sm:$0xff] %v7021_v38 }
 0x27c   : > { %5903 = vset.pattern.permute.xlu2 %v6332_v39 }
 0x27d   : > { %5902 = vset.pattern.permute.xlu1 %v6332_v39  ;;  %1348 = vperm.xlu2 %5903, %v6535_v6  }
 0x27e   : > { %1344 = vperm.xlu1 %5902, %v6533_v4   ;;  %v7010_v9 = vpop.permute.xlu1 %1079  ;;  %v7012_v51 = vpop.permute.xlu2 %1157 }
 0x27f   : > { %11139 = vst [vmem:[#allocation97_spill] sm:$0xff] %v7010_v9 }
 0x280   : > { %11140 = vst [vmem:[#allocation98_spill] sm:$0xff] %v7012_v51  ;;  %v7027_v46 = vpop.permute.xlu0 %1087 }
 0x281   : > { %11147 = vst [vmem:[#allocation105_spill] sm:$0xff] %v7027_v46 }
 0x286   : > { %1356 = vperm.xlu1 %5902, %v6561_v13   ;;  %v7017_v37 = vpop.permute.xlu1 %1091  ;;  %v7019_v45 = vpop.permute.xlu2 %1169 }
 0x287   : > { %11142 = vst [vmem:[#allocation100_spill] sm:$0xff] %v7017_v37 }
 0x288   : > { %11143 = vst [vmem:[#allocation101_spill] sm:$0xff] %v7019_v45  ;;  %v7033_v51 = vpop.permute.xlu0 %1126 }
 0x289   : > { %11150 = vst [vmem:[#allocation108_spill] sm:$0xff] %v7033_v51 }
 0x28e   : > { %v7023_v12 = vpop.permute.xlu2 %1181 }
 0x28f   : > { %11145 = vst [vmem:[#allocation103_spill] sm:$0xff] %v7023_v12  ;;  %v7025_v39 = vpop.permute.xlu1 %1118 }
 0x290   : > { %11146 = vst [vmem:[#allocation104_spill] sm:$0xff] %v7025_v39  ;;  %v7039_v37 = vpop.permute.xlu0 %1173 }
 0x291   : > { %11153 = vst [vmem:[#allocation111_spill] sm:$0xff] %v7039_v37 }
 0x296   : > { %v7029_v43 = vpop.permute.xlu2 %1204 }
 0x297   : > { %11148 = vst [vmem:[#allocation106_spill] sm:$0xff] %v7029_v43  ;;  %v7031_v9 = vpop.permute.xlu1 %1155 }
 0x298   : > { %11149 = vst [vmem:[#allocation107_spill] sm:$0xff] %v7031_v9  ;;  %v7045_v12 = vpop.permute.xlu0 %1206 }
 0x299   : > { %11156 = vst [vmem:[#allocation114_spill] sm:$0xff] %v7045_v12 }
 0x29e   : > { %v7035_v49 = vpop.permute.xlu2 %1220 }
 0x29f   : > { %11151 = vst [vmem:[#allocation109_spill] sm:$0xff] %v7035_v49  ;;  %v7037_v0 = vpop.permute.xlu1 %1159 }
 0x2a0   : > { %11152 = vst [vmem:[#allocation110_spill] sm:$0xff] %v7037_v0  ;;  %v7053_v9 = vpop.permute.xlu0 %1224 }
 0x2a1   : > { %11160 = vst [vmem:[#allocation118_spill] sm:$0xff] %v7053_v9 }
 0x2a6   : > { %v7041_v45 = vpop.permute.xlu2 %1249 }
 0x2a7   : > { %11154 = vst [vmem:[#allocation112_spill] sm:$0xff] %v7041_v45  ;;  %v7043_v38 = vpop.permute.xlu1 %1177 }
 0x2a8   : > { %11155 = vst [vmem:[#allocation113_spill] sm:$0xff] %v7043_v38  ;;  %v7061_v37 = vpop.permute.xlu0 %1263 }
 0x2a9   : > { %11164 = vst [vmem:[#allocation122_spill] sm:$0xff] %v7061_v37 }
 0x2ae   : > { %v7047_v39 = vpop.permute.xlu2 %1253 }
 0x2af   : > { %11157 = vst [vmem:[#allocation115_spill] sm:$0xff] %v7047_v39  ;;  %v7049_v46 = vpop.permute.xlu1 %1202 }
 0x2b0   : > { %11158 = vst [vmem:[#allocation116_spill] sm:$0xff] %v7049_v46  ;;  %v7067_v12 = vpop.permute.xlu0 %1298 }
 0x2b1   : > { %11167 = vst [vmem:[#allocation125_spill] sm:$0xff] %v7067_v12 }
 0x2b6   : > { %v7051_v43 = vpop.permute.xlu2 %1271 }
 0x2b7   : > { %11159 = vst [vmem:[#allocation117_spill] sm:$0xff] %v7051_v43  ;;  %v7055_v51 = vpop.permute.xlu1 %1216 }
 0x2b8   : > { %11161 = vst [vmem:[#allocation119_spill] sm:$0xff] %v7055_v51  ;;  %v7073_v43 = vpop.permute.xlu0 %1314 }
 0x2b9   : > { %11170 = vst [vmem:[#allocation128_spill] sm:$0xff] %v7073_v43  ;;  %v6334_v43 = vmov 18  }
 0x2ba   : > { %5905 = vset.pattern.permute.xlu0 %v6334_v43  ;;  %5906 = vset.pattern.permute.xlu1 %v6334_v43 }
 0x2bb   : > { %5907 = vset.pattern.permute.xlu2 %v6334_v43 }
 0x2be   : > { %v7057_v49 = vpop.permute.xlu2 %1296 }
 0x2bf   : > { %11162 = vst [vmem:[#allocation120_spill] sm:$0xff] %v7057_v49  ;;  %v7059_v0 = vpop.permute.xlu1 %1228 }
 0x2c0   : > { %11163 = vst [vmem:[#allocation121_spill] sm:$0xff] %v7059_v0  ;;  %v7082_v37 = vpop.permute.xlu0 %1352 }
 0x2c1   : > { %11173 = vst [vmem:[#allocation131_spill] sm:$0xff] %v7082_v37 }
 0x2c6   : > { %v7065_v38 = vpop.permute.xlu2 %1310 }
 0x2c7   : > { %v7063_v45 = vpop.permute.xlu1 %1251  ;;  %11166 = vst [vmem:[#allocation124_spill] sm:$0xff] %v7065_v38  ;;  %v1368_v38 = vmul.f32 %v7082_v37, %v6909_v2 }
 0x2c8   : > { %11165 = vst [vmem:[#allocation123_spill] sm:$0xff] %v7063_v45 }
 0x2ce   : > { %v7071_v46 = vpop.permute.xlu2 %1322 }
 0x2cf   : > { %v7069_v39 = vpop.permute.xlu1 %1267  ;;  %11169 = vst [vmem:[#allocation127_spill] sm:$0xff] %v7071_v46 }
 0x2d0   : > { %11168 = vst [vmem:[#allocation126_spill] sm:$0xff] %v7069_v39 }
 0x2d7   : > { %v7075_v9 = vpop.permute.xlu1 %1275  ;;  %v7077_v51 = vpop.permute.xlu2 %1348 }
 0x2d8   : > { %11171 = vst [vmem:[#allocation129_spill] sm:$0xff] %v7075_v9  ;;  %v1365_v0 = vmul.f32 %v7077_v51, %v6909_v2 }
 0x2d9   : > { %11172 = vst [vmem:[#allocation130_spill] sm:$0xff] %v7077_v51 }
 0x2da   : > { %1392 = vrot.lane.b32.xlu0 %v1365_v0, %s10840_s14 }
 0x2df   : > { %v7086_v39 = vpop.permute.xlu1 %1300 }
 0x2e0   : > { %11174 = vst [vmem:[#allocation132_spill] sm:$0xff] %v7086_v39 }
 0x2e2   : > { %1398 = vrot.lane.b32.xlu0 %v1368_v38, %s10840_s14  ;;  %v1366_v38 = vmul.f32 %v7077_v51, %v6907_v10 }
 0x2e7   : > { %v7089_v46 = vpop.permute.xlu1 %1318 }
 0x2e8   : > { %11175 = vst [vmem:[#allocation133_spill] sm:$0xff] %v7089_v46 }
 0x2f0   : > { %v7091_v9 = vpop.permute.xlu1 %1344 }
 0x2f1   : > { %11176 = vst [vmem:[#allocation134_spill] sm:$0xff] %v7091_v9  ;;  %v1363_v0 = vmul.f32 %v7091_v9, %v6907_v10  ;;  %v1362_v49 = vmul.f32 %v7091_v9, %v6909_v2  ;;  %v1364_v43 = vmul.f32 %v7091_v9, %v6890_v48 }
 0x2f3   : > { %1388 = vrot.lane.b32.xlu1 %v1363_v0, %s10840_s14  ;;  %1386 = vrot.lane.b32.xlu2 %v1362_v49, %s10840_s14  ;;  %v1369_v49 = vmul.f32 %v7082_v37, %v6907_v10  ;;  %v1367_v0 = vmul.f32 %v7077_v51, %v6890_v48 }
 0x2f8   : > { %v7101_v46 = vpop.permute.xlu1 %1356 }
 0x2f9   : > { %11177 = vst [vmem:[#allocation135_spill] sm:$0xff] %v7101_v46  ;;  %v1371_v39 = vmul.f32 %v7101_v46, %v6909_v2 }
 0x2fb   : > { %1394 = vrot.lane.b32.xlu1 %v1366_v38, %s10840_s14  ;;  %1390 = vrot.lane.b32.xlu2 %v1364_v43, %s10840_s14  ;;  %v1370_v38 = vmul.f32 %v7082_v37, %v6890_v48  ;;  %v1373_v43 = vmul.f32 %v7101_v46, %v6890_v48 }
 0x2fc   : > { %1404 = vrot.lane.b32.xlu0 %v1371_v39, %s10840_s14  ;;  %v1372_v39 = vmul.f32 %v7101_v46, %v6907_v10 }
 0x303   : > { %1396 = vrot.lane.b32.xlu2 %v1367_v0, %s10840_s14  ;;  %1400 = vrot.lane.b32.xlu1 %v1369_v49, %s10840_s14  ;;  %v6337_v49 = vmov 19   ;;  %v6339_v0 = vmov 20  }
 0x304   : > { %1435 = vrot.lane.b32.xlu0 %v6909_v2, %s6335_s16 }
 0x30b   : > { %1402 = vrot.lane.b32.xlu2 %v1370_v38, %s10840_s14  ;;  %1406 = vrot.lane.b32.xlu1 %v1372_v39, %s10840_s14  ;;  %v6340_v38 = vmov 21   ;;  %v6341_v39 = vmov 22  }
 0x30c   : > { %1449 = vperm.xlu0 %5905, %v6533_v4  }
 0x313   : > { %1408 = vrot.lane.b32.xlu2 %v1373_v43, %s10840_s14  ;;  %1437 = vrot.lane.b32.xlu1 %v6907_v10, %s6335_s16  ;;  %s10883_s14 = smov 98  }
 0x314   : > { %1484 = vrot.lane.b32.xlu0 %v6907_v10, %s10842_s1 }
 0x315   : > { %5909 = vset.pattern.permute.xlu0 %v6337_v49 }
 0x31b   : > { %1439 = vrot.lane.b32.xlu2 %v6890_v48, %s6335_s16  ;;  %1453 = vperm.xlu1 %5906, %v6535_v6  }
 0x31c   : > { %1500 = vperm.xlu0 %5909, %v6535_v6  }
 0x323   : > { %1457 = vperm.xlu2 %5907, %v6542_v7   ;;  %1461 = vperm.xlu1 %5906, %v6561_v13  }
 0x324   : > { %1533 = vrot.lane.b32.xlu0 %v6890_v48, %s10883_s14 }
 0x325   : > { %5913 = vset.pattern.permute.xlu0 %v6339_v0 }
 0x32b   : > { %1482 = vrot.lane.b32.xlu2 %v6909_v2, %s10842_s1  ;;  %1486 = vrot.lane.b32.xlu1 %v6890_v48, %s10842_s1  ;;  %s10868_s1 = smov 97  }
 0x32c   : > { %5908 = vset.pattern.permute.xlu2 %v6337_v49  ;;  %5910 = vset.pattern.permute.xlu1 %v6337_v49 }
 0x32d   : > { %1551 = vperm.xlu0 %5913, %v6542_v7  }
 0x333   : > { %1496 = vperm.xlu2 %5908, %v6533_v4   ;;  %1504 = vperm.xlu1 %5910, %v6542_v7  }
 0x335   : > { %5914 = vset.pattern.permute.xlu0 %v6340_v38 }
 0x336   : > { %1590 = vperm.xlu0 %5914, %v6533_v4  }
 0x33b   : > { %1508 = vperm.xlu2 %5908, %v6561_v13   ;;  %1529 = vrot.lane.b32.xlu1 %v6909_v2, %s10883_s14 }
 0x33c   : > { %5911 = vset.pattern.permute.xlu1 %v6339_v0 }
 0x33e   : > { %5918 = vset.pattern.permute.xlu0 %v6341_v39 }
 0x33f   : > { %1628 = vperm.xlu0 %5918, %v6535_v6  }
 0x343   : > { %1531 = vrot.lane.b32.xlu2 %v6907_v10, %s10883_s14  ;;  %1543 = vperm.xlu1 %5911, %v6533_v4   ;;  %s10905_s14 = smov 95  }
 0x344   : > { %5912 = vset.pattern.permute.xlu2 %v6339_v0 }
 0x34b   : > { %1547 = vperm.xlu2 %5912, %v6535_v6   ;;  %1555 = vperm.xlu1 %5911, %v6561_v13  }
 0x34d   : > { %v7157_v43 = vpop.permute.xlu2 %1386 }
 0x34e   : > { %11178 = vst [vmem:[#allocation136_spill] sm:$0xff] %v7157_v43 }
 0x353   : > { %1576 = vrot.lane.b32.xlu2 %v6909_v2, %s10868_s1  ;;  %1578 = vrot.lane.b32.xlu1 %v6907_v10, %s10868_s1 }
 0x354   : > { %5915 = vset.pattern.permute.xlu1 %v6340_v38  ;;  %5916 = vset.pattern.permute.xlu2 %v6340_v38  ;;  %v7176_v38 = vpop.permute.xlu0 %1392 }
 0x355   : > { %v7163_v49 = vpop.permute.xlu2 %1390  ;;  %11183 = vst [vmem:[#allocation141_spill] sm:$0xff] %v7176_v38 }
 0x356   : > { %11179 = vst [vmem:[#allocation137_spill] sm:$0xff] %v7163_v49 }
 0x35b   : > { %1580 = vrot.lane.b32.xlu2 %v6890_v48, %s10868_s1  ;;  %1594 = vperm.xlu1 %5915, %v6535_v6   ;;  %s6343_s1 = smov 96  }
 0x35c   : > { %v7189_v49 = vpop.permute.xlu0 %1398 }
 0x35d   : > { %v7168_v0 = vpop.permute.xlu2 %1396  ;;  %11188 = vst [vmem:[#allocation146_spill] sm:$0xff] %v7189_v49 }
 0x35e   : > { %11180 = vst [vmem:[#allocation138_spill] sm:$0xff] %v7168_v0 }
 0x363   : > { %1598 = vperm.xlu2 %5916, %v6542_v7   ;;  %1602 = vperm.xlu1 %5915, %v6561_v13  }
 0x365   : > { %v7172_v46 = vpop.permute.xlu1 %1388  ;;  %v7174_v37 = vpop.permute.xlu2 %1402 }
 0x366   : > { %11181 = vst [vmem:[#allocation139_spill] sm:$0xff] %v7172_v46 }
 0x367   : > { %11182 = vst [vmem:[#allocation140_spill] sm:$0xff] %v7174_v37 }
 0x36b   : > { %5917 = vset.pattern.permute.xlu2 %v6341_v39  ;;  %5919 = vset.pattern.permute.xlu1 %v6341_v39 }
 0x36c   : > { %1624 = vperm.xlu2 %5917, %v6533_v4   ;;  %1632 = vperm.xlu1 %5919, %v6542_v7  }
 0x36d   : > { %v7180_v51 = vpop.permute.xlu1 %1394  ;;  %v7182_v6 = vpop.permute.xlu2 %1408 }
 0x36e   : > { %11184 = vst [vmem:[#allocation142_spill] sm:$0xff] %v7180_v51  ;;  %v7195_v38 = vpop.permute.xlu0 %1404 }
 0x36f   : > { %11185 = vst [vmem:[#allocation143_spill] sm:$0xff] %v7182_v6 }
 0x370   : > { %11191 = vst [vmem:[#allocation149_spill] sm:$0xff] %v7195_v38 }
 0x374   : > { %1636 = vperm.xlu2 %5917, %v6561_v13  }
 0x375   : > { %v7185_v9 = vpop.permute.xlu2 %1439  ;;  %v7187_v0 = vpop.permute.xlu1 %1400 }
 0x376   : > { %11186 = vst [vmem:[#allocation144_spill] sm:$0xff] %v7185_v9  ;;  %v7201_v51 = vpop.permute.xlu0 %1435 }
 0x377   : > { %11187 = vst [vmem:[#allocation145_spill] sm:$0xff] %v7187_v0 }
 0x378   : > { %11194 = vst [vmem:[#allocation152_spill] sm:$0xff] %v7201_v51  ;;  %v447_v51 = vld [vmem:[#allocation11 + $0x10] sm:$0xff] }
 0x37d   : > { %v7191_v37 = vpop.permute.xlu2 %1457  ;;  %v7193_v39 = vpop.permute.xlu1 %1406 }
 0x37e   : > { %11189 = vst [vmem:[#allocation147_spill] sm:$0xff] %v7191_v37  ;;  %v7207_v43 = vpop.permute.xlu0 %1449 }
 0x37f   : > { %11190 = vst [vmem:[#allocation148_spill] sm:$0xff] %v7193_v39 }
 0x380   : > { %11197 = vst [vmem:[#allocation155_spill] sm:$0xff] %v7207_v43 }
 0x385   : > { %v7197_v4 = vpop.permute.xlu2 %1482  ;;  %v7199_v7 = vpop.permute.xlu1 %1437 }
 0x386   : > { %11192 = vst [vmem:[#allocation150_spill] sm:$0xff] %v7197_v4  ;;  %v7213_v37 = vpop.permute.xlu0 %1484 }
 0x387   : > { %11193 = vst [vmem:[#allocation151_spill] sm:$0xff] %v7199_v7 }
 0x388   : > { %11200 = vst [vmem:[#allocation158_spill] sm:$0xff] %v7213_v37 }
 0x38d   : > { %v7203_v6 = vpop.permute.xlu2 %1496  ;;  %v7205_v13 = vpop.permute.xlu1 %1453 }
 0x38e   : > { %11195 = vst [vmem:[#allocation153_spill] sm:$0xff] %v7203_v6  ;;  %v7223_v9 = vpop.permute.xlu0 %1500 }
 0x38f   : > { %11196 = vst [vmem:[#allocation154_spill] sm:$0xff] %v7205_v13 }
 0x390   : > { %11205 = vst [vmem:[#allocation163_spill] sm:$0xff] %v7223_v9 }
 0x395   : > { %v7209_v0 = vpop.permute.xlu2 %1508  ;;  %v7211_v49 = vpop.permute.xlu1 %1461 }
 0x396   : > { %11198 = vst [vmem:[#allocation156_spill] sm:$0xff] %v7209_v0  ;;  %v7229_v43 = vpop.permute.xlu0 %1533 }
 0x397   : > { %11199 = vst [vmem:[#allocation157_spill] sm:$0xff] %v7211_v49 }
 0x398   : > { %11208 = vst [vmem:[#allocation166_spill] sm:$0xff] %v7229_v43  ;;  %v446_v43 = vld [vmem:[#allocation11 + $0x8] sm:$0xff] }
 0x39d   : > { %v7215_v39 = vpop.permute.xlu2 %1531  ;;  %v7217_v38 = vpop.permute.xlu1 %1486 }
 0x39e   : > { %11201 = vst [vmem:[#allocation159_spill] sm:$0xff] %v7215_v39 }
 0x39f   : > { %11202 = vst [vmem:[#allocation160_spill] sm:$0xff] %v7217_v38  ;;  %v7235_v37 = vpop.permute.xlu0 %1551 }
 0x3a0   : > { %11211 = vst [vmem:[#allocation169_spill] sm:$0xff] %v7235_v37 }
 0x3a5   : > { %v7219_v4 = vpop.permute.xlu2 %1547  ;;  %v7221_v46 = vpop.permute.xlu1 %1504 }
 0x3a6   : > { %11203 = vst [vmem:[#allocation161_spill] sm:$0xff] %v7219_v4 }
 0x3a7   : > { %11204 = vst [vmem:[#allocation162_spill] sm:$0xff] %v7221_v46 }
 0x3a8   : > { %v7241_v4 = vpop.permute.xlu0 %1590 }
 0x3a9   : > { %11214 = vst [vmem:[#allocation172_spill] sm:$0xff] %v7241_v4 }
 0x3ad   : > { %v7225_v6 = vpop.permute.xlu1 %1529  ;;  %v7227_v13 = vpop.permute.xlu2 %1576 }
 0x3ae   : > { %11206 = vst [vmem:[#allocation164_spill] sm:$0xff] %v7225_v6  ;;  %v445_v6 = vld [vmem:[#allocation11] sm:$0xff] }
 0x3af   : > { %11207 = vst [vmem:[#allocation165_spill] sm:$0xff] %v7227_v13 }
 0x3b5   : > { %v7231_v0 = vpop.permute.xlu1 %1543  ;;  %v7233_v49 = vpop.permute.xlu2 %1580 }
 0x3b6   : > { %11209 = vst [vmem:[#allocation167_spill] sm:$0xff] %v7231_v0 }
 0x3b7   : > { %11210 = vst [vmem:[#allocation168_spill] sm:$0xff] %v7233_v49 }
 0x3bd   : > { %v7237_v39 = vpop.permute.xlu1 %1555  ;;  %v7239_v38 = vpop.permute.xlu2 %1598 }
 0x3be   : > { %11212 = vst [vmem:[#allocation170_spill] sm:$0xff] %v7237_v39  ;;  %v7255_v39 = vpop.permute.xlu0 %1628 }
 0x3bf   : > { %11213 = vst [vmem:[#allocation171_spill] sm:$0xff] %v7239_v38  ;;  %v1644_v4 = vmul.f32 %v7255_v39, %v6890_v48  ;;  %v1642_v37 = vmul.f32 %v7255_v39, %v6909_v2 }
 0x3c0   : > { %11217 = vst [vmem:[#allocation175_spill] sm:$0xff] %v7255_v39 }
 0x3c5   : > { %v7243_v46 = vpop.permute.xlu1 %1578 }
 0x3c6   : > { %11215 = vst [vmem:[#allocation173_spill] sm:$0xff] %v7243_v46  ;;  %v7245_v9 = vpop.permute.xlu2 %1624 }
 0x3c7   : > { %11216 = vst [vmem:[#allocation174_spill] sm:$0xff] %v7245_v9  ;;  %v1639_v13 = vmul.f32 %v7245_v9, %v6909_v2  ;;  %v1641_v0 = vmul.f32 %v7245_v9, %v6890_v48  ;;  %v1640_v49 = vmul.f32 %v7245_v9, %v6907_v10  ;;  %v1643_v9 = vmul.f32 %v7255_v39, %v6907_v10 }
 0x3c9   : > { %1663 = vrot.lane.b32.xlu1 %v1639_v13, %s6343_s1  ;;  %1667 = vrot.lane.b32.xlu0 %v1641_v0, %s6343_s1  ;;  %v6344_v0 = vmov 23  }
 0x3ca   : > { %1665 = vrot.lane.b32.xlu2 %v1640_v49, %s6343_s1  ;;  %5920 = vset.pattern.permute.xlu1 %v6344_v0 }
 0x3cb   : > { %5921 = vset.pattern.permute.xlu2 %v6344_v0  ;;  %5922 = vset.pattern.permute.xlu0 %v6344_v0 }
 0x3cd   : > { %v7258_v38 = vpop.permute.xlu1 %1594 }
 0x3ce   : > { %11218 = vst [vmem:[#allocation176_spill] sm:$0xff] %v7258_v38 }
 0x3d1   : > { %1673 = vrot.lane.b32.xlu0 %v1644_v4, %s6343_s1  ;;  %1669 = vrot.lane.b32.xlu1 %v1642_v37, %s6343_s1  ;;  %v361_v37 = vand.u32 127, %v11101_v47  ;;  %v1830_v47 = vld [vmem:[#allocation2 + $0x4] sm:$0x7] }
 0x3d2   : > { %1671 = vrot.lane.b32.xlu2 %v1643_v9, %s6343_s1  ;;  %v7282_v9 = vpop.permute.xlu2 %1636  ;;  %v7341_v12 = vperm.slane %v1830_v47, 0 }
 0x3d3   : > { %11221 = vst [vmem:[#allocation179_spill] sm:$0xff] %v7282_v9  ;;  %v1650_v0 = vmul.f32 %v7282_v9, %v6890_v48  ;;  %v1648_v46 = vmul.f32 %v7282_v9, %v6909_v2 }
 0x3d4   : > { %11224 = vst [vmem:[#allocation182_spill] sm:$0xff] %v7341_v12  ;;  %v7354_v5 = vmul.f32 %v7341_v12, %v6609_v26 }
 0x3d5   : > { %v7269_v49 = vpop.permute.xlu1 %1602 }
 0x3d6   : > { %11219 = vst [vmem:[#allocation177_spill] sm:$0xff] %v7269_v49  ;;  %v1649_v49 = vmul.f32 %v7282_v9, %v6907_v10  ;;  %v7326_v9 = vld [vmem:[#allocation9 + $0x10] sm:$0xff] }
 0x3d7   : > { %11222 = vst [vmem:[#allocation180_spill] sm:$0xff] %v7326_v9 }
 0x3d8   : > { %11226 = vst [vmem:[#allocation184_spill] sm:$0xff] %v7354_v5  ;;  %v6346_v5 = vmov 24  }
 0x3de   : > { %v7271_v13 = vpop.permute.xlu1 %1632 }
 0x3df   : > { %11220 = vst [vmem:[#allocation178_spill] sm:$0xff] %v7271_v13  ;;  %v1647_v38 = vmul.f32 %v7271_v13, %v6890_v48  ;;  %v1646_v39 = vmul.f32 %v7271_v13, %v6907_v10  ;;  %v1645_v4 = vmul.f32 %v7271_v13, %v6909_v2  ;;  %v362_v13 = vadd.s32 128, %v361_v37 }
 0x3e1   : > { %1679 = vrot.lane.b32.xlu0 %v1647_v38, %s6343_s1  ;;  %1677 = vrot.lane.b32.xlu2 %v1646_v39, %s6343_s1  ;;  %v7294_v38 = vand.u32 15, %v361_v37  ;;  %v7296_v39 = vand.u32 15, %v362_v13 }
 0x3e2   : > { %1675 = vrot.lane.b32.xlu1 %v1645_v4, %s6343_s1  ;;  %v465_v4 = vsel %vm464_vm4, %v6607_v25, %v6613_v28  ;;  %v516_v25 = vsel %vm515_vm5, %v6611_v27, %v6594_v18  ;;  %v7329_v27 = vld [vmem:[#allocation9 + $0x8] sm:$0xff] }
 0x3e3   : > { %vm387_vm6 = vcmp.ge.s32.totalorder %v7294_v38, 2  ;;  %vm388_vm7 = vcmp.ge.s32.totalorder %v7296_v39, 2  ;;  %vm389_vm8 = vcmp.ge.s32.totalorder %v7294_v38, 1  ;;  %vm390_vm9 = vcmp.ge.s32.totalorder %v7296_v39, 1  ;;  %11223 = vst [vmem:[#allocation181_spill] sm:$0xff] %v7329_v27 }
 0x3e4   : > { %vm392_vm12 = vcmp.lt.s32.totalorder %v7296_v39, 15  ;;  %vm391_vm13 = vcmp.lt.s32.totalorder %v7294_v38, 15  ;;  %vm393_vm14 = vcmp.lt.s32.totalorder %v7294_v38, 14  ;;  %vm394_vm0 = vcmp.lt.s32.totalorder %v7296_v39, 14 }
 0x3e9   : > { %1685 = vrot.lane.b32.xlu0 %v1650_v0, %s6343_s1  ;;  %1683 = vrot.lane.b32.xlu2 %v1649_v49, %s6343_s1  ;;  %v466_v49 = vsel %vm464_vm4, %v6613_v28, %v6605_v24  ;;  %v520_v28 = vsel %vm389_vm8, %v516_v25, 0.0  ;;  %v517_v0 = vsel %vm515_vm5, %v6594_v18, %v6618_v30  ;;  %v5928_v25 = vld [vmem:[#allocation9] sm:$0xff]  ;;  %v7337_v30 = vperm.slane %v1830_v47, 1 }
 0x3ea   : > { %1681 = vrot.lane.b32.xlu1 %v1648_v46, %s6343_s1  ;;  %v469_v46 = vsel %vm387_vm6, %v465_v4, 0.0  ;;  %v470_v24 = vsel %vm388_vm7, %v466_v49, 0.0  ;;  %v538_v4 = vperm.slane %v520_v28, 0  ;;  %v521_v49 = vsel %vm390_vm9, %v517_v0, 0.0 }
 0x3eb   : > { %v491_v13 = vperm.slane %v469_v46, 0  ;;  %v492_v37 = vperm.slane %v470_v24, 0  ;;  %v7343_v0 = vperm.slane %v1830_v47, 2  ;;  %v539_v45 = vperm.slane %v521_v49, 0 }
 0x3ec   : > { %v7349_v29 = vmul.f32 %v7337_v30, %v6609_v26  ;;  %v540_v41 = vmul.f32 %v538_v4, %v6598_v20 }
 0x3ed   : > { %v493_v46 = vmul.f32 %v491_v13, %v6596_v19  ;;  %v494_v24 = vmul.f32 %v492_v37, %v6596_v19  ;;  %v495_v18 = vmul.f32 %v491_v13, %v6590_v16  ;;  %v496_v7 = vmul.f32 %v492_v37, %v6590_v16  ;;  %v449_v19 = vld [vmem:[#allocation11 + $0x20] sm:$0xff]  ;;  %v450_v16 = vld [vmem:[#allocation11 + $0x28] sm:$0xff] }
 0x3ee   : > { %v497_v28 = vmul.f32 %v491_v13, %v6592_v17  ;;  %v499_v14 = vmul.f32 %v491_v13, %v6620_v31  ;;  %11225 = vst [vmem:[#allocation183_spill] sm:$0xff] %v7349_v29  ;;  %v7358_v47 = vmul.f32 %v7343_v0, %v6609_v26  ;;  %v500_v22 = vmul.f32 %v492_v37, %v6620_v31  ;;  %v11299_v31 = vld [vmem:[#allocation105_spill] sm:$0xff] }
 0x3ef   : > { %v501_v13 = vadd.f32 %v493_v46, %v445_v6  ;;  %v502_v49 = vadd.f32 %v494_v24, %v446_v43  ;;  %v503_v15 = vadd.f32 %v495_v18, %v447_v51  ;;  %v504_v29 = vadd.f32 %v496_v7, %v448_v21  ;;  %v7368_v21 = vld [vmem:[#allocation9 + $0x18] sm:$0xff] }
 0x3f0   : > { %v505_v42 = vadd.f32 %v497_v28, %v449_v19  ;;  %v541_v63 = vmul.f32 %v539_v45, %v6598_v20  ;;  %v544_v26 = vmul.f32 %v538_v4, %v6622_v32  ;;  %v545_v51 = vmul.f32 %v539_v45, %v6622_v32  ;;  %v11300_v20 = vld [vmem:[#allocation98_spill] sm:$0xff] }
 0x3f1   : > { %1716 = vrot.lane.b32.xlu0 %v6890_v48, %s10905_s14  ;;  %1714 = vrot.lane.b32.xlu2 %v6907_v10, %s10905_s14  ;;  %v547_v43 = vmul.f32 %v539_v45, %v6603_v23  ;;  %v542_v19 = vmul.f32 %v538_v4, %v6624_v33  ;;  %v548_v6 = vadd.f32 %v540_v41, %v501_v13 }
 0x3f2   : > { %1712 = vrot.lane.b32.xlu1 %v6909_v2, %s10905_s14  ;;  %s6347_s14 = smov 94   ;;  %v508_v7 = vadd.f32 %v500_v22, %v452_v55  ;;  %v626_v13 = vsel %vm623_vm15, %v6724_v8, %v6726_v11 }
 0x3f3   : > { %v550_v55 = vadd.f32 %v542_v19, %v503_v15  ;;  %v625_v15 = vsel %vm623_vm15, %v6720_v3, %v6710_v60  ;;  %v7425_v60 = vmul.f32 %v7343_v0, %v6626_v34 }
 0x3f9   : > { %1734 = vperm.xlu0 %5922, %v7326_v9   ;;  %1730 = vperm.xlu2 %5921, %v7329_v27   ;;  %v498_v27 = vmul.f32 %v492_v37, %v6592_v17  ;;  %v451_v9 = vld [vmem:[#allocation11 + $0x30] sm:$0xff]  ;;  %v546_v17 = vmul.f32 %v538_v4, %v6603_v23  ;;  %v549_v37 = vadd.f32 %v541_v63, %v502_v49 }
 0x3fa   : > { %1726 = vperm.xlu1 %5920, %v5928_v25   ;;  %v507_v36 = vadd.f32 %v499_v14, %v451_v9  ;;  %v543_v14 = vmul.f32 %v539_v45, %v6624_v33  ;;  %v702_v9 = vsel %vm701_vm11, %v6688_v53, %v6718_v1  ;;  %v7389_v4 = vadd.f32 %v547_v43, %v508_v7  ;;  %v11228_v43 = vld [vmem:[#allocation29_spill] sm:$0xff] }
 0x3fb   : > { %v506_v59 = vadd.f32 %v498_v27, %v450_v16  ;;  %v656_v16 = vsel %vm654_vm10, %v6693_v54, %v6677_v50  ;;  %v552_v27 = vadd.f32 %v544_v26, %v505_v42  ;;  %v706_v41 = vsel %vm393_vm14, %v702_v9, 0.0  ;;  %v11231_v9 = vld [vmem:[#allocation45_spill] sm:$0xff] }
 0x3fc   : > { %v7385_v50 = vadd.f32 %v546_v17, %v507_v36  ;;  %v660_v45 = vsel %vm392_vm12, %v656_v16, 0.0  ;;  %v703_v17 = vsel %vm701_vm11, %v6718_v1, %v6714_v62  ;;  %v624_v53 = vsel %vm623_vm15, %v6705_v58, %v6720_v3 }
 0x3fd   : > { %v553_v22 = vadd.f32 %v545_v51, %v506_v59  ;;  %v678_v63 = vperm.slane %v660_v45, 0  ;;  %v7409_v59 = vmul.f32 %v7337_v30, %v6626_v34  ;;  %v7421_v58 = vmul.f32 %v7337_v30, %v6628_v35 }
 0x3fe   : > { %v7429_v1 = vmul.f32 %v7341_v12, %v6628_v35  ;;  %v724_v3 = vperm.slane %v706_v41, 0  ;;  %v707_v36 = vsel %vm394_vm0, %v703_v17, 0.0  ;;  %v640_v42 = vadd.f32 %v624_v53, %v548_v6  ;;  %v11230_v6 = vld [vmem:[#allocation33_spill] sm:$0xff]  ;;  %v11234_v17 = vld [vmem:[#allocation34_spill] sm:$0xff] }
 0x3ff   : > { %v680_v24 = vmul.f32 %v678_v63, %v6712_v61  ;;  %v682_v18 = vmul.f32 %v678_v63, %v6699_v56  ;;  %v725_v28 = vperm.slane %v707_v36, 0  ;;  %v684_v49 = vmul.f32 %v678_v63, %v6682_v52  ;;  %v11236_v36 = vld [vmem:[#allocation44_spill] sm:$0xff] }
 0x400   : > { %v726_v16 = vmul.f32 %v724_v3, %v11228_v43  ;;  %v627_v7 = vsel %vm623_vm15, %v6726_v11, %v11230_v6 }
 0x401   : > { %5923 = vset.pattern.permute.xlu0 %v6346_v5  ;;  %1759 = vrot.lane.b32.xlu2 %v6909_v2, %s6347_s14  ;;  %v655_v2 = vsel %vm654_vm10, %v6701_v57, %v6693_v54  ;;  %v551_v57 = vadd.f32 %v543_v14, %v504_v29  ;;  %v7413_v29 = vmul.f32 %v7341_v12, %v6626_v34  ;;  %v11229_v14 = vld [vmem:[#allocation31_spill] sm:$0xff] }
 0x402   : > { %1738 = vperm.xlu1 %5920, %v7368_v21   ;;  %1773 = vperm.xlu0 %5923, %v5928_v25   ;;  %v659_v54 = vsel %vm391_vm13, %v655_v2, 0.0  ;;  %v7439_v34 = vmul.f32 %v7341_v12, %v6641_v40  ;;  %v7443_v25 = vmul.f32 %v7343_v0, %v6628_v35  ;;  %v11227_v35 = vld [vmem:[#allocation40_spill] sm:$0xff]  ;;  %v686_v2 = vmul.f32 %v678_v63, %v11229_v14 }
 0x403   : > { %5925 = vset.pattern.permute.xlu2 %v6346_v5  ;;  %v677_v62 = vperm.slane %v659_v54, 0  ;;  %v750_v26 = vsel %vm10919_vm1, %v11227_v35, %v6776_v44  ;;  %v749_v45 = vsel %vm10919_vm1, %v11231_v9, %v11227_v35  ;;  %v11232_v44 = vld [vmem:[#allocation38_spill] sm:$0xff]  ;;  %v11233_v54 = vld [vmem:[#allocation36_spill] sm:$0xff]  ;;  %v727_v11 = vmul.f32 %v725_v28, %v11228_v43  ;;  %v11239_v35 = vld [vmem:[#allocation37_spill] sm:$0xff] }
 0x404   : > { %v628_v41 = vsel %vm623_vm15, %v11233_v54, %v11232_v44  ;;  %v629_v53 = vsel %vm623_vm15, %v11232_v44, %v11234_v17  ;;  %v754_v63 = vsel %vm388_vm7, %v750_v26, 0.0  ;;  %v631_v26 = vsel %vm623_vm15, %v11236_v36, %v11239_v35  ;;  %v11243_v35 = vld [vmem:[#allocation48_spill] sm:$0xff] }
 0x405   : > { %v679_v46 = vmul.f32 %v677_v62, %v6712_v61  ;;  %v683_v19 = vmul.f32 %v677_v62, %v6682_v52  ;;  %v681_v8 = vmul.f32 %v677_v62, %v6699_v56  ;;  %v753_v6 = vsel %vm387_vm6, %v749_v45, 0.0  ;;  %v11250_v52 = vld [vmem:[#allocation55_spill] sm:$0xff] }
 0x406   : > { %v644_v44 = vadd.f32 %v628_v41, %v552_v27  ;;  %v645_v54 = vadd.f32 %v629_v53, %v553_v22  ;;  %v772_v17 = vperm.slane %v754_v63, 0  ;;  %v11246_v63 = vld [vmem:[#allocation43_spill] sm:$0xff]  ;;  %vm10952_vm1 = vcmask 15360  }
 0x407   : > { %v687_v51 = vadd.f32 %v679_v46, %v640_v42  ;;  %v11237_v42 = vld [vmem:[#allocation39_spill] sm:$0xff]  ;;  %v11238_v46 = vld [vmem:[#allocation181_spill] sm:$0xff] }
 0x408   : > { %v691_v53 = vadd.f32 %v683_v19, %v644_v44  ;;  %v11295_v61 = vld [vmem:[#allocation83_spill] sm:$0xff] }
 0x409   : > { %1763 = vrot.lane.b32.xlu2 %v6890_v48, %s6347_s14  ;;  %v641_v48 = vadd.f32 %v625_v15, %v549_v37  ;;  %v642_v37 = vadd.f32 %v626_v13, %v550_v55  ;;  %v11235_v15 = vld [vmem:[#allocation180_spill] sm:$0xff]  ;;  %v685_v55 = vmul.f32 %v677_v62, %v11229_v14  ;;  %v643_v13 = vadd.f32 %v627_v7, %v551_v57  ;;  %v11240_v62 = vld [vmem:[#allocation35_spill] sm:$0xff]  ;;  %v11242_v7 = vld [vmem:[#allocation46_spill] sm:$0xff] }
 0x40a   : > { %1761 = vrot.lane.b32.xlu1 %v6907_v10, %s6347_s14  ;;  %1837 = vrot.lane.b32.xlu0 %v7337_v30, %s6301_s2  ;;  %v7435_v10 = vmul.f32 %v7337_v30, %v6641_v40  ;;  %v647_v57 = vadd.f32 %v631_v26, %v7389_v4  ;;  %v11247_v26 = vld [vmem:[#allocation49_spill] sm:$0xff] }
 0x40b   : > { %5924 = vset.pattern.permute.xlu1 %v6346_v5  ;;  %v7450_v5 = vmul.f32 %v7343_v0, %v6641_v40  ;;  %v688_v40 = vadd.f32 %v680_v24, %v641_v48  ;;  %v630_v48 = vsel %vm623_vm15, %v11237_v42, %v11236_v36  ;;  %v734_v24 = vadd.f32 %v726_v16, %v687_v51  ;;  %v11241_v16 = vld [vmem:[#allocation53_spill] sm:$0xff] }
 0x40c   : > { %v732_v42 = vmul.f32 %v724_v3, %v11240_v62  ;;  %v646_v43 = vadd.f32 %v630_v48, %v7385_v50  ;;  %v771_v51 = vperm.slane %v753_v6, 0  ;;  %v795_v36 = vsel %vm10916_vm2, %v11242_v7, %v11241_v16 }
 0x40d   : > { %v735_v9 = vadd.f32 %v727_v11, %v688_v40  ;;  %v796_v27 = vsel %vm10916_vm2, %v11241_v16, %v11243_v35  ;;  %v690_v22 = vadd.f32 %v682_v18, %v643_v13  ;;  %v11244_v40 = vld [vmem:[#allocation42_spill] sm:$0xff]  ;;  %v692_v50 = vadd.f32 %v684_v49, %v645_v54 }
 0x40e   : > { %v729_v45 = vmul.f32 %v725_v28, %v11244_v40  ;;  %v776_v11 = vmul.f32 %v772_v17, %v11246_v63  ;;  %v693_v48 = vadd.f32 %v685_v55, %v646_v43  ;;  %v778_v6 = vmul.f32 %v772_v17, %v11247_v26 }
 0x40f   : > { %v799_v7 = vsel %vm389_vm8, %v795_v36, 0.0  ;;  %v800_v18 = vsel %vm390_vm9, %v796_v27, 0.0  ;;  %v694_v13 = vadd.f32 %v686_v2, %v647_v57  ;;  %v777_v49 = vmul.f32 %v771_v51, %v11247_v26  ;;  %v11249_v2 = vld [vmem:[#allocation50_spill] sm:$0xff] }
 0x410   : > { %v737_v55 = vadd.f32 %v729_v45, %v690_v22  ;;  %v817_v54 = vperm.slane %v799_v7, 0  ;;  %v818_v16 = vperm.slane %v800_v18, 0  ;;  %v779_v57 = vmul.f32 %v771_v51, %v11249_v2  ;;  %v11257_v18 = vld [vmem:[#allocation85_spill] sm:$0xff] }
 0x411   : > { %1781 = vperm.xlu2 %5925, %v11235_v15   ;;  %v689_v15 = vadd.f32 %v681_v8, %v642_v37  ;;  %v728_v8 = vmul.f32 %v724_v3, %v11244_v40  ;;  %v11245_v37 = vld [vmem:[#allocation41_spill] sm:$0xff]  ;;  %v780_v27 = vmul.f32 %v772_v17, %v11249_v2  ;;  %v7524_v22 = vmul.f32 %v7337_v30, %v11250_v52  ;;  %v11278_v2 = vld [vmem:[#allocation72_spill] sm:$0xff] }
 0x412   : > { %1777 = vperm.xlu1 %5924, %v11238_v46   ;;  %1867 = vrot.lane.b32.xlu0 %v7337_v30, %s6302_s9  ;;  %v733_v46 = vmul.f32 %v725_v28, %v11240_v62  ;;  %v731_v41 = vmul.f32 %v725_v28, %v11245_v37  ;;  %v730_v4 = vmul.f32 %v724_v3, %v11245_v37  ;;  %v11248_v3 = vld [vmem:[#allocation47_spill] sm:$0xff]  ;;  %vm10977_vm2 = vcmask 130048  }
 0x413   : > { %v775_v28 = vmul.f32 %v771_v51, %v11246_v63  ;;  %v773_v43 = vmul.f32 %v771_v51, %v11248_v3  ;;  %v774_v19 = vmul.f32 %v772_v17, %v11248_v3  ;;  %v736_v36 = vadd.f32 %v728_v8, %v689_v15  ;;  %v11251_v8 = vld [vmem:[#allocation52_spill] sm:$0xff] }
 0x414   : > { %v739_v44 = vadd.f32 %v731_v41, %v692_v50  ;;  %v738_v35 = vadd.f32 %v730_v4, %v691_v53  ;;  %v784_v26 = vadd.f32 %v776_v11, %v737_v55  ;;  %v741_v62 = vadd.f32 %v733_v46, %v694_v13  ;;  %v11252_v46 = vld [vmem:[#allocation51_spill] sm:$0xff]  ;;  %v11253_v53 = vld [vmem:[#allocation56_spill] sm:$0xff]  ;;  %v11258_v13 = vld [vmem:[#allocation65_spill] sm:$0xff] }
 0x415   : > { %v783_v37 = vadd.f32 %v775_v28, %v736_v36  ;;  %v781_v40 = vadd.f32 %v773_v43, %v734_v24  ;;  %v782_v14 = vadd.f32 %v774_v19, %v735_v9  ;;  %v7528_v15 = vmul.f32 %v7341_v12, %v11250_v52  ;;  %v11254_v11 = vld [vmem:[#allocation183_spill] sm:$0xff]  ;;  %v11259_v55 = vld [vmem:[#allocation73_spill] sm:$0xff] }
 0x416   : > { %v786_v63 = vadd.f32 %v778_v6, %v739_v44  ;;  %v819_v51 = vmul.f32 %v817_v54, %v11251_v8  ;;  %v820_v17 = vmul.f32 %v818_v16, %v11251_v8  ;;  %v823_v24 = vmul.f32 %v817_v54, %v11252_v46  ;;  %v11256_v6 = vld [vmem:[#allocation57_spill] sm:$0xff]  ;;  %v11277_v8 = vld [vmem:[#allocation67_spill] sm:$0xff] }
 0x417   : > { %v824_v9 = vmul.f32 %v818_v16, %v11252_v46  ;;  %v788_v41 = vadd.f32 %v780_v27, %v741_v62  ;;  %v821_v50 = vmul.f32 %v817_v54, %v11253_v53  ;;  %v822_v4 = vmul.f32 %v818_v16, %v11253_v53  ;;  %v11276_v46 = vld [vmem:[#allocation64_spill] sm:$0xff] }
 0x418   : > { %v825_v7 = vmul.f32 %v817_v54, %v11256_v6  ;;  %v826_v62 = vmul.f32 %v818_v16, %v11256_v6  ;;  %v932_v28 = vsel %vm10917_vm3, %v11258_v13, %v11257_v18  ;;  %v827_v43 = vadd.f32 %v819_v51, %v781_v40  ;;  %v11269_v18 = vld [vmem:[#allocation62_spill] sm:$0xff] }
 0x419   : > { %1835 = vrot.lane.b32.xlu2 %v7341_v12, %s6301_s2  ;;  %v828_v19 = vadd.f32 %v820_v17, %v782_v14  ;;  %v931_v44 = vsel %vm10917_vm3, %v11259_v55, %v11258_v13  ;;  %v832_v16 = vadd.f32 %v824_v9, %v786_v63  ;;  %v829_v27 = vadd.f32 %v821_v50, %v783_v37  ;;  %v11265_v50 = vld [vmem:[#allocation61_spill] sm:$0xff]  ;;  %v11270_v13 = vld [vmem:[#allocation68_spill] sm:$0xff]  ;;  %v11271_v55 = vld [vmem:[#allocation79_spill] sm:$0xff] }
 0x41a   : > { %1785 = vperm.xlu1 %5924, %v7368_v21   ;;  %1924 = vrot.lane.b32.xlu0 %v7409_v59, %s6308_s20  ;;  %v740_v21 = vadd.f32 %v732_v42, %v693_v48  ;;  %v785_v59 = vadd.f32 %v777_v49, %v738_v35  ;;  %v7534_v42 = vmul.f32 %v7343_v0, %v11250_v52  ;;  %v11255_v52 = vld [vmem:[#allocation54_spill] sm:$0xff]  ;;  %v11260_v35 = vld [vmem:[#allocation59_spill] sm:$0xff]  ;;  %v936_v14 = vsel %vm392_vm12, %v932_v28, 0.0 }
 0x41b   : > { %v7548_v48 = vmul.f32 %v7337_v30, %v11255_v52  ;;  %v7557_v49 = vmul.f32 %v7341_v12, %v11255_v52  ;;  %v7564_v36 = vmul.f32 %v7343_v0, %v11255_v52  ;;  %v7574_v40 = vmul.f32 %v7341_v12, %v11260_v35 }
 0x41c   : > { %v787_v45 = vadd.f32 %v779_v57, %v740_v21  ;;  %v831_v54 = vadd.f32 %v823_v24, %v785_v59  ;;  %v7568_v57 = vmul.f32 %v7337_v30, %v11260_v35  ;;  %v830_v21 = vadd.f32 %v822_v4, %v784_v26  ;;  %v11262_v59 = vld [vmem:[#allocation60_spill] sm:$0xff]  ;;  %v11263_v24 = vld [vmem:[#allocation63_spill] sm:$0xff]  ;;  %v11266_v4 = vld [vmem:[#allocation66_spill] sm:$0xff] }
 0x41d   : > { %11261 = vst [vmem:[#allocation40_spill] sm:$0xff] %v7574_v40  ;;  %v834_v17 = vadd.f32 %v826_v62, %v788_v41  ;;  %vm10928_vm3 = vcmask 113664   ;;  %v900_v37 = vsel %vm10977_vm2, %v11263_v24, %v11262_v59  ;;  %v11264_v26 = vld [vmem:[#allocation71_spill] sm:$0xff]  ;;  %v902_v52 = vsel %vm10977_vm2, %v11266_v4, %v11265_v50  ;;  %v11273_v4 = vld [vmem:[#allocation69_spill] sm:$0xff]  ;;  %v11333_v40 = vld [vmem:[#allocation124_spill] sm:$0xff] }
 0x41e   : > { %v833_v51 = vadd.f32 %v825_v7, %v787_v45  ;;  %v901_v9 = vsel %vm10977_vm2, %v11262_v59, %v11264_v26  ;;  %v11267_v45 = vld [vmem:[#allocation58_spill] sm:$0xff]  ;;  %v11268_v7 = vld [vmem:[#allocation76_spill] sm:$0xff]  ;;  %v904_v28 = vsel %vm10977_vm2, %v11270_v13, %v11269_v18  ;;  %v954_v59 = vperm.slane %v936_v14, 0  ;;  %v11272_v26 = vld [vmem:[#allocation81_spill] sm:$0xff] }
 0x41f   : > { %v7591_v41 = vmul.f32 %v7337_v30, %v11267_v45  ;;  %v903_v62 = vsel %vm10977_vm2, %v11265_v50, %v11268_v7  ;;  %v978_v6 = vsel %vm10928_vm3, %v11273_v4, %v11272_v26  ;;  %v7613_v50 = vmul.f32 %v7341_v12, %v11267_v45  ;;  %v11275_v4 = vld [vmem:[#allocation82_spill] sm:$0xff]  ;;  %v11325_v35 = vld [vmem:[#allocation119_spill] sm:$0xff] }
 0x420   : > { %v916_v14 = vadd.f32 %v900_v37, %v827_v43  ;;  %v917_v7 = vadd.f32 %v901_v9, %v828_v19  ;;  %v920_v13 = vadd.f32 %v904_v28, %v831_v54  ;;  %v907_v53 = vsel %vm10977_vm2, %v11276_v46, %v11275_v4  ;;  %v11279_v19 = vld [vmem:[#allocation96_spill] sm:$0xff]  ;;  %v11281_v54 = vld [vmem:[#allocation70_spill] sm:$0xff]  ;;  %v11283_v28 = vld [vmem:[#allocation75_spill] sm:$0xff] }
 0x421   : > { %1865 = vrot.lane.b32.xlu2 %v7341_v12, %s6302_s9  ;;  %v979_v3 = vsel %vm10928_vm3, %v11272_v26, %v11278_v2  ;;  %v982_v43 = vsel %vm393_vm14, %v978_v6, 0.0  ;;  %v11282_v9 = vld [vmem:[#allocation88_spill] sm:$0xff]  ;;  %v11284_v6 = vld [vmem:[#allocation78_spill] sm:$0xff]  ;;  %vm10943_vm3 = vcmask 7168  }
 0x422   : > { %1839 = vrot.lane.b32.xlu1 %v7343_v0, %s6301_s2  ;;  %1930 = vrot.lane.b32.xlu0 %v11254_v11, %s6308_s20  ;;  %v935_v11 = vsel %vm391_vm13, %v931_v44, 0.0  ;;  %v905_v44 = vsel %vm10977_vm2, %v11269_v18, %v11271_v55  ;;  %v918_v18 = vadd.f32 %v902_v52, %v829_v27  ;;  %v11280_v27 = vld [vmem:[#allocation77_spill] sm:$0xff]  ;;  %v983_v4 = vsel %vm394_vm0, %v979_v3, 0.0  ;;  %s11394_s2 = smov 127  }
 0x423   : > { %v953_v24 = vperm.slane %v935_v11, 0  ;;  %v919_v11 = vadd.f32 %v903_v62, %v830_v21  ;;  %v921_v55 = vadd.f32 %v905_v44, %v832_v16  ;;  %v1025_v37 = vsel %vm10952_vm1, %v11280_v27, %v11279_v19 }
 0x424   : > { %v7578_v63 = vpop.permute.xlu2 %1665  ;;  %v906_v16 = vsel %vm10977_vm2, %v11281_v54, %v11276_v46  ;;  %v923_v62 = vadd.f32 %v907_v53, %v834_v17  ;;  %v956_v44 = vmul.f32 %v954_v59, %v11283_v28  ;;  %v1000_v27 = vperm.slane %v982_v43, 0  ;;  %v11285_v54 = vld [vmem:[#allocation90_spill] sm:$0xff] }
 0x425   : > { %v957_v21 = vmul.f32 %v953_v24, %v11277_v8  ;;  %v959_v52 = vmul.f32 %v953_v24, %v11282_v9  ;;  %v955_v2 = vmul.f32 %v953_v24, %v11283_v28  ;;  %v961_v26 = vmul.f32 %v953_v24, %v11284_v6 }
 0x426   : > { %v1029_v46 = vsel %vm387_vm6, %v1025_v37, 0.0  ;;  %v922_v56 = vadd.f32 %v906_v16, %v833_v51  ;;  %v962_v53 = vmul.f32 %v954_v59, %v11284_v6  ;;  %v1001_v51 = vperm.slane %v983_v4, 0  ;;  %v11293_v4 = vld [vmem:[#allocation74_spill] sm:$0xff] }
 0x427   : > { %v967_v28 = vadd.f32 %v959_v52, %v920_v13  ;;  %v965_v43 = vadd.f32 %v957_v21, %v918_v18  ;;  %v1047_v37 = vperm.slane %v1029_v46, 0  ;;  %v11288_v13 = vld [vmem:[#allocation102_spill] sm:$0xff]  ;;  %vm1488_vm2 = vcmask 900096  }
 0x428   : > { %v969_v16 = vadd.f32 %v961_v26, %v922_v56  ;;  %v970_v21 = vadd.f32 %v962_v53, %v923_v62  ;;  %v1007_v26 = vmul.f32 %v1001_v51, %v11293_v4  ;;  %v11294_v62 = vld [vmem:[#allocation80_spill] sm:$0xff] }
 0x429   : > { %1922 = vrot.lane.b32.xlu2 %v7413_v29, %s6308_s20  ;;  %v7617_v29 = vmul.f32 %v7343_v0, %v11267_v45  ;;  %v960_v45 = vmul.f32 %v954_v59, %v11282_v9  ;;  %v11286_v9 = vld [vmem:[#allocation184_spill] sm:$0xff]  ;;  %v1049_v53 = vmul.f32 %v1047_v37, %v11294_v62 }
 0x42a   : > { %1869 = vrot.lane.b32.xlu1 %v7343_v0, %s6302_s9  ;;  %1936 = vrot.lane.b32.xlu0 %v7421_v58, %s6308_s20  ;;  %v958_v58 = vmul.f32 %v954_v59, %v11277_v8  ;;  %v1026_v8 = vsel %vm10952_vm1, %v11279_v19, %v11285_v54  ;;  %v963_v19 = vadd.f32 %v955_v2, %v916_v14  ;;  %v11292_v14 = vld [vmem:[#allocation94_spill] sm:$0xff]  ;;  %vm10958_vm1 = vcmask 1031168   ;;  %s11395_s9 = smov 126  }
 0x42b   : > { %11274 = vst [vmem:[#allocation33_spill] sm:$0xff] %v7617_v29  ;;  %v968_v3 = vadd.f32 %v960_v45, %v921_v55  ;;  %v1030_v59 = vsel %vm388_vm7, %v1026_v8, 0.0  ;;  %v11289_v55 = vld [vmem:[#allocation86_spill] sm:$0xff]  ;;  %v11291_v45 = vld [vmem:[#allocation87_spill] sm:$0xff]  ;;  %v1006_v8 = vmul.f32 %v1000_v27, %v11293_v4 }
 0x42c   : > { %v966_v17 = vadd.f32 %v958_v58, %v919_v11  ;;  %v7650_v24 = vpop.permute.xlu2 %1671  ;;  %v1112_v11 = vld [vmem:[#allocation2 + $0x1] sm:$0x3]  ;;  %v964_v58 = vadd.f32 %v956_v44, %v917_v7  ;;  %v1073_v18 = vsel %vm10943_vm3, %v11289_v55, %v11288_v13  ;;  %v1072_v2 = vsel %vm10943_vm3, %v11292_v14, %v11289_v55 }
 0x42d   : > { %v1048_v46 = vperm.slane %v1030_v59, 0  ;;  %v7668_v7 = vperm.slane %v1112_v11, 0  ;;  %v7670_v56 = vperm.slane %v1112_v11, 1  ;;  %v1077_v13 = vsel %vm390_vm9, %v1073_v18, 0.0  ;;  %v11296_v11 = vld [vmem:[#allocation99_spill] sm:$0xff] }
 0x42e   : > { %v1055_v55 = vmul.f32 %v1047_v37, %v11295_v61  ;;  %v1051_v23 = vmul.f32 %v1047_v37, %v11296_v11  ;;  %v1014_v33 = vadd.f32 %v1006_v8, %v967_v28  ;;  %vm10957_vm3 = vcmask 1039360  }
 0x42f   : > { %v1050_v4 = vmul.f32 %v1048_v46, %v11294_v62  ;;  %v1052_v18 = vmul.f32 %v1048_v46, %v11296_v11  ;;  %v11298_v62 = vld [vmem:[#allocation89_spill] sm:$0xff] }
 0x431   : > { %1928 = vrot.lane.b32.xlu2 %v11286_v9, %s6308_s20  ;;  %v11287_v9 = vld [vmem:[#allocation91_spill] sm:$0xff] }
 0x432   : > { %1926 = vrot.lane.b32.xlu1 %v7425_v60, %s6308_s20  ;;  %1942 = vrot.lane.b32.xlu0 %v7435_v10, %s6308_s20  ;;  %v1002_v54 = vmul.f32 %v1000_v27, %v11287_v9  ;;  %v11290_v60 = vld [vmem:[#allocation84_spill] sm:$0xff]  ;;  %v1008_v10 = vmul.f32 %v1000_v27, %v11291_v45  ;;  %v1003_v44 = vmul.f32 %v1001_v51, %v11287_v9 }
 0x433   : > { %v1004_v52 = vmul.f32 %v1000_v27, %v11290_v60  ;;  %v1005_v6 = vmul.f32 %v1001_v51, %v11290_v60  ;;  %v1076_v27 = vsel %vm389_vm8, %v1072_v2, 0.0  ;;  %v1009_v9 = vmul.f32 %v1001_v51, %v11291_v45  ;;  %v11297_v51 = vld [vmem:[#allocation92_spill] sm:$0xff] }
 0x434   : > { %v1010_v59 = vadd.f32 %v1002_v54, %v963_v19  ;;  %v1016_v32 = vadd.f32 %v1008_v10, %v969_v16  ;;  %v1095_v60 = vperm.slane %v1077_v13, 0  ;;  %v1015_v19 = vadd.f32 %v1007_v26, %v968_v3 }
 0x435   : > { %v1012_v14 = vadd.f32 %v1004_v52, %v965_v43  ;;  %v1056_v43 = vmul.f32 %v1048_v46, %v11295_v61  ;;  %v1054_v16 = vmul.f32 %v1048_v46, %v11297_v51  ;;  %v1094_v54 = vperm.slane %v1076_v27, 0 }
 0x436   : > { %v1011_v10 = vadd.f32 %v1003_v44, %v964_v58  ;;  %v1057_v2 = vadd.f32 %v1049_v53, %v1010_v59  ;;  %v1017_v28 = vadd.f32 %v1009_v9, %v970_v21  ;;  %v1053_v8 = vmul.f32 %v1047_v37, %v11297_v51  ;;  %v11302_v58 = vld [vmem:[#allocation97_spill] sm:$0xff]  ;;  %v11303_v37 = vld [vmem:[#allocation110_spill] sm:$0xff] }
 0x437   : > { %v1059_v13 = vadd.f32 %v1051_v23, %v1012_v14  ;;  %v1099_v45 = vmul.f32 %v1095_v60, %v11298_v62  ;;  %v1101_v61 = vmul.f32 %v1095_v60, %v11299_v31  ;;  %v1062_v26 = vadd.f32 %v1054_v16, %v1015_v19  ;;  %v11304_v44 = vld [vmem:[#allocation93_spill] sm:$0xff] }
 0x438   : > { %v1058_v3 = vadd.f32 %v1050_v4, %v1011_v10  ;;  %v1100_v46 = vmul.f32 %v1094_v54, %v11299_v31  ;;  %v1064_v27 = vadd.f32 %v1056_v43, %v1017_v28  ;;  %v1096_v23 = vmul.f32 %v1094_v54, %v11302_v58  ;;  %v11307_v28 = vld [vmem:[#allocation114_spill] sm:$0xff] }
 0x439   : > { %1934 = vrot.lane.b32.xlu2 %v7429_v1, %s6308_s20  ;;  %v1013_v1 = vadd.f32 %v1005_v6, %v966_v17  ;;  %v11301_v6 = vld [vmem:[#allocation107_spill] sm:$0xff]  ;;  %v1097_v9 = vmul.f32 %v1095_v60, %v11302_v58  ;;  %v1061_v21 = vadd.f32 %v1053_v8, %v1014_v33  ;;  %v1134_v4 = vmul.f32 %v7668_v7, %v11304_v44  ;;  %v11308_v8 = vld [vmem:[#allocation106_spill] sm:$0xff]  ;;  %v11310_v58 = vld [vmem:[#allocation108_spill] sm:$0xff] }
 0x43a   : > { %1932 = vrot.lane.b32.xlu1 %v7358_v47, %s6308_s20  ;;  %1972 = vrot.lane.b32.xlu0 %v7337_v30, %s6304_s15  ;;  %v1063_v47 = vadd.f32 %v1055_v55, %v1016_v32  ;;  %v1162_v17 = vsel %vm10957_vm3, %v11301_v6, %v11300_v20  ;;  %v1163_v32 = vsel %vm10957_vm3, %v11300_v20, %v11303_v37  ;;  %v11305_v55 = vld [vmem:[#allocation100_spill] sm:$0xff]  ;;  %vm10976_vm3 = vcmask 932864  }
 0x43b   : > { %v7693_v52 = vpop.permute.xlu2 %1677  ;;  %v1060_v11 = vadd.f32 %v1052_v18, %v1013_v1  ;;  %v1135_v53 = vmul.f32 %v7670_v56, %v11304_v44  ;;  %v1102_v59 = vmul.f32 %v1094_v54, %v11305_v55  ;;  %v7712_v14 = vpop.permute.xlu0 %1667  ;;  %v11306_v18 = vld [vmem:[#allocation95_spill] sm:$0xff]  ;;  %v1166_v19 = vsel %vm391_vm13, %v1162_v17, 0.0 }
 0x43c   : > { %v1138_v43 = vmul.f32 %v7668_v7, %v11306_v18  ;;  %v1139_v20 = vmul.f32 %v7670_v56, %v11306_v18  ;;  %v7722_v16 = vpop.permute.xlu1 %1663  ;;  %v1108_v1 = vadd.f32 %v1100_v46, %v1061_v21  ;;  %v1167_v10 = vsel %vm392_vm12, %v1163_v32, 0.0 }
 0x43d   : > { %v1107_v33 = vadd.f32 %v1099_v45, %v1060_v11  ;;  %v1210_v45 = vsel %vm10958_vm1, %v11308_v8, %v11307_v28  ;;  %v1109_v6 = vadd.f32 %v1101_v61, %v1062_v26  ;;  %v1104_v17 = vadd.f32 %v1096_v23, %v1057_v2 }
 0x43e   : > { %v1105_v37 = vadd.f32 %v1097_v9, %v1058_v3  ;;  %v1110_v31 = vadd.f32 %v1102_v59, %v1063_v47  ;;  %v1140_v51 = vmul.f32 %v7668_v7, %v11310_v58  ;;  %v1184_v21 = vperm.slane %v1166_v19, 0  ;;  %v11313_v19 = vld [vmem:[#allocation111_spill] sm:$0xff] }
 0x43f   : > { %v1147_v32 = vadd.f32 %v1139_v20, %v1109_v6  ;;  %v1185_v28 = vperm.slane %v1167_v10, 0  ;;  %v1214_v61 = vsel %vm394_vm0, %v1210_v45, 0.0  ;;  %v1146_v2 = vadd.f32 %v1138_v43, %v1108_v1  ;;  %v11318_v1 = vld [vmem:[#allocation103_spill] sm:$0xff] }
 0x440   : > { %v1142_v26 = vadd.f32 %v1134_v4, %v1104_v17  ;;  %v1143_v23 = vadd.f32 %v1135_v53, %v1105_v37  ;;  %v1148_v59 = vadd.f32 %v1140_v51, %v1110_v31  ;;  %v1188_v10 = vmul.f32 %v1184_v21, %v11313_v19  ;;  %v11315_v4 = vld [vmem:[#allocation112_spill] sm:$0xff]  ;;  %v11316_v53 = vld [vmem:[#allocation115_spill] sm:$0xff] }
 0x441   : > { %1940 = vrot.lane.b32.xlu2 %v7439_v34, %s6308_s20  ;;  %v1098_v34 = vmul.f32 %v1094_v54, %v11298_v62  ;;  %v11311_v54 = vld [vmem:[#allocation104_spill] sm:$0xff]  ;;  %v1141_v62 = vmul.f32 %v7670_v56, %v11310_v58  ;;  %v1232_v6 = vperm.slane %v1214_v61, 0  ;;  %v11319_v61 = vld [vmem:[#allocation113_spill] sm:$0xff] }
 0x442   : > { %1938 = vrot.lane.b32.xlu1 %v7443_v25, %s6308_s20  ;;  %2002 = vrot.lane.b32.xlu0 %v7337_v30, %s6306_s17  ;;  %v1103_v25 = vmul.f32 %v1095_v60, %v11305_v55  ;;  %v1136_v46 = vmul.f32 %v7668_v7, %v11311_v54  ;;  %v11312_v60 = vld [vmem:[#allocation116_spill] sm:$0xff]  ;;  %v1137_v7 = vmul.f32 %v7670_v56, %v11311_v54  ;;  %v11317_v56 = vld [vmem:[#allocation101_spill] sm:$0xff] }
 0x443   : > { %v7734_v11 = vpop.permute.xlu2 %1683  ;;  %v1106_v3 = vadd.f32 %v1098_v34, %v1059_v13  ;;  %v1209_v47 = vsel %vm10958_vm1, %v11312_v60, %v11308_v8  ;;  %v1189_v13 = vmul.f32 %v1185_v28, %v11313_v19  ;;  %v11314_v34 = vld [vmem:[#allocation123_spill] sm:$0xff]  ;;  %v1186_v51 = vmul.f32 %v1184_v21, %v11317_v56  ;;  %v7769_v17 = vpop.permute.xlu0 %1673  ;;  %v11320_v60 = vld [vmem:[#allocation118_spill] sm:$0xff]  ;;  %v11321_v55 = vld [vmem:[#allocation109_spill] sm:$0xff] }
 0x444   : > { %11309 = vst [vmem:[#allocation45_spill] sm:$0xff] %v7734_v11  ;;  %v1111_v9 = vadd.f32 %v1103_v25, %v1064_v27  ;;  %v1213_v43 = vsel %vm393_vm14, %v1209_v47, 0.0  ;;  %v1256_v27 = vsel %vm10976_vm3, %v11315_v4, %v11314_v34  ;;  %v1257_v31 = vsel %vm10976_vm3, %v11314_v34, %v11316_v53  ;;  %v7775_v47 = vpop.permute.xlu1 %1669  ;;  %v11324_v11 = vld [vmem:[#allocation132_spill] sm:$0xff] }
 0x445   : > { %v1144_v20 = vadd.f32 %v1136_v46, %v1106_v3  ;;  %v1192_v8 = vmul.f32 %v1184_v21, %v11318_v1  ;;  %v1187_v45 = vmul.f32 %v1185_v28, %v11317_v56  ;;  %vm10975_vm1 = vcmask 924672  }
 0x446   : > { %v1149_v25 = vadd.f32 %v1141_v62, %v1111_v9  ;;  %v1145_v46 = vadd.f32 %v1137_v7, %v1107_v33  ;;  %v1191_v3 = vmul.f32 %v1185_v28, %v11319_v61  ;;  %v1231_v4 = vperm.slane %v1213_v43, 0  ;;  %v11322_v62 = vld [vmem:[#allocation125_spill] sm:$0xff]  ;;  %v11323_v33 = vld [vmem:[#allocation120_spill] sm:$0xff] }
 0x447   : > { %v1196_v34 = vadd.f32 %v1188_v10, %v1144_v20  ;;  %v1260_v53 = vsel %vm387_vm6, %v1256_v27, 0.0  ;;  %v1261_v19 = vsel %vm388_vm7, %v1257_v31, 0.0  ;;  %v1193_v56 = vmul.f32 %v1185_v28, %v11318_v1 }
 0x448   : > { %v1236_v54 = vmul.f32 %v1232_v6, %v11321_v55  ;;  %v1303_v9 = vsel %vm10975_vm1, %v11323_v33, %v11322_v62  ;;  %v1197_v7 = vadd.f32 %v1189_v13, %v1145_v46  ;;  %v1190_v18 = vmul.f32 %v1184_v21, %v11319_v61  ;;  %v11330_v33 = vld [vmem:[#allocation126_spill] sm:$0xff] }
 0x449   : > { %1970 = vrot.lane.b32.xlu2 %v7341_v12, %s6304_s15  ;;  %v1194_v58 = vadd.f32 %v1186_v51, %v1142_v26  ;;  %v1195_v20 = vadd.f32 %v1187_v45, %v1143_v23  ;;  %v1200_v10 = vadd.f32 %v1192_v8, %v1148_v59  ;;  %v1199_v43 = vadd.f32 %v1191_v3, %v1147_v32  ;;  %v11326_v23 = vld [vmem:[#allocation121_spill] sm:$0xff] }
 0x44a   : > { %1944 = vrot.lane.b32.xlu1 %v7450_v5, %s6308_s20  ;;  %2032 = vrot.lane.b32.xlu0 %v7337_v30, %s6309_s18  ;;  %v1238_v5 = vmul.f32 %v1232_v6, %v11320_v60  ;;  %v1278_v44 = vperm.slane %v1260_v53, 0  ;;  %v1279_v27 = vperm.slane %v1261_v19, 0  ;;  %v1304_v31 = vsel %vm10975_vm1, %v11322_v62, %v11324_v11  ;;  %v11329_v62 = vld [vmem:[#allocation117_spill] sm:$0xff]  ;;  %s11399_s20 = smov 112  }
 0x44b   : > { %v7771_v37 = vpop.permute.xlu2 %1714  ;;  %v1235_v28 = vmul.f32 %v1231_v4, %v11321_v55  ;;  %v1237_v1 = vmul.f32 %v1231_v4, %v11320_v60  ;;  %v1233_v29 = vmul.f32 %v1231_v4, %v11325_v35  ;;  %v1307_v13 = vsel %vm389_vm8, %v1303_v9, 0.0  ;;  %v11332_v55 = vld [vmem:[#allocation128_spill] sm:$0xff] }
 0x44c   : > { %v1234_v21 = vmul.f32 %v1232_v6, %v11325_v35  ;;  %v1244_v32 = vadd.f32 %v1236_v54, %v1197_v7  ;;  %v1201_v26 = vadd.f32 %v1193_v56, %v1149_v25  ;;  %v1198_v11 = vadd.f32 %v1190_v18, %v1146_v2  ;;  %v11328_v56 = vld [vmem:[#allocation122_spill] sm:$0xff]  ;;  %v11331_v7 = vld [vmem:[#allocation129_spill] sm:$0xff] }
 0x44d   : > { %v1239_v59 = vmul.f32 %v1231_v4, %v11326_v23  ;;  %v1240_v19 = vmul.f32 %v1232_v6, %v11326_v23  ;;  %v1308_v51 = vsel %vm390_vm9, %v1304_v31, 0.0  ;;  %v1325_v54 = vperm.slane %v1307_v13, 0 }
 0x44e   : > { %v1280_v25 = vmul.f32 %v1278_v44, %v11328_v56  ;;  %v1281_v46 = vmul.f32 %v1279_v27, %v11328_v56  ;;  %v1246_v3 = vadd.f32 %v1238_v5, %v1199_v43  ;;  %v1241_v18 = vadd.f32 %v1233_v29, %v1194_v58 }
 0x44f   : > { %v1243_v2 = vadd.f32 %v1235_v28, %v1196_v34  ;;  %v1245_v4 = vadd.f32 %v1237_v1, %v1198_v11  ;;  %v1284_v6 = vmul.f32 %v1278_v44, %v11329_v62  ;;  %v1282_v9 = vmul.f32 %v1278_v44, %v11330_v33  ;;  %v11334_v28 = vld [vmem:[#allocation127_spill] sm:$0xff] }
 0x450   : > { %v1286_v31 = vmul.f32 %v1278_v44, %v11331_v7  ;;  %v1326_v23 = vperm.slane %v1308_v51, 0  ;;  %v1242_v60 = vadd.f32 %v1234_v21, %v1195_v20  ;;  %v1329_v13 = vmul.f32 %v1325_v54, %v11332_v55  ;;  %v11335_v11 = vld [vmem:[#allocation151_spill] sm:$0xff] }
 0x451   : > { %2000 = vrot.lane.b32.xlu2 %v7341_v12, %s6306_s17  ;;  %v1285_v35 = vmul.f32 %v1279_v27, %v11329_v62  ;;  %v1247_v61 = vadd.f32 %v1239_v59, %v1200_v10  ;;  %v1248_v56 = vadd.f32 %v1240_v19, %v1201_v26  ;;  %v1288_v5 = vadd.f32 %v1280_v25, %v1241_v18  ;;  %v11336_v59 = vld [vmem:[#allocation152_spill] sm:$0xff] }
 0x452   : > { %1974 = vrot.lane.b32.xlu1 %v7343_v0, %s6304_s15  ;;  %2062 = vrot.lane.b32.xlu0 %v7337_v30, %s6313_s21  ;;  %v1289_v43 = vadd.f32 %v1281_v46, %v1242_v60  ;;  %v1327_v29 = vmul.f32 %v1325_v54, %v11333_v40  ;;  %vm10983_vm1 = vcmask 908288   ;;  %v1283_v58 = vmul.f32 %v1279_v27, %v11330_v33  ;;  %v11367_v33 = vld [vmem:[#allocation168_spill] sm:$0xff]  ;;  %s11396_s15 = smov 114  }
 0x453   : > { %v7806_v8 = vpop.permute.xlu2 %1730  ;;  %v7808_v45 = vpop.permute.xlu0 %1679  ;;  %v1287_v1 = vmul.f32 %v1279_v27, %v11331_v7  ;;  %v1292_v34 = vadd.f32 %v1284_v6, %v1245_v4  ;;  %v1333_v44 = vmul.f32 %v1325_v54, %v11334_v28  ;;  %v1328_v20 = vmul.f32 %v1326_v23, %v11333_v40  ;;  %v11340_v4 = vld [vmem:[#allocation144_spill] sm:$0xff]  ;;  %v11343_v7 = vld [vmem:[#allocation158_spill] sm:$0xff] }
 0x454   : > { %11327 = vst [vmem:[#allocation38_spill] sm:$0xff] %v7806_v8  ;;  %v7812_v53 = vpop.permute.xlu1 %1675  ;;  %v1290_v21 = vadd.f32 %v1282_v9, %v1243_v2  ;;  %v1294_v10 = vadd.f32 %v1286_v31, %v1247_v61  ;;  %v1330_v60 = vmul.f32 %v1326_v23, %v11332_v55  ;;  %v1293_v26 = vadd.f32 %v1285_v35, %v1246_v3  ;;  %v11338_v61 = vld [vmem:[#allocation133_spill] sm:$0xff]  ;;  %v11341_v55 = vld [vmem:[#allocation139_spill] sm:$0xff] }
 0x455   : > { %v1334_v27 = vmul.f32 %v1326_v23, %v11334_v28  ;;  %v1442_v19 = vsel %vm10983_vm1, %v11336_v59, %v11335_v11  ;;  %vm10985_vm3 = vcmask 916480   ;;  %v1331_v46 = vmul.f32 %v1325_v54, %v11338_v61  ;;  %v11342_v54 = vld [vmem:[#allocation136_spill] sm:$0xff] }
 0x456   : > { %v1332_v18 = vmul.f32 %v1326_v23, %v11338_v61  ;;  %v1335_v2 = vadd.f32 %v1327_v29, %v1288_v5  ;;  %v1291_v35 = vadd.f32 %v1283_v58, %v1244_v32  ;;  %v1295_v3 = vadd.f32 %v1287_v1, %v1248_v56  ;;  %v11344_v5 = vld [vmem:[#allocation150_spill] sm:$0xff]  ;;  %v11345_v56 = vld [vmem:[#allocation137_spill] sm:$0xff] }
 0x457   : > { %v1443_v6 = vsel %vm10983_vm1, %v11335_v11, %v11340_v4  ;;  %v1336_v9 = vadd.f32 %v1328_v20, %v1289_v43  ;;  %v1337_v31 = vadd.f32 %v1329_v13, %v1290_v21  ;;  %v1341_v59 = vadd.f32 %v1333_v44, %v1294_v10  ;;  %v11346_v1 = vld [vmem:[#allocation142_spill] sm:$0xff]  ;;  %v11347_v44 = vld [vmem:[#allocation141_spill] sm:$0xff] }
 0x458   : > { %v1446_v28 = vsel %vm391_vm13, %v1442_v19, 0.0  ;;  %v1411_v23 = vsel %vm10985_vm3, %v11342_v54, %v11341_v55  ;;  %v1338_v61 = vadd.f32 %v1330_v60, %v1291_v35  ;;  %v1342_v40 = vadd.f32 %v1334_v27, %v1295_v3  ;;  %v11348_v21 = vld [vmem:[#allocation138_spill] sm:$0xff]  ;;  %v11349_v60 = vld [vmem:[#allocation145_spill] sm:$0xff]  ;;  %v11354_v3 = vld [vmem:[#allocation143_spill] sm:$0xff] }
 0x459   : > { %2030 = vrot.lane.b32.xlu2 %v7341_v12, %s6309_s18  ;;  %v1489_v32 = vsel %vm1488_vm2, %v11344_v5, %v11343_v7  ;;  %v1412_v29 = vsel %vm10985_vm3, %v11341_v55, %v11345_v56  ;;  %v1339_v43 = vadd.f32 %v1331_v46, %v1292_v34  ;;  %v1340_v13 = vadd.f32 %v1332_v18, %v1293_v26  ;;  %v11350_v27 = vld [vmem:[#allocation146_spill] sm:$0xff]  ;;  %v11351_v34 = vld [vmem:[#allocation140_spill] sm:$0xff] }
 0x45a   : > { %2004 = vrot.lane.b32.xlu1 %v7343_v0, %s6306_s17  ;;  %2116 = vrot.lane.b32.xlu0 %v7548_v48, %s6314_s30  ;;  %v1447_v58 = vsel %vm392_vm12, %v1443_v6, 0.0  ;;  %v1413_v20 = vsel %vm10985_vm3, %v11347_v44, %v11346_v1  ;;  %v1414_v10 = vsel %vm10985_vm3, %v11346_v1, %v11348_v21  ;;  %v1415_v11 = vsel %vm10985_vm3, %v11350_v27, %v11349_v60  ;;  %v11352_v18 = vld [vmem:[#allocation148_spill] sm:$0xff]  ;;  %v11356_v27 = vld [vmem:[#allocation166_spill] sm:$0xff]  ;;  %s11397_s17 = smov 113  }
 0x45b   : > { %v7835_v51 = vpop.permute.xlu2 %1759  ;;  %v7837_v25 = vpop.permute.xlu0 %1685  ;;  %v1464_v19 = vperm.slane %v1446_v28, 0  ;;  %v1427_v55 = vadd.f32 %v1411_v23, %v1335_v2  ;;  %v1416_v26 = vsel %vm10985_vm3, %v11349_v60, %v11351_v34  ;;  %v1493_v46 = vsel %vm393_vm14, %v1489_v32, 0.0  ;;  %v11353_v28 = vld [vmem:[#allocation149_spill] sm:$0xff]  ;;  %v11355_v6 = vld [vmem:[#allocation160_spill] sm:$0xff]  ;;  %v11357_v34 = vld [vmem:[#allocation159_spill] sm:$0xff] }
 0x45c   : > { %11337 = vst [vmem:[#allocation36_spill] sm:$0xff] %v7837_v25  ;;  %v7841_v48 = vpop.permute.xlu1 %1681  ;;  %vm10995_vm1 = vcmask 801792   ;;  %v1417_v35 = vsel %vm10985_vm3, %v11353_v28, %v11352_v18  ;;  %v1418_v2 = vsel %vm10985_vm3, %v11352_v18, %v11354_v3  ;;  %v1465_v4 = vperm.slane %v1447_v58, 0  ;;  %v11358_v18 = vld [vmem:[#allocation155_spill] sm:$0xff] }
 0x45d   : > { %11339 = vst [vmem:[#allocation34_spill] sm:$0xff] %v7841_v48  ;;  %v1490_v54 = vsel %vm1488_vm2, %v11343_v7, %v11355_v6  ;;  %v1428_v32 = vadd.f32 %v1412_v29, %v1336_v9  ;;  %v1429_v56 = vadd.f32 %v1413_v20, %v1337_v31  ;;  %v1431_v1 = vadd.f32 %v1415_v11, %v1339_v43  ;;  %v11359_v6 = vld [vmem:[#allocation154_spill] sm:$0xff]  ;;  %v11360_v31 = vld [vmem:[#allocation147_spill] sm:$0xff]  ;;  %v11361_v20 = vld [vmem:[#allocation157_spill] sm:$0xff] }
 0x45e   : > { %v1432_v21 = vadd.f32 %v1416_v26, %v1340_v13  ;;  %v1511_v60 = vperm.slane %v1493_v46, 0  ;;  %v1537_v58 = vsel %vm10995_vm1, %v11357_v34, %v11356_v27  ;;  %v1466_v28 = vmul.f32 %v1464_v19, %v11358_v18  ;;  %v11363_v26 = vld [vmem:[#allocation153_spill] sm:$0xff] }
 0x45f   : > { %v1433_v3 = vadd.f32 %v1417_v35, %v1341_v59  ;;  %v1434_v7 = vadd.f32 %v1418_v2, %v1342_v40  ;;  %v1468_v62 = vmul.f32 %v1464_v19, %v11359_v6  ;;  %v1494_v9 = vsel %vm394_vm0, %v1490_v54, 0.0  ;;  %v11362_v40 = vld [vmem:[#allocation164_spill] sm:$0xff]  ;;  %v11364_v35 = vld [vmem:[#allocation163_spill] sm:$0xff] }
 0x460   : > { %vm10994_vm3 = vcmask 793600   ;;  %v1470_v29 = vmul.f32 %v1464_v19, %v11360_v31  ;;  %v1471_v43 = vmul.f32 %v1465_v4, %v11360_v31  ;;  %v1469_v13 = vmul.f32 %v1465_v4, %v11359_v6  ;;  %v11365_v6 = vld [vmem:[#allocation173_spill] sm:$0xff] }
 0x461   : > { %2060 = vrot.lane.b32.xlu2 %v7341_v12, %s6313_s21  ;;  %v1541_v59 = vsel %vm388_vm7, %v1537_v58, 0.0  ;;  %v1536_v11 = vsel %vm10995_vm1, %v11362_v40, %v11357_v34  ;;  %v1513_v46 = vmul.f32 %v1511_v60, %v11363_v26  ;;  %v1515_v2 = vmul.f32 %v1511_v60, %v11364_v35  ;;  %v11371_v12 = vld [vmem:[#allocation162_spill] sm:$0xff] }
 0x462   : > { %2034 = vrot.lane.b32.xlu1 %v7343_v0, %s6309_s18  ;;  %2122 = vrot.lane.b32.xlu0 %v7524_v22, %s6314_s30  ;;  %v1430_v22 = vadd.f32 %v1414_v10, %v1338_v61  ;;  %v1467_v61 = vmul.f32 %v1465_v4, %v11358_v18  ;;  %v1472_v10 = vmul.f32 %v1464_v19, %v11361_v20  ;;  %v1512_v54 = vperm.slane %v1494_v9, 0  ;;  %v11366_v18 = vld [vmem:[#allocation165_spill] sm:$0xff]  ;;  %s11408_s18 = smov 110  }
 0x463   : > { %v7888_v23 = vpop.permute.xlu2 %1763  ;;  %v7890_v5 = vpop.permute.xlu0 %1716  ;;  %v1474_v27 = vadd.f32 %v1466_v28, %v1427_v55  ;;  %v1476_v31 = vadd.f32 %v1468_v62, %v1429_v56  ;;  %v1583_v19 = vsel %vm10994_vm3, %v11366_v18, %v11365_v6  ;;  %v1584_v58 = vsel %vm10994_vm3, %v11365_v6, %v11367_v33 }
 0x464   : > { %v7892_v44 = vpop.permute.xlu1 %1712  ;;  %v1473_v55 = vmul.f32 %v1465_v4, %v11361_v20  ;;  %v1559_v34 = vperm.slane %v1541_v59, 0  ;;  %v1475_v62 = vadd.f32 %v1467_v61, %v1428_v32  ;;  %v1477_v28 = vadd.f32 %v1469_v13, %v1430_v22  ;;  %v11372_v61 = vld [vmem:[#allocation156_spill] sm:$0xff]  ;;  %v11374_v13 = vld [vmem:[#allocation169_spill] sm:$0xff] }
 0x465   : > { %v1480_v9 = vadd.f32 %v1472_v10, %v1433_v3  ;;  %v1478_v33 = vadd.f32 %v1470_v29, %v1431_v1  ;;  %v1479_v6 = vadd.f32 %v1471_v43, %v1432_v21  ;;  %v1518_v25 = vmul.f32 %v1512_v54, %v11371_v12  ;;  %v11373_v1 = vld [vmem:[#allocation161_spill] sm:$0xff] }
 0x466   : > { %v1588_v4 = vsel %vm390_vm9, %v1584_v58, 0.0  ;;  %v1516_v32 = vmul.f32 %v1512_v54, %v11364_v35  ;;  %v1519_v59 = vmul.f32 %v1511_v60, %v11372_v61  ;;  %v1521_v20 = vadd.f32 %v1513_v46, %v1474_v27 }
 0x467   : > { %v1523_v22 = vadd.f32 %v1515_v2, %v1476_v31  ;;  %v7941_v3 = vadd.f32 %v1473_v55, %v1434_v7  ;;  %v1563_v21 = vmul.f32 %v1559_v34, %v11373_v1  ;;  %v1517_v29 = vmul.f32 %v1511_v60, %v11371_v12  ;;  %v11375_v60 = vld [vmem:[#allocation167_spill] sm:$0xff] }
 0x468   : > { %v1514_v43 = vmul.f32 %v1512_v54, %v11363_v26  ;;  %v1565_v10 = vmul.f32 %v1559_v34, %v11374_v13  ;;  %v7949_v58 = vperm.slane %v1588_v4, 0  ;;  %v7951_v35 = vadd.f32 %v1519_v59, %v1480_v9  ;;  %v11380_v4 = vld [vmem:[#allocation171_spill] sm:$0xff] }
 0x469   : > { %2114 = vrot.lane.b32.xlu2 %v7557_v49, %s6314_s30  ;;  %v1540_v49 = vsel %vm387_vm6, %v1536_v11, 0.0  ;;  %v1524_v48 = vadd.f32 %v1516_v32, %v1477_v28  ;;  %v7954_v31 = vmul.f32 %v1512_v54, %v11372_v61  ;;  %vm11002_vm3 = vcmask 777216  }
 0x46a   : > { %2064 = vrot.lane.b32.xlu1 %v7343_v0, %s6313_s21  ;;  %2128 = vrot.lane.b32.xlu0 %v7591_v41, %s6314_s30  ;;  %v1587_v41 = vsel %vm389_vm8, %v1583_v19, 0.0  ;;  %v1558_v11 = vperm.slane %v1540_v49, 0  ;;  %v1526_v49 = vadd.f32 %v1518_v25, %v1479_v6  ;;  %v1561_v25 = vmul.f32 %v1559_v34, %v11375_v60 }
 0x46b   : > { %v7928_v56 = vpop.permute.xlu2 %1781  ;;  %v7930_v18 = vpop.permute.xlu0 %1734  ;;  %v7947_v19 = vperm.slane %v1587_v41, 0  ;;  %v1522_v54 = vadd.f32 %v1514_v43, %v1475_v62  ;;  %v1571_v27 = vadd.f32 %v1563_v21, %v1524_v48  ;;  %v1525_v55 = vadd.f32 %v1517_v29, %v1478_v33  ;;  %v11379_v62 = vld [vmem:[#allocation176_spill] sm:$0xff] }
 0x46c   : > { %11368 = vst [vmem:[#allocation180_spill] sm:$0xff] %v7928_v56  ;;  %v7932_v40 = vpop.permute.xlu1 %1726  ;;  %v1560_v7 = vmul.f32 %v1558_v11, %v11375_v60  ;;  %v1562_v46 = vmul.f32 %v1558_v11, %v11373_v1  ;;  %v1564_v2 = vmul.f32 %v1558_v11, %v11374_v13  ;;  %vm1687_vm1 = vcmask 785408   ;;  %v11381_v1 = vld [vmem:[#allocation170_spill] sm:$0xff] }
 0x46d   : > { %11369 = vst [vmem:[#allocation44_spill] sm:$0xff] %v7930_v18  ;;  %v1609_v33 = vmul.f32 %v7947_v19, %v11379_v62  ;;  %v1611_v32 = vmul.f32 %v7947_v19, %v11380_v4  ;;  %v1612_v59 = vmul.f32 %v7949_v58, %v11380_v4  ;;  %v1573_v43 = vadd.f32 %v1565_v10, %v1526_v49 }
 0x46e   : > { %11370 = vst [vmem:[#allocation39_spill] sm:$0xff] %v7932_v40  ;;  %v1568_v21 = vadd.f32 %v1560_v7, %v1521_v20  ;;  %v1572_v29 = vadd.f32 %v1564_v2, %v1525_v55  ;;  %v1566_v60 = vmul.f32 %v1558_v11, %v11381_v1  ;;  %v7996_v61 = vmul.f32 %v1559_v34, %v11381_v1 }
 0x46f   : > { %v1688_v20 = vsel %vm1687_vm1, %v7722_v16, %v7578_v63  ;;  %v1620_v7 = vadd.f32 %v1612_v59, %v1573_v43  ;;  %v11382_v43 = vld [vmem:[#allocation40_spill] sm:$0xff] }
 0x470   : > { %v1619_v49 = vadd.f32 %v1611_v32, %v1572_v29 }
 0x471   : > { %2120 = vrot.lane.b32.xlu2 %v7528_v15, %s6314_s30  ;;  %v11376_v15 = vld [vmem:[#allocation172_spill] sm:$0xff] }
 0x472   : > { %2118 = vrot.lane.b32.xlu1 %v7564_v36, %s6314_s30  ;;  %2134 = vrot.lane.b32.xlu0 %v7568_v57, %s6314_s30  ;;  %v1607_v9 = vmul.f32 %v7947_v19, %v11376_v15  ;;  %v1608_v6 = vmul.f32 %v7949_v58, %v11376_v15  ;;  %v1719_v36 = vsel %vm11002_vm3, %v7892_v44, %v7771_v37 }
 0x473   : > { %v7966_v28 = vpop.permute.xlu2 %1835  ;;  %v1720_v57 = vsel %vm11002_vm3, %v7771_v37, %v7890_v5  ;;  %v1570_v44 = vadd.f32 %v1562_v46, %v1523_v22  ;;  %v1569_v15 = vadd.f32 %v1561_v25, %v1522_v54  ;;  %v1610_v37 = vmul.f32 %v7949_v58, %v11379_v62  ;;  %v11423_v62 = vld [vmem:[#allocation175_spill] sm:$0xff] }
 0x474   : > { %v7978_v41 = vpop.permute.xlu1 %1738  ;;  %v7980_v48 = vpop.permute.xlu0 %1773  ;;  %v1723_v5 = vsel %vm391_vm13, %v1719_v36, 0.0  ;;  %v1724_v13 = vsel %vm392_vm12, %v1720_v57, 0.0  ;;  %v1615_v4 = vadd.f32 %v1607_v9, %v1568_v21  ;;  %v1689_v46 = vsel %vm1687_vm1, %v7578_v63, %v7712_v14 }
 0x475   : > { %11377 = vst [vmem:[#allocation181_spill] sm:$0xff] %v7978_v41  ;;  %v1616_v22 = vadd.f32 %v1608_v6, %v1569_v15  ;;  %v1617_v10 = vadd.f32 %v1609_v33, %v1570_v44  ;;  %v8006_v11 = vperm.slane %v1723_v5, 0  ;;  %v8008_v34 = vperm.slane %v1724_v13, 0  ;;  %v11383_v5 = vld [vmem:[#allocation177_spill] sm:$0xff] }
 0x476   : > { %11378 = vst [vmem:[#allocation37_spill] sm:$0xff] %v7980_v48  ;;  %vm1765_vm3 = vcmask 769024   ;;  %v1704_v16 = vadd.f32 %v1688_v20, %v1615_v4  ;;  %v1618_v2 = vadd.f32 %v1610_v37, %v1571_v27  ;;  %v1693_v63 = vsel %vm1687_vm1, %v7693_v52, %v7808_v45 }
 0x477   : > { %v1743_v13 = vmul.f32 %v8006_v11, %v7932_v40  ;;  %v1747_v25 = vmul.f32 %v8006_v11, %v7930_v18  ;;  %v1748_v54 = vmul.f32 %v8008_v34, %v7930_v18  ;;  %v1705_v55 = vadd.f32 %v1689_v46, %v1616_v22 }
 0x478   : > { %v1709_v6 = vadd.f32 %v1693_v63, %v1620_v7  ;;  %v1691_v33 = vsel %vm1687_vm1, %v7650_v24, %v7769_v17  ;;  %v1613_v20 = vmul.f32 %v7947_v19, %v11383_v5  ;;  %v1745_v22 = vmul.f32 %v8006_v11, %v7806_v8 }
 0x479   : > { %2126 = vrot.lane.b32.xlu2 %v7613_v50, %s6314_s30  ;;  %v1692_v50 = vsel %vm1687_vm1, %v7812_v53, %v7693_v52  ;;  %v1690_v52 = vsel %vm1687_vm1, %v7775_v47, %v7650_v24  ;;  %v1746_v47 = vmul.f32 %v8008_v34, %v7806_v8  ;;  %v1707_v37 = vadd.f32 %v1691_v33, %v1618_v2  ;;  %v11389_v33 = vld [vmem:[#allocation36_spill] sm:$0xff] }
 0x47a   : > { %2124 = vrot.lane.b32.xlu1 %v7534_v42, %s6314_s30  ;;  %2164 = vrot.lane.b32.xlu0 %v7337_v30, %s6316_s11  ;;  %v1744_v42 = vmul.f32 %v8008_v34, %v7932_v40  ;;  %v1708_v9 = vadd.f32 %v1692_v50, %v1619_v49  ;;  %v1756_v21 = vadd.f32 %v1748_v54, %v1709_v6  ;;  %v11384_v49 = vld [vmem:[#allocation33_spill] sm:$0xff] }
 0x47b   : > { %v8020_v14 = vpop.permute.xlu2 %1865  ;;  %v1706_v2 = vadd.f32 %v1690_v52, %v1617_v10  ;;  %v1574_v19 = vadd.f32 %v1566_v60, %v7951_v35  ;;  %v11386_v60 = vld [vmem:[#allocation59_spill] sm:$0xff]  ;;  %v11387_v6 = vld [vmem:[#allocation45_spill] sm:$0xff] }
 0x47c   : > { %v1762_v27 = vpop.permute.xlu1 %1761  ;;  %v8030_v53 = vpop.permute.xlu0 %1837  ;;  %v1752_v32 = vadd.f32 %v1744_v42, %v1705_v55  ;;  %v1755_v59 = vadd.f32 %v1747_v25, %v1708_v9  ;;  %v1614_v42 = vmul.f32 %v7949_v58, %v11383_v5  ;;  %v2101_v52 = vmul.f32 %v7343_v0, %v11386_v60 }
 0x47d   : > { %v1766_v45 = vsel %vm1765_vm3, %v7835_v51, %v1762_v27  ;;  %v1767_v15 = vsel %vm1765_vm3, %v1762_v27, %v7888_v23  ;;  %v1751_v23 = vadd.f32 %v1743_v13, %v1704_v16  ;;  %v1528_v13 = vadd.f32 %v7954_v31, %v7941_v3 }
 0x47e   : > { %v1770_v36 = vsel %vm393_vm14, %v1766_v45, 0.0  ;;  %v1771_v57 = vsel %vm394_vm0, %v1767_v15, 0.0  ;;  %v1754_v15 = vadd.f32 %v1746_v47, %v1707_v37  ;;  %v1753_v10 = vadd.f32 %v1745_v22, %v1706_v2 }
 0x47f   : > { %v8048_v4 = vperm.slane %v1770_v36, 0  ;;  %v8050_v51 = vperm.slane %v1771_v57, 0  ;;  %v1621_v31 = vadd.f32 %v1613_v20, %v1574_v19  ;;  %v1575_v58 = vadd.f32 %v7996_v61, %v1528_v13  ;;  %v11388_v36 = vld [vmem:[#allocation34_spill] sm:$0xff] }
 0x480   : > { %v1694_v57 = vsel %vm1687_vm1, %v11388_v36, %v11387_v6  ;;  %v1695_v47 = vsel %vm1687_vm1, %v11387_v6, %v11389_v33  ;;  %v1749_v61 = vmul.f32 %v8006_v11, %v7978_v41 }
 0x481   : > { %v1790_v44 = vmul.f32 %v8048_v4, %v7980_v48  ;;  %v1791_v29 = vmul.f32 %v8050_v51, %v7980_v48  ;;  %v1794_v24 = vmul.f32 %v8048_v4, %v7928_v56  ;;  %v1795_v17 = vmul.f32 %v8050_v51, %v7928_v56  ;;  %2132 = vrot.lane.b32.xlu2 %v11382_v43, %s6314_s30 }
 0x482   : > { %2130 = vrot.lane.b32.xlu1 %v11384_v49, %s6314_s30  ;;  %2194 = vrot.lane.b32.xlu0 %v7337_v30, %s6317_s12 }
 0x483   : > { %v8070_v7 = vadd.f32 %v1790_v44, %v1751_v23  ;;  %v1799_v46 = vadd.f32 %v1791_v29, %v1752_v32  ;;  %v8072_v16 = vadd.f32 %v1794_v24, %v1755_v59  ;;  %v1803_v50 = vadd.f32 %v1795_v17, %v1756_v21  ;;  %v8074_v63 = vpop.permute.xlu2 %1922  ;;  %v11390_v44 = vld [vmem:[#allocation182_spill] sm:$0xff] }
 0x484   : > { %v8081_v25 = vpop.permute.xlu1 %1777  ;;  %v8083_v54 = vpop.permute.xlu0 %1867  ;;  %v1622_v59 = vadd.f32 %v1614_v42, %v1575_v58  ;;  %v1750_v21 = vmul.f32 %v8008_v34, %v7978_v41  ;;  %v1710_v17 = vadd.f32 %v1694_v57, %v1621_v31  ;;  %v11419_v41 = vld [vmem:[#allocation174_spill] sm:$0xff] }
 0x485   : > { %11385 = vst [vmem:[#allocation53_spill] sm:$0xff] %v8081_v25  ;;  %v11006_v27 = vmax.f32 %v8070_v7, 0.0  ;;  %v1807_v55 = vmax.f32 %v1799_v46, 0.0  ;;  %v11004_v45 = vmax.f32 %v8072_v16, 0.0  ;;  %v1811_v9 = vmax.f32 %v1803_v50, 0.0 }
 0x486   : > { %v1792_v35 = vmul.f32 %v8048_v4, %v8081_v25  ;;  %v1793_v3 = vmul.f32 %v8050_v51, %v8081_v25  ;;  %v1711_v11 = vadd.f32 %v1695_v47, %v1622_v59  ;;  %v1757_v20 = vadd.f32 %v1749_v61, %v1710_v17 }
 0x487   : > { %1814 = vst [vmem:[#allocation3 + $0x8] sm:$0xff] %v11006_v27 }
 0x488   : > { %1815 = vst [vmem:[#allocation3 + $0x10] sm:$0xff] %v1807_v55  ;;  %v8102_v23 = vadd.f32 %v1792_v35, %v1753_v10  ;;  %v1801_v32 = vadd.f32 %v1793_v3, %v1754_v15  ;;  %v1758_v22 = vadd.f32 %v1750_v21, %v1711_v11  ;;  %v11398_v21 = vld [vmem:[#allocation134_spill] sm:$0xff] }
 0x489   : > { %1818 = vst [vmem:[#allocation3 + $0x48] sm:$0xff] %v11004_v45  ;;  %2162 = vrot.lane.b32.xlu2 %v11390_v44, %s6316_s11 }
 0x48a   : > { %1819 = vst [vmem:[#allocation3 + $0x50] sm:$0xff] %v1811_v9  ;;  %v11005_v29 = vmax.f32 %v8102_v23, 0.0  ;;  %v1809_v24 = vmax.f32 %v1801_v32, 0.0  ;;  %2136 = vrot.lane.b32.xlu1 %v2101_v52, %s6314_s30  ;;  %2224 = vrot.lane.b32.xlu0 %v7337_v30, %s6319_s13  ;;  %v2304_v9 = vld [vmem:[#allocation2 + $0x5] sm:$0x7] }
 0x48b   : > { %v8116_v43 = vpop.permute.xlu2 %1928  ;;  %v8151_v10 = vperm.slane %v2304_v9, 1  ;;  %v8177_v36 = vperm.slane %v2304_v9, 0  ;;  %v8191_v32 = vperm.slane %v2304_v9, 2  ;;  %v11401_v9 = vld [vmem:[#allocation131_spill] sm:$0xff] }
 0x48c   : > { %1816 = vst [vmem:[#allocation3 + $0x28] sm:$0xff] %v11005_v29  ;;  %v8120_v34 = vpop.permute.xlu1 %1785  ;;  %v8122_v37 = vpop.permute.xlu0 %1924  ;;  %v11403_v29 = vld [vmem:[#allocation135_spill] sm:$0xff] }
 0x48d   : > { %11391 = vst [vmem:[#allocation46_spill] sm:$0xff] %v8120_v34  ;;  %v1796_v49 = vmul.f32 %v8048_v4, %v8120_v34  ;;  %v1797_v46 = vmul.f32 %v8050_v51, %v8120_v34  ;;  %v2434_v45 = vmul.f32 %v8191_v32, %v11398_v21  ;;  %v2441_v34 = vmul.f32 %v8177_v36, %v11403_v29 }
 0x48e   : > { %1817 = vst [vmem:[#allocation3 + $0x30] sm:$0xff] %v1809_v24  ;;  %v2440_v56 = vmul.f32 %v8191_v32, %v11401_v9  ;;  %v2443_v25 = vmul.f32 %v8191_v32, %v11403_v29  ;;  %v2625_v18 = vmul.f32 %v8151_v10, %v11419_v41  ;;  %v2628_v1 = vmul.f32 %v8151_v10, %v11423_v62 }
 0x48f   : > { %v8128_v50 = vadd.f32 %v1796_v49, %v1757_v20  ;;  %v1805_v2 = vadd.f32 %v1797_v46, %v1758_v22  ;;  %v11400_v20 = vld [vmem:[#allocation130_spill] sm:$0xff] }
 0x490   : > { %v8130_v19 = vld [vmem:[#allocation3 + $0x48] sm:$0xff]  ;;  %v2436_v22 = vmul.f32 %v8151_v10, %v11400_v20 }
 0x491   : > { %11392 = vst [vmem:[#allocation48_spill] sm:$0xff] %v8130_v19  ;;  %v11003_v13 = vmax.f32 %v8128_v50, 0.0  ;;  %v1813_v42 = vmax.f32 %v1805_v2, 0.0  ;;  %2192 = vrot.lane.b32.xlu2 %v11390_v44, %s6317_s12  ;;  %v8136_v55 = vld [vmem:[#allocation3 + $0x50] sm:$0xff] }
 0x492   : > { %3416 = vst [vmem:[#allocation5 + $0x240] sm:$0xff] %v8130_v19  ;;  %2166 = vrot.lane.b32.xlu1 %v7343_v0, %s6316_s11  ;;  %2254 = vrot.lane.b32.xlu0 %v7337_v30, %s6321_s23  ;;  %v2438_v19 = vmul.f32 %v8177_v36, %v11401_v9 }
 0x493   : > { %11393 = vst [vmem:[#allocation55_spill] sm:$0xff] %v8136_v55  ;;  %v8145_v4 = vpop.permute.xlu2 %1934 }
 0x494   : > { %3417 = vst [vmem:[#allocation5 + $0x248] sm:$0xff] %v8136_v55  ;;  %v8147_v51 = vpop.permute.xlu1 %1839  ;;  %v8149_v15 = vpop.permute.xlu0 %1930 }
 0x495   : > { %1820 = vst [vmem:[#allocation3 + $0x68] sm:$0xff] %v11003_v13  ;;  %v2435_v13 = vmul.f32 %v8177_v36, %v11400_v20 }
 0x496   : > { %1821 = vst [vmem:[#allocation3 + $0x70] sm:$0xff] %v1813_v42  ;;  %v2432_v42 = vmul.f32 %v8177_v36, %v11398_v21 }
 0x499   : > { %2222 = vrot.lane.b32.xlu2 %v11390_v44, %s6319_s13 }
 0x49a   : > { %2196 = vrot.lane.b32.xlu1 %v7343_v0, %s6317_s12  ;;  %2311 = vrot.lane.b32.xlu0 %v8151_v10, %s11394_s2  ;;  %s11412_s12 = smov 98  }
 0x49b   : > { %v8159_v35 = vpop.permute.xlu2 %1940 }
 0x49c   : > { %v3410_v30 = vld [vmem:[#allocation3 + $0x68] sm:$0xff]  ;;  %v8161_v31 = vpop.permute.xlu1 %1869  ;;  %v8163_v58 = vpop.permute.xlu0 %1936 }
 0x49d   : > { %3418 = vst [vmem:[#allocation5 + $0x260] sm:$0xff] %v3410_v30  ;;  %v3411_v3 = vld [vmem:[#allocation3 + $0x70] sm:$0xff]  ;;  %v2439_v30 = vmul.f32 %v8151_v10, %v11401_v9 }
 0x49e   : > { %3419 = vst [vmem:[#allocation5 + $0x268] sm:$0xff] %v3411_v3 }
 0x4a1   : > { %2252 = vrot.lane.b32.xlu2 %v11390_v44, %s6321_s23  ;;  %v2433_v44 = vmul.f32 %v8151_v10, %v11398_v21  ;;  %v2437_v21 = vmul.f32 %v8191_v32, %v11400_v20 }
 0x4a2   : > { %2226 = vrot.lane.b32.xlu1 %v7343_v0, %s6319_s13  ;;  %2341 = vrot.lane.b32.xlu0 %v8151_v10, %s11395_s9  ;;  %s11415_s13 = smov 97  }
 0x4a3   : > { %v8171_v60 = vpop.permute.xlu2 %1970 }
 0x4a4   : > { %v8173_v52 = vpop.permute.xlu1 %1926  ;;  %v8175_v6 = vpop.permute.xlu0 %1942 }
 0x4a9   : > { %2309 = vrot.lane.b32.xlu2 %v8177_v36, %s11394_s2 }
 0x4aa   : > { %2256 = vrot.lane.b32.xlu1 %v7343_v0, %s6321_s23  ;;  %2371 = vrot.lane.b32.xlu0 %v8151_v10, %s11396_s15 }
 0x4ab   : > { %v8185_v57 = vpop.permute.xlu2 %2000 }
 0x4ac   : > { %v8187_v33 = vpop.permute.xlu1 %1932  ;;  %v8189_v47 = vpop.permute.xlu0 %1972 }
 0x4b1   : > { %2339 = vrot.lane.b32.xlu2 %v8177_v36, %s11395_s9 }
 0x4b2   : > { %2313 = vrot.lane.b32.xlu1 %v8191_v32, %s11394_s2  ;;  %2401 = vrot.lane.b32.xlu0 %v8151_v10, %s11397_s17 }
 0x4b3   : > { %v8199_v0 = vpop.permute.xlu2 %2030 }
 0x4b4   : > { %v8201_v59 = vpop.permute.xlu1 %1938  ;;  %v8203_v61 = vpop.permute.xlu0 %2002 }
 0x4b9   : > { %2369 = vrot.lane.b32.xlu2 %v8177_v36, %s11396_s15 }
 0x4ba   : > { %2343 = vrot.lane.b32.xlu1 %v8191_v32, %s11395_s9  ;;  %2458 = vrot.lane.b32.xlu0 %v2433_v44, %s11399_s20  ;;  %s11435_s9 = smov 95  }
 0x4bb   : > { %v8212_v24 = vpop.permute.xlu2 %2060 }
 0x4bc   : > { %v8214_v17 = vpop.permute.xlu1 %1944  ;;  %v8216_v11 = vpop.permute.xlu0 %2032 }
 0x4c1   : > { %2399 = vrot.lane.b32.xlu2 %v8177_v36, %s11397_s17 }
 0x4c2   : > { %2373 = vrot.lane.b32.xlu1 %v8191_v32, %s11396_s15  ;;  %2464 = vrot.lane.b32.xlu0 %v2436_v22, %s11399_s20  ;;  %s11855_s15 = sshll.u32 %s6507_s28, 2 }
 0x4c3   : > { %v8225_v49 = vpop.permute.xlu2 %2114 }
 0x4c4   : > { %v8227_v46 = vpop.permute.xlu1 %1974  ;;  %v8229_v2 = vpop.permute.xlu0 %2062 }
 0x4c9   : > { %2456 = vrot.lane.b32.xlu2 %v2432_v42, %s11399_s20  ;;  %v2442_v42 = vmul.f32 %v8151_v10, %v11403_v29 }
 0x4ca   : > { %2403 = vrot.lane.b32.xlu1 %v8191_v32, %s11397_s17  ;;  %2470 = vrot.lane.b32.xlu0 %v2439_v30, %s11399_s20 }
 0x4cb   : > { %v8239_v3 = vpop.permute.xlu2 %2120 }
 0x4cc   : > { %11402 = vst [vmem:[#allocation183_spill] sm:$0xff] %v8239_v3  ;;  %v8241_v44 = vpop.permute.xlu1 %2004  ;;  %v8243_v22 = vpop.permute.xlu0 %2116  ;;  %v11457_v3 = vld [vmem:[#allocation95_spill] sm:$0xff] }
 0x4d1   : > { %2462 = vrot.lane.b32.xlu2 %v2435_v13, %s11399_s20 }
 0x4d2   : > { %2460 = vrot.lane.b32.xlu1 %v2434_v45, %s11399_s20  ;;  %2476 = vrot.lane.b32.xlu0 %v2442_v42, %s11399_s20 }
 0x4d3   : > { %v8254_v30 = vpop.permute.xlu2 %2126 }
 0x4d4   : > { %11404 = vst [vmem:[#allocation54_spill] sm:$0xff] %v8254_v30  ;;  %v8256_v27 = vpop.permute.xlu1 %2034  ;;  %v8258_v55 = vpop.permute.xlu0 %2122  ;;  %v11456_v30 = vld [vmem:[#allocation25_spill] sm:$0xff] }
 0x4d5   : > { %11405 = vst [vmem:[#allocation85_spill] sm:$0xff] %v8258_v55  ;;  %v11460_v55 = vld [vmem:[#allocation27_spill] sm:$0xff] }
 0x4d9   : > { %2468 = vrot.lane.b32.xlu2 %v2438_v19, %s11399_s20 }
 0x4da   : > { %2466 = vrot.lane.b32.xlu1 %v2437_v21, %s11399_s20  ;;  %2506 = vrot.lane.b32.xlu0 %v8151_v10, %s6335_s16 }
 0x4db   : > { %v8268_v45 = vpop.permute.xlu2 %2132 }
 0x4dc   : > { %11406 = vst [vmem:[#allocation65_spill] sm:$0xff] %v8268_v45  ;;  %v8270_v13 = vpop.permute.xlu1 %2064  ;;  %v8272_v42 = vpop.permute.xlu0 %2128 }
 0x4dd   : > { %11407 = vst [vmem:[#allocation73_spill] sm:$0xff] %v8272_v42 }
 0x4e1   : > { %2474 = vrot.lane.b32.xlu2 %v2441_v34, %s11399_s20 }
 0x4e2   : > { %2472 = vrot.lane.b32.xlu1 %v2440_v56, %s11399_s20  ;;  %2536 = vrot.lane.b32.xlu0 %v8151_v10, %s11408_s18 }
 0x4e3   : > { %v8282_v19 = vpop.permute.xlu2 %2162 }
 0x4e4   : > { %11409 = vst [vmem:[#allocation60_spill] sm:$0xff] %v8282_v19  ;;  %v8284_v20 = vpop.permute.xlu1 %2118  ;;  %v8286_v21 = vpop.permute.xlu0 %2134  ;;  %v1828_v19 = vld [vmem:[#allocation11 + $0x30] sm:$0xff] }
 0x4e5   : > { %11410 = vst [vmem:[#allocation63_spill] sm:$0xff] %v8284_v20 }
 0x4e6   : > { %11411 = vst [vmem:[#allocation71_spill] sm:$0xff] %v8286_v21  ;;  %v11451_v21 = vld [vmem:[#allocation108_spill] sm:$0xff] }
 0x4e9   : > { %2504 = vrot.lane.b32.xlu2 %v8177_v36, %s6335_s16 }
 0x4ea   : > { %2478 = vrot.lane.b32.xlu1 %v2443_v25, %s11399_s20  ;;  %2566 = vrot.lane.b32.xlu0 %v8151_v10, %s11412_s12 }
 0x4eb   : > { %v8295_v56 = vpop.permute.xlu2 %2192 }
 0x4ec   : > { %11413 = vst [vmem:[#allocation61_spill] sm:$0xff] %v8295_v56  ;;  %v8297_v34 = vpop.permute.xlu1 %2124  ;;  %v8299_v9 = vpop.permute.xlu0 %2164 }
 0x4ed   : > { %11414 = vst [vmem:[#allocation66_spill] sm:$0xff] %v8297_v34  ;;  %v11431_v34 = vld [vmem:[#allocation179_spill] sm:$0xff] }
 0x4ee   : > { %v2634_v45 = vmul.f32 %v8151_v10, %v11431_v34 }
 0x4f1   : > { %2534 = vrot.lane.b32.xlu2 %v8177_v36, %s11408_s18 }
 0x4f2   : > { %2508 = vrot.lane.b32.xlu1 %v8191_v32, %s6335_s16  ;;  %2596 = vrot.lane.b32.xlu0 %v8151_v10, %s11415_s13 }
 0x4f3   : > { %v8307_v29 = vpop.permute.xlu2 %2222 }
 0x4f4   : > { %11416 = vst [vmem:[#allocation58_spill] sm:$0xff] %v8307_v29  ;;  %v8309_v25 = vpop.permute.xlu1 %2130  ;;  %v8311_v48 = vpop.permute.xlu0 %2194 }
 0x4f5   : > { %11417 = vst [vmem:[#allocation76_spill] sm:$0xff] %v8309_v25  ;;  %v11427_v25 = vld [vmem:[#allocation178_spill] sm:$0xff] }
 0x4f6   : > { %11418 = vst [vmem:[#allocation62_spill] sm:$0xff] %v8311_v48  ;;  %v1826_v48 = vld [vmem:[#allocation11 + $0x20] sm:$0xff] }
 0x4f9   : > { %2564 = vrot.lane.b32.xlu2 %v8177_v36, %s11412_s12 }
 0x4fa   : > { %2538 = vrot.lane.b32.xlu1 %v8191_v32, %s11408_s18  ;;  %2650 = vrot.lane.b32.xlu0 %v2625_v18, %s6343_s1  ;;  %s5540_s18 = scalar_lea.sflag [#allocation8], %s6507_s28 }
 0x4fb   : > { %v8320_v8 = vpop.permute.xlu2 %2252 }
 0x4fc   : > { %11420 = vst [vmem:[#allocation68_spill] sm:$0xff] %v8320_v8  ;;  %v8322_v40 = vpop.permute.xlu1 %2136  ;;  %v8324_v5 = vpop.permute.xlu0 %2224  ;;  %v2631_v8 = vmul.f32 %v8151_v10, %v11427_v25 }
 0x4fd   : > { %11421 = vst [vmem:[#allocation79_spill] sm:$0xff] %v8322_v40  ;;  %v2624_v40 = vmul.f32 %v8177_v36, %v11419_v41 }
 0x4fe   : > { %11422 = vst [vmem:[#allocation81_spill] sm:$0xff] %v8324_v5 }
 0x501   : > { %2594 = vrot.lane.b32.xlu2 %v8177_v36, %s11415_s13 }
 0x502   : > { %2568 = vrot.lane.b32.xlu1 %v8191_v32, %s11412_s12  ;;  %2656 = vrot.lane.b32.xlu0 %v2628_v1, %s6343_s1 }
 0x503   : > { %v8333_v12 = vpop.permute.xlu2 %2309 }
 0x504   : > { %11424 = vst [vmem:[#allocation69_spill] sm:$0xff] %v8333_v12  ;;  %v8335_v18 = vpop.permute.xlu1 %2166  ;;  %v8337_v26 = vpop.permute.xlu0 %2254 }
 0x505   : > { %11425 = vst [vmem:[#allocation82_spill] sm:$0xff] %v8335_v18 }
 0x506   : > { %11426 = vst [vmem:[#allocation64_spill] sm:$0xff] %v8337_v26  ;;  %v2627_v26 = vmul.f32 %v8177_v36, %v11423_v62 }
 0x509   : > { %2648 = vrot.lane.b32.xlu2 %v2624_v40, %s6343_s1  ;;  %v2626_v40 = vmul.f32 %v8191_v32, %v11419_v41  ;;  %v2629_v41 = vmul.f32 %v8191_v32, %v11423_v62 }
 0x50a   : > { %2598 = vrot.lane.b32.xlu1 %v8191_v32, %s11415_s13  ;;  %2662 = vrot.lane.b32.xlu0 %v2631_v8, %s6343_s1 }
 0x50b   : > { %v8347_v1 = vpop.permute.xlu2 %2339 }
 0x50c   : > { %11428 = vst [vmem:[#allocation72_spill] sm:$0xff] %v8347_v1  ;;  %v8349_v12 = vpop.permute.xlu1 %2196  ;;  %v8351_v18 = vpop.permute.xlu0 %2311 }
 0x50d   : > { %11429 = vst [vmem:[#allocation96_spill] sm:$0xff] %v8349_v12  ;;  %v2630_v12 = vmul.f32 %v8177_v36, %v11427_v25 }
 0x50e   : > { %11430 = vst [vmem:[#allocation77_spill] sm:$0xff] %v8351_v18 }
 0x511   : > { %2654 = vrot.lane.b32.xlu2 %v2627_v26, %s6343_s1 }
 0x512   : > { %2652 = vrot.lane.b32.xlu1 %v2626_v40, %s6343_s1  ;;  %2668 = vrot.lane.b32.xlu0 %v2634_v45, %s6343_s1 }
 0x513   : > { %v8362_v8 = vpop.permute.xlu2 %2369 }
 0x514   : > { %11432 = vst [vmem:[#allocation70_spill] sm:$0xff] %v8362_v8  ;;  %v8364_v1 = vpop.permute.xlu1 %2226  ;;  %v8366_v18 = vpop.permute.xlu0 %2341  ;;  %v2633_v8 = vmul.f32 %v8177_v36, %v11431_v34 }
 0x515   : > { %11433 = vst [vmem:[#allocation90_spill] sm:$0xff] %v8364_v1  ;;  %v11446_v1 = vld [vmem:[#allocation22_spill] sm:$0xff] }
 0x516   : > { %11434 = vst [vmem:[#allocation184_spill] sm:$0xff] %v8366_v18  ;;  %v2632_v18 = vmul.f32 %v8191_v32, %v11427_v25  ;;  %v1871_v25 = vsel %vm515_vm5, %v8020_v14, %v8083_v54 }
 0x519   : > { %2660 = vrot.lane.b32.xlu2 %v2630_v12, %s6343_s1  ;;  %v1841_v12 = vsel %vm464_vm4, %v7966_v28, %v8030_v53  ;;  %v1875_v28 = vsel %vm389_vm8, %v1871_v25, 0.0 }
 0x51a   : > { %2658 = vrot.lane.b32.xlu1 %v2629_v41, %s6343_s1  ;;  %2698 = vrot.lane.b32.xlu0 %v8151_v10, %s11435_s9 }
 0x51b   : > { %v8376_v26 = vpop.permute.xlu2 %2399 }
 0x51c   : > { %11436 = vst [vmem:[#allocation102_spill] sm:$0xff] %v8376_v26  ;;  %v8378_v45 = vpop.permute.xlu1 %2256  ;;  %v8380_v40 = vpop.permute.xlu0 %2371 }
 0x51d   : > { %11437 = vst [vmem:[#allocation86_spill] sm:$0xff] %v8378_v45 }
 0x51e   : > { %11438 = vst [vmem:[#allocation94_spill] sm:$0xff] %v8380_v40 }
 0x521   : > { %2666 = vrot.lane.b32.xlu2 %v2633_v8, %s6343_s1  ;;  %v2282_v8 = vld [vmem:[#allocation2 + $0x5] sm:$0x3] }
 0x522   : > { %2664 = vrot.lane.b32.xlu1 %v2632_v18, %s6343_s1  ;;  %2728 = vrot.lane.b32.xlu0 %v8151_v10, %s6347_s14  ;;  %v1845_v18 = vsel %vm387_vm6, %v1841_v12, 0.0  ;;  %v2635_v10 = vmul.f32 %v8191_v32, %v11431_v34  ;;  %v2285_v14 = vperm.slane %v2282_v8, 1  ;;  %v1877_v12 = vperm.slane %v1875_v28, 0 }
 0x523   : > { %v8393_v62 = vpop.permute.xlu2 %2456  ;;  %v1847_v40 = vperm.slane %v1845_v18, 0  ;;  %v1872_v34 = vsel %vm515_vm5, %v8083_v54, %v8161_v31  ;;  %v11453_v31 = vld [vmem:[#allocation23_spill] sm:$0xff] }
 0x524   : > { %11439 = vst [vmem:[#allocation98_spill] sm:$0xff] %v8393_v62  ;;  %v8395_v41 = vpop.permute.xlu1 %2313  ;;  %v8397_v26 = vpop.permute.xlu0 %2401  ;;  %v2284_v62 = vperm.slane %v2282_v8, 0  ;;  %v11447_v8 = vld [vmem:[#allocation93_spill] sm:$0xff]  ;;  %v1876_v20 = vsel %vm390_vm9, %v1872_v34, 0.0  ;;  %v1881_v56 = vmul.f32 %v1877_v12, %v11460_v55 }
 0x525   : > { %11440 = vst [vmem:[#allocation107_spill] sm:$0xff] %v8395_v41  ;;  %v11442_v41 = vmax.f32 %v8070_v7, 0.0  ;;  %v1822_v7 = vld [vmem:[#allocation11] sm:$0xff]  ;;  %v1855_v42 = vmul.f32 %v1847_v40, %v11456_v30 }
 0x526   : > { %11441 = vst [vmem:[#allocation110_spill] sm:$0xff] %v8397_v26  ;;  %v1842_v26 = vsel %vm464_vm4, %v8030_v53, %v8147_v51  ;;  %v1849_v53 = vmul.f32 %v1847_v40, %v11446_v1  ;;  %v8430_v28 = vmul.f32 %v2284_v62, %v11447_v8  ;;  %v8437_v54 = vmul.f32 %v2284_v62, %v11451_v21 }
 0x527   : > { %v1846_v51 = vsel %vm388_vm7, %v1842_v26, 0.0  ;;  %v8443_v26 = vmul.f32 %v2285_v14, %v11451_v21  ;;  %v11461_v21 = vld [vmem:[#allocation104_spill] sm:$0xff]  ;;  %vm11470_vm4 = vcmask 146432  }
 0x528   : > { %11448 = vst [vmem:[#allocation123_spill] sm:$0xff] %v8430_v28  ;;  %v1848_v29 = vperm.slane %v1846_v51, 0  ;;  %v11455_v28 = vld [vmem:[#allocation21_spill] sm:$0xff]  ;;  %v8457_v34 = vmul.f32 %v2284_v62, %v11461_v21  ;;  %v8460_v51 = vmul.f32 %v2285_v14, %v11461_v21 }
 0x529   : > { %2696 = vrot.lane.b32.xlu2 %v8177_v36, %s11435_s9  ;;  %11452 = vst [vmem:[#allocation115_spill] sm:$0xff] %v8437_v54  ;;  %v1853_v5 = vmul.f32 %v1847_v40, %v11455_v28  ;;  %v1857_v54 = vadd.f32 %v1849_v53, %v1822_v7  ;;  %v11464_v53 = vld [vmem:[#allocation26_spill] sm:$0xff] }
 0x52a   : > { %2670 = vrot.lane.b32.xlu1 %v2635_v10, %s6343_s1  ;;  %2802 = vrot.lane.b32.xlu0 %v11442_v41, %s6313_s21  ;;  %v11449_v41 = vld [vmem:[#allocation20_spill] sm:$0xff]  ;;  %11454 = vst [vmem:[#allocation125_spill] sm:$0xff] %v8443_v26  ;;  %v1878_v26 = vperm.slane %v1876_v20, 0  ;;  %v1883_v7 = vmul.f32 %v1877_v12, %v11464_v53  ;;  %v1946_v20 = vsel %vm623_vm15, %v8074_v63, %v8122_v37  ;;  %v1825_v63 = vld [vmem:[#allocation11 + $0x18] sm:$0xff] }
 0x52b   : > { %v8417_v25 = vpop.permute.xlu2 %2462  ;;  %v1851_v10 = vmul.f32 %v1847_v40, %v11449_v41  ;;  %11462 = vst [vmem:[#allocation151_spill] sm:$0xff] %v8457_v34 }
 0x52c   : > { %11443 = vst [vmem:[#allocation114_spill] sm:$0xff] %v8417_v25  ;;  %v8422_v18 = vpop.permute.xlu1 %2343  ;;  %v8424_v45 = vpop.permute.xlu0 %2458  ;;  %v8434_v25 = vmul.f32 %v2285_v14, %v11447_v8  ;;  %v8448_v8 = vmul.f32 %v2284_v62, %v11457_v3  ;;  %v11466_v62 = vmax.f32 %v8102_v23, 0.0  ;;  %v1854_v23 = vmul.f32 %v1848_v29, %v11455_v28 }
 0x52d   : > { %11444 = vst [vmem:[#allocation106_spill] sm:$0xff] %v8422_v18  ;;  %v1879_v18 = vmul.f32 %v1877_v12, %v11453_v31 }
 0x52e   : > { %11445 = vst [vmem:[#allocation116_spill] sm:$0xff] %v8424_v45  ;;  %v1824_v45 = vld [vmem:[#allocation11 + $0x10] sm:$0xff] }
 0x52f   : > { %11450 = vst [vmem:[#allocation112_spill] sm:$0xff] %v8434_v25  ;;  %v8451_v25 = vmul.f32 %v2285_v14, %v11457_v3  ;;  %v1859_v40 = vadd.f32 %v1851_v10, %v1824_v45  ;;  %v1887_v3 = vadd.f32 %v1879_v18, %v1857_v54  ;;  %v1861_v45 = vadd.f32 %v1853_v5, %v1826_v48 }
 0x530   : > { %11458 = vst [vmem:[#allocation120_spill] sm:$0xff] %v8448_v8  ;;  %v1850_v18 = vmul.f32 %v1848_v29, %v11446_v1  ;;  %v1863_v10 = vadd.f32 %v1855_v42, %v1828_v19  ;;  %v1948_v48 = vsel %vm623_vm15, %v8116_v43, %v8149_v15  ;;  %v1880_v5 = vmul.f32 %v1878_v26, %v11453_v31  ;;  %v1827_v19 = vld [vmem:[#allocation11 + $0x28] sm:$0xff] }
 0x531   : > { %11459 = vst [vmem:[#allocation132_spill] sm:$0xff] %v8451_v25  ;;  %2726 = vrot.lane.b32.xlu2 %v8177_v36, %s6347_s14  ;;  %v11465_v25 = vld [vmem:[#allocation24_spill] sm:$0xff]  ;;  %v1976_v36 = vsel %vm654_vm10, %v8171_v60, %v8189_v47  ;;  %v1889_v21 = vadd.f32 %v1881_v56, %v1859_v40  ;;  %v1856_v56 = vmul.f32 %v1848_v29, %v11456_v30 }
 0x532   : > { %11463 = vst [vmem:[#allocation152_spill] sm:$0xff] %v8460_v51  ;;  %2700 = vrot.lane.b32.xlu1 %v8191_v32, %s11435_s9  ;;  %v1885_v8 = vmul.f32 %v1877_v12, %v11465_v25  ;;  %2808 = vrot.lane.b32.xlu0 %v11466_v62, %s6313_s21  ;;  %v1823_v60 = vld [vmem:[#allocation11 + $0x8] sm:$0xff]  ;;  %v1852_v51 = vmul.f32 %v1848_v29, %v11449_v41  ;;  %v1980_v42 = vsel %vm391_vm13, %v1976_v36, 0.0  ;;  %v8501_v29 = vld [vmem:[#allocation3] sm:$0xff] }
 0x533   : > { %v8472_v14 = vpop.permute.xlu2 %2468  ;;  %v2006_v62 = vsel %vm701_vm11, %v8185_v57, %v8203_v61  ;;  %v1962_v1 = vadd.f32 %v1946_v20, %v1887_v3  ;;  %v1891_v41 = vadd.f32 %v1883_v7, %v1861_v45  ;;  %v1882_v40 = vmul.f32 %v1878_v26, %v11460_v55 }
 0x534   : > { %11467 = vst [vmem:[#allocation144_spill] sm:$0xff] %v8472_v14  ;;  %v8478_v54 = vpop.permute.xlu1 %2373  ;;  %v8480_v12 = vpop.permute.xlu0 %2464  ;;  %v1893_v28 = vadd.f32 %v1885_v8, %v1863_v10  ;;  %v1829_v14 = vld [vmem:[#allocation11 + $0x38] sm:$0xff]  ;;  %v1950_v57 = vsel %vm623_vm15, %v8145_v4, %v8163_v58  ;;  %v1858_v43 = vadd.f32 %v1850_v18, %v1823_v60  ;;  %v1884_v31 = vmul.f32 %v1878_v26, %v11464_v53 }
 0x535   : > { %11468 = vst [vmem:[#allocation139_spill] sm:$0xff] %v8478_v54  ;;  %v1964_v36 = vadd.f32 %v1948_v48, %v1889_v21  ;;  %v1860_v54 = vadd.f32 %v1852_v51, %v1825_v63  ;;  %v1982_v34 = vperm.slane %v1980_v42, 0  ;;  %v1862_v30 = vadd.f32 %v1854_v23, %v1827_v19  ;;  %v11476_v10 = vld [vmem:[#allocation30_spill] sm:$0xff]  ;;  %v11479_v63 = vld [vmem:[#allocation29_spill] sm:$0xff] }
 0x536   : > { %11469 = vst [vmem:[#allocation136_spill] sm:$0xff] %v8480_v12  ;;  %v2010_v12 = vsel %vm393_vm14, %v2006_v62, 0.0  ;;  %v1888_v55 = vadd.f32 %v1880_v5, %v1858_v43  ;;  %v1864_v8 = vadd.f32 %v1856_v56, %v1829_v14  ;;  %v1886_v3 = vmul.f32 %v1878_v26, %v11465_v25 }
 0x537   : > { %v2036_v4 = vsel %vm11470_vm4, %v8199_v0, %v8216_v11  ;;  %v1966_v53 = vadd.f32 %v1950_v57, %v1891_v41  ;;  %v1947_v51 = vsel %vm623_vm15, %v8122_v37, %v8173_v52  ;;  %v1890_v7 = vadd.f32 %v1882_v40, %v1860_v54  ;;  %v11481_v57 = vld [vmem:[#allocation41_spill] sm:$0xff] }
 0x538   : > { %v2012_v20 = vperm.slane %v2010_v12, 0  ;;  %v11471_v45 = vmax.f32 %v8072_v16, 0.0  ;;  %v1952_v0 = vsel %vm623_vm15, %v8159_v35, %v8175_v6  ;;  %v1892_v25 = vadd.f32 %v1884_v31, %v1862_v30  ;;  %v11475_v16 = vld [vmem:[#allocation32_spill] sm:$0xff] }
 0x539   : > { %2800 = vrot.lane.b32.xlu2 %v8501_v29, %s6313_s21  ;;  %vm11473_vm4 = vcmask 138240   ;;  %v1984_v18 = vmul.f32 %v1982_v34, %v11475_v16  ;;  %v1986_v54 = vmul.f32 %v1982_v34, %v11476_v10  ;;  %v2040_v35 = vsel %vm387_vm6, %v2036_v4, 0.0  ;;  %v11477_v12 = vld [vmem:[#allocation28_spill] sm:$0xff] }
 0x53a   : > { %2730 = vrot.lane.b32.xlu1 %v8191_v32, %s6347_s14  ;;  %2814 = vrot.lane.b32.xlu0 %v11471_v45, %s6313_s21  ;;  %v1949_v32 = vsel %vm623_vm15, %v8149_v15, %v8187_v33  ;;  %v2066_v37 = vsel %vm11473_vm4, %v8212_v24, %v8229_v2  ;;  %v1977_v15 = vsel %vm654_vm10, %v8189_v47, %v8227_v46  ;;  %v11478_v24 = vld [vmem:[#allocation31_spill] sm:$0xff]  ;;  %v2042_v56 = vperm.slane %v2040_v35, 0  ;;  %v11480_v46 = vld [vmem:[#allocation42_spill] sm:$0xff]  ;;  %v2774_v31 = vld [vmem:[#allocation3 + $0x10] sm:$0xff] }
 0x53b   : > { %v8517_v14 = vpop.permute.xlu2 %2474  ;;  %v8539_v33 = vadd.f32 %v1947_v51, %v1888_v55  ;;  %v1988_v21 = vmul.f32 %v1982_v34, %v11477_v12  ;;  %v1990_v60 = vmul.f32 %v1982_v34, %v11478_v24  ;;  %v1894_v23 = vadd.f32 %v1886_v3, %v1864_v8  ;;  %v11482_v55 = vld [vmem:[#allocation35_spill] sm:$0xff] }
 0x53c   : > { %11472 = vst [vmem:[#allocation158_spill] sm:$0xff] %v8517_v14  ;;  %v8528_v52 = vpop.permute.xlu1 %2403  ;;  %v8530_v26 = vpop.permute.xlu0 %2470  ;;  %v1968_v62 = vadd.f32 %v1952_v0, %v1893_v28  ;;  %v1965_v48 = vadd.f32 %v1949_v32, %v1890_v7  ;;  %v2070_v5 = vsel %vm389_vm8, %v2066_v37, 0.0  ;;  %v2014_v42 = vmul.f32 %v2012_v20, %v11479_v63  ;;  %v11484_v51 = vld [vmem:[#allocation47_spill] sm:$0xff] }
 0x53d   : > { %11474 = vst [vmem:[#allocation150_spill] sm:$0xff] %v8530_v26  ;;  %v1951_v19 = vsel %vm623_vm15, %v8163_v58, %v8201_v59  ;;  %v1981_v47 = vsel %vm392_vm12, %v1977_v15, 0.0  ;;  %v2016_v41 = vmul.f32 %v2012_v20, %v11480_v46  ;;  %v2007_v34 = vsel %vm701_vm11, %v8203_v61, %v8241_v44  ;;  %v11491_v15 = vld [vmem:[#allocation52_spill] sm:$0xff]  ;;  %vm11492_vm11 = vmmov %vm11473_vm4 }
 0x53e   : > { %v1992_v28 = vadd.f32 %v1984_v18, %v1962_v1  ;;  %v1994_v40 = vadd.f32 %v1986_v54, %v1964_v36  ;;  %v2018_v43 = vmul.f32 %v2012_v20, %v11481_v57  ;;  %v2072_v30 = vperm.slane %v2070_v5, 0  ;;  %v11490_v18 = vld [vmem:[#allocation50_spill] sm:$0xff] }
 0x53f   : > { %v1996_v58 = vadd.f32 %v1988_v21, %v1966_v53  ;;  %v1998_v59 = vadd.f32 %v1990_v60, %v1968_v62  ;;  %v2020_v8 = vmul.f32 %v2012_v20, %v11482_v55  ;;  %v1967_v3 = vadd.f32 %v1951_v19, %v1892_v25  ;;  %v11489_v25 = vld [vmem:[#allocation49_spill] sm:$0xff] }
 0x540   : > { %v1953_v61 = vsel %vm623_vm15, %v8175_v6, %v8214_v17  ;;  %v1983_v44 = vperm.slane %v1981_v47, 0  ;;  %v2022_v1 = vadd.f32 %v2014_v42, %v1992_v28  ;;  %v11483_v36 = vmax.f32 %v8128_v50, 0.0  ;;  %v11488_v17 = vld [vmem:[#allocation43_spill] sm:$0xff] }
 0x541   : > { %2806 = vrot.lane.b32.xlu2 %v8501_v29, %s6313_s21  ;;  %v2011_v53 = vsel %vm394_vm0, %v2007_v34, 0.0  ;;  %v2044_v7 = vmul.f32 %v2042_v56, %v11484_v51  ;;  %vm11485_vm10 = vcmask 146432   ;;  %v2024_v45 = vadd.f32 %v2016_v41, %v1994_v40  ;;  %v11494_v41 = vld [vmem:[#allocation51_spill] sm:$0xff] }
 0x542   : > { %2804 = vrot.lane.b32.xlu1 %v2774_v31, %s6313_s21  ;;  %2820 = vrot.lane.b32.xlu0 %v11483_v36, %s6313_s21  ;;  %v2037_v20 = vsel %vm11485_vm10, %v8216_v11, %v8256_v27  ;;  %v2046_v32 = vmul.f32 %v2042_v56, %v11488_v17  ;;  %v2026_v50 = vadd.f32 %v2018_v43, %v1996_v58  ;;  %v2013_v5 = vperm.slane %v2011_v53, 0 }
 0x543   : > { %v8566_v4 = vpop.permute.xlu2 %2504  ;;  %v2048_v37 = vmul.f32 %v2042_v56, %v11489_v25  ;;  %v2050_v54 = vmul.f32 %v2042_v56, %v11490_v18  ;;  %v1969_v35 = vadd.f32 %v1953_v61, %v1894_v23  ;;  %v2074_v21 = vmul.f32 %v2072_v30, %v11491_v15  ;;  %v11493_v56 = vld [vmem:[#allocation56_spill] sm:$0xff] }
 0x544   : > { %v8574_v0 = vpop.permute.xlu1 %2460  ;;  %v8576_v6 = vpop.permute.xlu0 %2476  ;;  %v2067_v60 = vsel %vm11492_vm11, %v8229_v2, %v8270_v13  ;;  %v2028_v27 = vadd.f32 %v2020_v8, %v1998_v59  ;;  %v1985_v11 = vmul.f32 %v1983_v44, %v11475_v16  ;;  %v1987_v62 = vmul.f32 %v1983_v44, %v11476_v10  ;;  %v2777_v16 = vld [vmem:[#allocation3 + $0x30] sm:$0xff] }
 0x545   : > { %11486 = vst [vmem:[#allocation137_spill] sm:$0xff] %v8574_v0  ;;  %v2041_v42 = vsel %vm388_vm7, %v2037_v20, 0.0  ;;  %v1989_v19 = vmul.f32 %v1983_v44, %v11477_v12  ;;  %v2052_v47 = vadd.f32 %v2044_v7, %v2022_v1  ;;  %v2076_v23 = vmul.f32 %v2072_v30, %v11493_v56  ;;  %v11495_v12 = vld [vmem:[#allocation57_spill] sm:$0xff] }
 0x546   : > { %11487 = vst [vmem:[#allocation142_spill] sm:$0xff] %v8576_v6  ;;  %v2078_v34 = vmul.f32 %v2072_v30, %v11494_v41  ;;  %v2054_v28 = vadd.f32 %v2046_v32, %v2024_v45  ;;  %v2071_v2 = vsel %vm390_vm9, %v2067_v60, 0.0  ;;  %v2056_v13 = vadd.f32 %v2048_v37, %v2026_v50  ;;  %v11498_v32 = vld [vmem:[#allocation60_spill] sm:$0xff] }
 0x547   : > { %v2058_v40 = vadd.f32 %v2050_v54, %v2028_v27  ;;  %v1991_v10 = vmul.f32 %v1983_v44, %v11478_v24  ;;  %v2082_v43 = vadd.f32 %v2074_v21, %v2052_v47  ;;  %v2043_v31 = vperm.slane %v2041_v42, 0  ;;  %v11500_v27 = vld [vmem:[#allocation62_spill] sm:$0xff]  ;;  %v11504_v42 = vld [vmem:[#allocation183_spill] sm:$0xff]  ;;  %v8632_v47 = vld [vmem:[#allocation3 + $0x50] sm:$0xff] }
 0x548   : > { %v2080_v58 = vmul.f32 %v2072_v30, %v11495_v12  ;;  %vm11496_vm15 = vcmask 130048   ;;  %v1993_v8 = vadd.f32 %v1985_v11, %v8539_v33  ;;  %v2015_v61 = vmul.f32 %v2013_v5, %v11479_v63  ;;  %11506 = vst [vmem:[#allocation138_spill] sm:$0xff] %v8632_v47 }
 0x549   : > { %2812 = vrot.lane.b32.xlu2 %v8501_v29, %s6313_s21  ;;  %v2138_v59 = vsel %vm11496_vm15, %v8225_v49, %v8243_v22  ;;  %v1995_v1 = vadd.f32 %v1987_v62, %v1965_v48  ;;  %v2084_v53 = vadd.f32 %v2076_v23, %v2054_v28  ;;  %v2073_v7 = vperm.slane %v2071_v2, 0  ;;  %v11503_v62 = vld [vmem:[#allocation85_spill] sm:$0xff]  ;;  %vm11505_vm11 = vmmov %vm11496_vm15 }
 0x54a   : > { %2810 = vrot.lane.b32.xlu1 %v2777_v16, %s6313_s21  ;;  %v2086_v24 = vadd.f32 %v2078_v34, %v2056_v13  ;;  %v1997_v44 = vadd.f32 %v1989_v19, %v1967_v3  ;;  %v2017_v45 = vmul.f32 %v2013_v5, %v11480_v46  ;;  %vm11499_vm4 = vcmask 121856   ;;  %v11501_v46 = vld [vmem:[#allocation61_spill] sm:$0xff]  ;;  %v11508_v34 = vld [vmem:[#allocation54_spill] sm:$0xff]  ;;  %vm11509_vm15 = vmmov %vm11505_vm11 }
 0x54b   : > { %v8604_v36 = vpop.permute.xlu2 %2534  ;;  %v2168_v49 = vsel %vm11499_vm4, %v11498_v32, %v8299_v9  ;;  %v2019_v33 = vmul.f32 %v2013_v5, %v11481_v57  ;;  %v2021_v48 = vmul.f32 %v2013_v5, %v11482_v55  ;;  %v2154_v63 = vadd.f32 %v2138_v59, %v2082_v43  ;;  %v11507_v23 = vld [vmem:[#allocation73_spill] sm:$0xff] }
 0x54c   : > { %v8606_v20 = vpop.permute.xlu1 %2466  ;;  %v8608_v30 = vpop.permute.xlu0 %2506  ;;  %v2045_v50 = vmul.f32 %v2043_v31, %v11484_v51  ;;  %v2088_v37 = vadd.f32 %v2080_v58, %v2058_v40  ;;  %v1999_v54 = vadd.f32 %v1991_v10, %v1969_v35  ;;  %v2023_v3 = vadd.f32 %v2015_v61, %v1993_v8  ;;  %v11510_v59 = vld [vmem:[#allocation81_spill] sm:$0xff]  ;;  %v11511_v8 = vld [vmem:[#allocation58_spill] sm:$0xff] }
 0x54d   : > { %11497 = vst [vmem:[#allocation141_spill] sm:$0xff] %v8606_v20  ;;  %v2047_v21 = vmul.f32 %v2043_v31, %v11488_v17  ;;  %v2049_v60 = vmul.f32 %v2043_v31, %v11489_v25  ;;  %vm11502_vm10 = vcmask 113664   ;;  %v2140_v57 = vsel %vm11505_vm11, %v11504_v42, %v11503_v62  ;;  %v11525_v42 = vld [vmem:[#allocation64_spill] sm:$0xff] }
 0x54e   : > { %v2198_v11 = vsel %vm11502_vm10, %v11501_v46, %v11500_v27  ;;  %v2075_v55 = vmul.f32 %v2073_v7, %v11491_v15  ;;  %v2172_v51 = vsel %vm391_vm13, %v2168_v49, 0.0  ;;  %v2051_v35 = vmul.f32 %v2043_v31, %v11490_v18  ;;  %vm11515_vm10 = vmmov %vm11505_vm11  ;;  %v11524_v46 = vld [vmem:[#allocation67_spill] sm:$0xff] }
 0x54f   : > { %v2025_v5 = vadd.f32 %v2017_v45, %v1995_v1  ;;  %v2077_v17 = vmul.f32 %v2073_v7, %v11493_v56  ;;  %v2027_v19 = vadd.f32 %v2019_v33, %v1997_v44  ;;  %v2029_v25 = vadd.f32 %v2021_v48, %v1999_v54  ;;  %v11514_v45 = vld [vmem:[#allocation63_spill] sm:$0xff]  ;;  %v11517_v48 = vld [vmem:[#allocation65_spill] sm:$0xff]  ;;  %vm11518_vm11 = vmmov %vm11515_vm10 }
 0x550   : > { %v2142_v28 = vsel %vm11509_vm15, %v11508_v34, %v11507_v23  ;;  %v2053_v15 = vadd.f32 %v2045_v50, %v2023_v3  ;;  %v2079_v2 = vmul.f32 %v2073_v7, %v11494_v41  ;;  %v2202_v18 = vsel %vm393_vm14, %v2198_v11, 0.0  ;;  %v11516_v33 = vld [vmem:[#allocation71_spill] sm:$0xff]  ;;  %vm11520_vm15 = vmmov %vm11515_vm10  ;;  %v11521_v3 = vld [vmem:[#allocation82_spill] sm:$0xff] }
 0x551   : > { %2818 = vrot.lane.b32.xlu2 %v8501_v29, %s6313_s21  ;;  %v2156_v56 = vadd.f32 %v2140_v57, %v2084_v53  ;;  %v2055_v13 = vadd.f32 %v2047_v21, %v2025_v5  ;;  %v2174_v40 = vperm.slane %v2172_v51, 0  ;;  %v2057_v16 = vadd.f32 %v2049_v60, %v2027_v19  ;;  %v11526_v57 = vld [vmem:[#allocation68_spill] sm:$0xff] }
 0x552   : > { %2816 = vrot.lane.b32.xlu1 %v8632_v47, %s6313_s21  ;;  %v2083_v43 = vadd.f32 %v2075_v55, %v2053_v15  ;;  %v2059_v31 = vadd.f32 %v2051_v35, %v2029_v25  ;;  %v2081_v58 = vmul.f32 %v2073_v7, %v11495_v12  ;;  %vm11512_vm4 = vcmask 15360   ;;  %v11519_v12 = vld [vmem:[#allocation66_spill] sm:$0xff]  ;;  %v11528_v35 = vld [vmem:[#allocation88_spill] sm:$0xff] }
 0x553   : > { %v8642_v10 = vpop.permute.xlu2 %2564  ;;  %v2228_v41 = vsel %vm11512_vm4, %v11511_v8, %v11510_v59  ;;  %v2158_v44 = vadd.f32 %v2142_v28, %v2086_v24  ;;  %v2139_v53 = vsel %vm11515_vm10, %v8243_v22, %v11514_v45  ;;  %v2085_v32 = vadd.f32 %v2077_v17, %v2055_v13  ;;  %v11523_v24 = vld [vmem:[#allocation75_spill] sm:$0xff]  ;;  %v11534_v8 = vld [vmem:[#allocation74_spill] sm:$0xff] }
 0x554   : > { %v8648_v61 = vpop.permute.xlu1 %2472  ;;  %v8650_v1 = vpop.permute.xlu0 %2536  ;;  %v2204_v49 = vperm.slane %v2202_v18, 0  ;;  %v2144_v50 = vsel %vm11518_vm11, %v11517_v48, %v11516_v33  ;;  %v2141_v7 = vsel %vm11520_vm15, %v11503_v62, %v11519_v12  ;;  %v2087_v54 = vadd.f32 %v2079_v2, %v2057_v16  ;;  %v11529_v62 = vld [vmem:[#allocation78_spill] sm:$0xff]  ;;  %v8678_v2 = vld [vmem:[#allocation3 + $0x70] sm:$0xff]  ;;  %v11535_v45 = vld [vmem:[#allocation87_spill] sm:$0xff] }
 0x555   : > { %11513 = vst [vmem:[#allocation145_spill] sm:$0xff] %v8648_v61  ;;  %vm11522_vm4 = vcmask 121856   ;;  %v2176_v60 = vmul.f32 %v2174_v40, %v11523_v24  ;;  %v2178_v11 = vmul.f32 %v2174_v40, %v11524_v46  ;;  %v2232_v22 = vsel %vm387_vm6, %v2228_v41, 0.0  ;;  %v11532_v18 = vld [vmem:[#allocation76_spill] sm:$0xff]  ;;  %vm11537_vm15 = vmmov %vm11518_vm11  ;;  %v11552_v47 = vld [vmem:[#allocation90_spill] sm:$0xff] }
 0x556   : > { %v2169_v21 = vsel %vm11522_vm4, %v8299_v9, %v11521_v3  ;;  %vm11527_vm10 = vcmask 7168   ;;  %v2155_v51 = vadd.f32 %v2139_v53, %v2083_v43  ;;  %v2180_v5 = vmul.f32 %v2174_v40, %v11528_v35  ;;  %v11530_v9 = vld [vmem:[#allocation91_spill] sm:$0xff]  ;;  %11531 = vst [vmem:[#allocation146_spill] sm:$0xff] %v8678_v2  ;;  %v11533_v16 = vld [vmem:[#allocation84_spill] sm:$0xff] }
 0x557   : > { %v2258_v55 = vsel %vm11527_vm10, %v11526_v57, %v11525_v42  ;;  %v2182_v17 = vmul.f32 %v2174_v40, %v11529_v62  ;;  %v2089_v19 = vadd.f32 %v2081_v58, %v2059_v31  ;;  %v2160_v25 = vadd.f32 %v2144_v50, %v2088_v37  ;;  %v11541_v57 = vld [vmem:[#allocation80_spill] sm:$0xff] }
 0x558   : > { %v2157_v34 = vadd.f32 %v2141_v7, %v2085_v32  ;;  %v2206_v28 = vmul.f32 %v2204_v49, %v11530_v9  ;;  %v2173_v15 = vsel %vm392_vm12, %v2169_v21, 0.0  ;;  %v2143_v13 = vsel %vm11518_vm11, %v11507_v23, %v11532_v18  ;;  %v11536_v23 = vld [vmem:[#allocation79_spill] sm:$0xff] }
 0x559   : > { %2880 = vrot.lane.b32.xlu2 %v8501_v29, %s6313_s21  ;;  %v2208_v43 = vmul.f32 %v2204_v49, %v11533_v16  ;;  %v2234_v40 = vperm.slane %v2232_v22, 0  ;;  %v2262_v37 = vsel %vm389_vm8, %v2258_v55, 0.0  ;;  %v2184_v31 = vadd.f32 %v2176_v60, %v2154_v63  ;;  %v11539_v60 = vld [vmem:[#allocation96_spill] sm:$0xff]  ;;  %v11542_v55 = vld [vmem:[#allocation99_spill] sm:$0xff] }
 0x55a   : > { %2822 = vrot.lane.b32.xlu1 %v8678_v2, %s6313_s21  ;;  %v2186_v58 = vadd.f32 %v2178_v11, %v2156_v56  ;;  %v2210_v41 = vmul.f32 %v2204_v49, %v11534_v8  ;;  %v2212_v53 = vmul.f32 %v2204_v49, %v11535_v45  ;;  %v2188_v48 = vadd.f32 %v2180_v5, %v2158_v44  ;;  %v11546_v2 = vld [vmem:[#allocation92_spill] sm:$0xff] }
 0x55b   : > { %v8690_v32 = vpop.permute.xlu2 %2594  ;;  %v2190_v50 = vadd.f32 %v2182_v17, %v2160_v25  ;;  %v2145_v12 = vsel %vm11537_vm15, %v11516_v33, %v11536_v23  ;;  %v2175_v7 = vperm.slane %v2173_v15, 0  ;;  %v2159_v22 = vadd.f32 %v2143_v13, %v2087_v54  ;;  %v11543_v17 = vld [vmem:[#allocation77_spill] sm:$0xff] }
 0x55c   : > { %v8695_v3 = vpop.permute.xlu1 %2478  ;;  %v8697_v21 = vpop.permute.xlu0 %2566  ;;  %v2214_v63 = vadd.f32 %v2206_v28, %v2184_v31  ;;  %v2264_v56 = vperm.slane %v2262_v37, 0  ;;  %vm11540_vm4 = vcmask 113664   ;;  %v2216_v11 = vadd.f32 %v2208_v43, %v2186_v58  ;;  %v11544_v25 = vld [vmem:[#allocation69_spill] sm:$0xff]  ;;  %v11547_v28 = vld [vmem:[#allocation83_spill] sm:$0xff] }
 0x55d   : > { %11538 = vst [vmem:[#allocation140_spill] sm:$0xff] %v8695_v3  ;;  %v2199_v49 = vsel %vm11540_vm4, %v11500_v27, %v11539_v60  ;;  %v2236_v44 = vmul.f32 %v2234_v40, %v11541_v57  ;;  %v2238_v5 = vmul.f32 %v2234_v40, %v11542_v55  ;;  %vm11545_vm10 = vcmask 1039360   ;;  %v11548_v60 = vld [vmem:[#allocation97_spill] sm:$0xff] }
 0x55e   : > { %v2315_v33 = vsel %vm11545_vm10, %v11544_v25, %v11543_v17  ;;  %v2218_v15 = vadd.f32 %v2210_v41, %v2188_v48  ;;  %v2220_v18 = vadd.f32 %v2212_v53, %v2190_v50  ;;  %v2161_v23 = vadd.f32 %v2145_v12, %v2089_v19  ;;  %v11551_v12 = vld [vmem:[#allocation100_spill] sm:$0xff] }
 0x55f   : > { %v2240_v54 = vmul.f32 %v2234_v40, %v11546_v2  ;;  %v2242_v13 = vmul.f32 %v2234_v40, %v11547_v28  ;;  %v2177_v37 = vmul.f32 %v2175_v7, %v11523_v24  ;;  %v2179_v27 = vmul.f32 %v2175_v7, %v11524_v46  ;;  %v11549_v24 = vld [vmem:[#allocation89_spill] sm:$0xff] }
 0x560   : > { %v2203_v43 = vsel %vm394_vm0, %v2199_v49, 0.0  ;;  %v2181_v31 = vmul.f32 %v2175_v7, %v11528_v35  ;;  %v2183_v58 = vmul.f32 %v2175_v7, %v11529_v62  ;;  %v2266_v25 = vmul.f32 %v2264_v56, %v11548_v60  ;;  %v11550_v46 = vld [vmem:[#allocation105_spill] sm:$0xff] }
 0x561   : > { %v2319_v19 = vsel %vm391_vm13, %v2315_v33, 0.0  ;;  %2886 = vrot.lane.b32.xlu2 %v8501_v29, %s6313_s21  ;;  %v2244_v40 = vadd.f32 %v2236_v44, %v2214_v63  ;;  %v2246_v41 = vadd.f32 %v2238_v5, %v2216_v11  ;;  %v2268_v53 = vmul.f32 %v2264_v56, %v11549_v24 }
 0x562   : > { %v2270_v48 = vmul.f32 %v2264_v56, %v11550_v46  ;;  %v2248_v50 = vadd.f32 %v2240_v54, %v2218_v15  ;;  %v2272_v49 = vmul.f32 %v2264_v56, %v11551_v12  ;;  %v2205_v35 = vperm.slane %v2203_v43, 0  ;;  %v11556_v54 = vld [vmem:[#allocation184_spill] sm:$0xff] }
 0x563   : > { %vm11553_vm11 = vcmask 15360   ;;  %v8726_v7 = vpop.permute.xlu2 %2648  ;;  %v2250_v33 = vadd.f32 %v2242_v13, %v2220_v18  ;;  %v2185_v3 = vadd.f32 %v2177_v37, %v2155_v51  ;;  %v2187_v61 = vadd.f32 %v2179_v27, %v2157_v34  ;;  %v11557_v56 = vld [vmem:[#allocation72_spill] sm:$0xff]  ;;  %v11561_v37 = vld [vmem:[#allocation101_spill] sm:$0xff] }
 0x564   : > { %v2229_v62 = vsel %vm11553_vm11, %v11510_v59, %v11552_v47  ;;  %11554 = vst [vmem:[#allocation148_spill] sm:$0xff] %v8726_v7  ;;  %v2321_v20 = vperm.slane %v2319_v19, 0  ;;  %v8728_v63 = vpop.permute.xlu1 %2508  ;;  %v8730_v11 = vpop.permute.xlu0 %2596  ;;  %v2189_v44 = vadd.f32 %v2181_v31, %v2159_v22  ;;  %v2191_v5 = vadd.f32 %v2183_v58, %v2161_v23  ;;  %v11559_v59 = vld [vmem:[#allocation86_spill] sm:$0xff]  ;;  %v11562_v31 = vld [vmem:[#allocation111_spill] sm:$0xff]  ;;  %v11563_v19 = vld [vmem:[#allocation113_spill] sm:$0xff] }
 0x565   : > { %11555 = vst [vmem:[#allocation149_spill] sm:$0xff] %v8728_v63  ;;  %v2274_v15 = vadd.f32 %v2266_v25, %v2244_v40  ;;  %vm11558_vm15 = vcmask 1031168   ;;  %v2276_v0 = vadd.f32 %v2268_v53, %v2246_v41  ;;  %v2278_v14 = vadd.f32 %v2270_v48, %v2248_v50  ;;  %v11565_v53 = vld [vmem:[#allocation70_spill] sm:$0xff]  ;;  %v11568_v48 = vld [vmem:[#allocation123_spill] sm:$0xff] }
 0x566   : > { %v2345_v43 = vsel %vm11558_vm15, %v11557_v56, %v11556_v54  ;;  %v2233_v47 = vsel %vm388_vm7, %v2229_v62, 0.0  ;;  %vm11560_vm4 = vcmask 7168   ;;  %v2280_v34 = vadd.f32 %v2272_v49, %v2250_v33  ;;  %v11569_v49 = vld [vmem:[#allocation151_spill] sm:$0xff]  ;;  %v11570_v62 = vld [vmem:[#allocation120_spill] sm:$0xff] }
 0x567   : > { %v2259_v51 = vsel %vm11560_vm4, %v11525_v42, %v11559_v59  ;;  %v2207_v18 = vmul.f32 %v2205_v35, %v11530_v9  ;;  %v2209_v22 = vmul.f32 %v2205_v35, %v11533_v16  ;;  %v2211_v23 = vmul.f32 %v2205_v35, %v11534_v8  ;;  %v11564_v9 = vld [vmem:[#allocation94_spill] sm:$0xff]  ;;  %v11567_v8 = vld [vmem:[#allocation103_spill] sm:$0xff] }
 0x568   : > { %v2213_v13 = vmul.f32 %v2205_v35, %v11535_v45  ;;  %v2323_v27 = vmul.f32 %v2321_v20, %v11561_v37  ;;  %v2325_v58 = vmul.f32 %v2321_v20, %v11562_v31  ;;  %v2349_v25 = vsel %vm393_vm14, %v2345_v43, 0.0  ;;  %v11571_v59 = vld [vmem:[#allocation115_spill] sm:$0xff] }
 0x569   : > { %v2327_v40 = vmul.f32 %v2321_v20, %v11563_v19  ;;  %v2235_v41 = vperm.slane %v2233_v47, 0  ;;  %v2263_v42 = vsel %vm390_vm9, %v2259_v51, 0.0  ;;  %vm11566_vm10 = vcmask 932864   ;;  %2892 = vrot.lane.b32.xlu2 %v8501_v29, %s6313_s21 }
 0x56a   : > { %v2375_v16 = vsel %vm11566_vm10, %v11565_v53, %v11564_v9  ;;  %v2329_v45 = vmul.f32 %v2321_v20, %v11567_v8  ;;  %v2296_v50 = vadd.f32 %v11568_v48, %v2274_v15  ;;  %v2298_v35 = vadd.f32 %v11569_v49, %v2276_v0  ;;  %v11579_v48 = vld [vmem:[#allocation118_spill] sm:$0xff] }
 0x56b   : > { %v2300_v33 = vadd.f32 %v11570_v62, %v2278_v14  ;;  %v2215_v56 = vadd.f32 %v2207_v18, %v2185_v3  ;;  %v2217_v43 = vadd.f32 %v2209_v22, %v2187_v61  ;;  %v2351_v47 = vperm.slane %v2349_v25, 0  ;;  %v8761_v7 = vpop.permute.xlu2 %2654  ;;  %v11572_v22 = vld [vmem:[#allocation107_spill] sm:$0xff]  ;;  %v11574_v25 = vld [vmem:[#allocation110_spill] sm:$0xff] }
 0x56c   : > { %v2302_v51 = vadd.f32 %v11571_v59, %v2280_v34  ;;  %v2219_v63 = vadd.f32 %v2211_v23, %v2189_v44  ;;  %v2221_v53 = vadd.f32 %v2213_v13, %v2191_v5  ;;  %v2265_v6 = vperm.slane %v2263_v42, 0  ;;  %v8765_v20 = vpop.permute.xlu1 %2538  ;;  %v8767_v15 = vpop.permute.xlu0 %2650  ;;  %v11575_v42 = vld [vmem:[#allocation102_spill] sm:$0xff] }
 0x56d   : > { %v2379_v26 = vsel %vm387_vm6, %v2375_v16, 0.0  ;;  %v2237_v0 = vmul.f32 %v2235_v41, %v11541_v57  ;;  %v2331_v14 = vadd.f32 %v2323_v27, %v2296_v50  ;;  %v2333_v3 = vadd.f32 %v2325_v58, %v2298_v35  ;;  %v11577_v57 = vld [vmem:[#allocation119_spill] sm:$0xff]  ;;  %v11580_v50 = vld [vmem:[#allocation121_spill] sm:$0xff] }
 0x56e   : > { %v2335_v61 = vadd.f32 %v2327_v40, %v2300_v33  ;;  %v2239_v18 = vmul.f32 %v2235_v41, %v11542_v55  ;;  %v2241_v34 = vmul.f32 %v2235_v41, %v11546_v2  ;;  %vm11573_vm11 = vcmask 1039360   ;;  %v11578_v40 = vld [vmem:[#allocation109_spill] sm:$0xff] }
 0x56f   : > { %v2316_v44 = vsel %vm11573_vm11, %v11543_v17, %v11572_v22  ;;  %v2337_v5 = vadd.f32 %v2329_v45, %v2302_v51  ;;  %v2243_v23 = vmul.f32 %v2235_v41, %v11547_v28  ;;  %v2381_v13 = vperm.slane %v2379_v26, 0 }
 0x570   : > { %vm11576_vm15 = vcmask 924672   ;;  %v2353_v27 = vmul.f32 %v2351_v47, %v11577_v57  ;;  %v2267_v58 = vmul.f32 %v2265_v6, %v11548_v60  ;;  %v2355_v55 = vmul.f32 %v2351_v47, %v11578_v40 }
 0x571   : > { %v2405_v16 = vsel %vm11576_vm15, %v11575_v42, %v11574_v25  ;;  %v2357_v2 = vmul.f32 %v2351_v47, %v11579_v48  ;;  %v2359_v49 = vmul.f32 %v2351_v47, %v11580_v50  ;;  %v2245_v35 = vadd.f32 %v2237_v0, %v2215_v56  ;;  %2898 = vrot.lane.b32.xlu2 %v8501_v29, %s6313_s21  ;;  %v11581_v56 = vld [vmem:[#allocation122_spill] sm:$0xff]  ;;  %v11586_v42 = vld [vmem:[#allocation117_spill] sm:$0xff] }
 0x572   : > { %v2269_v17 = vmul.f32 %v2265_v6, %v11549_v24  ;;  %v2271_v28 = vmul.f32 %v2265_v6, %v11550_v46  ;;  %v2320_v26 = vsel %vm392_vm12, %v2316_v44, 0.0  ;;  %v2247_v41 = vadd.f32 %v2239_v18, %v2217_v43  ;;  %v11582_v24 = vld [vmem:[#allocation126_spill] sm:$0xff] }
 0x573   : > { %v2249_v45 = vadd.f32 %v2241_v34, %v2219_v63  ;;  %v2273_v60 = vmul.f32 %v2265_v6, %v11551_v12  ;;  %v2409_v62 = vsel %vm389_vm8, %v2405_v16, 0.0  ;;  %v2251_v33 = vadd.f32 %v2243_v23, %v2221_v53  ;;  %v8795_v46 = vpop.permute.xlu2 %2660  ;;  %v11584_v44 = vld [vmem:[#allocation106_spill] sm:$0xff] }
 0x574   : > { %v2361_v47 = vadd.f32 %v2353_v27, %v2331_v14  ;;  %v2383_v59 = vmul.f32 %v2381_v13, %v11581_v56  ;;  %v2385_v51 = vmul.f32 %v2381_v13, %v11582_v24  ;;  %11583 = vst [vmem:[#allocation143_spill] sm:$0xff] %v8795_v46  ;;  %v2275_v0 = vadd.f32 %v2267_v58, %v2245_v35  ;;  %v8800_v18 = vpop.permute.xlu1 %2568  ;;  %v8802_v6 = vpop.permute.xlu0 %2656  ;;  %v11587_v46 = vld [vmem:[#allocation129_spill] sm:$0xff] }
 0x575   : > { %v2322_v22 = vperm.slane %v2320_v26, 0  ;;  %vm11585_vm4 = vcmask 1031168   ;;  %v2363_v63 = vadd.f32 %v2355_v55, %v2333_v3  ;;  %v2277_v12 = vadd.f32 %v2269_v17, %v2247_v41 }
 0x576   : > { %v2346_v43 = vsel %vm11585_vm4, %v11556_v54, %v11584_v44  ;;  %v2279_v53 = vadd.f32 %v2271_v28, %v2249_v45  ;;  %v2411_v14 = vperm.slane %v2409_v62, 0  ;;  %v2365_v34 = vadd.f32 %v2357_v2, %v2335_v61  ;;  %v11588_v54 = vld [vmem:[#allocation139_spill] sm:$0xff]  ;;  %v11589_v2 = vld [vmem:[#allocation112_spill] sm:$0xff]  ;;  %v11596_v44 = vld [vmem:[#allocation125_spill] sm:$0xff] }
 0x577   : > { %v2281_v23 = vadd.f32 %v2273_v60, %v2251_v33  ;;  %v2387_v16 = vmul.f32 %v2381_v13, %v11586_v42  ;;  %v2367_v27 = vadd.f32 %v2359_v49, %v2337_v5  ;;  %v2389_v58 = vmul.f32 %v2381_v13, %v11587_v46  ;;  %v11590_v13 = vld [vmem:[#allocation124_spill] sm:$0xff] }
 0x578   : > { %v2350_v35 = vsel %vm394_vm0, %v2346_v43, 0.0  ;;  %v2391_v26 = vadd.f32 %v2383_v59, %v2361_v47  ;;  %v2376_v3 = vsel %vm11566_vm10, %v11564_v9, %v11588_v54  ;;  %v2393_v55 = vadd.f32 %v2385_v51, %v2363_v63  ;;  %v11591_v45 = vld [vmem:[#allocation152_spill] sm:$0xff] }
 0x579   : > { %v2324_v17 = vmul.f32 %v2322_v22, %v11561_v37  ;;  %v2326_v28 = vmul.f32 %v2322_v22, %v11562_v31  ;;  %v2328_v61 = vmul.f32 %v2322_v22, %v11563_v19  ;;  %v2297_v41 = vadd.f32 %v11589_v2, %v2275_v0  ;;  %v11592_v62 = vld [vmem:[#allocation132_spill] sm:$0xff]  ;;  %2960 = vrot.lane.b32.xlu2 %v8501_v29, %s6314_s30  ;;  %v11594_v19 = vld [vmem:[#allocation133_spill] sm:$0xff] }
 0x57a   : > { %v2330_v5 = vmul.f32 %v2322_v22, %v11567_v8  ;;  %v2413_v49 = vmul.f32 %v2411_v14, %v11590_v13  ;;  %v2299_v60 = vadd.f32 %v11591_v45, %v2277_v12  ;;  %v2301_v33 = vadd.f32 %v11592_v62, %v2279_v53  ;;  %v11593_v31 = vld [vmem:[#allocation128_spill] sm:$0xff]  ;;  %v11595_v8 = vld [vmem:[#allocation127_spill] sm:$0xff] }
 0x57b   : > { %v2352_v9 = vperm.slane %v2350_v35, 0  ;;  %v2380_v37 = vsel %vm388_vm7, %v2376_v3, 0.0  ;;  %v2415_v47 = vmul.f32 %v2411_v14, %v11593_v31  ;;  %v2417_v59 = vmul.f32 %v2411_v14, %v11594_v19  ;;  %v8827_v63 = vpop.permute.xlu2 %2666 }
 0x57c   : > { %v2395_v51 = vadd.f32 %v2387_v16, %v2365_v34  ;;  %v2397_v0 = vadd.f32 %v2389_v58, %v2367_v27  ;;  %v2419_v22 = vmul.f32 %v2411_v14, %v11595_v8  ;;  %v2303_v43 = vadd.f32 %v11596_v44, %v2281_v23  ;;  %v8832_v3 = vpop.permute.xlu1 %2598  ;;  %v8837_v16 = vpop.permute.xlu0 %2662 }
 0x57d   : > { %v2332_v12 = vadd.f32 %v2324_v17, %v2297_v41  ;;  %v2334_v53 = vadd.f32 %v2326_v28, %v2299_v60  ;;  %vm11597_vm11 = vcmask 908288   ;;  %v2336_v54 = vadd.f32 %v2328_v61, %v2301_v33  ;;  %v11598_v17 = vld [vmem:[#allocation116_spill] sm:$0xff]  ;;  %v11599_v28 = vld [vmem:[#allocation98_spill] sm:$0xff] }
 0x57e   : > { %v2510_v35 = vsel %vm11597_vm11, %v8566_v4, %v8608_v30  ;;  %v2421_v2 = vadd.f32 %v2413_v49, %v2391_v26  ;;  %v2382_v45 = vperm.slane %v2380_v37, 0  ;;  %v2406_v34 = vsel %vm11576_vm15, %v11574_v25, %v8528_v52  ;;  %v11601_v41 = vld [vmem:[#allocation136_spill] sm:$0xff] }
 0x57f   : > { %v2338_v14 = vadd.f32 %v2330_v5, %v2303_v43  ;;  %v2423_v23 = vadd.f32 %v2415_v47, %v2393_v55  ;;  %v2425_v27 = vadd.f32 %v2417_v59, %v2395_v51  ;;  %v2354_v58 = vmul.f32 %v2352_v9, %v11577_v57  ;;  %v11602_v55 = vld [vmem:[#allocation114_spill] sm:$0xff] }
 0x580   : > { %v2540_v4 = vsel %vm1488_vm2, %v8604_v36, %v8650_v1  ;;  %vm11600_vm4 = vcmask 916480   ;;  %v2356_v61 = vmul.f32 %v2352_v9, %v11578_v40  ;;  %v2514_v52 = vsel %vm391_vm13, %v2510_v35, 0.0 }
 0x581   : > { %v2480_v26 = vsel %vm11600_vm4, %v11599_v28, %v11598_v17  ;;  %v2358_v25 = vmul.f32 %v2352_v9, %v11579_v48  ;;  %vm11603_vm10 = vmmov %vm11600_vm4  ;;  %v2410_v57 = vsel %vm390_vm9, %v2406_v34, 0.0  ;;  %v2427_v49 = vadd.f32 %v2419_v22, %v2397_v0  ;;  %2966 = vrot.lane.b32.xlu2 %v8501_v29, %s6314_s30  ;;  %v11609_v34 = vld [vmem:[#allocation142_spill] sm:$0xff] }
 0x582   : > { %v2482_v5 = vsel %vm11603_vm10, %v11602_v55, %v11601_v41  ;;  %v2360_v36 = vmul.f32 %v2352_v9, %v11580_v50  ;;  %v2384_v60 = vmul.f32 %v2382_v45, %v11581_v56  ;;  %v2386_v62 = vmul.f32 %v2382_v45, %v11582_v24  ;;  %vm11611_vm10 = vmmov %vm11600_vm4 }
 0x583   : > { %v2388_v40 = vmul.f32 %v2382_v45, %v11586_v42  ;;  %v2544_v33 = vsel %vm393_vm14, %v2540_v4, 0.0  ;;  %v2496_v48 = vadd.f32 %v2480_v26, %v2421_v2  ;;  %v2362_v37 = vadd.f32 %v2354_v58, %v2332_v12  ;;  %v2697_v51 = vpop.permute.xlu2 %2696  ;;  %v11612_v58 = vld [vmem:[#allocation155_spill] sm:$0xff]  ;;  %v11613_v4 = vld [vmem:[#allocation154_spill] sm:$0xff] }
 0x584   : > { %v2516_v47 = vperm.slane %v2514_v52, 0  ;;  %vm11604_vm11 = vcmask 801792   ;;  %v2412_v50 = vperm.slane %v2410_v57, 0  ;;  %v2364_v9 = vadd.f32 %v2356_v61, %v2334_v53  ;;  %v8870_v43 = vpop.permute.xlu1 %2652  ;;  %v8874_v53 = vpop.permute.xlu0 %2668  ;;  %v11614_v61 = vld [vmem:[#allocation147_spill] sm:$0xff] }
 0x585   : > { %v2570_v59 = vsel %vm11604_vm11, %v8642_v10, %v8697_v21  ;;  %v2366_v56 = vadd.f32 %v2358_v25, %v2336_v54  ;;  %v2390_v24 = vmul.f32 %v2382_v45, %v11587_v46  ;;  %v2498_v42 = vadd.f32 %v2482_v5, %v2423_v23  ;;  %11606 = vst [vmem:[#allocation160_spill] sm:$0xff] %v8870_v43  ;;  %v11607_v54 = vld [vmem:[#allocation150_spill] sm:$0xff]  ;;  %v11608_v46 = vld [vmem:[#allocation144_spill] sm:$0xff]  ;;  %v11615_v5 = vld [vmem:[#allocation157_spill] sm:$0xff] }
 0x586   : > { %v2546_v0 = vperm.slane %v2544_v33, 0  ;;  %v2368_v22 = vadd.f32 %v2360_v36, %v2338_v14  ;;  %vm11605_vm15 = vcmask 793600   ;;  %v2392_v12 = vadd.f32 %v2384_v60, %v2362_v37  ;;  %v11610_v14 = vld [vmem:[#allocation158_spill] sm:$0xff]  ;;  %v11616_v60 = vld [vmem:[#allocation153_spill] sm:$0xff] }
 0x587   : > { %v2600_v44 = vsel %vm11605_vm15, %v8690_v32, %v8730_v11  ;;  %v2394_v35 = vadd.f32 %v2386_v62, %v2364_v9  ;;  %v2396_v2 = vadd.f32 %v2388_v40, %v2366_v56  ;;  %v2574_v10 = vsel %vm387_vm6, %v2570_v59, 0.0  ;;  %v11617_v40 = vld [vmem:[#allocation163_spill] sm:$0xff]  ;;  %v11618_v56 = vld [vmem:[#allocation162_spill] sm:$0xff]  ;;  %vm11633_vm15 = vmmov %vm11600_vm4 }
 0x588   : > { %v2484_v45 = vsel %vm11600_vm4, %v11608_v46, %v11607_v54  ;;  %v2486_v23 = vsel %vm11611_vm10, %v11610_v14, %v11609_v34  ;;  %v2518_v32 = vmul.f32 %v2516_v47, %v11612_v58  ;;  %v2520_v28 = vmul.f32 %v2516_v47, %v11613_v4 }
 0x589   : > { %v2414_v26 = vmul.f32 %v2412_v50, %v11590_v13  ;;  %v2522_v52 = vmul.f32 %v2516_v47, %v11614_v61  ;;  %v2398_v25 = vadd.f32 %v2390_v24, %v2368_v22  ;;  %v2604_v55 = vsel %vm389_vm8, %v2600_v44, 0.0  ;;  %2972 = vrot.lane.b32.xlu2 %v8501_v29, %s6314_s30  ;;  %v11619_v44 = vld [vmem:[#allocation156_spill] sm:$0xff] }
 0x58a   : > { %v2524_v57 = vmul.f32 %v2516_v47, %v11615_v5  ;;  %v2576_v36 = vperm.slane %v2574_v10, 0  ;;  %v2548_v62 = vmul.f32 %v2546_v0, %v11616_v60  ;;  %v2550_v33 = vmul.f32 %v2546_v0, %v11617_v40  ;;  %v11622_v5 = vld [vmem:[#allocation161_spill] sm:$0xff] }
 0x58b   : > { %v2500_v37 = vadd.f32 %v2484_v45, %v2425_v27  ;;  %v2502_v59 = vadd.f32 %v2486_v23, %v2427_v49  ;;  %v2416_v9 = vmul.f32 %v2412_v50, %v11593_v31  ;;  %v2552_v46 = vmul.f32 %v2546_v0, %v11618_v56  ;;  %v2727_v27 = vpop.permute.xlu2 %2726  ;;  %v11620_v45 = vld [vmem:[#allocation167_spill] sm:$0xff] }
 0x58c   : > { %v2606_v13 = vperm.slane %v2604_v55, 0  ;;  %v2526_v24 = vadd.f32 %v2518_v32, %v2496_v48  ;;  %v2528_v22 = vadd.f32 %v2520_v28, %v2498_v42  ;;  %v2554_v14 = vmul.f32 %v2546_v0, %v11619_v44  ;;  %v8899_v60 = vpop.permute.xlu1 %2658  ;;  %v11623_v42 = vld [vmem:[#allocation169_spill] sm:$0xff]  ;;  %v11624_v0 = vld [vmem:[#allocation170_spill] sm:$0xff]  ;;  %v8904_v28 = vpop.permute.xlu0 %2698 }
 0x58d   : > { %v2422_v47 = vadd.f32 %v2414_v26, %v2392_v12  ;;  %v2418_v10 = vmul.f32 %v2412_v50, %v11594_v19  ;;  %v2420_v43 = vmul.f32 %v2412_v50, %v11595_v8  ;;  %v2530_v40 = vadd.f32 %v2522_v52, %v2500_v37  ;;  %11621 = vst [vmem:[#allocation166_spill] sm:$0xff] %v8899_v60  ;;  %v11625_v19 = vld [vmem:[#allocation149_spill] sm:$0xff]  ;;  %v11627_v50 = vld [vmem:[#allocation172_spill] sm:$0xff]  ;;  %v11630_v37 = vld [vmem:[#allocation171_spill] sm:$0xff] }
 0x58e   : > { %v2556_v49 = vadd.f32 %v2548_v62, %v2526_v24  ;;  %v2578_v31 = vmul.f32 %v2576_v36, %v11620_v45  ;;  %v2558_v23 = vadd.f32 %v2550_v33, %v2528_v22  ;;  %v2532_v56 = vadd.f32 %v2524_v57, %v2502_v59  ;;  %v11629_v62 = vld [vmem:[#allocation176_spill] sm:$0xff]  ;;  %v11631_v59 = vld [vmem:[#allocation177_spill] sm:$0xff] }
 0x58f   : > { %v2580_v55 = vmul.f32 %v2576_v36, %v11622_v5  ;;  %v2560_v48 = vadd.f32 %v2552_v46, %v2530_v40  ;;  %v2582_v32 = vmul.f32 %v2576_v36, %v11623_v42  ;;  %v2584_v12 = vmul.f32 %v2576_v36, %v11624_v0 }
 0x590   : > { %vm11626_vm6 = vcmask 908288   ;;  %v2608_v26 = vmul.f32 %v2606_v13, %v11627_v50  ;;  %v2562_v52 = vadd.f32 %v2554_v14, %v2532_v56  ;;  %vm11628_vm11 = vcmask 777216  }
 0x591   : > { %v2511_v8 = vsel %vm11626_vm6, %v8608_v30, %v11625_v19  ;;  %v2702_v57 = vsel %vm11628_vm11, %v2697_v51, %v8904_v28  ;;  %v2610_v33 = vmul.f32 %v2606_v13, %v11629_v62  ;;  %v2612_v40 = vmul.f32 %v2606_v13, %v11630_v37  ;;  %2978 = vrot.lane.b32.xlu2 %v8501_v29, %s6314_s30  ;;  %v11632_v51 = vld [vmem:[#allocation137_spill] sm:$0xff]  ;;  %vm11650_vm6 = vmmov %vm11600_vm4 }
 0x592   : > { %v2614_v46 = vmul.f32 %v2606_v13, %v11631_v59  ;;  %v2706_v36 = vsel %vm391_vm13, %v2702_v57, 0.0  ;;  %v2424_v24 = vadd.f32 %v2416_v9, %v2394_v35  ;;  %v8917_v22 = vadd.f32 %v2418_v10, %v2396_v2  ;;  %v11634_v59 = vld [vmem:[#allocation141_spill] sm:$0xff] }
 0x593   : > { %v8919_v60 = vadd.f32 %v2420_v43, %v2398_v25  ;;  %v2586_v30 = vadd.f32 %v2578_v31, %v2556_v49  ;;  %v2588_v19 = vadd.f32 %v2580_v55, %v2558_v23  ;;  %v2590_v56 = vadd.f32 %v2582_v32, %v2560_v48  ;;  %v11635_v25 = vld [vmem:[#allocation148_spill] sm:$0xff]  ;;  %v2801_v23 = vpop.permute.xlu2 %2800  ;;  %v11636_v55 = vld [vmem:[#allocation143_spill] sm:$0xff] }
 0x594   : > { %v2592_v14 = vadd.f32 %v2584_v12, %v2562_v52  ;;  %v2708_v0 = vperm.slane %v2706_v36, 0  ;;  %v2481_v13 = vsel %vm11633_vm15, %v11598_v17, %v11632_v51  ;;  %v2483_v35 = vsel %vm11600_vm4, %v11601_v41, %v11634_v59  ;;  %v8946_v12 = vpop.permute.xlu1 %2664  ;;  %v11638_v52 = vld [vmem:[#allocation38_spill] sm:$0xff]  ;;  %v8952_v59 = vpop.permute.xlu0 %2728 }
 0x595   : > { %v2515_v43 = vsel %vm392_vm12, %v2511_v8, 0.0  ;;  %v2616_v2 = vadd.f32 %v2608_v26, %v2586_v30  ;;  %v2672_v9 = vsel %vm1687_vm1, %v11635_v25, %v8767_v15  ;;  %v2618_v10 = vadd.f32 %v2610_v33, %v2588_v19  ;;  %v11637_v8 = vld [vmem:[#allocation39_spill] sm:$0xff]  ;;  %v11639_v33 = vld [vmem:[#allocation44_spill] sm:$0xff] }
 0x596   : > { %v2620_v49 = vadd.f32 %v2612_v40, %v2590_v56  ;;  %v2622_v31 = vadd.f32 %v2614_v46, %v2592_v14  ;;  %v2541_v17 = vsel %vm1488_vm2, %v8650_v1, %v8765_v20  ;;  %v2674_v41 = vsel %vm1687_vm1, %v8761_v7, %v8802_v6  ;;  %v11640_v20 = vld [vmem:[#allocation181_spill] sm:$0xff] }
 0x597   : > { %v2676_v48 = vsel %vm1687_vm1, %v11636_v55, %v8837_v16  ;;  %v2678_v32 = vsel %vm1687_vm1, %v8827_v63, %v8874_v53  ;;  %v2710_v26 = vmul.f32 %v2708_v0, %v11637_v8  ;;  %v2712_v57 = vmul.f32 %v2708_v0, %v11638_v52  ;;  %v11646_v55 = vld [vmem:[#allocation145_spill] sm:$0xff] }
 0x598   : > { %v2714_v1 = vmul.f32 %v2708_v0, %v11639_v33  ;;  %v2716_v40 = vmul.f32 %v2708_v0, %v11640_v20  ;;  %v2497_v7 = vadd.f32 %v2481_v13, %v2422_v47  ;;  %v2499_v46 = vadd.f32 %v2483_v35, %v2424_v24 }
 0x599   : > { %v2688_v36 = vadd.f32 %v2672_v9, %v2616_v2  ;;  %v2732_v30 = vsel %vm1765_vm3, %v2727_v27, %v8952_v59  ;;  %v2690_v19 = vadd.f32 %v2674_v41, %v2618_v10  ;;  %v2692_v63 = vadd.f32 %v2676_v48, %v2620_v49  ;;  %3032 = vrot.lane.b32.xlu2 %v8501_v29, %s6314_s30  ;;  %v11642_v27 = vld [vmem:[#allocation37_spill] sm:$0xff]  ;;  %v11645_v41 = vld [vmem:[#allocation46_spill] sm:$0xff] }
 0x59a   : > { %v2694_v56 = vadd.f32 %v2678_v32, %v2622_v31  ;;  %v2736_v14 = vsel %vm393_vm14, %v2732_v30, 0.0  ;;  %v2517_v51 = vperm.slane %v2515_v43, 0  ;;  %v2545_v25 = vsel %vm394_vm0, %v2541_v17, 0.0  ;;  %v11643_v10 = vld [vmem:[#allocation53_spill] sm:$0xff]  ;;  %v11644_v43 = vld [vmem:[#allocation180_spill] sm:$0xff]  ;;  %vm11647_vm14 = vmmov %vm11600_vm4 }
 0x59b   : > { %vm11641_vm2 = vcmask 801792   ;;  %v2738_v47 = vperm.slane %v2736_v14, 0  ;;  %v2718_v24 = vadd.f32 %v2710_v26, %v2688_v36  ;;  %v2720_v13 = vadd.f32 %v2712_v57, %v2690_v19  ;;  %v2807_v26 = vpop.permute.xlu2 %2806  ;;  %v11649_v19 = vld [vmem:[#allocation140_spill] sm:$0xff] }
 0x59c   : > { %v2571_v0 = vsel %vm11641_vm2, %v8697_v21, %v8800_v18  ;;  %v2722_v35 = vadd.f32 %v2714_v1, %v2692_v63  ;;  %v2724_v2 = vadd.f32 %v2716_v40, %v2694_v56  ;;  %v2485_v21 = vsel %vm11647_vm14, %v11607_v54, %v11646_v55  ;;  %v8977_v30 = vpop.permute.xlu1 %2670 }
 0x59d   : > { %v2740_v9 = vmul.f32 %v2738_v47, %v11642_v27  ;;  %v2742_v49 = vmul.f32 %v2738_v47, %v11643_v10  ;;  %v2744_v31 = vmul.f32 %v2738_v47, %v11644_v43  ;;  %v2746_v17 = vmul.f32 %v2738_v47, %v11645_v41 }
 0x59e   : > { %v2547_v18 = vperm.slane %v2545_v25, 0  ;;  %v2575_v48 = vsel %vm388_vm7, %v2571_v0, 0.0  ;;  %vm11648_vm10 = vcmask 793600   ;;  %v2487_v63 = vsel %vm11650_vm6, %v11609_v34, %v11649_v19  ;;  %v8985_v25 = vpop.permute.xlu0 %2802 }
 0x59f   : > { %v2601_v32 = vsel %vm11648_vm10, %v8730_v11, %v8832_v3  ;;  %v2748_v57 = vadd.f32 %v2740_v9, %v2718_v24  ;;  %v2750_v1 = vadd.f32 %v2742_v49, %v2720_v13  ;;  %v2752_v40 = vadd.f32 %v2744_v31, %v2722_v35  ;;  %v11651_v24 = vld [vmem:[#allocation157_spill] sm:$0xff]  ;;  %v11654_v9 = vld [vmem:[#allocation163_spill] sm:$0xff] }
 0x5a0   : > { %v2754_v36 = vadd.f32 %v2746_v17, %v2724_v2  ;;  %v2519_v54 = vmul.f32 %v2517_v51, %v11612_v58  ;;  %v2521_v56 = vmul.f32 %v2517_v51, %v11613_v4  ;;  %v2523_v14 = vmul.f32 %v2517_v51, %v11614_v61  ;;  %v11653_v61 = vld [vmem:[#allocation153_spill] sm:$0xff]  ;;  %v11655_v17 = vld [vmem:[#allocation162_spill] sm:$0xff] }
 0x5a1   : > { %v2605_v11 = vsel %vm390_vm9, %v2601_v32, 0.0  ;;  %v8989_v3 = vmax.f32 %v2748_v57, 0.0  ;;  %v8991_v0 = vmax.f32 %v2750_v1, 0.0  ;;  %v8993_v47 = vmax.f32 %v2752_v40, 0.0  ;;  %3038 = vrot.lane.b32.xlu2 %v8501_v29, %s6314_s30 }
 0x5a2   : > { %v2525_v13 = vmul.f32 %v2517_v51, %v11651_v24  ;;  %v2577_v34 = vperm.slane %v2575_v48, 0  ;;  %v8996_v35 = vmax.f32 %v2754_v36, 0.0  ;;  %vm11652_vm7 = vcmask 138240  }
 0x5a3   : > { %v2824_v58 = vsel %vm11652_vm7, %v2801_v23, %v8985_v25  ;;  %v2501_v4 = vadd.f32 %v2485_v21, %v8917_v22  ;;  %v2549_v2 = vmul.f32 %v2547_v18, %v11653_v61  ;;  %v2551_v49 = vmul.f32 %v2547_v18, %v11654_v9  ;;  %2764 = vst [vmem:[#allocation3 + $0x88] sm:$0xff] %v8989_v3  ;;  %v2813_v57 = vpop.permute.xlu2 %2812  ;;  %vm11657_vm15 = vmmov %vm11652_vm7  ;;  %v9036_v61 = vld [vmem:[#allocation3] sm:$0xff] }
 0x5a4   : > { %2882 = vrot.lane.b32.xlu0 %v8989_v3, %s6313_s21  ;;  %v2503_v31 = vadd.f32 %v2487_v63, %v8919_v60  ;;  %v2607_v51 = vperm.slane %v2605_v11, 0  ;;  %v2553_v55 = vmul.f32 %v2547_v18, %v11655_v17  ;;  %2766 = vst [vmem:[#allocation3 + $0xa8] sm:$0xff] %v8991_v0  ;;  %v2840_v23 = vsel %vm389_vm8, %v2824_v58, 0.0  ;;  %v2701_v63 = vpop.permute.xlu1 %2700  ;;  %v11658_v58 = vld [vmem:[#allocation177_spill] sm:$0xff] }
 0x5a5   : > { %v2527_v22 = vadd.f32 %v2519_v54, %v2497_v7  ;;  %v2529_v21 = vadd.f32 %v2521_v56, %v2499_v46  ;;  %2768 = vst [vmem:[#allocation3 + $0xc8] sm:$0xff] %v8993_v47  ;;  %v2579_v48 = vmul.f32 %v2577_v34, %v11620_v45  ;;  %v2531_v32 = vadd.f32 %v2523_v14, %v2501_v4  ;;  %v11656_v14 = vld [vmem:[#allocation170_spill] sm:$0xff] }
 0x5a6   : > { %2770 = vst [vmem:[#allocation3 + $0xe8] sm:$0xff] %v8996_v35  ;;  %v2533_v60 = vadd.f32 %v2525_v13, %v2503_v31  ;;  %v2581_v36 = vmul.f32 %v2577_v34, %v11622_v5  ;;  %v2555_v19 = vmul.f32 %v2547_v18, %v11619_v44  ;;  %v2609_v29 = vmul.f32 %v2607_v51, %v11627_v50  ;;  %v9022_v54 = vpop.permute.xlu0 %2808 }
 0x5a7   : > { %v2557_v1 = vadd.f32 %v2549_v2, %v2527_v22  ;;  %v2559_v40 = vadd.f32 %v2551_v49, %v2529_v21  ;;  %2848 = vst [vmem:[#allocation5] sm:$0xff] %v2840_v23  ;;  %v2561_v7 = vadd.f32 %v2553_v55, %v2531_v32  ;;  %v2583_v46 = vmul.f32 %v2577_v34, %v11623_v42  ;;  %v11660_v49 = vld [vmem:[#allocation166_spill] sm:$0xff] }
 0x5a8   : > { %v2703_v45 = vsel %vm11628_vm11, %v8904_v28, %v2701_v63  ;;  %v2611_v56 = vmul.f32 %v2607_v51, %v11629_v62  ;;  %v2585_v11 = vmul.f32 %v2577_v34, %v11656_v14  ;;  %v2826_v44 = vsel %vm11657_vm15, %v2807_v26, %v9022_v54  ;;  %v11659_v26 = vld [vmem:[#allocation160_spill] sm:$0xff] }
 0x5a9   : > { %v2707_v5 = vsel %vm392_vm12, %v2703_v45, 0.0  ;;  %v2587_v18 = vadd.f32 %v2579_v48, %v2557_v1  ;;  %v2613_v50 = vmul.f32 %v2607_v51, %v11630_v37  ;;  %v2842_v42 = vsel %vm389_vm8, %v2826_v44, 0.0  ;;  %3044 = vrot.lane.b32.xlu2 %v9036_v61, %s6314_s30 }
 0x5aa   : > { %v2709_v24 = vperm.slane %v2707_v5, 0  ;;  %v2589_v28 = vadd.f32 %v2581_v36, %v2559_v40  ;;  %v2563_v13 = vadd.f32 %v2555_v19, %v2533_v60  ;;  %v2615_v4 = vmul.f32 %v2607_v51, %v11658_v58  ;;  %2850 = vst [vmem:[#allocation5 + $0x20] sm:$0xff] %v2842_v42 }
 0x5ab   : > { %v2617_v62 = vadd.f32 %v2609_v29, %v2587_v18  ;;  %v2591_v34 = vadd.f32 %v2583_v46, %v2561_v7  ;;  %v2673_v2 = vsel %vm1687_vm1, %v8767_v15, %v11659_v26  ;;  %v2675_v31 = vsel %vm1687_vm1, %v8802_v6, %v11660_v49  ;;  %v2819_v21 = vpop.permute.xlu2 %2818 }
 0x5ac   : > { %2888 = vrot.lane.b32.xlu0 %v8991_v0, %s6313_s21  ;;  %v9040_v37 = vld [vmem:[#allocation3 + $0xc8] sm:$0xff]  ;;  %v2619_v9 = vadd.f32 %v2611_v56, %v2589_v28  ;;  %v2593_v51 = vadd.f32 %v2585_v11, %v2563_v13  ;;  %v2677_v23 = vsel %vm1687_vm1, %v8837_v16, %v8946_v12  ;;  %v2679_v22 = vsel %vm1687_vm1, %v8874_v53, %v8977_v30  ;;  %v2731_v1 = vpop.permute.xlu1 %2730  ;;  %vm11661_vm1 = vmmov %vm11652_vm7 }
 0x5ad   : > { %v3426_v17 = vld [vmem:[#allocation3 + $0xe8] sm:$0xff]  ;;  %3432 = vst [vmem:[#allocation5 + $0x250] sm:$0xff] %v9040_v37  ;;  %v2621_v55 = vadd.f32 %v2613_v50, %v2591_v34  ;;  %v2711_v15 = vmul.f32 %v2709_v24, %v11637_v8  ;;  %v2713_v6 = vmul.f32 %v2709_v24, %v11638_v52  ;;  %v2715_v32 = vmul.f32 %v2709_v24, %v11639_v33 }
 0x5ae   : > { %3434 = vst [vmem:[#allocation5 + $0x270] sm:$0xff] %v3426_v17  ;;  %v2623_v48 = vadd.f32 %v2615_v4, %v2593_v51  ;;  %v2717_v60 = vmul.f32 %v2709_v24, %v11640_v20  ;;  %v2689_v40 = vadd.f32 %v2673_v2, %v2617_v62  ;;  %v2691_v36 = vadd.f32 %v2675_v31, %v2619_v9  ;;  %v2815_v12 = vpop.permute.xlu0 %2814  ;;  %v9109_v34 = vld [vmem:[#allocation3 + $0x8] sm:$0xff] }
 0x5af   : > { %v2733_v16 = vsel %vm1765_vm3, %v8952_v59, %v2731_v1  ;;  %v2693_v19 = vadd.f32 %v2677_v23, %v2621_v55  ;;  %v2828_v30 = vsel %vm11661_vm1, %v2813_v57, %v2815_v12  ;;  %v9125_v51 = vld [vmem:[#allocation3 + $0x28] sm:$0xff] }
 0x5b0   : > { %v2695_v53 = vadd.f32 %v2679_v22, %v2623_v48  ;;  %v2737_v8 = vsel %vm394_vm0, %v2733_v16, 0.0  ;;  %v2719_v63 = vadd.f32 %v2711_v15, %v2689_v40  ;;  %v2844_v33 = vsel %vm389_vm8, %v2828_v30, 0.0  ;;  %vm11662_vm0 = vmmov %vm11661_vm1  ;;  %v9138_v15 = vld [vmem:[#allocation3 + $0x48] sm:$0xff]  ;;  %v5932_v48 = vld [vmem:[#allocation3 + $0x10] sm:$0xff] }
 0x5b1   : > { %v2739_v52 = vperm.slane %v2737_v8, 0  ;;  %v2721_v20 = vadd.f32 %v2713_v6, %v2691_v36  ;;  %v2723_v29 = vadd.f32 %v2715_v32, %v2693_v19  ;;  %2852 = vst [vmem:[#allocation5 + $0x40] sm:$0xff] %v2844_v33  ;;  %3050 = vrot.lane.b32.xlu2 %v9036_v61, %s6314_s30  ;;  %vm11663_vm3 = vmmov %vm11662_vm0  ;;  %v9147_v6 = vld [vmem:[#allocation3 + $0x68] sm:$0xff]  ;;  %v11667_v40 = vld [vmem:[#allocation138_spill] sm:$0xff] }
 0x5b2   : > { %v2725_v7 = vadd.f32 %v2717_v60, %v2695_v53  ;;  %vm11664_vm4 = vmmov %vm11662_vm0  ;;  %v9155_v60 = vld [vmem:[#allocation3 + $0x30] sm:$0xff]  ;;  %v11668_v16 = vld [vmem:[#allocation146_spill] sm:$0xff] }
 0x5b3   : > { %v2741_v59 = vmul.f32 %v2739_v52, %v11642_v27  ;;  %v2743_v46 = vmul.f32 %v2739_v52, %v11643_v10  ;;  %v2745_v45 = vmul.f32 %v2739_v52, %v11644_v43  ;;  %v2747_v57 = vmul.f32 %v2739_v52, %v11645_v41  ;;  %v9074_v44 = vpop.permute.xlu2 %2880  ;;  %vm11665_vm2 = vmmov %vm11662_vm0 }
 0x5b4   : > { %2894 = vrot.lane.b32.xlu0 %v8993_v47, %s6313_s21  ;;  %v2805_v18 = vpop.permute.xlu1 %2804  ;;  %vm11666_vm14 = vmmov %vm11662_vm0 }
 0x5b5   : > { %v2749_v56 = vadd.f32 %v2741_v59, %v2719_v63  ;;  %v2751_v14 = vadd.f32 %v2743_v46, %v2721_v20  ;;  %v2753_v11 = vadd.f32 %v2745_v45, %v2723_v29  ;;  %v2755_v5 = vadd.f32 %v2747_v57, %v2725_v7  ;;  %vm11669_vm10 = vmmov %vm11662_vm0  ;;  %v9228_v46 = vld [vmem:[#allocation3 + $0x58] sm:$0xff] }
 0x5b6   : > { %v2821_v10 = vpop.permute.xlu0 %2820  ;;  %v2825_v41 = vsel %vm11662_vm0, %v8985_v25, %v2805_v18  ;;  %vm11670_vm6 = vmmov %vm11662_vm0 }
 0x5b7   : > { %v9076_v50 = vmax.f32 %v2749_v56, 0.0  ;;  %v9078_v24 = vmax.f32 %v2751_v14, 0.0  ;;  %v9080_v27 = vmax.f32 %v2753_v11, 0.0  ;;  %v9082_v43 = vmax.f32 %v2755_v5, 0.0  ;;  %vm11671_vm7 = vmmov %vm11662_vm0  ;;  %v9242_v11 = vld [vmem:[#allocation3 + $0x50] sm:$0xff] }
 0x5b8   : > { %v2830_v42 = vsel %vm11663_vm3, %v2819_v21, %v2821_v10  ;;  %v2841_v28 = vsel %vm390_vm9, %v2825_v41, 0.0  ;;  %vm11672_vm11 = vmmov %vm11662_vm0 }
 0x5b9   : > { %2765 = vst [vmem:[#allocation3 + $0x90] sm:$0xff] %v9076_v50  ;;  %2884 = vrot.lane.b32.xlu1 %v9076_v50, %s6313_s21  ;;  %v2846_v25 = vsel %vm389_vm8, %v2830_v42, 0.0  ;;  %3108 = vrot.lane.b32.xlu2 %v9036_v61, %s6316_s11  ;;  %vm11673_vm15 = vmmov %vm11662_vm0 }
 0x5ba   : > { %2767 = vst [vmem:[#allocation3 + $0xb0] sm:$0xff] %v9078_v24  ;;  %vm11674_vm1 = vmmov %vm11662_vm0 }
 0x5bb   : > { %2769 = vst [vmem:[#allocation3 + $0xd0] sm:$0xff] %v9080_v27  ;;  %v9101_v13 = vpop.permute.xlu2 %2886  ;;  %vm11675_vm3 = vmmov %vm11662_vm0 }
 0x5bc   : > { %2900 = vrot.lane.b32.xlu0 %v8996_v35, %s6313_s21  ;;  %2771 = vst [vmem:[#allocation3 + $0xf0] sm:$0xff] %v9082_v43  ;;  %v2811_v58 = vpop.permute.xlu1 %2810 }
 0x5bd   : > { %2849 = vst [vmem:[#allocation5 + $0x8] sm:$0xff] %v2841_v28  ;;  %v2827_v4 = vsel %vm11664_vm4, %v9022_v54, %v2811_v58  ;;  %v9260_v28 = vld [vmem:[#allocation3 + $0x70] sm:$0xff]  ;;  %vm11676_vm4 = vcmask 130048  }
 0x5be   : > { %2854 = vst [vmem:[#allocation5 + $0x60] sm:$0xff] %v2846_v25  ;;  %v2843_v62 = vsel %vm390_vm9, %v2827_v4, 0.0 }
 0x5bf   : > { %2851 = vst [vmem:[#allocation5 + $0x28] sm:$0xff] %v2843_v62 }
 0x5c1   : > { %2890 = vrot.lane.b32.xlu1 %v9078_v24, %s6313_s21  ;;  %3114 = vrot.lane.b32.xlu2 %v9036_v61, %s6316_s11 }
 0x5c2   : > { %v9113_v26 = vld [vmem:[#allocation3 + $0xd0] sm:$0xff] }
 0x5c3   : > { %v3427_v2 = vld [vmem:[#allocation3 + $0xf0] sm:$0xff]  ;;  %3433 = vst [vmem:[#allocation5 + $0x258] sm:$0xff] %v9113_v26  ;;  %v9118_v54 = vpop.permute.xlu2 %2892 }
 0x5c4   : > { %2962 = vrot.lane.b32.xlu0 %v9109_v34, %s6314_s30  ;;  %3435 = vst [vmem:[#allocation5 + $0x278] sm:$0xff] %v3427_v2  ;;  %v2817_v9 = vpop.permute.xlu1 %2816 }
 0x5c5   : > { %v2829_v49 = vsel %vm11665_vm2, %v2815_v12, %v2817_v9  ;;  %vm11677_vm2 = vmmov %vm11676_vm4 }
 0x5c6   : > { %v2845_v31 = vsel %vm390_vm9, %v2829_v49, 0.0 }
 0x5c7   : > { %2853 = vst [vmem:[#allocation5 + $0x48] sm:$0xff] %v2845_v31 }
 0x5c9   : > { %2896 = vrot.lane.b32.xlu1 %v9080_v27, %s6313_s21  ;;  %3120 = vrot.lane.b32.xlu2 %v9036_v61, %s6316_s11 }
 0x5cb   : > { %v9131_v17 = vpop.permute.xlu2 %2898 }
 0x5cc   : > { %2968 = vrot.lane.b32.xlu0 %v9125_v51, %s6314_s30  ;;  %v2823_v55 = vpop.permute.xlu1 %2822 }
 0x5cd   : > { %v2831_v23 = vsel %vm11666_vm14, %v2821_v10, %v2823_v55  ;;  %vm11678_vm14 = vmmov %vm11677_vm2 }
 0x5ce   : > { %v2847_v22 = vsel %vm390_vm9, %v2831_v23, 0.0 }
 0x5cf   : > { %2855 = vst [vmem:[#allocation5 + $0x68] sm:$0xff] %v2847_v22 }
 0x5d1   : > { %2902 = vrot.lane.b32.xlu1 %v9082_v43, %s6313_s21  ;;  %3126 = vrot.lane.b32.xlu2 %v9036_v61, %s6316_s11 }
 0x5d3   : > { %v9144_v21 = vpop.permute.xlu2 %2960 }
 0x5d4   : > { %2974 = vrot.lane.b32.xlu0 %v9138_v15, %s6314_s30 }
 0x5d9   : > { %2964 = vrot.lane.b32.xlu1 %v5932_v48, %s6314_s30  ;;  %3188 = vrot.lane.b32.xlu2 %v9036_v61, %s6316_s11 }
 0x5db   : > { %v9153_v32 = vpop.permute.xlu2 %2966 }
 0x5dc   : > { %2980 = vrot.lane.b32.xlu0 %v9147_v6, %s6314_s30 }
 0x5e1   : > { %2970 = vrot.lane.b32.xlu1 %v9155_v60, %s6314_s30  ;;  %3194 = vrot.lane.b32.xlu2 %v9036_v61, %s6316_s11 }
 0x5e3   : > { %v9163_v1 = vpop.permute.xlu2 %2972 }
 0x5e4   : > { %3034 = vrot.lane.b32.xlu0 %v8989_v3, %s6314_s30 }
 0x5e9   : > { %2976 = vrot.lane.b32.xlu1 %v11667_v40, %s6314_s30  ;;  %3200 = vrot.lane.b32.xlu2 %v9036_v61, %s6316_s11 }
 0x5eb   : > { %v9171_v36 = vpop.permute.xlu2 %2978 }
 0x5ec   : > { %3040 = vrot.lane.b32.xlu0 %v8991_v0, %s6314_s30 }
 0x5f1   : > { %2982 = vrot.lane.b32.xlu1 %v11668_v16, %s6314_s30  ;;  %3206 = vrot.lane.b32.xlu2 %v9036_v61, %s6316_s11 }
 0x5f3   : > { %v9179_v12 = vpop.permute.xlu2 %3032 }
 0x5f4   : > { %3046 = vrot.lane.b32.xlu0 %v8993_v47, %s6314_s30 }
 0x5f9   : > { %3036 = vrot.lane.b32.xlu1 %v9076_v50, %s6314_s30  ;;  %3268 = vrot.lane.b32.xlu2 %v9036_v61, %s6321_s23 }
 0x5fb   : > { %v9187_v19 = vpop.permute.xlu2 %3038 }
 0x5fc   : > { %3052 = vrot.lane.b32.xlu0 %v8996_v35, %s6314_s30 }
 0x601   : > { %3042 = vrot.lane.b32.xlu1 %v9078_v24, %s6314_s30  ;;  %3274 = vrot.lane.b32.xlu2 %v9036_v61, %s6321_s23 }
 0x603   : > { %v9195_v53 = vpop.permute.xlu2 %3044 }
 0x604   : > { %3110 = vrot.lane.b32.xlu0 %v9109_v34, %s6316_s11 }
 0x609   : > { %3048 = vrot.lane.b32.xlu1 %v9080_v27, %s6314_s30  ;;  %3280 = vrot.lane.b32.xlu2 %v9036_v61, %s6321_s23 }
 0x60b   : > { %v9203_v8 = vpop.permute.xlu2 %3050 }
 0x60c   : > { %3116 = vrot.lane.b32.xlu0 %v9125_v51, %s6316_s11 }
 0x611   : > { %3054 = vrot.lane.b32.xlu1 %v9082_v43, %s6314_s30  ;;  %3286 = vrot.lane.b32.xlu2 %v9036_v61, %s6321_s23 }
 0x613   : > { %v9211_v63 = vpop.permute.xlu2 %3108 }
 0x614   : > { %3122 = vrot.lane.b32.xlu0 %v9138_v15, %s6316_s11 }
 0x616   : > { %v2883_v30 = vpop.permute.xlu0 %2882 }
 0x617   : > { %v2904_v52 = vsel %vm11669_vm10, %v9074_v44, %v2883_v30  ;;  %vm11679_vm10 = vmmov %vm11677_vm2 }
 0x618   : > { %v2920_v33 = vsel %vm389_vm8, %v2904_v52, 0.0 }
 0x619   : > { %2928 = vst [vmem:[#allocation5 + $0x10] sm:$0xff] %v2920_v33  ;;  %3112 = vrot.lane.b32.xlu1 %v5932_v48, %s6316_s11  ;;  %3800 = vrot.lane.b32.xlu2 %v11668_v16, %s11399_s20  ;;  %v9325_v33 = vld [vmem:[#allocation3 + $0x18] sm:$0xff] }
 0x61b   : > { %v9222_v29 = vpop.permute.xlu2 %3114 }
 0x61c   : > { %3128 = vrot.lane.b32.xlu0 %v9147_v6, %s6316_s11 }
 0x61e   : > { %v2889_v20 = vpop.permute.xlu0 %2888 }
 0x61f   : > { %v2906_v7 = vsel %vm11670_vm6, %v9101_v13, %v2889_v20  ;;  %vm11680_vm6 = vmmov %vm11677_vm2 }
 0x620   : > { %v2922_v59 = vsel %vm389_vm8, %v2906_v7, 0.0 }
 0x621   : > { %2930 = vst [vmem:[#allocation5 + $0x30] sm:$0xff] %v2922_v59  ;;  %3118 = vrot.lane.b32.xlu1 %v9155_v60, %s6316_s11  ;;  %3796 = vrot.lane.b32.xlu2 %v9228_v46, %s11399_s20 }
 0x623   : > { %v9236_v57 = vpop.permute.xlu2 %3120 }
 0x624   : > { %3190 = vrot.lane.b32.xlu0 %v8989_v3, %s6316_s11 }
 0x626   : > { %v2895_v45 = vpop.permute.xlu0 %2894 }
 0x627   : > { %v2908_v56 = vsel %vm11671_vm7, %v9118_v54, %v2895_v45  ;;  %vm11681_vm7 = vmmov %vm11677_vm2 }
 0x628   : > { %v2924_v14 = vsel %vm389_vm8, %v2908_v56, 0.0 }
 0x629   : > { %2932 = vst [vmem:[#allocation5 + $0x50] sm:$0xff] %v2924_v14  ;;  %3124 = vrot.lane.b32.xlu1 %v9242_v11, %s6316_s11  ;;  %3782 = vrot.lane.b32.xlu2 %v5932_v48, %s11399_s20 }
 0x62b   : > { %v2885_v3 = vpop.permute.xlu1 %2884  ;;  %v9250_v18 = vpop.permute.xlu2 %3126 }
 0x62c   : > { %3196 = vrot.lane.b32.xlu0 %v8991_v0, %s6316_s11  ;;  %v2905_v5 = vsel %vm11672_vm11, %v2883_v30, %v2885_v3  ;;  %v9258_v0 = vld [vmem:[#allocation3 + $0x78] sm:$0xff]  ;;  %vm11682_vm11 = vmmov %vm11677_vm2 }
 0x62d   : > { %v2921_v10 = vsel %vm390_vm9, %v2905_v5, 0.0 }
 0x62e   : > { %v2901_v44 = vpop.permute.xlu0 %2900  ;;  %2929 = vst [vmem:[#allocation5 + $0x18] sm:$0xff] %v2921_v10 }
 0x62f   : > { %v2910_v41 = vsel %vm11673_vm15, %v9131_v17, %v2901_v44  ;;  %vm11683_vm15 = vmmov %vm11677_vm2 }
 0x630   : > { %v2926_v42 = vsel %vm389_vm8, %v2910_v41, 0.0 }
 0x631   : > { %2934 = vst [vmem:[#allocation5 + $0x70] sm:$0xff] %v2926_v42  ;;  %3130 = vrot.lane.b32.xlu1 %v9260_v28, %s6316_s11  ;;  %3642 = vrot.lane.b32.xlu2 %v9258_v0, %s11397_s17 }
 0x633   : > { %v2891_v25 = vpop.permute.xlu1 %2890  ;;  %v9271_v4 = vpop.permute.xlu2 %3188 }
 0x634   : > { %3202 = vrot.lane.b32.xlu0 %v8993_v47, %s6316_s11  ;;  %v2907_v13 = vsel %vm11674_vm1, %v2889_v20, %v2891_v25  ;;  %v9327_v20 = vld [vmem:[#allocation3 + $0x10] sm:$0xff]  ;;  %vm11684_vm1 = vcmask 121856  }
 0x635   : > { %v2923_v62 = vsel %vm390_vm9, %v2907_v13, 0.0  ;;  %v9377_v13 = vld [vmem:[#allocation3 + $0x50] sm:$0xff] }
 0x636   : > { %v9269_v58 = vpop.permute.xlu0 %2962  ;;  %2931 = vst [vmem:[#allocation5 + $0x38] sm:$0xff] %v2923_v62 }
 0x639   : > { %3192 = vrot.lane.b32.xlu1 %v9076_v50, %s6316_s11  ;;  %3798 = vrot.lane.b32.xlu2 %v9147_v6, %s11399_s20 }
 0x63b   : > { %v2897_v47 = vpop.permute.xlu1 %2896  ;;  %v9284_v9 = vpop.permute.xlu2 %3194 }
 0x63c   : > { %3208 = vrot.lane.b32.xlu0 %v8996_v35, %s6316_s11  ;;  %v2909_v2 = vsel %vm11662_vm0, %v2895_v45, %v2897_v47  ;;  %vm11685_vm0 = vcmask 916480  }
 0x63d   : > { %v2925_v49 = vsel %vm390_vm9, %v2909_v2, 0.0  ;;  %v9390_v2 = vld [vmem:[#allocation3 + $0x38] sm:$0xff] }
 0x63e   : > { %v9282_v54 = vpop.permute.xlu0 %2968  ;;  %2933 = vst [vmem:[#allocation5 + $0x58] sm:$0xff] %v2925_v49 }
 0x641   : > { %3198 = vrot.lane.b32.xlu1 %v9078_v24, %s6316_s11  ;;  %3936 = vrot.lane.b32.xlu2 %v9138_v15, %s6335_s16 }
 0x643   : > { %v2903_v31 = vpop.permute.xlu1 %2902  ;;  %v9297_v23 = vpop.permute.xlu2 %3200 }
 0x644   : > { %3270 = vrot.lane.b32.xlu0 %v9109_v34, %s6321_s23  ;;  %v2911_v17 = vsel %vm11675_vm3, %v2901_v44, %v2903_v31  ;;  %vm11686_vm3 = vmmov %vm11684_vm1 }
 0x645   : > { %v2927_v22 = vsel %vm390_vm9, %v2911_v17, 0.0 }
 0x646   : > { %v9295_v55 = vpop.permute.xlu0 %2974  ;;  %2935 = vst [vmem:[#allocation5 + $0x78] sm:$0xff] %v2927_v22 }
 0x649   : > { %3204 = vrot.lane.b32.xlu1 %v9080_v27, %s6316_s11  ;;  %3628 = vrot.lane.b32.xlu2 %v9155_v60, %s11397_s17 }
 0x64b   : > { %v9307_v24 = vpop.permute.xlu1 %2964  ;;  %v9311_v40 = vpop.permute.xlu2 %3206 }
 0x64c   : > { %3276 = vrot.lane.b32.xlu0 %v9125_v51, %s6321_s23 }
 0x64e   : > { %v9309_v48 = vpop.permute.xlu0 %2980 }
 0x651   : > { %3210 = vrot.lane.b32.xlu1 %v9082_v43, %s6316_s11  ;;  %3932 = vrot.lane.b32.xlu2 %v9155_v60, %s6335_s16 }
 0x653   : > { %v9319_v27 = vpop.permute.xlu1 %2970  ;;  %v9321_v30 = vpop.permute.xlu2 %3268 }
 0x654   : > { %3282 = vrot.lane.b32.xlu0 %v9138_v15, %s6321_s23 }
 0x656   : > { %v3035_v16 = vpop.permute.xlu0 %3034 }
 0x657   : > { %v3056_v52 = vsel %vm11676_vm4, %v9179_v12, %v3035_v16  ;;  %vm11687_vm4 = vmmov %vm11684_vm1 }
 0x658   : > { %3072 = vst [vmem:[#allocation5 + $0x90] sm:$0xff] %v3056_v52 }
 0x659   : > { %3272 = vrot.lane.b32.xlu1 %v9327_v20, %s6321_s23  ;;  %3624 = vrot.lane.b32.xlu2 %v9325_v33, %s11397_s17 }
 0x65b   : > { %v9335_v43 = vpop.permute.xlu1 %2976  ;;  %v9337_v59 = vpop.permute.xlu2 %3274 }
 0x65c   : > { %3288 = vrot.lane.b32.xlu0 %v9147_v6, %s6321_s23 }
 0x65e   : > { %v3041_v7 = vpop.permute.xlu0 %3040 }
 0x65f   : > { %v3058_v12 = vsel %vm11677_vm2, %v9187_v19, %v3041_v7  ;;  %v9355_v19 = vld [vmem:[#allocation3 + $0x30] sm:$0xff]  ;;  %vm11688_vm2 = vmmov %vm11684_vm1 }
 0x660   : > { %3074 = vst [vmem:[#allocation5 + $0xb0] sm:$0xff] %v3058_v12 }
 0x661   : > { %3278 = vrot.lane.b32.xlu1 %v9155_v60, %s6321_s23  ;;  %3780 = vrot.lane.b32.xlu2 %v9109_v34, %s11399_s20 }
 0x663   : > { %v9347_v45 = vpop.permute.xlu1 %2982  ;;  %v9349_v14 = vpop.permute.xlu2 %3280 }
 0x664   : > { %3802 = vrot.lane.b32.xlu0 %v9258_v0, %s11399_s20 }
 0x666   : > { %v3047_v56 = vpop.permute.xlu0 %3046 }
 0x667   : > { %v3060_v3 = vsel %vm11678_vm14, %v9195_v53, %v3047_v56  ;;  %vm11689_vm14 = vmmov %vm11684_vm1 }
 0x668   : > { %3076 = vst [vmem:[#allocation5 + $0xd0] sm:$0xff] %v3060_v3 }
 0x669   : > { %3284 = vrot.lane.b32.xlu1 %v9242_v11, %s6321_s23  ;;  %3638 = vrot.lane.b32.xlu2 %v9147_v6, %s11397_s17 }
 0x66b   : > { %v3037_v60 = vpop.permute.xlu1 %3036  ;;  %v9362_v10 = vpop.permute.xlu2 %3286 }
 0x66c   : > { %3788 = vrot.lane.b32.xlu0 %v9355_v19, %s11399_s20  ;;  %v3057_v5 = vsel %vm11679_vm10, %v3035_v16, %v3037_v60  ;;  %v3606_v16 = vld [vmem:[#allocation3 + $0x70] sm:$0xff]  ;;  %vm11690_vm10 = vmmov %vm11684_vm1 }
 0x66d   : > { %3073 = vst [vmem:[#allocation5 + $0x98] sm:$0xff] %v3057_v5 }
 0x66e   : > { %v3053_v44 = vpop.permute.xlu0 %3052 }
 0x66f   : > { %v3062_v53 = vsel %vm11680_vm6, %v9203_v8, %v3053_v44  ;;  %vm11691_vm6 = vmmov %vm11685_vm0 }
 0x670   : > { %3078 = vst [vmem:[#allocation5 + $0xf0] sm:$0xff] %v3062_v53 }
 0x671   : > { %3290 = vrot.lane.b32.xlu1 %v9260_v28, %s6321_s23  ;;  %3632 = vrot.lane.b32.xlu2 %v9138_v15, %s11397_s17 }
 0x673   : > { %v3043_v11 = vpop.permute.xlu1 %3042  ;;  %v9375_v25 = vpop.permute.xlu2 %3800 }
 0x674   : > { %3784 = vrot.lane.b32.xlu0 %v9325_v33, %s11399_s20  ;;  %v3059_v41 = vsel %vm11681_vm7, %v3041_v7, %v3043_v11  ;;  %vm11692_vm7 = vmmov %vm11684_vm1 }
 0x675   : > { %3075 = vst [vmem:[#allocation5 + $0xb8] sm:$0xff] %v3059_v41 }
 0x676   : > { %v9373_v42 = vpop.permute.xlu0 %3110 }
 0x679   : > { %3794 = vrot.lane.b32.xlu1 %v9377_v13, %s11399_s20  ;;  %3626 = vrot.lane.b32.xlu2 %v9125_v51, %s11397_s17 }
 0x67b   : > { %v3049_v8 = vpop.permute.xlu1 %3048  ;;  %v9388_v47 = vpop.permute.xlu2 %3796 }
 0x67c   : > { %3942 = vrot.lane.b32.xlu0 %v9147_v6, %s6335_s16  ;;  %v3061_v28 = vsel %vm11682_vm11, %v3047_v56, %v3049_v8  ;;  %vm11693_vm11 = vcmask 7168  }
 0x67d   : > { %3077 = vst [vmem:[#allocation5 + $0xd8] sm:$0xff] %v3061_v28 }
 0x67e   : > { %v9386_v62 = vpop.permute.xlu0 %3116 }
 0x681   : > { %3790 = vrot.lane.b32.xlu1 %v9390_v2, %s11399_s20  ;;  %3620 = vrot.lane.b32.xlu2 %v9109_v34, %s11397_s17 }
 0x683   : > { %v3055_v49 = vpop.permute.xlu1 %3054  ;;  %v9401_v22 = vpop.permute.xlu2 %3782 }
 0x684   : > { %3634 = vrot.lane.b32.xlu0 %v9377_v13, %s11397_s17  ;;  %v3063_v31 = vsel %vm11683_vm15, %v3053_v44, %v3055_v49  ;;  %vm11694_vm15 = vmmov %vm11693_vm11 }
 0x685   : > { %3079 = vst [vmem:[#allocation5 + $0xf8] sm:$0xff] %v3063_v31 }
 0x686   : > { %v9399_v17 = vpop.permute.xlu0 %3122 }
 0x689   : > { %3640 = vrot.lane.b32.xlu1 %v3606_v16, %s11397_s17  ;;  %3478 = vrot.lane.b32.xlu2 %v9147_v6, %s11394_s2 }
 0x68b   : > { %v9408_v52 = vpop.permute.xlu1 %3112  ;;  %v9412_v12 = vpop.permute.xlu2 %3642 }
 0x68c   : > { %3938 = vrot.lane.b32.xlu0 %v9377_v13, %s6335_s16 }
 0x68e   : > { %v9410_v7 = vpop.permute.xlu0 %3128 }
 0x691   : > { %3944 = vrot.lane.b32.xlu1 %v3606_v16, %s6335_s16  ;;  %3472 = vrot.lane.b32.xlu2 %v9138_v15, %s11394_s2 }
 0x693   : > { %v9419_v56 = vpop.permute.xlu1 %3118  ;;  %v3799_v60 = vpop.permute.xlu2 %3798 }
 0x694   : > { %3630 = vrot.lane.b32.xlu0 %v9390_v2, %s11397_s17  ;;  %v3810_v5 = vsel %vm11685_vm0, %v3799_v60, %v9375_v25 }
 0x695   : > { %4261 = vmatpush.msra.mxu1 %v3810_v5 }
 0x696   : > { %v3191_v3 = vpop.permute.xlu0 %3190 }
 0x697   : > { %v3212_v6 = vsel %vm11684_vm1, %v9271_v4, %v3191_v3  ;;  %vm11695_vm1 = vmmov %vm11693_vm11 }
 0x698   : > { %v3228_v44 = vsel %vm391_vm13, %v3212_v6, 0.0  ;;  %v9455_v6 = vld [vmem:[#allocation3 + $0xf8] sm:$0xff]  ;;  %vm11696_vm0 = vmmov %vm11695_vm1 }
 0x699   : > { %3236 = vst [vmem:[#allocation5 + $0x110] sm:$0xff] %v3228_v44  ;;  %3636 = vrot.lane.b32.xlu1 %v9228_v46, %s11397_s17  ;;  %3466 = vrot.lane.b32.xlu2 %v9125_v51, %s11394_s2 }
 0x69b   : > { %v9433_v53 = vpop.permute.xlu1 %3124  ;;  %v9435_v11 = vpop.permute.xlu2 %3936 }
 0x69c   : > { %3786 = vrot.lane.b32.xlu0 %v9125_v51, %s11399_s20 }
 0x69e   : > { %v3197_v4 = vpop.permute.xlu0 %3196 }
 0x69f   : > { %v3214_v41 = vsel %vm11686_vm3, %v9284_v9, %v3197_v4  ;;  %vm11697_vm3 = vmmov %vm11688_vm2 }
 0x6a0   : > { %v3230_v8 = vsel %vm391_vm13, %v3214_v41, 0.0  ;;  %v9469_v41 = vld [vmem:[#allocation3 + $0xd8] sm:$0xff] }
 0x6a1   : > { %3238 = vst [vmem:[#allocation5 + $0x130] sm:$0xff] %v3230_v8  ;;  %3792 = vrot.lane.b32.xlu1 %v9138_v15, %s11399_s20  ;;  %3460 = vrot.lane.b32.xlu2 %v9109_v34, %s11394_s2 }
 0x6a3   : > { %v9447_v28 = vpop.permute.xlu1 %3130  ;;  %v9449_v31 = vpop.permute.xlu2 %3628 }
 0x6a4   : > { %3924 = vrot.lane.b32.xlu0 %v9109_v34, %s6335_s16 }
 0x6a6   : > { %v3203_v49 = vpop.permute.xlu0 %3202 }
 0x6a7   : > { %v3216_v9 = vsel %vm11687_vm4, %v9297_v23, %v3203_v49  ;;  %vm11698_vm4 = vmmov %vm11688_vm2 }
 0x6a8   : > { %v3232_v60 = vsel %vm391_vm13, %v3216_v9, 0.0 }
 0x6a9   : > { %3240 = vst [vmem:[#allocation5 + $0x150] sm:$0xff] %v3232_v60  ;;  %3930 = vrot.lane.b32.xlu1 %v9125_v51, %s6335_s16  ;;  %3874 = vrot.lane.b32.xlu2 %v9455_v6, %s11399_s20  ;;  %v9484_v60 = vld [vmem:[#allocation3 + $0xb8] sm:$0xff] }
 0x6ab   : > { %v3193_v34 = vpop.permute.xlu1 %3192  ;;  %v9465_v23 = vpop.permute.xlu2 %3932 }
 0x6ac   : > { %3480 = vrot.lane.b32.xlu0 %v3606_v16, %s11394_s2  ;;  %v3213_v15 = vsel %vm11688_vm2, %v3191_v3, %v3193_v34  ;;  %vm11699_vm2 = vmmov %vm11691_vm6 }
 0x6ad   : > { %v3229_v44 = vsel %vm392_vm12, %v3213_v15, 0.0 }
 0x6ae   : > { %v9463_v5 = vpop.permute.xlu0 %3208  ;;  %3237 = vst [vmem:[#allocation5 + $0x118] sm:$0xff] %v3229_v44 }
 0x6b1   : > { %3622 = vrot.lane.b32.xlu1 %v9327_v20, %s11397_s17  ;;  %3868 = vrot.lane.b32.xlu2 %v9469_v41, %s11399_s20 }
 0x6b3   : > { %v3199_v51 = vpop.permute.xlu1 %3198  ;;  %v9480_v8 = vpop.permute.xlu2 %3624 }
 0x6b4   : > { %3474 = vrot.lane.b32.xlu0 %v9377_v13, %s11394_s2  ;;  %v3215_v16 = vsel %vm11689_vm14, %v3197_v4, %v3199_v51  ;;  %vm11700_vm14 = vcmask 924672  }
 0x6b5   : > { %v3231_v9 = vsel %vm392_vm12, %v3215_v16, 0.0 }
 0x6b6   : > { %v9478_v3 = vpop.permute.xlu0 %3270  ;;  %3239 = vst [vmem:[#allocation5 + $0x138] sm:$0xff] %v3231_v9 }
 0x6b9   : > { %3926 = vrot.lane.b32.xlu1 %v9327_v20, %s6335_s16  ;;  %3862 = vrot.lane.b32.xlu2 %v9484_v60, %s11399_s20 }
 0x6bb   : > { %v3205_v13 = vpop.permute.xlu1 %3204  ;;  %v3781_v15 = vpop.permute.xlu2 %3780 }
 0x6bc   : > { %3468 = vrot.lane.b32.xlu0 %v9355_v19, %s11394_s2  ;;  %v3217_v4 = vsel %vm11690_vm10, %v3203_v49, %v3205_v13  ;;  %v9499_v51 = vsel %vm11691_vm6, %v3781_v15, %v9401_v22  ;;  %vm11701_vm10 = vmmov %vm11697_vm3 }
 0x6bd   : > { %v3233_v44 = vsel %vm392_vm12, %v3217_v4, 0.0  ;;  %vm11702_vm6 = vmmov %vm11697_vm3 }
 0x6be   : > { %v9493_v34 = vpop.permute.xlu0 %3276  ;;  %3241 = vst [vmem:[#allocation5 + $0x158] sm:$0xff] %v3233_v44 }
 0x6c1   : > { %3482 = vrot.lane.b32.xlu1 %v9258_v0, %s11394_s2  ;;  %3854 = vrot.lane.b32.xlu2 %v9076_v50, %s11399_s20 }
 0x6c3   : > { %v3211_v19 = vpop.permute.xlu1 %3210  ;;  %v9509_v9 = vpop.permute.xlu2 %3638 }
 0x6c4   : > { %3462 = vrot.lane.b32.xlu0 %v9327_v20, %s11394_s2  ;;  %v3219_v49 = vsel %vm11692_vm7, %v9463_v5, %v3211_v19  ;;  %vm11703_vm7 = vcmask 130048  }
 0x6c5   : > { %v3235_v13 = vsel %vm392_vm12, %v3219_v49, 0.0  ;;  %v3292_v49 = vsel %vm11696_vm0, %v9321_v30, %v9478_v3 }
 0x6c6   : > { %v3283_v16 = vpop.permute.xlu0 %3282  ;;  %3243 = vst [vmem:[#allocation5 + $0x178] sm:$0xff] %v3235_v13 }
 0x6c7   : > { %v3296_v15 = vsel %vm11693_vm11, %v9349_v14, %v3283_v16 }
 0x6c9   : > { %3476 = vrot.lane.b32.xlu1 %v9228_v46, %s11394_s2  ;;  %3718 = vrot.lane.b32.xlu2 %v8996_v35, %s11397_s17  ;;  %v3294_v46 = vsel %vm11695_vm1, %v9337_v59, %v9493_v34  ;;  %v3138_v59 = vsel %vm11697_vm3, %v9250_v18, %v9410_v7  ;;  %v3134_v18 = vsel %vm11701_vm10, %v9222_v29, %v9386_v62  ;;  %vm11708_vm1 = vmmov %vm11703_vm7  ;;  %vm11710_vm3 = vcmask 7168  }
 0x6ca   : > { %vm11709_vm0 = vmmov %vm11708_vm1  ;;  %vm4225_vm10 = vcmask 1040384  }
 0x6cb   : > { %v9519_v20 = vpop.permute.xlu1 %3272  ;;  %v9523_v44 = vpop.permute.xlu2 %3632 }
 0x6cc   : > { %3366 = vrot.lane.b32.xlu0 %v9036_v61, %s6321_s23 }
 0x6ce   : > { %v3289_v4 = vpop.permute.xlu0 %3288 }
 0x6cf   : > { %v3298_v19 = vsel %vm11694_vm15, %v9362_v10, %v3289_v4  ;;  %v3136_v10 = vsel %vm11698_vm4, %v9236_v57, %v9399_v17  ;;  %v3132_v57 = vsel %vm11702_vm6, %v9211_v63, %v9373_v42  ;;  %vm11707_vm15 = vmmov %vm11703_vm7 }
 0x6d0   : > { %5941 = vmatpush.msk.msra.mxu0 %vm389_vm8, %v3298_v19  ;;  %vm11711_vm4 = vmmov %vm11710_vm3 }
 0x6d1   : > { %3470 = vrot.lane.b32.xlu1 %v9390_v2, %s11394_s2  ;;  %4022 = vrot.lane.b32.xlu2 %v8996_v35, %s6335_s16  ;;  %vm11713_vm6 = vmmov %vm11710_vm3 }
 0x6d2   : > { %5942 = vmatpush.msk.msra.mxu0 %vm389_vm8, %v3296_v15 }
 0x6d3   : > { %v3279_v14 = vpop.permute.xlu1 %3278  ;;  %v3627_v13 = vpop.permute.xlu2 %3626 }
 0x6d4   : > { %3360 = vrot.lane.b32.xlu0 %v9036_v61, %s6321_s23  ;;  %5943 = vmatpush.msk.msra.mxu0 %vm389_vm8, %v3294_v46  ;;  %v9559_v35 = vsel %vm11700_vm14, %v3627_v13, %v9449_v31  ;;  %v11704_v46 = vlaneseq  ;;  %v2984_v13 = vsel %vm11709_vm0, %v9144_v21, %v9269_v58  ;;  %vm11712_vm14 = vmmov %vm11710_vm3 }
 0x6d6   : > { %v3803_v30 = vpop.permute.xlu0 %3802  ;;  %5944 = vmatpush.msk.msra.mxu0 %vm389_vm8, %v3292_v49  ;;  %vm9591_vm11 = vcmp.lt.s32.totalorder %v11704_v46, 512 }
 0x6d7   : > { %v9553_v15 = vsel %vm11699_vm2, %v9375_v25, %v3803_v30  ;;  %v9573_v25 = vld [vmem:[#allocation3 + $0xc8] sm:$0xff] }
 0x6d8   : > { %5945 = vmatpush.msk.msra.mxu0 %vm391_vm13, %v3138_v59  ;;  %v2988_v59 = vsel %vm11707_vm15, %v9163_v1, %v9295_v55  ;;  %v9598_v30 = vld [vmem:[#allocation3 + $0xe8] sm:$0xff] }
 0x6d9   : > { %3464 = vrot.lane.b32.xlu1 %v9325_v33, %s11394_s2  ;;  %3712 = vrot.lane.b32.xlu2 %v9573_v25, %s11397_s17  ;;  %v2990_v33 = vsel %vm11703_vm7, %v9171_v36, %v9309_v48  ;;  %v2986_v36 = vsel %vm11708_vm1, %v9153_v32, %v9282_v54  ;;  %vm11714_vm7 = vcmask 121856   ;;  %vm11716_vm1 = vmmov %vm11699_vm2 }
 0x6da   : > { %5946 = vmatpush.msk.msra.mxu0 %vm391_vm13, %v3136_v10  ;;  %v6348_v10 = vmov 1.0   ;;  %vm11715_vm15 = vmmov %vm11714_vm7 }
 0x6db   : > { %v3285_v29 = vpop.permute.xlu1 %3284  ;;  %v9583_v63 = vpop.permute.xlu2 %3620  ;;  %4063 = vst.msk [vmem:[#allocation5 + $0x480] ss:$8 sm:$0xf] %vm9591_vm11, %v6348_v10  ;;  %vm11717_vm0 = vmmov %vm11714_vm7 }
 0x6dc   : > { %3354 = vrot.lane.b32.xlu0 %v9036_v61, %s6321_s23  ;;  %5947 = vmatpush.msk.msra.mxu0 %vm391_vm13, %v3134_v18  ;;  %5171 = vst.msk [vmem:[#allocation5 + $0x240] ss:$8 sm:$0xf] %vm9591_vm11, %v6348_v10  ;;  %v3297_v18 = vsel %vm11710_vm3, %v3283_v16, %v3285_v29  ;;  %v3293_v16 = vsel %vm11713_vm6, %v9478_v3, %v9519_v20  ;;  %v4075_v3 = vld [vmem:[#allocation5 + $0x20] sm:$0xff]  ;;  %vm11718_vm3 = vmmov %vm11717_vm0 }
 0x6de   : > { %v9581_v19 = vpop.permute.xlu0 %3788  ;;  %5948 = vmatpush.msk.msra.mxu0 %vm391_vm13, %v3132_v57 }
 0x6e0   : > { %4246 = vmatpush.msra.mxu0 %v2990_v33 }
 0x6e1   : > { %3368 = vrot.lane.b32.xlu1 %v9598_v30, %s6321_s23  ;;  %3946 = vrot.lane.b32.xlu2 %v9258_v0, %s6335_s16  ;;  %v4083_v0 = vld [vmem:[#allocation5 + $0x60] sm:$0xff] }
 0x6e2   : > { %4247 = vmatpush.msra.mxu0 %v2988_v59  ;;  %v4215_v21 = vld [vmem:[#allocation5 + $0x480] sm:$0x1] }
 0x6e3   : > { %v3291_v1 = vpop.permute.xlu1 %3290  ;;  %v9618_v46 = vpop.permute.xlu2 %3478  ;;  %5679 = vmatpush.msk.msra.mxu2 %vm4225_vm10, %v4215_v21 }
 0x6e4   : > { %3348 = vrot.lane.b32.xlu0 %v9036_v61, %s6321_s23  ;;  %4248 = vmatpush.msra.mxu0 %v2986_v36  ;;  %v3299_v57 = vsel %vm11711_vm4, %v3289_v4, %v3291_v1  ;;  %v3295_v61 = vsel %vm11712_vm14, %v9493_v34, %v3279_v14  ;;  %v3139_v34 = vsel %vm11714_vm7, %v9410_v7, %v9447_v28  ;;  %v4071_v14 = vld [vmem:[#allocation5] sm:$0xff]  ;;  %vm11719_vm4 = vmmov %vm11716_vm1  ;;  %vm11721_vm14 = vcmask 924672   ;;  %v9697_v36 = vld [vmem:[#allocation3 + $0x88] sm:$0xff] }
 0x6e5   : > { %5949 = vmatpush.msk.msra.mxu3 %vm390_vm9, %v3299_v57  ;;  %v3137_v4 = vsel %vm11715_vm15, %v9399_v17, %v9433_v53  ;;  %v9667_v17 = vld [vmem:[#allocation3 + $0xa8] sm:$0xff]  ;;  %v9728_v57 = vld [vmem:[#allocation3 + $0xf0] sm:$0xff] }
 0x6e6   : > { %v3785_v33 = vpop.permute.xlu0 %3784  ;;  %4249 = vmatpush.msra.mxu0 %v2984_v13  ;;  %v4080_v13 = vld [vmem:[#allocation5 + $0x48] sm:$0xff] }
 0x6e7   : > { %v9622_v32 = vsel %vm11699_vm2, %v9401_v22, %v3785_v33  ;;  %5950 = vmatpush.msk.msra.mxu3 %vm390_vm9, %v3297_v18  ;;  %v4079_v22 = vld [vmem:[#allocation5 + $0x40] sm:$0xff]  ;;  %vm11720_vm2 = vcmask 130048   ;;  %v9726_v18 = vld [vmem:[#allocation3 + $0x98] sm:$0xff] }
 0x6e8   : > { %4250 = vmatpush.msra.mxu0 %v4083_v0  ;;  %vm11722_vm6 = vmmov %vm11720_vm2 }
 0x6e9   : > { %3362 = vrot.lane.b32.xlu1 %v9573_v25, %s6321_s23  ;;  %5951 = vmatpush.msk.msra.mxu3 %vm390_vm9, %v3295_v61  ;;  %v2989_v10 = vsel %vm11722_vm6, %v9295_v55, %v9335_v43  ;;  %vm11723_vm7 = vmmov %vm11720_vm2  ;;  %vm11731_vm6 = vcmask 916480  }
 0x6ea   : > { %4251 = vmatpush.msra.mxu0 %v4079_v22  ;;  %3352 = vrot.lane.b32.xlu2 %v9076_v50, %s6321_s23  ;;  %v3135_v50 = vsel %vm11717_vm0, %v9386_v62, %v9419_v56  ;;  %v2991_v56 = vsel %vm11720_vm2, %v9309_v48, %v9347_v45  ;;  %v2987_v1 = vsel %vm11723_vm7, %v9282_v54, %v9319_v27  ;;  %v9704_v48 = vld [vmem:[#allocation3 + $0xb0] sm:$0xff]  ;;  %vm11724_vm15 = vmmov %vm11720_vm2 }
 0x6eb   : > { %v9645_v20 = vpop.permute.xlu1 %3794  ;;  %5952 = vmatpush.msk.msra.mxu3 %vm390_vm9, %v3293_v16  ;;  %v9657_v29 = vpop.permute.xlu2 %3472  ;;  %v2985_v55 = vsel %vm11724_vm15, %v9269_v58, %v9307_v24  ;;  %v4084_v24 = vld [vmem:[#allocation5 + $0x68] sm:$0xff]  ;;  %v9748_v16 = vld [vmem:[#allocation3 + $0xd0] sm:$0xff]  ;;  %vm11732_vm7 = vmmov %vm11731_vm6 }
 0x6ec   : > { %3870 = vrot.lane.b32.xlu0 %v9598_v30, %s11399_s20  ;;  %4252 = vmatpush.msra.mxu0 %v4075_v3  ;;  %v9653_v7 = vsel %vm11716_vm1, %v9645_v20, %v9388_v47  ;;  %v3133_v47 = vsel %vm11718_vm3, %v9373_v42, %v9408_v52  ;;  %vm11725_vm1 = vmmov %vm11721_vm14  ;;  %vm11727_vm3 = vcmask 908288   ;;  %v9754_v22 = vld [vmem:[#allocation3 + $0x90] sm:$0xff] }
 0x6ed   : > { %5953 = vmatpush.msk.msra.mxu3 %vm392_vm12, %v3139_v34  ;;  %vm11726_vm0 = vmmov %vm11725_vm1 }
 0x6ee   : > { %v3943_v28 = vpop.permute.xlu0 %3942  ;;  %4253 = vmatpush.msra.mxu0 %v4071_v14  ;;  %vm11729_vm2 = vmmov %vm11726_vm0 }
 0x6ef   : > { %5954 = vmatpush.msk.msra.mxu3 %vm392_vm12, %v3137_v4  ;;  %vm11733_vm15 = vmmov %vm11727_vm3 }
 0x6f1   : > { %3356 = vrot.lane.b32.xlu1 %v9667_v17, %s6321_s23  ;;  %5955 = vmatpush.msk.msra.mxu3 %vm392_vm12, %v3135_v50 }
 0x6f2   : > { %3710 = vrot.lane.b32.xlu2 %v9484_v60, %s11397_s17 }
 0x6f3   : > { %v3791_v62 = vpop.permute.xlu1 %3790  ;;  %5956 = vmatpush.msk.msra.mxu3 %vm392_vm12, %v3133_v47  ;;  %v9688_v53 = vpop.permute.xlu2 %3466 }
 0x6f4   : > { %3864 = vrot.lane.b32.xlu0 %v9573_v25, %s11399_s20  ;;  %v9681_v42 = vsel %vm11719_vm4, %v9581_v19, %v3791_v62  ;;  %vm11728_vm4 = vmmov %vm11727_vm3 }
 0x6f5   : > { %4315 = vmatpush.msra.mxu3 %v2991_v56 }
 0x6f6   : > { %v3635_v52 = vpop.permute.xlu0 %3634 }
 0x6f7   : > { %v9692_v59 = vsel %vm11721_vm14, %v9523_v44, %v3635_v52  ;;  %4316 = vmatpush.msra.mxu3 %v2989_v10  ;;  %vm11730_vm14 = vmmov %vm11726_vm0 }
 0x6f9   : > { %3350 = vrot.lane.b32.xlu1 %v9697_v36, %s6321_s23  ;;  %4317 = vmatpush.msra.mxu3 %v2987_v1 }
 0x6fa   : > { %4012 = vrot.lane.b32.xlu2 %v9704_v48, %s6335_s16 }
 0x6fb   : > { %v3641_v43 = vpop.permute.xlu1 %3640  ;;  %4318 = vmatpush.msra.mxu3 %v2985_v55  ;;  %v9721_v44 = vpop.permute.xlu2 %3460 }
 0x6fc   : > { %3858 = vrot.lane.b32.xlu0 %v9667_v17, %s11399_s20  ;;  %v3650_v54 = vsel %vm11725_vm1, %v9509_v9, %v3641_v43  ;;  %v9717_v27 = vsel %vm11726_vm0, %v3641_v43, %v9412_v12  ;;  %v4076_v12 = vld [vmem:[#allocation5 + $0x28] sm:$0xff]  ;;  %vm11734_vm1 = vcmask 1039360  }
 0x6fd   : > { %4319 = vmatpush.msra.mxu3 %v4084_v24  ;;  %v4072_v9 = vld [vmem:[#allocation5 + $0x8] sm:$0xff] }
 0x6fe   : > { %v9719_v45 = vpop.permute.xlu0 %3938 }
 0x6ff   : > { %v3952_v58 = vsel %vm11727_vm3, %v9435_v11, %v9719_v45  ;;  %4320 = vmatpush.msra.mxu3 %v4080_v13  ;;  %vm11735_vm3 = vmmov %vm11726_vm0 }
 0x701   : > { %3872 = vrot.lane.b32.xlu1 %v9728_v57, %s11399_s20  ;;  %4321 = vmatpush.msra.mxu3 %v4076_v12 }
 0x702   : > { %3704 = vrot.lane.b32.xlu2 %v9726_v18, %s11397_s17 }
 0x703   : > { %v9736_v11 = vpop.permute.xlu1 %3944  ;;  %4322 = vmatpush.msra.mxu3 %v4072_v9  ;;  %v9740_v0 = vpop.permute.xlu2 %3874 }
 0x704   : > { %3370 = vrot.lane.b32.xlu0 %v9728_v57, %s6321_s23  ;;  %v3954_v33 = vsel %vm11728_vm4, %v3943_v28, %v9736_v11  ;;  %vm11736_vm4 = vmmov %vm11734_vm1 }
 0x705   : > { %5957 = vmatpush.msk.msra.mxu2 %vm391_vm13, %v3954_v33 }
 0x706   : > { %v3631_v61 = vpop.permute.xlu0 %3630 }
 0x707   : > { %v9744_v21 = vsel %vm11729_vm2, %v9449_v31, %v3631_v61  ;;  %5958 = vmatpush.msk.msra.mxu2 %vm391_vm13, %v3952_v58  ;;  %vm11737_vm2 = vmmov %vm11733_vm15 }
 0x709   : > { %3866 = vrot.lane.b32.xlu1 %v9748_v16, %s11399_s20 }
 0x70a   : > { %4006 = vrot.lane.b32.xlu2 %v9754_v22, %s6335_s16 }
 0x70b   : > { %v3637_v31 = vpop.permute.xlu1 %3636  ;;  %v9763_v4 = vpop.permute.xlu2 %3868 }
 0x70c   : > { %3856 = vrot.lane.b32.xlu0 %v9726_v18, %s11399_s20  ;;  %v9761_v34 = vsel %vm11730_vm14, %v3635_v52, %v3637_v31  ;;  %vm11738_vm14 = vmmov %vm11734_vm1  ;;  %v3404_v31 = vld [vmem:[#allocation3 + $0x8] sm:$0xff] }
 0x70e   : > { %v3787_v3 = vpop.permute.xlu0 %3786 }
 0x70f   : > { %v3806_v28 = vsel %vm11731_vm6, %v3787_v3, %v9581_v19  ;;  %vm11739_vm6 = vmmov %vm11734_vm1 }
 0x711   : > { %3860 = vrot.lane.b32.xlu1 %v9704_v48, %s11399_s20 }
 0x712   : > { %3562 = vrot.lane.b32.xlu2 %v9455_v6, %s11394_s2 }
 0x713   : > { %v3793_v14 = vpop.permute.xlu1 %3792  ;;  %v9775_v62 = vpop.permute.xlu2 %3862 }
 0x714   : > { %3720 = vrot.lane.b32.xlu0 %v9728_v57, %s11397_s17  ;;  %v3808_v50 = vsel %vm11732_vm7, %v3793_v14, %v9645_v20  ;;  %vm11740_vm7 = vmmov %vm11734_vm1  ;;  %v5937_v14 = vld [vmem:[#allocation5 + $0x268] sm:$0xff] }
 0x715   : > { %4262 = vmatpush.msra.mxu1 %v3808_v50  ;;  %v11746_v50 = vld [vmem:[#allocation55_spill] sm:$0xff] }
 0x716   : > { %v3925_v47 = vpop.permute.xlu0 %3924 }
 0x717   : > { %4263 = vmatpush.msra.mxu1 %v3806_v28 }
 0x719   : > { %3852 = vrot.lane.b32.xlu1 %v9697_v36, %s11399_s20  ;;  %4264 = vmatpush.msra.mxu1 %v9499_v51  ;;  %v4216_v51 = vld [vmem:[#allocation5 + $0x488] sm:$0x1] }
 0x71a   : > { %3554 = vrot.lane.b32.xlu2 %v9748_v16, %s11394_s2  ;;  %5682 = vmatpush.msk.msrb.mxu0 %vm4225_vm10, %v4216_v51 }
 0x71b   : > { %v3931_v19 = vpop.permute.xlu1 %3930  ;;  %5959 = vmatpush.msk.msra.mxu1 %vm389_vm8, %v3650_v54  ;;  %v9788_v56 = vpop.permute.xlu2 %3854 }
 0x71c   : > { %4024 = vrot.lane.b32.xlu0 %v9728_v57, %s6335_s16  ;;  %v3950_v20 = vsel %vm11733_vm15, %v3931_v19, %v9465_v23  ;;  %vm11742_vm15 = vmmov %vm11734_vm1 }
 0x71d   : > { %5960 = vmatpush.msk.msra.mxu1 %vm389_vm8, %v9692_v59  ;;  %5961 = vmatpush.msk.msra.mxu2 %vm391_vm13, %v3950_v20  ;;  %v3405_v20 = vld [vmem:[#allocation3 + $0x10] sm:$0xff] }
 0x71e   : > { %v3481_v52 = vpop.permute.xlu0 %3480 }
 0x71f   : > { %v3490_v10 = vsel %vm11734_vm1, %v9618_v46, %v3481_v52  ;;  %5962 = vmatpush.msk.msra.mxu1 %vm389_vm8, %v9559_v35  ;;  %vm11743_vm1 = vmmov %vm11737_vm2 }
 0x721   : > { %3364 = vrot.lane.b32.xlu1 %v9748_v16, %s6321_s23 }
 0x722   : > { %3548 = vrot.lane.b32.xlu2 %v9704_v48, %s11394_s2 }
 0x723   : > { %v3623_v46 = vpop.permute.xlu1 %3622  ;;  %v9811_v55 = vpop.permute.xlu2 %3718 }
 0x724   : > { %3714 = vrot.lane.b32.xlu0 %v9748_v16, %s11397_s17  ;;  %v3644_v59 = vsel %vm11726_vm0, %v9583_v63, %v3623_v46  ;;  %v3645_v1 = vsel %vm11735_vm3, %v3623_v46, %v9480_v8  ;;  %vm11744_vm0 = vmmov %vm11736_vm4 }
 0x725   : > { %5963 = vmatpush.msk.msra.mxu1 %vm389_vm8, %v3644_v59  ;;  %vm11745_vm3 = vmmov %vm11744_vm0 }
 0x726   : > { %v3475_v35 = vpop.permute.xlu0 %3474 }
 0x727   : > { %v3488_v43 = vsel %vm11736_vm4, %v9657_v29, %v3475_v35  ;;  %5964 = vmatpush.msk.msra.mxu1 %vm391_vm13, %v3490_v10  ;;  %vm11747_vm4 = vcmask 7168  }
 0x729   : > { %3722 = vrot.lane.b32.xlu1 %v9455_v6, %s11397_s17  ;;  %5965 = vmatpush.msk.msra.mxu1 %vm391_vm13, %v3488_v43 }
 0x72a   : > { %3542 = vrot.lane.b32.xlu2 %v9754_v22, %s11394_s2 }
 0x72b   : > { %v9827_v8 = vpop.permute.xlu1 %3926  ;;  %v9831_v54 = vpop.permute.xlu2 %4022 }
 0x72c   : > { %4016 = vrot.lane.b32.xlu0 %v9573_v25, %s6335_s16  ;;  %v3948_v63 = vsel %vm11737_vm2, %v3925_v47, %v9827_v8  ;;  %vm11748_vm2 = vmmov %vm11747_vm4 }
 0x72d   : > { %5966 = vmatpush.msk.msra.mxu2 %vm391_vm13, %v3948_v63 }
 0x72e   : > { %v3469_v29 = vpop.permute.xlu0 %3468 }
 0x72f   : > { %v3486_v6 = vsel %vm11738_vm14, %v9688_v53, %v3469_v29  ;;  %4330 = vmatpush.msrb.mxu2 %v9553_v15  ;;  %vm11749_vm14 = vmmov %vm11748_vm2 }
 0x730   : > { %5967 = vmatpush.msk.msra.mxu1 %vm391_vm13, %v3486_v6 }
 0x731   : > { %3358 = vrot.lane.b32.xlu1 %v9704_v48, %s6321_s23  ;;  %4331 = vmatpush.msrb.mxu2 %v9653_v7  ;;  %v3908_v7 = vld [vmem:[#allocation3 + $0x58] sm:$0xff] }
 0x732   : > { %4020 = vrot.lane.b32.xlu2 %v9469_v41, %s6335_s16 }
 0x733   : > { %v3483_v58 = vpop.permute.xlu1 %3482  ;;  %4332 = vmatpush.msrb.mxu2 %v9681_v42  ;;  %v9849_v13 = vpop.permute.xlu2 %3712  ;;  %v5936_v42 = vld [vmem:[#allocation5 + $0x260] sm:$0xff] }
 0x734   : > { %3706 = vrot.lane.b32.xlu0 %v9667_v17, %s11397_s17  ;;  %v3491_v53 = vsel %vm11739_vm6, %v3481_v52, %v3483_v58  ;;  %v3902_v52 = vld [vmem:[#allocation3 + $0x18] sm:$0xff]  ;;  %vm11750_vm6 = vcmask 121856   ;;  %v4217_v58 = vld [vmem:[#allocation5 + $0x490] sm:$0x1] }
 0x735   : > { %4333 = vmatpush.msrb.mxu2 %v9622_v32 }
 0x736   : > { %v3463_v24 = vpop.permute.xlu0 %3462 }
 0x737   : > { %v3484_v15 = vsel %vm11740_vm7, %v9721_v44, %v3463_v24  ;;  %5969 = vmatpush.msk.msrb.mxu2 %vm390_vm9, %v9717_v27  ;;  %v11741_v44 = vld [vmem:[#allocation48_spill] sm:$0xff]  ;;  %v3406_v27 = vld [vmem:[#allocation3 + $0x28] sm:$0xff]  ;;  %vm11751_vm7 = vmmov %vm11748_vm2 }
 0x738   : > { %5968 = vmatpush.msk.msra.mxu1 %vm391_vm13, %v3484_v15 }
 0x739   : > { %3716 = vrot.lane.b32.xlu1 %v9469_v41, %s11397_s17  ;;  %5970 = vmatpush.msk.msrb.mxu2 %vm390_vm9, %v9761_v34 }
 0x73a   : > { %4273 = vmatpush.msra.mxu1 %v5936_v42 }
 0x73b   : > { %v3477_v32 = vpop.permute.xlu1 %3476  ;;  %5971 = vmatpush.msk.msrb.mxu2 %vm390_vm9, %v9744_v21  ;;  %v3947_v33 = vpop.permute.xlu2 %3946 }
 0x73c   : > { %3940 = vrot.lane.b32.xlu0 %v3908_v7, %s6335_s16  ;;  %4274 = vmatpush.msra.mxu1 %v11741_v44  ;;  %v3489_v12 = vsel %vm11742_vm15, %v3475_v35, %v3477_v32  ;;  %v3955_v61 = vsel %vm11743_vm1, %v9736_v11, %v3947_v33  ;;  %vm11752_vm15 = vcmask 916480   ;;  %v4101_v32 = vld [vmem:[#allocation5 + $0xf0] sm:$0xff] }
 0x73d   : > { %5972 = vmatpush.msk.msrb.mxu2 %vm390_vm9, %v3645_v1  ;;  %5973 = vmatpush.msk.msrb.mxu0 %vm392_vm12, %v3955_v61  ;;  %vm11753_vm1 = vmmov %vm11752_vm15  ;;  %v4097_v44 = vld [vmem:[#allocation5 + $0xd0] sm:$0xff] }
 0x73e   : > { %v3367_v9 = vpop.permute.xlu0 %3366  ;;  %4275 = vmatpush.msra.mxu1 %v3406_v27 }
 0x73f   : > { %5974 = vmatpush.msk.msrb.mxu2 %vm392_vm12, %v3491_v53  ;;  %v4113_v53 = vld [vmem:[#allocation5 + $0x150] sm:$0xff] }
 0x740   : > { %4276 = vmatpush.msra.mxu1 %v3404_v31  ;;  %v4085_v31 = vld [vmem:[#allocation5 + $0x70] sm:$0xff] }
 0x741   : > { %4018 = vrot.lane.b32.xlu1 %v9748_v16, %s6335_s16  ;;  %5975 = vmatpush.msk.msrb.mxu2 %vm392_vm12, %v3489_v12  ;;  %v4093_v12 = vld [vmem:[#allocation5 + $0xb0] sm:$0xff] }
 0x743   : > { %v3471_v11 = vpop.permute.xlu1 %3470 }
 0x744   : > { %3700 = vrot.lane.b32.xlu0 %v9697_v36, %s11397_s17  ;;  %v3487_v21 = vsel %vm11744_vm0, %v3469_v29, %v3471_v11  ;;  %v9905_v10 = vpop.permute.xlu2 %3352  ;;  %vm11754_vm0 = vmmov %vm11753_vm1  ;;  %v4081_v11 = vld [vmem:[#allocation5 + $0x50] sm:$0xff] }
 0x745   : > { %5976 = vmatpush.msk.msrb.mxu2 %vm392_vm12, %v3487_v21  ;;  %v4077_v21 = vld [vmem:[#allocation5 + $0x30] sm:$0xff] }
 0x746   : > { %v3361_v34 = vpop.permute.xlu0 %3360 }
 0x749   : > { %3708 = vrot.lane.b32.xlu1 %v9704_v48, %s11397_s17 }
 0x74b   : > { %v3465_v16 = vpop.permute.xlu1 %3464 }
 0x74c   : > { %3934 = vrot.lane.b32.xlu0 %v9390_v2, %s6335_s16  ;;  %v3485_v3 = vsel %vm11745_vm3, %v3463_v24, %v3465_v16  ;;  %v3407_v2 = vld [vmem:[#allocation3 + $0x30] sm:$0xff]  ;;  %v9920_v59 = vpop.permute.xlu2 %3710  ;;  %vm11755_vm3 = vmmov %vm11754_vm0 }
 0x74d   : > { %5977 = vmatpush.msk.msrb.mxu2 %vm392_vm12, %v3485_v3 }
 0x74e   : > { %v3355_v28 = vpop.permute.xlu0 %3354 }
 0x74f   : > { %4342 = vmatpush.msrb.mxu2 %v5937_v14  ;;  %v4073_v14 = vld [vmem:[#allocation5 + $0x10] sm:$0xff] }
 0x751   : > { %4010 = vrot.lane.b32.xlu1 %v9667_v17, %s6335_s16  ;;  %4343 = vmatpush.msrb.mxu2 %v11746_v50  ;;  %v3991_v50 = vld [vmem:[#allocation3 + $0xf8] sm:$0xff] }
 0x753   : > { %v9899_v48 = vpop.permute.xlu1 %3368  ;;  %4344 = vmatpush.msrb.mxu2 %v3407_v2 }
 0x754   : > { %3558 = vrot.lane.b32.xlu0 %v9598_v30, %s11394_s2  ;;  %v3378_v47 = vsel %vm11747_vm4, %v3367_v9, %v9899_v48  ;;  %v9939_v6 = vpop.permute.xlu2 %4012  ;;  %vm11756_vm4 = vmmov %vm11754_vm0 }
 0x755   : > { %4345 = vmatpush.msrb.mxu2 %v3405_v20  ;;  %5978 = vmatpush.msk.msrb.mxu1 %vm389_vm8, %v3378_v47 }
 0x756   : > { %v3349_v19 = vpop.permute.xlu0 %3348 }
 0x759   : > { %3702 = vrot.lane.b32.xlu1 %v9754_v22, %s11397_s17 }
 0x75b   : > { %v9910_v30 = vpop.permute.xlu1 %3362 }
 0x75c   : > { %3928 = vrot.lane.b32.xlu0 %v3902_v52, %s6335_s16  ;;  %v3376_v51 = vsel %vm11748_vm2, %v3361_v34, %v9910_v30  ;;  %v9961_v42 = vpop.permute.xlu2 %3704  ;;  %vm11757_vm2 = vmmov %vm11754_vm0 }
 0x75d   : > { %5979 = vmatpush.msk.msrb.mxu1 %vm389_vm8, %v3376_v51  ;;  %v10011_v51 = vld [vmem:[#allocation12 + $0x8] sm:$0xff] }
 0x75e   : > { %v3871_v46 = vpop.permute.xlu0 %3870  ;;  %4277 = vmatmul.f32.vlgmr.msra.gmra.mxu1 %v10011_v51 }
 0x761   : > { %4004 = vrot.lane.b32.xlu1 %v9697_v36, %s6335_s16 }
 0x763   : > { %v9922_v22 = vpop.permute.xlu1 %3356 }
 0x764   : > { %3556 = vrot.lane.b32.xlu0 %v9469_v41, %s11394_s2  ;;  %v3374_v1 = vsel %vm11749_vm14, %v3355_v28, %v9922_v22  ;;  %v3218_v41 = vsel %vm11750_vm6, %v9311_v40, %v9463_v5  ;;  %v4109_v5 = vld [vmem:[#allocation5 + $0x130] sm:$0xff]  ;;  %vm11758_vm14 = vmmov %vm11754_vm0  ;;  %vm11759_vm6 = vcmask 924672  }
 0x765   : > { %5980 = vmatpush.msk.msrb.mxu1 %vm389_vm8, %v3374_v1 }
 0x766   : > { %v3865_v35 = vpop.permute.xlu0 %3864 }
 0x769   : > { %3560 = vrot.lane.b32.xlu1 %v9728_v57, %s11394_s2  ;;  %v9945_v57 = vld [vmem:[#allocation12 + $0x10] sm:$0xff] }
 0x76a   : > { %5680 = vmatmul.msk.f32.vlgmr.msra.gmra.mxu2 %vm515_vm5, %v9945_v57 }
 0x76b   : > { %v9932_v43 = vpop.permute.xlu1 %3350  ;;  %5685 = vmatpush.msk.msra.mxu2 %vm4225_vm10, %v4217_v58  ;;  %v10027_v58 = vld [vmem:[#allocation12 + $0x20] sm:$0xff] }
 0x76c   : > { %3550 = vrot.lane.b32.xlu0 %v9484_v60, %s11394_s2  ;;  %v3372_v63 = vsel %vm11751_vm7, %v3349_v19, %v9932_v43  ;;  %vm11760_vm7 = vmmov %vm11754_vm0  ;;  %4280 = vmatmul.f32.gmra.mxu1 %v10027_v58 }
 0x76d   : > { %5981 = vmatpush.msk.msrb.mxu1 %vm389_vm8, %v3372_v63 }
 0x76e   : > { %v3859_v29 = vpop.permute.xlu0 %3858 }
 0x76f   : > { %5982 = vmatpush.msk.msrb.mxu1 %vm391_vm13, %v3218_v41  ;;  %v10021_v41 = vld [vmem:[#allocation12 + $0x28] sm:$0xff] }
 0x771   : > { %3552 = vrot.lane.b32.xlu1 %v9573_v25, %s11394_s2  ;;  %4381 = vmatpush.msrb.mxu1 %v4113_v53  ;;  %v4105_v25 = vld [vmem:[#allocation5 + $0x110] sm:$0xff] }
 0x772   : > { %5681 = vmatmul.msk.f32.gmra.mxu2 %vm515_vm5, %v10021_v41 }
 0x773   : > { %v3873_v40 = vpop.permute.xlu1 %3872  ;;  %4382 = vmatpush.msrb.mxu1 %v4109_v5 }
 0x774   : > { %3544 = vrot.lane.b32.xlu0 %v9726_v18, %s11394_s2  ;;  %v3882_v24 = vsel %vm11752_vm15, %v3871_v46, %v3873_v40  ;;  %v9957_v15 = vsel %vm11753_vm1, %v3873_v40, %v9740_v0  ;;  %vm11761_vm15 = vcmask 908288   ;;  %vm11762_vm1 = vmmov %vm11759_vm6 }
 0x775   : > { %4399 = vmatpush.msrb.mxu3 %v3882_v24  ;;  %4383 = vmatpush.msrb.mxu1 %v4105_v25 }
 0x776   : > { %v9959_v7 = vpop.permute.xlu0 %3370 }
 0x777   : > { %4384 = vmatpush.msrb.mxu1 %v4101_v32 }
 0x779   : > { %3546 = vrot.lane.b32.xlu1 %v9667_v17, %s11394_s2  ;;  %4385 = vmatpush.msrb.mxu1 %v4097_v44  ;;  %v4089_v17 = vld [vmem:[#allocation5 + $0x90] sm:$0xff] }
 0x77a   : > { %4346 = vmatmul.f32.vlgmr.msrb.gmra.mxu2 %v10011_v51 }
 0x77b   : > { %v3867_v0 = vpop.permute.xlu1 %3866  ;;  %4386 = vmatpush.msrb.mxu1 %v4093_v12 }
 0x77c   : > { %4014 = vrot.lane.b32.xlu0 %v9484_v60, %s6335_s16  ;;  %v3880_v9 = vsel %vm11754_vm0, %v3865_v35, %v3867_v0  ;;  %v9970_v27 = vsel %vm11755_vm3, %v3867_v0, %v9763_v4  ;;  %v9976_v60 = vpop.permute.xlu2 %4006  ;;  %vm11763_vm0 = vmmov %vm11762_vm1 }
 0x77d   : > { %4400 = vmatpush.msrb.mxu3 %v3880_v9  ;;  %4387 = vmatpush.msrb.mxu1 %v4089_v17  ;;  %vm11764_vm3 = vmmov %vm11763_vm0 }
 0x77e   : > { %v3857_v33 = vpop.permute.xlu0 %3856 }
 0x77f   : > { %v9974_v61 = vsel %vm11756_vm4, %v9788_v56, %v3857_v33  ;;  %4388 = vmatpush.msrb.mxu1 %v4085_v31  ;;  %vm11765_vm4 = vmmov %vm11761_vm15 }
 0x781   : > { %3540 = vrot.lane.b32.xlu1 %v9697_v36, %s11394_s2  ;;  %4389 = vmatpush.msrb.mxu1 %v4081_v11 }
 0x782   : > { %4349 = vmatmul.f32.gmra.mxu2 %v10027_v58 }
 0x783   : > { %v3861_v4 = vpop.permute.xlu1 %3860  ;;  %4390 = vmatpush.msrb.mxu1 %v4077_v21 }
 0x784   : > { %v3878_v34 = vsel %vm11757_vm2, %v3859_v29, %v3861_v4  ;;  %v9983_v16 = vsel %vm11758_vm14, %v3861_v4, %v9775_v62  ;;  %v9988_v36 = vpop.permute.xlu2 %3562  ;;  %v10025_v29 = vld [vmem:[#allocation12 + $0x18] sm:$0xff]  ;;  %vm11766_vm2 = vmmov %vm11765_vm4 }
 0x785   : > { %4401 = vmatpush.msrb.mxu3 %v3878_v34  ;;  %4391 = vmatpush.msrb.mxu1 %v4073_v14  ;;  %vm11767_vm14 = vmmov %vm11766_vm2 }
 0x786   : > { %v3721_v3 = vpop.permute.xlu0 %3720 }
 0x787   : > { %v3730_v28 = vsel %vm11759_vm6, %v9811_v55, %v3721_v3  ;;  %vm11768_vm6 = vmmov %vm11763_vm0 }
 0x789   : > { %4026 = vrot.lane.b32.xlu1 %v3991_v50, %s6335_s16 }
 0x78b   : > { %v3853_v2 = vpop.permute.xlu1 %3852 }
 0x78c   : > { %v3876_v47 = vsel %vm11760_vm7, %v3853_v2, %v9788_v56  ;;  %v10003_v52 = vpop.permute.xlu2 %3554  ;;  %vm11769_vm7 = vmmov %vm11763_vm0 }
 0x78d   : > { %4402 = vmatpush.msrb.mxu3 %v3876_v47 }
 0x78e   : > { %v9992_v19 = vpop.permute.xlu0 %4024 }
 0x78f   : > { %v4034_v62 = vsel %vm11761_vm15, %v9831_v54, %v9992_v19  ;;  %5983 = vmatpush.msk.msrb.mxu3 %vm389_vm8, %v3730_v28  ;;  %v10009_v54 = vld [vmem:[#allocation12] sm:$0xff]  ;;  %vm11770_vm15 = vmmov %vm11766_vm2 }
 0x790   : > { %5984 = vmatpush.msk.msra.mxu2 %vm391_vm13, %v4034_v62  ;;  %4254 = vmatmul.f32.vlgmr.msra.gmra.mxu0 %v10009_v54 }
 0x791   : > { %4008 = vrot.lane.b32.xlu1 %v9726_v18, %s6335_s16  ;;  %4323 = vmatmul.f32.vlgmr.msra.gmra.mxu3 %v10009_v54 }
 0x792   : > { %4392 = vmatmul.f32.vlgmr.msrb.gmra.mxu1 %v10009_v54 }
 0x793   : > { %v3365_v55 = vpop.permute.xlu1 %3364 }
 0x794   : > { %v10019_v35 = vpop.permute.xlu2 %3548 }
 0x796   : > { %v3715_v20 = vpop.permute.xlu0 %3714 }
 0x797   : > { %v3728_v56 = vsel %vm11762_vm1, %v9849_v13, %v3715_v20  ;;  %vm11771_vm1 = vmmov %vm11766_vm2 }
 0x798   : > { %5985 = vmatpush.msk.msrb.mxu3 %vm389_vm8, %v3728_v56  ;;  %4257 = vmatmul.f32.gmra.mxu0 %v10025_v29 }
 0x799   : > { %4326 = vmatmul.f32.gmra.mxu3 %v10025_v29 }
 0x79a   : > { %4395 = vmatmul.f32.gmra.mxu1 %v10025_v29 }
 0x79b   : > { %v3723_v46 = vpop.permute.xlu1 %3722 }
 0x79c   : > { %v10017_v18 = vsel %vm11763_vm0, %v3721_v3, %v3723_v46  ;;  %v10031_v53 = vpop.permute.xlu2 %3542  ;;  %v4102_v46 = vld [vmem:[#allocation5 + $0xf8] sm:$0xff] }
 0x79e   : > { %v4017_v1 = vpop.permute.xlu0 %4016 }
 0x7a3   : > { %v3359_v13 = vpop.permute.xlu1 %3358 }
 0x7a4   : > { %v4021_v32 = vpop.permute.xlu2 %4020 }
 0x7a6   : > { %v3707_v63 = vpop.permute.xlu0 %3706 }
 0x7ab   : > { %v3717_v40 = vpop.permute.xlu1 %3716 }
 0x7ac   : > { %v10035_v5 = vsel %vm11764_vm3, %v3715_v20, %v3717_v40  ;;  %vm11772_vm3 = vmmov %vm11763_vm0  ;;  %v4110_v20 = vld [vmem:[#allocation5 + $0x138] sm:$0xff] }
 0x7ad   : > { %v4090_v40 = vld [vmem:[#allocation5 + $0x98] sm:$0xff] }
 0x7ae   : > { %v3941_v24 = vpop.permute.xlu0 %3940 }
 0x7af   : > { %v3953_v25 = vsel %vm11765_vm4, %v9719_v45, %v3941_v24  ;;  %vm11773_vm4 = vcmask 7168  }
 0x7b0   : > { %5986 = vmatpush.msk.msrb.mxu0 %vm392_vm12, %v3953_v25  ;;  %v3379_v14 = vsel %vm11773_vm4, %v9899_v48, %v9959_v7 }
 0x7b3   : > { %v4019_v44 = vpop.permute.xlu1 %4018 }
 0x7b4   : > { %v4032_v0 = vsel %vm11766_vm2, %v4017_v1, %v4019_v44  ;;  %v10045_v12 = vsel %vm11767_vm14, %v4019_v44, %v4021_v32  ;;  %vm11774_vm2 = vmmov %vm11771_vm1  ;;  %v4078_v44 = vld [vmem:[#allocation5 + $0x38] sm:$0xff] }
 0x7b5   : > { %5987 = vmatpush.msk.msra.mxu2 %vm391_vm13, %v4032_v0  ;;  %vm11775_vm14 = vmmov %vm11773_vm4 }
 0x7b6   : > { %v3701_v9 = vpop.permute.xlu0 %3700  ;;  %v3377_v2 = vsel %vm11775_vm14, %v9910_v30, %v3365_v55 }
 0x7bb   : > { %v3709_v45 = vpop.permute.xlu1 %3708 }
 0x7bc   : > { %v3726_v33 = vsel %vm11768_vm6, %v3707_v63, %v3709_v45  ;;  %v3727_v17 = vsel %vm11769_vm7, %v3709_v45, %v9920_v59  ;;  %vm11776_vm6 = vmmov %vm11773_vm4  ;;  %v5938_v45 = vld [vmem:[#allocation5 + $0x278] sm:$0xff] }
 0x7bd   : > { %5988 = vmatpush.msk.msrb.mxu3 %vm389_vm8, %v3726_v33  ;;  %vm11777_vm7 = vmmov %vm11773_vm4 }
 0x7be   : > { %v3935_v31 = vpop.permute.xlu0 %3934 }
 0x7bf   : > { %v3951_v11 = vsel %vm11770_vm15, %v9465_v23, %v3935_v31  ;;  %vm11778_vm15 = vmmov %vm11771_vm1  ;;  %v5939_v31 = vld [vmem:[#allocation5 + $0x270] sm:$0xff] }
 0x7c0   : > { %5989 = vmatpush.msk.msrb.mxu0 %vm392_vm12, %v3951_v11 }
 0x7c3   : > { %v4011_v4 = vpop.permute.xlu1 %4010 }
 0x7c4   : > { %v4030_v21 = vsel %vm11771_vm1, %v4011_v4, %v9939_v6  ;;  %vm11779_vm1 = vcmask 1039360  }
 0x7c5   : > { %5990 = vmatpush.msk.msra.mxu2 %vm391_vm13, %v4030_v21 }
 0x7c6   : > { %v3559_v34 = vpop.permute.xlu0 %3558 }
 0x7cb   : > { %v3703_v3 = vpop.permute.xlu1 %3702 }
 0x7cc   : > { %v3724_v59 = vsel %vm11763_vm0, %v3701_v9, %v3703_v3  ;;  %v3725_v23 = vsel %vm11772_vm3, %v3703_v3, %v9961_v42  ;;  %v3375_v42 = vsel %vm11776_vm6, %v9922_v22, %v3359_v13  ;;  %v4114_v22 = vld [vmem:[#allocation5 + $0x158] sm:$0xff]  ;;  %vm11780_vm0 = vmmov %vm11779_vm1 }
 0x7cd   : > { %5991 = vmatpush.msk.msrb.mxu3 %vm389_vm8, %v3724_v59  ;;  %vm11781_vm3 = vmmov %vm11780_vm0  ;;  %v4094_v13 = vld [vmem:[#allocation5 + $0xb8] sm:$0xff] }
 0x7ce   : > { %v3929_v28 = vpop.permute.xlu0 %3928  ;;  %vm11782_vm4 = vmmov %vm11780_vm0  ;;  %v4074_v9 = vld [vmem:[#allocation5 + $0x18] sm:$0xff] }
 0x7cf   : > { %v3949_v50 = vsel %vm11774_vm2, %v9827_v8, %v3929_v28  ;;  %v3373_v8 = vsel %vm11777_vm7, %v9932_v43, %v9905_v10  ;;  %v4118_v10 = vld [vmem:[#allocation5 + $0x178] sm:$0xff]  ;;  %vm11783_vm2 = vmmov %vm11780_vm0 }
 0x7d0   : > { %5992 = vmatpush.msk.msrb.mxu0 %vm392_vm12, %v3949_v50  ;;  %vm11784_vm14 = vmmov %vm11780_vm0 }
 0x7d1   : > { %5683 = vmatmul.msk.f32.vlgmr.msrb.gmra.mxu0 %vm515_vm5, %v9945_v57  ;;  %vm11785_vm6 = vmmov %vm11780_vm0 }
 0x7d2   : > { %5993 = vmatpush.msk.msra.mxu0 %vm390_vm9, %v3379_v14  ;;  %vm11786_vm7 = vmmov %vm11778_vm15 }
 0x7d3   : > { %v4005_v48 = vpop.permute.xlu1 %4004 }
 0x7d4   : > { %5994 = vmatpush.msk.msra.mxu0 %vm390_vm9, %v3377_v2  ;;  %v4028_v30 = vsel %vm11778_vm15, %v4005_v48, %v9976_v60  ;;  %vm11787_vm15 = vmmov %vm11780_vm0 }
 0x7d5   : > { %5996 = vmatpush.msk.msra.mxu2 %vm391_vm13, %v4028_v30 }
 0x7d6   : > { %v3557_v7 = vpop.permute.xlu0 %3556  ;;  %5995 = vmatpush.msk.msra.mxu0 %vm390_vm9, %v3375_v42  ;;  %5686 = vmatmul.msk.f32.vlgmr.msra.gmra.mxu2 %vm515_vm5, %v9945_v57 }
 0x7d7   : > { %v3569_v47 = vsel %vm11779_vm1, %v10003_v52, %v3557_v7  ;;  %4468 = vmatpush.msrb.mxu2 %v9957_v15  ;;  %vm11788_vm1 = vmmov %vm11786_vm7 }
 0x7d8   : > { %5997 = vmatpush.msk.msra.mxu0 %vm390_vm9, %v3373_v8 }
 0x7d9   : > { %5684 = vmatmul.msk.f32.gmra.mxu0 %vm515_vm5, %v10021_v41  ;;  %4469 = vmatpush.msrb.mxu2 %v9970_v27  ;;  %v4106_v27 = vld [vmem:[#allocation5 + $0x118] sm:$0xff] }
 0x7da   : > { %4449 = vmatpush.msra.mxu0 %v4118_v10 }
 0x7db   : > { %v3561_v43 = vpop.permute.xlu1 %3560  ;;  %4470 = vmatpush.msrb.mxu2 %v9983_v16  ;;  %v4218_v16 = vld [vmem:[#allocation5 + $0x498] sm:$0x1] }
 0x7dc   : > { %4450 = vmatpush.msra.mxu0 %v4114_v22  ;;  %v3570_v62 = vsel %vm11780_vm0, %v3559_v34, %v3561_v43  ;;  %v3571_v15 = vsel %vm11781_vm3, %v3561_v43, %v9988_v36  ;;  %5688 = vmatpush.msk.msra.mxu1 %vm4225_vm10, %v4218_v16  ;;  %vm11789_vm0 = vmmov %vm11788_vm1  ;;  %v10202_v22 = vld [vmem:[#allocation4 + $0x38] sm:$0xff] }
 0x7dd   : > { %4471 = vmatpush.msrb.mxu2 %v9974_v61  ;;  %5998 = vmatpush.msk.msrb.mxu3 %vm391_vm13, %v3570_v62  ;;  %v4098_v61 = vld [vmem:[#allocation5 + $0xd8] sm:$0xff] }
 0x7de   : > { %v3551_v55 = vpop.permute.xlu0 %3550  ;;  %4451 = vmatpush.msra.mxu0 %v4110_v20  ;;  %5687 = vmatmul.msk.f32.gmra.mxu2 %vm515_vm5, %v10021_v41  ;;  %v10210_v62 = vld [vmem:[#allocation4 + $0x18] sm:$0xff]  ;;  %v10218_v20 = vld [vmem:[#allocation3] sm:$0xff] }
 0x7df   : > { %v3567_v56 = vsel %vm11782_vm4, %v10019_v35, %v3551_v55  ;;  %5999 = vmatpush.msk.msrb.mxu2 %vm390_vm9, %v10017_v18 }
 0x7e0   : > { %4452 = vmatpush.msra.mxu0 %v4106_v27 }
 0x7e1   : > { %6000 = vmatpush.msk.msrb.mxu2 %vm390_vm9, %v10035_v5  ;;  %v4086_v5 = vld [vmem:[#allocation5 + $0x78] sm:$0xff] }
 0x7e2   : > { %4453 = vmatpush.msra.mxu0 %v4102_v46 }
 0x7e3   : > { %v3553_v36 = vpop.permute.xlu1 %3552  ;;  %6001 = vmatpush.msk.msrb.mxu2 %vm390_vm9, %v3727_v17  ;;  %v3421_v17 = vld [vmem:[#allocation3 + $0x90] sm:$0xff] }
 0x7e4   : > { %4454 = vmatpush.msra.mxu0 %v4098_v61  ;;  %v3568_v18 = vsel %vm11783_vm2, %v3553_v36, %v10003_v52  ;;  %v4082_v52 = vld [vmem:[#allocation5 + $0x58] sm:$0xff] }
 0x7e5   : > { %6002 = vmatpush.msk.msrb.mxu2 %vm390_vm9, %v3725_v23  ;;  %6003 = vmatpush.msk.msrb.mxu3 %vm391_vm13, %v3568_v18 }
 0x7e6   : > { %v3545_v1 = vpop.permute.xlu0 %3544  ;;  %4455 = vmatpush.msra.mxu0 %v4094_v13 }
 0x7e7   : > { %v3565_v63 = vsel %vm11784_vm14, %v10031_v53, %v3545_v1  ;;  %6004 = vmatpush.msk.msrb.mxu2 %vm392_vm12, %v3571_v15  ;;  %vm11794_vm14 = vmmov %vm11785_vm6 }
 0x7e8   : > { %4456 = vmatpush.msra.mxu0 %v4090_v40 }
 0x7e9   : > { %6005 = vmatpush.msk.msrb.mxu2 %vm392_vm12, %v3569_v47 }
 0x7ea   : > { %4457 = vmatpush.msra.mxu0 %v4086_v5 }
 0x7eb   : > { %v3547_v24 = vpop.permute.xlu1 %3546  ;;  %6006 = vmatpush.msk.msrb.mxu2 %vm392_vm12, %v3567_v56 }
 0x7ec   : > { %4458 = vmatpush.msra.mxu0 %v4082_v52  ;;  %v3566_v25 = vsel %vm11785_vm6, %v3547_v24, %v10019_v35  ;;  %v3423_v35 = vld [vmem:[#allocation3 + $0xb0] sm:$0xff]  ;;  %vm11795_vm6 = vcmask 924672  }
 0x7ed   : > { %6007 = vmatpush.msk.msrb.mxu2 %vm392_vm12, %v3565_v63  ;;  %6008 = vmatpush.msk.msrb.mxu3 %vm391_vm13, %v3566_v25 }
 0x7ee   : > { %v4015_v32 = vpop.permute.xlu0 %4014  ;;  %4459 = vmatpush.msra.mxu0 %v4078_v44 }
 0x7ef   : > { %v4031_v0 = vsel %vm11786_vm7, %v9939_v6, %v4015_v32  ;;  %4480 = vmatpush.msrb.mxu2 %v5938_v45  ;;  %vm11796_vm7 = vmmov %vm11795_vm6 }
 0x7f0   : > { %4460 = vmatpush.msra.mxu0 %v4074_v9 }
 0x7f1   : > { %4461 = vmatmul.f32.vlgmr.msra.gmra.mxu0 %v10009_v54  ;;  %4481 = vmatpush.msrb.mxu2 %v9113_v26  ;;  %v3422_v54 = vld [vmem:[#allocation3 + $0xa8] sm:$0xff] }
 0x7f3   : > { %v3541_v33 = vpop.permute.xlu1 %3540  ;;  %4482 = vmatpush.msrb.mxu2 %v3423_v35 }
 0x7f4   : > { %v3564_v6 = vsel %vm11787_vm15, %v3541_v33, %v10031_v53  ;;  %v3420_v53 = vld [vmem:[#allocation3 + $0x88] sm:$0xff]  ;;  %vm11797_vm15 = vmmov %vm11795_vm6 }
 0x7f5   : > { %4483 = vmatpush.msrb.mxu2 %v3421_v17  ;;  %6009 = vmatpush.msk.msrb.mxu3 %vm391_vm13, %v3564_v6  ;;  %v10268_v6 = vld [vmem:[#allocation4 + $0x78] sm:$0xff] }
 0x7f6   : > { %4484 = vmatmul.f32.vlgmr.msrb.gmra.mxu2 %v10011_v51 }
 0x7f7   : > { %4411 = vmatpush.msrb.mxu3 %v5939_v31 }
 0x7f9   : > { %4464 = vmatmul.f32.gmra.mxu0 %v10025_v29  ;;  %4412 = vmatpush.msrb.mxu3 %v9040_v37 }
 0x7fb   : > { %v4027_v26 = vpop.permute.xlu1 %4026  ;;  %4413 = vmatpush.msrb.mxu3 %v3422_v54 }
 0x7fc   : > { %v4035_v11 = vsel %vm11788_vm1, %v9992_v19, %v4027_v26  ;;  %vm11798_vm1 = vmmov %vm11794_vm14 }
 0x7fd   : > { %4414 = vmatpush.msrb.mxu3 %v3420_v53  ;;  %6010 = vmatpush.msk.msra.mxu1 %vm392_vm12, %v4035_v11  ;;  %v10283_v11 = vld [vmem:[#allocation4 + $0x58] sm:$0xff] }
 0x7fe   : > { %4415 = vmatmul.f32.vlgmr.msrb.gmra.mxu3 %v10011_v51  ;;  %4487 = vmatmul.f32.gmra.mxu2 %v10027_v58  ;;  %v4301_v51 = vpop.f32.mrf.mxu2 }
 0x7ff   : > { %6011 = vmatpush.msk.msra.mxu1 %vm392_vm12, %v10045_v12  ;;  %v4278_v12 = vpop.f32.mrf.mxu1 }
 0x801   : > { %6012 = vmatpush.msk.msra.mxu1 %vm392_vm12, %v4031_v0 }
 0x803   : > { %v4009_v37 = vpop.permute.xlu1 %4008 }
 0x804   : > { %v4029_v19 = vsel %vm11789_vm0, %v9976_v60, %v4009_v37  ;;  %vm11799_vm0 = vcmask 7168  }
 0x805   : > { %6013 = vmatpush.msk.msra.mxu1 %vm392_vm12, %v4029_v19 }
 0x806   : > { %4418 = vmatmul.f32.gmra.mxu3 %v10027_v58  ;;  %5689 = vmatmul.msk.f32.vlgmr.msra.gmra.mxu1 %vm515_vm5, %v9945_v57  ;;  %v4304_v58 = vpop.f32.mrf.mxu2 }
 0x807   : > { %v4281_v3 = vpop.f32.mrf.mxu1 }
 0x80d   : > { %v4255_v29 = vpop.f32.mrf.mxu0 }
 0x80e   : > { %5690 = vmatmul.msk.f32.gmra.mxu1 %vm515_vm5, %v10021_v41  ;;  %v4279_v4 = vadd.f32 %v4278_v12, %v4255_v29  ;;  %v4347_v41 = vpop.f32.mrf.mxu2  ;;  %vm11790_vm5 = vcmask 916480  }
 0x80f   : > { %v4393_v15 = vpop.f32.mrf.mxu1  ;;  %vm11791_vm3 = vmmov %vm11790_vm5 }
 0x810   : > { %v4302_v21 = vadd.f32 %v4301_v51, %v4279_v4  ;;  %vm11792_vm4 = vmmov %vm11791_vm3 }
 0x811   : > { %vm11793_vm2 = vmmov %vm11791_vm3 }
 0x812   : > { %v10176_v34 = vmax.f32 %v4302_v21, 0.0 }
 0x814   : > { %5030 = vrot.lane.b32.xlu1 %v10176_v34, %s11399_s20  ;;  %v4324_v57 = vpop.f32.mrf.mxu3 }
 0x815   : > { %v4258_v60 = vpop.f32.mrf.mxu0  ;;  %v4348_v14 = vadd.f32 %v4347_v41, %v4324_v57 }
 0x816   : > { %v4282_v59 = vadd.f32 %v4281_v3, %v4258_v60  ;;  %v4350_v8 = vpop.f32.mrf.mxu2 }
 0x817   : > { %v4396_v56 = vpop.f32.mrf.mxu1 }
 0x818   : > { %v4305_v23 = vadd.f32 %v4304_v58, %v4282_v59 }
 0x81a   : > { %v10180_v28 = vmax.f32 %v4305_v23, 0.0 }
 0x81c   : > { %5036 = vrot.lane.b32.xlu2 %v10180_v28, %s11399_s20  ;;  %v4327_v42 = vpop.f32.mrf.mxu3 }
 0x81d   : > { %v4351_v30 = vadd.f32 %v4350_v8, %v4327_v42  ;;  %v5247_v42 = vld [vmem:[#allocation5 + $0x240] sm:$0x1] }
 0x81e   : > { %5691 = vmatpush.msk.msrb.mxu0 %vm4225_vm10, %v5247_v42 }
 0x84e   : > { %v4370_v50 = vpop.f32.mrf.mxu0 }
 0x84f   : > { %v4371_v2 = vadd.f32 %v4370_v50, %v4348_v14 }
 0x851   : > { %v10184_v48 = vmax.f32 %v4371_v2, 0.0 }
 0x853   : > { %5032 = vrot.lane.b32.xlu2 %v10184_v48, %s11399_s20 }
 0x856   : > { %v4373_v7 = vpop.f32.mrf.mxu0 }
 0x857   : > { %v4374_v47 = vadd.f32 %v4373_v7, %v4351_v30 }
 0x859   : > { %v10188_v10 = vmax.f32 %v4374_v47, 0.0  ;;  %v4439_v43 = vpop.f32.mrf.mxu2 }
 0x85b   : > { %5038 = vrot.lane.b32.xlu0 %v10188_v10, %s11399_s20  ;;  %4958 = vrot.lane.b32.xlu1 %v10188_v10, %s11397_s17 }
 0x85c   : > { %4950 = vrot.lane.b32.xlu2 %v10176_v34, %s11397_s17 }
 0x861   : > { %v4442_v55 = vpop.f32.mrf.mxu2 }
 0x863   : > { %4956 = vrot.lane.b32.xlu0 %v10180_v28, %s11397_s17  ;;  %4876 = vrot.lane.b32.xlu1 %v10180_v28, %s11394_s2 }
 0x864   : > { %4878 = vrot.lane.b32.xlu2 %v10188_v10, %s11394_s2 }
 0x86b   : > { %4952 = vrot.lane.b32.xlu0 %v10184_v48, %s11397_s17  ;;  %4872 = vrot.lane.b32.xlu1 %v10184_v48, %s11394_s2 }
 0x86c   : > { %5040 = vrot.lane.b32.xlu2 %v10202_v22, %s11399_s20 }
 0x86e   : > { %v4462_v27 = vpop.f32.mrf.mxu0 }
 0x873   : > { %4870 = vrot.lane.b32.xlu0 %v10176_v34, %s11394_s2  ;;  %4782 = vrot.lane.b32.xlu1 %v10180_v28, %s6321_s23 }
 0x874   : > { %5034 = vrot.lane.b32.xlu2 %v10210_v62, %s11399_s20 }
 0x876   : > { %v4465_v63 = vpop.f32.mrf.mxu0  ;;  %v5037_v33 = vpop.permute.xlu2 %5036 }
 0x879   : > { %v4485_v16 = vpop.f32.mrf.mxu2 }
 0x87a   : > { %v4486_v46 = vadd.f32 %v4485_v16, %v4462_v27 }
 0x87b   : > { %4780 = vrot.lane.b32.xlu0 %v10218_v20, %s6321_s23  ;;  %4776 = vrot.lane.b32.xlu1 %v10176_v34, %s6321_s23 }
 0x87c   : > { %4960 = vrot.lane.b32.xlu2 %v10202_v22, %s11397_s17 }
 0x881   : > { %v4416_v61 = vpop.f32.mrf.mxu3  ;;  %v4488_v40 = vpop.f32.mrf.mxu2 }
 0x882   : > { %v4417_v36 = vadd.f32 %v4416_v61, %v4393_v15  ;;  %v4489_v24 = vadd.f32 %v4488_v40, %v4465_v63 }
 0x883   : > { %4774 = vrot.lane.b32.xlu0 %v10218_v20, %s6321_s23  ;;  %5110 = vrot.lane.b32.xlu1 %v10188_v10, %s6335_s16  ;;  %v4508_v18 = vpop.f32.mrf.mxu1 }
 0x884   : > { %4700 = vrot.lane.b32.xlu2 %v10218_v20, %s6316_s11  ;;  %v4440_v1 = vadd.f32 %v4439_v43, %v4417_v36  ;;  %v4509_v13 = vadd.f32 %v4508_v18, %v4486_v46 }
 0x886   : > { %v10232_v5 = vmax.f32 %v4440_v1, 0.0  ;;  %v10234_v52 = vmax.f32 %v4509_v13, 0.0  ;;  %v5031_v17 = vpop.permute.xlu1 %5030 }
 0x888   : > { %4854 = vst [vmem:[#allocation5 + $0x110] sm:$0xff] %v10232_v5 }
 0x889   : > { %v4419_v25 = vpop.f32.mrf.mxu3  ;;  %4855 = vst [vmem:[#allocation5 + $0x118] sm:$0xff] %v10234_v52 }
 0x88a   : > { %v4420_v32 = vadd.f32 %v4419_v25, %v4396_v56 }
 0x88b   : > { %5108 = vrot.lane.b32.xlu0 %v10180_v28, %s6335_s16  ;;  %4954 = vrot.lane.b32.xlu1 %v10210_v62, %s11397_s17  ;;  %v4511_v44 = vpop.f32.mrf.mxu1 }
 0x88c   : > { %5102 = vrot.lane.b32.xlu2 %v10176_v34, %s6335_s16  ;;  %v4443_v0 = vadd.f32 %v4442_v55, %v4420_v32  ;;  %v4512_v9 = vadd.f32 %v4511_v44, %v4489_v24 }
 0x88e   : > { %v10244_v45 = vmax.f32 %v4443_v0, 0.0  ;;  %v10246_v35 = vmax.f32 %v4512_v9, 0.0 }
 0x890   : > { %4856 = vst [vmem:[#allocation5 + $0x130] sm:$0xff] %v10244_v45 }
 0x891   : > { %4857 = vst [vmem:[#allocation5 + $0x138] sm:$0xff] %v10246_v35 }
 0x893   : > { %4702 = vrot.lane.b32.xlu0 %v10180_v28, %s6316_s11  ;;  %4694 = vrot.lane.b32.xlu1 %v10218_v20, %s6316_s11 }
 0x894   : > { %4696 = vrot.lane.b32.xlu2 %v10176_v34, %s6316_s11 }
 0x89b   : > { %5104 = vrot.lane.b32.xlu0 %v10184_v48, %s6335_s16  ;;  %5072 = vrot.lane.b32.xlu1 %v10244_v45, %s11399_s20 }
 0x89c   : > { %5074 = vrot.lane.b32.xlu2 %v10246_v35, %s11399_s20 }
 0x8a3   : > { %4880 = vrot.lane.b32.xlu0 %v10202_v22, %s11394_s2  ;;  %4874 = vrot.lane.b32.xlu1 %v10210_v62, %s11394_s2 }
 0x8a4   : > { %4628 = vrot.lane.b32.xlu2 %v10218_v20, %s6314_s30 }
 0x8ab   : > { %5076 = vrot.lane.b32.xlu0 %v10268_v6, %s11399_s20  ;;  %5066 = vrot.lane.b32.xlu1 %v10232_v5, %s11399_s20 }
 0x8ac   : > { %5068 = vrot.lane.b32.xlu2 %v10234_v52, %s11399_s20 }
 0x8ad   : > { %v5033_v31 = vpop.permute.xlu2 %5032 }
 0x8ae   : > { %v5042_v26 = vsel %vm11790_vm5, %v5031_v17, %v5033_v31  ;;  %vm11800_vm5 = vmmov %vm11799_vm0 }
 0x8b3   : > { %4630 = vrot.lane.b32.xlu0 %v10180_v28, %s6314_s30  ;;  %4996 = vrot.lane.b32.xlu1 %v10244_v45, %s11397_s17 }
 0x8b4   : > { %4998 = vrot.lane.b32.xlu2 %v10246_v35, %s11397_s17 }
 0x8b6   : > { %v4951_v54 = vpop.permute.xlu2 %4950 }
 0x8bb   : > { %5070 = vrot.lane.b32.xlu0 %v10283_v11, %s11399_s20  ;;  %4622 = vrot.lane.b32.xlu1 %v10218_v20, %s6314_s30 }
 0x8bc   : > { %4624 = vrot.lane.b32.xlu2 %v10176_v34, %s6314_s30 }
 0x8be   : > { %v10291_v53 = vpop.permute.xlu2 %4878 }
 0x8c3   : > { %5000 = vrot.lane.b32.xlu0 %v10268_v6, %s11397_s17  ;;  %4550 = vrot.lane.b32.xlu1 %v10180_v28, %s6313_s21 }
 0x8c4   : > { %4990 = vrot.lane.b32.xlu2 %v10232_v5, %s11397_s17 }
 0x8c6   : > { %v5041_v37 = vpop.permute.xlu2 %5040 }
 0x8cb   : > { %4548 = vrot.lane.b32.xlu0 %v10218_v20, %s6313_s21  ;;  %4994 = vrot.lane.b32.xlu1 %v10283_v11, %s11397_s17 }
 0x8cc   : > { %4542 = vrot.lane.b32.xlu2 %v10218_v20, %s6313_s21 }
 0x8cd   : > { %v4959_v19 = vpop.permute.xlu1 %4958  ;;  %v5039_v51 = vpop.permute.xlu0 %5038 }
 0x8ce   : > { %v5035_v29 = vpop.permute.xlu2 %5034  ;;  %v5044_v12 = vsel %vm11791_vm3, %v5037_v33, %v5039_v51  ;;  %v5045_v4 = vsel %vm11792_vm4, %v5039_v51, %v5041_v37  ;;  %vm11801_vm3 = vmmov %vm11795_vm6  ;;  %vm11802_vm4 = vcmask 908288  }
 0x8cf   : > { %v5043_v21 = vsel %vm11793_vm2, %v5033_v31, %v5035_v29  ;;  %5266 = vmatpush.msra.mxu3 %v5044_v12  ;;  %5306 = vmatpush.msrb.mxu1 %v5045_v4  ;;  %vm11803_vm2 = vcmask 121856  }
 0x8d1   : > { %5267 = vmatpush.msra.mxu3 %v5042_v26  ;;  %5307 = vmatpush.msrb.mxu1 %v5043_v21 }
 0x8d3   : > { %4784 = vrot.lane.b32.xlu1 %v10188_v10, %s6321_s23  ;;  %4992 = vrot.lane.b32.xlu0 %v10234_v52, %s11397_s17  ;;  %s359_s17 = scalar_lea.vmem [#allocation15], %s11855_s15 }
 0x8d4   : > { %4916 = vrot.lane.b32.xlu2 %v10244_v45, %s11394_s2  ;;  %s5552_s20 = sshll.u32 %s359_s17, 4  ;;  %s5553_s20 = int_to_ptr.vmem [resolvable:$true] %s5552_s20 }
 0x8d5   : > { %v4877_v60 = vpop.permute.xlu1 %4876  ;;  %v4957_v3 = vpop.permute.xlu0 %4956 }
 0x8d6   : > { %v4884_v59 = vsel %vm11794_vm14, %v4877_v60, %v10291_v53  ;;  %v4961_v58 = vpop.permute.xlu2 %4960  ;;  %v4964_v23 = vsel %vm11795_vm6, %v4957_v3, %v4959_v19  ;;  %vm11804_vm14 = vmmov %vm11803_vm2  ;;  %vm11805_vm6 = vcmask 916480  }
 0x8d7   : > { %v4965_v57 = vsel %vm11796_vm7, %v4959_v19, %v4961_v58  ;;  %6014 = vmatpush.msk.msra.mxu3 %vm389_vm8, %v4964_v23  ;;  %vm11806_vm7 = vmmov %vm11802_vm4 }
 0x8d8   : > { %6015 = vmatpush.msk.msrb.mxu1 %vm390_vm9, %v4965_v57 }
 0x8db   : > { %4920 = vrot.lane.b32.xlu1 %v10268_v6, %s11394_s2  ;;  %4544 = vrot.lane.b32.xlu0 %v10176_v34, %s6313_s21 }
 0x8dc   : > { %4778 = vrot.lane.b32.xlu2 %v10184_v48, %s6321_s23 }
 0x8dd   : > { %v10328_v41 = vpop.permute.xlu1 %4872  ;;  %v4953_v14 = vpop.permute.xlu0 %4952 }
 0x8de   : > { %v4701_v50 = vpop.permute.xlu2 %4700  ;;  %v4962_v2 = vsel %vm11797_vm15, %v4951_v54, %v4953_v14  ;;  %vm11807_vm15 = vmmov %vm11798_vm1 }
 0x8df   : > { %6016 = vmatpush.msk.msra.mxu3 %vm389_vm8, %v4962_v2 }
 0x8e1   : > { %6017 = vmatpush.msk.msra.mxu3 %vm391_vm13, %v4884_v59 }
 0x8e3   : > { %4918 = vrot.lane.b32.xlu0 %v10246_v35, %s11394_s2  ;;  %4912 = vrot.lane.b32.xlu1 %v10234_v52, %s11394_s2 }
 0x8e4   : > { %4914 = vrot.lane.b32.xlu2 %v10283_v11, %s11394_s2 }
 0x8e5   : > { %v10342_v8 = vpop.permute.xlu1 %4782  ;;  %v4871_v30 = vpop.permute.xlu0 %4870 }
 0x8e6   : > { %v5103_v7 = vpop.permute.xlu2 %5102  ;;  %v4882_v47 = vsel %vm11798_vm1, %v4871_v30, %v10328_v41 }
 0x8e7   : > { %6018 = vmatpush.msk.msra.mxu3 %vm391_vm13, %v4882_v47 }
 0x8e9   : > { %5272 = vmatpush.msra.mxu3 %v10180_v28 }
 0x8eb   : > { %4910 = vrot.lane.b32.xlu0 %v10232_v5, %s11394_s2  ;;  %4698 = vrot.lane.b32.xlu1 %v10184_v48, %s6316_s11 }
 0x8ec   : > { %5148 = vrot.lane.b32.xlu2 %v10244_v45, %s6335_s16  ;;  %5273 = vmatpush.msra.mxu3 %v10176_v34 }
 0x8ed   : > { %v10356_v43 = vpop.permute.xlu1 %4776  ;;  %v4781_v15 = vpop.permute.xlu0 %4780 }
 0x8ee   : > { %v10358_v55 = vpop.permute.xlu2 %4696  ;;  %v4788_v56 = vsel %vm11799_vm0, %v4781_v15, %v10342_v8  ;;  %vm11808_vm0 = vmmov %vm11805_vm6 }
 0x8ef   : > { %6019 = vmatpush.msk.msra.mxu3 %vm389_vm8, %v4788_v56 }
 0x8f3   : > { %4704 = vrot.lane.b32.xlu0 %v10188_v10, %s6316_s11  ;;  %4820 = vrot.lane.b32.xlu1 %v10218_v20, %s6321_s23 }
 0x8f4   : > { %4822 = vrot.lane.b32.xlu2 %v10244_v45, %s6321_s23 }
 0x8f5   : > { %v10370_v34 = vpop.permute.xlu1 %5110  ;;  %v4775_v28 = vpop.permute.xlu0 %4774 }
 0x8f6   : > { %v5075_v27 = vpop.permute.xlu2 %5074  ;;  %v4786_v16 = vsel %vm11800_vm5, %v4775_v28, %v10356_v43  ;;  %vm11809_vm5 = vmmov %vm11808_vm0 }
 0x8f7   : > { %6020 = vmatpush.msk.msra.mxu3 %vm389_vm8, %v4786_v16 }
 0x8fb   : > { %5150 = vrot.lane.b32.xlu0 %v10246_v35, %s6335_s16  ;;  %5142 = vrot.lane.b32.xlu1 %v10232_v5, %s6335_s16 }
 0x8fc   : > { %5144 = vrot.lane.b32.xlu2 %v10234_v52, %s6335_s16 }
 0x8fd   : > { %v4955_v46 = vpop.permute.xlu1 %4954  ;;  %v5109_v61 = vpop.permute.xlu0 %5108 }
 0x8fe   : > { %v4963_v36 = vsel %vm11801_vm3, %v4953_v14, %v4955_v46  ;;  %v4629_v18 = vpop.permute.xlu2 %4628  ;;  %v5116_v1 = vsel %vm11802_vm4, %v5109_v61, %v10370_v34  ;;  %vm11810_vm4 = vcmask 130048   ;;  %v5249_v46 = vld [vmem:[#allocation5 + $0x250] sm:$0x1] }
 0x8ff   : > { %6021 = vmatpush.msk.msrb.mxu0 %vm391_vm13, %v5116_v1  ;;  %6022 = vmatpush.msk.msrb.mxu1 %vm390_vm9, %v4963_v36 }
 0x903   : > { %4824 = vrot.lane.b32.xlu0 %v10246_v35, %s6321_s23  ;;  %4814 = vrot.lane.b32.xlu1 %v10218_v20, %s6321_s23 }
 0x904   : > { %4816 = vrot.lane.b32.xlu2 %v10232_v5, %s6321_s23 }
 0x905   : > { %v4695_v13 = vpop.permute.xlu1 %4694  ;;  %v10395_v63 = vpop.permute.xlu0 %4702 }
 0x906   : > { %v4706_v40 = vsel %vm11803_vm2, %v4695_v13, %v10358_v55  ;;  %v5069_v24 = vpop.permute.xlu2 %5068  ;;  %v4708_v25 = vsel %vm11804_vm14, %v4701_v50, %v10395_v63  ;;  %vm11811_vm2 = vmmov %vm11810_vm4 }
 0x907   : > { %6023 = vmatpush.msk.msra.mxu3 %vm391_vm13, %v4708_v25  ;;  %vm11812_vm14 = vmmov %vm11808_vm0 }
 0x909   : > { %6024 = vmatpush.msk.msra.mxu3 %vm391_vm13, %v4706_v40 }
 0x90b   : > { %4632 = vrot.lane.b32.xlu0 %v10188_v10, %s6314_s30  ;;  %4626 = vrot.lane.b32.xlu1 %v10184_v48, %s6314_s30 }
 0x90c   : > { %4552 = vrot.lane.b32.xlu2 %v10188_v10, %s6313_s21 }
 0x90d   : > { %v5073_v32 = vpop.permute.xlu1 %5072  ;;  %v10411_v44 = vpop.permute.xlu0 %5104 }
 0x90e   : > { %v5080_v0 = vsel %vm11805_vm6, %v5073_v32, %v5075_v27  ;;  %v4999_v9 = vpop.permute.xlu2 %4998  ;;  %v5114_v33 = vsel %vm11806_vm7, %v5103_v7, %v10411_v44  ;;  %vm11813_vm6 = vmmov %vm11801_vm3  ;;  %vm11814_vm7 = vcmask 7168  }
 0x90f   : > { %5346 = vmatpush.msra.mxu2 %v5080_v0  ;;  %6025 = vmatpush.msk.msrb.mxu0 %vm391_vm13, %v5114_v33 }
 0x913   : > { %4742 = vrot.lane.b32.xlu1 %v10244_v45, %s6316_s11  ;;  %4818 = vrot.lane.b32.xlu0 %v10234_v52, %s6321_s23  ;;  %s5704_s23 = sshll.u32 %s6413_s8, 2 }
 0x914   : > { %4744 = vrot.lane.b32.xlu2 %v10246_v35, %s6316_s11  ;;  %s5550_s2 = scalar_lea.hbm %s10761_s7, %s5704_s23 }
 0x915   : > { %v4875_v17 = vpop.permute.xlu1 %4874  ;;  %v4881_v31 = vpop.permute.xlu0 %4880  ;;  %s5554_s8 = sshll.u32 %s5550_s2, 4  ;;  %s5555_s8 = int_to_ptr.hbm [resolvable:$true] %s5554_s8 }
 0x916   : > { %v4883_v26 = vsel %vm11807_vm15, %v10328_v41, %v4875_v17  ;;  %v10426_v54 = vpop.permute.xlu2 %4624  ;;  %v4885_v37 = vsel %vm11798_vm1, %v10291_v53, %v4881_v31  ;;  %vm11815_vm15 = vcmask 138240   ;;  %vm11816_vm1 = vmmov %vm11814_vm7  ;;  %s6226_s12 = sshra.s32 %s5555_s8, 4  ;;  %s6227_s12 = int_to_ptr.hbm [resolvable:$true] %s6226_s12 }
 0x917   : > { %6026 = vmatpush.msk.msrb.mxu1 %vm392_vm12, %v4885_v37  ;;  %s6228_s13 = scalar_lea.hbm %s6227_s12, 4  ;;  %p6233_p12 = scmp.lt.s32.totalorder %s6227_s12, %s10761_s7 }
 0x918   : > { %p6229_p1 = scmp.ne.s32.totalorder %s6227_s12, %s6228_s13 }
 0x919   : > { %6027 = vmatpush.msk.msrb.mxu1 %vm392_vm12, %v4883_v26 }
 0x91a   : > { %p6230_p3 = pnand %p6229_p1, %p6476_p4 }
 0x91b   : > { %4546 = vrot.lane.b32.xlu1 %v10184_v48, %s6313_s21  ;;  %4740 = vrot.lane.b32.xlu0 %v10218_v20, %s6316_s11 }
 0x91c   : > { %4734 = vrot.lane.b32.xlu2 %v10218_v20, %s6316_s11  ;;  %5312 = vmatpush.msrb.mxu1 %v10188_v10  ;;  %p6231_p5 = pneg %p6230_p3 }
 0x91d   : > { %v5067_v19 = vpop.permute.xlu1 %5066  ;;  %v5077_v51 = vpop.permute.xlu0 %5076 }
 0x91e   : > { %v5078_v53 = vsel %vm11808_vm0, %v5067_v19, %v5069_v24  ;;  %v4991_v29 = vpop.permute.xlu2 %4990  ;;  %v10443_v12 = vsel %vm11809_vm5, %v5075_v27, %v5077_v51  ;;  %5313 = vmatpush.msrb.mxu1 %v10184_v48  ;;  %vm11817_vm0 = vmmov %vm11801_vm3 }
 0x91f   : > { %5347 = vmatpush.msra.mxu2 %v5078_v53  ;;  %vm11818_vm5 = vmmov %vm11817_vm0 }
 0x923   : > { %5112 = vrot.lane.b32.xlu0 %v10202_v22, %s6335_s16  ;;  %4738 = vrot.lane.b32.xlu1 %v10234_v52, %s6316_s11 }
 0x924   : > { %5106 = vrot.lane.b32.xlu2 %v10210_v62, %s6335_s16 }
 0x925   : > { %v4997_v10 = vpop.permute.xlu1 %4996  ;;  %v10452_v4 = vpop.permute.xlu0 %4630 }
 0x926   : > { %v5004_v21 = vsel %vm11801_vm3, %v4997_v10, %v4999_v9  ;;  %v4543_v60 = vpop.permute.xlu2 %4542  ;;  %v4636_v3 = vsel %vm11810_vm4, %v4629_v18, %v10452_v4  ;;  %vm11819_vm3 = vmmov %vm11815_vm15  ;;  %vm11820_vm4 = vcmask 1039360  }
 0x927   : > { %4644 = vst [vmem:[#allocation5 + $0x60] sm:$0xff] %v4636_v3  ;;  %5278 = vmatpush.msra.mxu3 %v4636_v3  ;;  %6028 = vmatpush.msk.msra.mxu2 %vm389_vm8, %v5004_v21 }
 0x92b   : > { %4736 = vrot.lane.b32.xlu0 %v10232_v5, %s6316_s11  ;;  %5146 = vrot.lane.b32.xlu1 %v10283_v11, %s6335_s16 }
 0x92c   : > { %4664 = vrot.lane.b32.xlu2 %v10218_v20, %s6314_s30 }
 0x92d   : > { %v4623_v48 = vpop.permute.xlu1 %4622  ;;  %v5071_v22 = vpop.permute.xlu0 %5070 }
 0x92e   : > { %v4634_v62 = vsel %vm11811_vm2, %v4623_v48, %v10426_v54  ;;  %v4917_v59 = vpop.permute.xlu2 %4916  ;;  %v10468_v58 = vsel %vm11812_vm14, %v5069_v24, %v5071_v22  ;;  %vm11821_vm2 = vmmov %vm11820_vm4 }
 0x92f   : > { %4642 = vst [vmem:[#allocation5 + $0x40] sm:$0xff] %v4634_v62  ;;  %5279 = vmatpush.msra.mxu3 %v4634_v62  ;;  %vm11822_vm14 = vmmov %vm11821_vm2 }
 0x933   : > { %5152 = vrot.lane.b32.xlu0 %v10268_v6, %s6335_s16  ;;  %4668 = vrot.lane.b32.xlu1 %v10246_v35, %s6314_s30 }
 0x934   : > { %4658 = vrot.lane.b32.xlu2 %v10218_v20, %s6314_s30 }
 0x935   : > { %v10476_v11 = vpop.permute.xlu1 %4550  ;;  %v5001_v23 = vpop.permute.xlu0 %5000 }
 0x936   : > { %v4779_v57 = vpop.permute.xlu2 %4778  ;;  %v10479_v41 = vsel %vm11813_vm6, %v4999_v9, %v5001_v23  ;;  %vm11823_vm6 = vcmask 121856   ;;  %v5248_v23 = vld [vmem:[#allocation5 + $0x248] sm:$0x1] }
 0x937   : > { %v4787_v14 = vsel %vm11814_vm7, %v10356_v43, %v4779_v57  ;;  %vm11824_vm7 = vmmov %vm11821_vm2  ;;  %5693 = vmatpush.msk.msra.mxu0 %vm4225_vm10, %v5248_v23 }
 0x93b   : > { %4666 = vrot.lane.b32.xlu0 %v10244_v45, %s6314_s30  ;;  %4662 = vrot.lane.b32.xlu1 %v10234_v52, %s6314_s30 }
 0x93c   : > { %4588 = vrot.lane.b32.xlu2 %v10218_v20, %s6313_s21 }
 0x93d   : > { %v4995_v6 = vpop.permute.xlu1 %4994  ;;  %v4549_v50 = vpop.permute.xlu0 %4548 }
 0x93e   : > { %v4915_v2 = vpop.permute.xlu2 %4914  ;;  %v4556_v42 = vsel %vm11815_vm15, %v4549_v50, %v10476_v11  ;;  %vm11825_vm15 = vmmov %vm11816_vm1 }
 0x93f   : > { %v4564_v30 = vsel %vm389_vm8, %v4556_v42, 0.0  ;;  %6029 = vmatpush.msk.msra.mxu3 %vm389_vm8, %v4556_v42  ;;  %v10595_v42 = vld [vmem:[#allocation14 + $0x8] sm:$0xff] }
 0x940   : > { %4568 = vst [vmem:[#allocation5 + $0x20] sm:$0xff] %v4564_v30 }
 0x943   : > { %4660 = vrot.lane.b32.xlu0 %v10232_v5, %s6314_s30  ;;  %4592 = vrot.lane.b32.xlu1 %v10246_v35, %s6313_s21 }
 0x944   : > { %4582 = vrot.lane.b32.xlu2 %v10218_v20, %s6313_s21 }
 0x945   : > { %v4785_v7 = vpop.permute.xlu1 %4784  ;;  %v4993_v47 = vpop.permute.xlu0 %4992 }
 0x946   : > { %v4789_v43 = vsel %vm11816_vm1, %v10342_v8, %v4785_v7  ;;  %v5149_v15 = vpop.permute.xlu2 %5148  ;;  %v5002_v56 = vsel %vm11817_vm0, %v4991_v29, %v4993_v47  ;;  %v10505_v28 = vsel %vm11818_vm5, %v4993_v47, %v4995_v6  ;;  %vm11826_vm1 = vmmov %vm11823_vm6  ;;  %vm11828_vm5 = vcmask 908288  }
 0x947   : > { %6030 = vmatpush.msk.msrb.mxu1 %vm390_vm9, %v4789_v43  ;;  %6031 = vmatpush.msk.msra.mxu2 %vm389_vm8, %v5002_v56  ;;  %vm11827_vm0 = vmmov %vm11819_vm3  ;;  %v5250_v56 = vld [vmem:[#allocation5 + $0x258] sm:$0x1] }
 0x949   : > { %6032 = vmatpush.msk.msrb.mxu1 %vm390_vm9, %v4787_v14 }
 0x94b   : > { %4590 = vrot.lane.b32.xlu0 %v10244_v45, %s6313_s21  ;;  %4586 = vrot.lane.b32.xlu1 %v10234_v52, %s6313_s21 }
 0x94d   : > { %v4921_v20 = vpop.permute.xlu1 %4920  ;;  %v10517_v35 = vpop.permute.xlu0 %4544 }
 0x94e   : > { %v4823_v8 = vpop.permute.xlu2 %4822  ;;  %v4554_v27 = vsel %vm11819_vm3, %v4543_v60, %v10517_v35  ;;  %vm11829_vm3 = vmmov %vm11828_vm5 }
 0x94f   : > { %v4562_v16 = vsel %vm389_vm8, %v4554_v27, 0.0  ;;  %6033 = vmatpush.msk.msra.mxu3 %vm389_vm8, %v4554_v27 }
 0x950   : > { %4566 = vst [vmem:[#allocation5] sm:$0xff] %v4562_v16 }
 0x951   : > { %5695 = vmatpush.msk.msrb.mxu3 %vm4225_vm10, %v5249_v46 }
 0x953   : > { %4584 = vrot.lane.b32.xlu0 %v10232_v5, %s6313_s21  ;;  %s6232_s21 = scalar_lea.hbm %s10761_s7, 8 }
 0x954   : > { %p6234_p7 = scmp.lt.s32.totalorder %s6232_s21, %s6228_s13 }
 0x955   : > { %v4913_v52 = vpop.permute.xlu1 %4912  ;;  %v4919_v61 = vpop.permute.xlu0 %4918 }
 0x956   : > { %v10528_v36 = vpop.permute.xlu2 %5144  ;;  %v10531_v18 = vsel %vm11820_vm4, %v4913_v52, %v4915_v2  ;;  %v4924_v1 = vsel %vm11821_vm2, %v4917_v59, %v4919_v61  ;;  %v10535_v13 = vsel %vm11822_vm14, %v4919_v61, %v4921_v20  ;;  %vm11830_vm4 = vmmov %vm11825_vm15  ;;  %vm11832_vm14 = vcmask 130048   ;;  %p6235_p8 = por %p6234_p7, %p6233_p12 }
 0x957   : > { %v4931_v40 = vsel %vm392_vm12, %v10531_v18, 0.0  ;;  %v4933_v24 = vsel %vm392_vm12, %v10535_v13, 0.0  ;;  %6034 = vmatpush.msk.msra.mxu2 %vm391_vm13, %v4924_v1  ;;  %vm11831_vm2 = vmmov %vm11830_vm4 }
 0x958   : > { %4935 = vst [vmem:[#allocation5 + $0x158] sm:$0xff] %v4931_v40  ;;  %p6236_p9 = pnand %p6235_p8, %p6231_p5 }
 0x959   : > { %4937 = vst [vmem:[#allocation5 + $0x178] sm:$0xff] %v4933_v24 }
 0x95d   : > { %v4699_v25 = vpop.permute.xlu1 %4698  ;;  %v4911_v32 = vpop.permute.xlu0 %4910 }
 0x95e   : > { %v4817_v0 = vpop.permute.xlu2 %4816  ;;  %v4707_v9 = vsel %vm11823_vm6, %v10358_v55, %v4699_v25  ;;  %v4922_v33 = vsel %vm11824_vm7, %v4911_v32, %v4913_v52  ;;  %vm11833_vm6 = vmmov %vm11832_vm14 }
 0x95f   : > { %v4930_v17 = vsel %vm391_vm13, %v4922_v33, 0.0  ;;  %6035 = vmatpush.msk.msra.mxu2 %vm391_vm13, %v4922_v33  ;;  %vm11834_vm7 = vmmov %vm11829_vm3 }
 0x960   : > { %4934 = vst [vmem:[#allocation5 + $0x150] sm:$0xff] %v4930_v17 }
 0x961   : > { %5352 = vmatpush.msra.mxu2 %v10244_v45 }
 0x963   : > { %5353 = vmatpush.msra.mxu2 %v10232_v5 }
 0x965   : > { %v4821_v31 = vpop.permute.xlu1 %4820  ;;  %v4705_v26 = vpop.permute.xlu0 %4704 }
 0x966   : > { %v4553_v37 = vpop.permute.xlu2 %4552  ;;  %v4828_v19 = vsel %vm11825_vm15, %v4821_v31, %v4823_v8  ;;  %v4709_v55 = vsel %vm11826_vm1, %v10395_v63, %v4705_v26  ;;  %vm11835_vm15 = vmmov %vm11827_vm0 }
 0x967   : > { %v4557_v51 = vsel %vm11827_vm0, %v10476_v11, %v4553_v37  ;;  %v4836_v53 = vsel %vm389_vm8, %v4828_v19, 0.0  ;;  %6036 = vmatpush.msk.msrb.mxu1 %vm392_vm12, %v4709_v55  ;;  %6037 = vmatpush.msk.msra.mxu2 %vm389_vm8, %v4828_v19  ;;  %vm11836_vm0 = vmmov %vm11831_vm2 }
 0x968   : > { %v4565_v29 = vsel %vm390_vm9, %v4557_v51, 0.0  ;;  %4840 = vst [vmem:[#allocation5 + $0xf0] sm:$0xff] %v4836_v53  ;;  %5692 = vmatmul.msk.f32.vlgmr.msrb.gmra.mxu0 %vm11835_vm15, %v10595_v42 }
 0x969   : > { %4569 = vst [vmem:[#allocation5 + $0x28] sm:$0xff] %v4565_v29  ;;  %6038 = vmatpush.msk.msrb.mxu1 %vm392_vm12, %v4707_v9  ;;  %v5214_v9 = vld [vmem:[#allocation5 + $0x138] sm:$0xff] }
 0x96d   : > { %v5143_v5 = vpop.permute.xlu1 %5142  ;;  %v10569_v45 = vpop.permute.xlu0 %5150 }
 0x96e   : > { %v4745_v63 = vpop.permute.xlu2 %4744  ;;  %v5154_v10 = vsel %vm11828_vm5, %v5143_v5, %v10528_v36  ;;  %v5156_v21 = vsel %vm11829_vm3, %v5149_v15, %v10569_v45  ;;  %v10612_v15 = vld [vmem:[#allocation14] sm:$0xff]  ;;  %vm11837_vm5 = vmmov %vm11835_vm15 }
 0x96f   : > { %6039 = vmatpush.msk.msrb.mxu3 %vm391_vm13, %v5156_v21  ;;  %vm11838_vm3 = vmmov %vm11826_vm1 }
 0x970   : > { %5282 = vmatmul.f32.vlgmr.msra.gmra.mxu3 %v10612_v15  ;;  %vm11844_vm15 = vmmov %vm11826_vm1 }
 0x971   : > { %6040 = vmatpush.msk.msrb.mxu3 %vm391_vm13, %v5154_v10 }
 0x973   : > { %5697 = vmatpush.msk.msra.mxu3 %vm4225_vm10, %v5250_v56 }
 0x975   : > { %v4815_v60 = vpop.permute.xlu1 %4814  ;;  %v4825_v3 = vpop.permute.xlu0 %4824 }
 0x976   : > { %v4735_v48 = vpop.permute.xlu2 %4734  ;;  %v4826_v22 = vsel %vm11830_vm4, %v4815_v60, %v4817_v0  ;;  %v10581_v62 = vsel %vm11831_vm2, %v4823_v8, %v4825_v3  ;;  %vm11839_vm4 = vmmov %vm11837_vm5 }
 0x977   : > { %v4834_v59 = vsel %vm389_vm8, %v4826_v22, 0.0  ;;  %v4837_v11 = vsel %vm390_vm9, %v10581_v62, 0.0  ;;  %6041 = vmatpush.msk.msra.mxu2 %vm389_vm8, %v4826_v22  ;;  %vm11840_vm2 = vmmov %vm11834_vm7 }
 0x978   : > { %4838 = vst [vmem:[#allocation5 + $0xd0] sm:$0xff] %v4834_v59  ;;  %5696 = vmatmul.msk.f32.vlgmr.msrb.gmra.mxu3 %vm11839_vm4, %v10595_v42 }
 0x979   : > { %4841 = vst [vmem:[#allocation5 + $0xf8] sm:$0xff] %v4837_v11 }
 0x97d   : > { %v4627_v57 = vpop.permute.xlu1 %4626  ;;  %v4633_v14 = vpop.permute.xlu0 %4632 }
 0x97e   : > { %v5107_v6 = vpop.permute.xlu2 %5106  ;;  %v4635_v50 = vsel %vm11832_vm14, %v10426_v54, %v4627_v57  ;;  %v4637_v2 = vsel %vm11833_vm6, %v10452_v4, %v4633_v14  ;;  %vm11841_vm14 = vmmov %vm11839_vm4 }
 0x97f   : > { %v5115_v30 = vsel %vm11834_vm7, %v10411_v44, %v5107_v6  ;;  %4643 = vst [vmem:[#allocation5 + $0x48] sm:$0xff] %v4635_v50  ;;  %5318 = vmatpush.msrb.mxu1 %v4637_v2  ;;  %vm11842_vm6 = vmmov %vm11840_vm2  ;;  %v5430_v6 = vld [vmem:[%s10759_s5] sm:$0x1] }
 0x980   : > { %4645 = vst [vmem:[#allocation5 + $0x68] sm:$0xff] %v4637_v2  ;;  %vm11843_vm7 = vmmov %vm11826_vm1 }
 0x981   : > { %5319 = vmatpush.msrb.mxu1 %v4635_v50 }
 0x983   : > { %6042 = vmatpush.msk.msrb.mxu1 %vm390_vm9, %v4557_v51 }
 0x985   : > { %v4743_v7 = vpop.permute.xlu1 %4742  ;;  %v4819_v54 = vpop.permute.xlu0 %4818 }
 0x986   : > { %v10604_v47 = vsel %vm11826_vm1, %v4743_v7, %v4745_v63  ;;  %v4827_v4 = vsel %vm11836_vm0, %v4817_v0, %v4819_v54  ;;  %vm11845_vm1 = vmmov %vm11840_vm2  ;;  %vm11847_vm0 = vcmask 130048  }
 0x987   : > { %v4757_v44 = vsel %vm392_vm12, %v10604_v47, 0.0  ;;  %v4835_v43 = vsel %vm390_vm9, %v4827_v4, 0.0 }
 0x988   : > { %4761 = vst [vmem:[#allocation5 + $0xb8] sm:$0xff] %v4757_v44 }
 0x989   : > { %4839 = vst [vmem:[#allocation5 + $0xd8] sm:$0xff] %v4835_v43 }
 0x98d   : > { %v4547_v20 = vpop.permute.xlu1 %4546  ;;  %v4741_v8 = vpop.permute.xlu0 %4740 }
 0x98e   : > { %v4555_v27 = vsel %vm11837_vm5, %v10517_v35, %v4547_v20  ;;  %v4748_v16 = vsel %vm11838_vm3, %v4741_v8, %v4743_v7  ;;  %vm11848_vm5 = vmmov %vm11847_vm0 }
 0x98f   : > { %v4563_v46 = vsel %vm390_vm9, %v4555_v27, 0.0  ;;  %v4756_v52 = vsel %vm391_vm13, %v4748_v16, 0.0  ;;  %6043 = vmatpush.msk.msrb.mxu1 %vm390_vm9, %v4555_v27  ;;  %6044 = vmatpush.msk.msra.mxu2 %vm391_vm13, %v4748_v16  ;;  %vm11849_vm3 = vmmov %vm11847_vm0 }
 0x990   : > { %4567 = vst [vmem:[#allocation5 + $0x8] sm:$0xff] %v4563_v46  ;;  %5322 = vmatmul.f32.vlgmr.msrb.gmra.mxu1 %v10612_v15 }
 0x991   : > { %4760 = vst [vmem:[#allocation5 + $0xb0] sm:$0xff] %v4756_v52 }
 0x995   : > { %v4739_v35 = vpop.permute.xlu1 %4738  ;;  %v5113_v61 = vpop.permute.xlu0 %5112 }
 0x996   : > { %v5117_v1 = vsel %vm11840_vm2, %v10370_v34, %v5113_v61 }
 0x997   : > { %6045 = vmatpush.msk.msra.mxu0 %vm392_vm12, %v5117_v1 }
 0x999   : > { %6046 = vmatpush.msk.msra.mxu0 %vm392_vm12, %v5115_v30 }
 0x99a   : > { %5694 = vmatmul.msk.f32.vlgmr.msra.gmra.mxu0 %vm11841_vm14, %v10595_v42 }
 0x99b   : > { %5386 = vmatpush.msrb.mxu0 %v10443_v12 }
 0x99d   : > { %v5147_v40 = vpop.permute.xlu1 %5146  ;;  %v4737_v24 = vpop.permute.xlu0 %4736  ;;  %5387 = vmatpush.msrb.mxu0 %v10468_v58 }
 0x99e   : > { %v5155_v25 = vsel %vm11842_vm6, %v10528_v36, %v5147_v40  ;;  %v4746_v34 = vsel %vm11843_vm7, %v4735_v48, %v4737_v24  ;;  %v4747_v32 = vsel %vm11844_vm15, %v4737_v24, %v4739_v35  ;;  %v4665_v36 = vpop.permute.xlu2 %4664  ;;  %vm5441_vm7 = vcmask 64512  }
 0x99f   : > { %v4754_v0 = vsel %vm391_vm13, %v4746_v34, 0.0  ;;  %v4755_v12 = vsel %vm392_vm12, %v4747_v32, 0.0  ;;  %6047 = vmatpush.msk.msrb.mxu0 %vm390_vm9, %v10479_v41  ;;  %6048 = vmatpush.msk.msra.mxu2 %vm391_vm13, %v4746_v34  ;;  %vm11846_vm13 = vmmov %vm11839_vm4 }
 0x9a0   : > { %4758 = vst [vmem:[#allocation5 + $0x90] sm:$0xff] %v4754_v0  ;;  %vm11850_vm4 = vmmov %vm11847_vm0 }
 0x9a1   : > { %6049 = vmatpush.msk.msrb.mxu0 %vm390_vm9, %v10505_v28  ;;  %4759 = vst [vmem:[#allocation5 + $0x98] sm:$0xff] %v4755_v12  ;;  %v5210_v28 = vld [vmem:[#allocation5 + $0x118] sm:$0xff]  ;;  %vm11851_vm2 = vmmov %vm11846_vm13 }
 0x9a2   : > { %vm11852_vm14 = vmmov %vm11851_vm2 }
 0x9a3   : > { %6050 = vmatpush.msk.msrb.mxu0 %vm392_vm12, %v10535_v13  ;;  %vm11854_vm6 = vmmov %vm11851_vm2 }
 0x9a5   : > { %v5153_v58 = vpop.permute.xlu0 %5152  ;;  %6051 = vmatpush.msk.msrb.mxu0 %vm392_vm12, %v10531_v18  ;;  %v4669_v33 = vpop.permute.xlu1 %4668 }
 0x9a6   : > { %v5157_v41 = vsel %vm11845_vm1, %v10569_v45, %v5153_v58  ;;  %v4659_v31 = vpop.permute.xlu2 %4658 }
 0x9a7   : > { %5392 = vmatpush.msrb.mxu0 %v5214_v9  ;;  %6052 = vmatpush.msk.msra.mxu3 %vm392_vm12, %v5157_v41 }
 0x9a9   : > { %5393 = vmatpush.msrb.mxu0 %v5210_v28  ;;  %6053 = vmatpush.msk.msra.mxu3 %vm392_vm12, %v5155_v25 }
 0x9aa   : > { %5698 = vmatmul.msk.f32.vlgmr.msra.gmra.mxu3 %vm11846_vm13, %v10595_v42 }
 0x9ab   : > { %6054 = vmatpush.msk.msrb.mxu0 %vm390_vm9, %v10581_v62 }
 0x9ad   : > { %v4667_v18 = vpop.permute.xlu0 %4666  ;;  %6055 = vmatpush.msk.msrb.mxu0 %vm390_vm9, %v4827_v4  ;;  %v4663_v26 = vpop.permute.xlu1 %4662 }
 0x9ae   : > { %v4672_v13 = vsel %vm11847_vm0, %v4665_v36, %v4667_v18  ;;  %v4673_v17 = vsel %vm11848_vm5, %v4667_v18, %v4669_v33  ;;  %v4589_v51 = vpop.permute.xlu2 %4588 }
 0x9af   : > { %4680 = vst [vmem:[#allocation5 + $0x70] sm:$0xff] %v4672_v13  ;;  %5358 = vmatpush.msra.mxu2 %v4672_v13  ;;  %6056 = vmatpush.msk.msrb.mxu0 %vm392_vm12, %v10604_v47 }
 0x9b0   : > { %4681 = vst [vmem:[#allocation5 + $0x78] sm:$0xff] %v4673_v17 }
 0x9b1   : > { %6057 = vmatpush.msk.msrb.mxu0 %vm392_vm12, %v4747_v32  ;;  %vm11853_vm12 = vmmov %vm11851_vm2 }
 0x9b3   : > { %5398 = vmatpush.msrb.mxu0 %v4673_v17 }
 0x9b5   : > { %v4661_v37 = vpop.permute.xlu0 %4660  ;;  %v4593_v53 = vpop.permute.xlu1 %4592 }
 0x9b6   : > { %v4670_v19 = vsel %vm11849_vm3, %v4659_v31, %v4661_v37  ;;  %v4671_v55 = vsel %vm11850_vm4, %v4661_v37, %v4663_v26  ;;  %v4583_v21 = vpop.permute.xlu2 %4582 }
 0x9b7   : > { %4678 = vst [vmem:[#allocation5 + $0x50] sm:$0xff] %v4670_v19  ;;  %5359 = vmatpush.msra.mxu2 %v4670_v19  ;;  %5399 = vmatpush.msrb.mxu0 %v4671_v55 }
 0x9b8   : > { %4679 = vst [vmem:[#allocation5 + $0x58] sm:$0xff] %v4671_v55 }
 0x9bd   : > { %v4591_v29 = vpop.permute.xlu0 %4590  ;;  %v4587_v60 = vpop.permute.xlu1 %4586 }
 0x9be   : > { %v4596_v5 = vsel %vm11851_vm2, %v4589_v51, %v4591_v29  ;;  %v4597_v45 = vsel %vm11852_vm14, %v4591_v29, %v4593_v53 }
 0x9bf   : > { %v4604_v63 = vsel %vm389_vm8, %v4596_v5, 0.0  ;;  %v4605_v10 = vsel %vm390_vm9, %v4597_v45, 0.0  ;;  %6058 = vmatpush.msk.msra.mxu2 %vm389_vm8, %v4596_v5  ;;  %6059 = vmatpush.msk.msrb.mxu0 %vm390_vm9, %v4597_v45 }
 0x9c0   : > { %4608 = vst [vmem:[#allocation5 + $0x30] sm:$0xff] %v4604_v63 }
 0x9c1   : > { %4609 = vst [vmem:[#allocation5 + $0x38] sm:$0xff] %v4605_v10 }
 0x9c5   : > { %v4585_v3 = vpop.permute.xlu0 %4584 }
 0x9c6   : > { %v4594_v48 = vsel %vm11853_vm12, %v4583_v21, %v4585_v3  ;;  %v4595_v22 = vsel %vm11854_vm6, %v4585_v3, %v4587_v60 }
 0x9c7   : > { %v4602_v62 = vsel %vm389_vm8, %v4594_v48, 0.0  ;;  %v4603_v59 = vsel %vm390_vm9, %v4595_v22, 0.0  ;;  %6060 = vmatpush.msk.msra.mxu2 %vm389_vm8, %v4594_v48  ;;  %6061 = vmatpush.msk.msrb.mxu0 %vm390_vm9, %v4595_v22  ;;  %vm5533_vm8 = vcmask 1042434   ;;  %vm5535_vm9 = vcmask 1041408  }
 0x9c8   : > { %4606 = vst [vmem:[#allocation5 + $0x10] sm:$0xff] %v4602_v62  ;;  %5362 = vmatmul.f32.vlgmr.msra.gmra.mxu2 %v10612_v15  ;;  %5402 = vmatmul.f32.vlgmr.msrb.gmra.mxu0 %v10612_v15  ;;  %v5431_v15 = vld [vmem:[%s10760_s6] sm:$0xf] }
 0x9c9   : > { %4607 = vst [vmem:[#allocation5 + $0x18] sm:$0xff] %v4603_v59  ;;  %v5434_v8 = vperm.slane %v5431_v15, 1  ;;  %v5433_v27 = vperm.slane %v5431_v15, 0  ;;  %v5435_v46 = vperm.slane %v5431_v15, 2  ;;  %v5436_v52 = vperm.slane %v5431_v15, 3 }
 0x9e5   : > { %v5303_v11 = vpop.f32.mrf.mxu0 }
 0x9f3   : > { %v5283_v23 = vpop.f32.mrf.mxu3 }
 0x9f4   : > { %v5304_v57 = vadd.f32 %v5303_v11, %v5283_v23 }
 0x9f6   : > { %v5426_v14 = vmax.f32 %v5304_v57, 0.0 }
 0x9f8   : > { %5460 = vmatpush.msra.mxu1 %v5426_v14 }
 0x9f9   : > { %5699 = vmatmul.msk.f32.vlgmr.msra.gmra.mxu1 %vm5441_vm7, %v5430_v6 }
 0x9fb   : > { %v5383_v42 = vpop.f32.mrf.mxu3 }
 0xa0d   : > { %v5323_v38 = vpop.f32.mrf.mxu1 }
 0xa17   : > { %v5343_v39 = vpop.f32.mrf.mxu0 }
 0xa18   : > { %v5344_v50 = vadd.f32 %v5343_v39, %v5323_v38 }
 0xa1a   : > { %v5427_v2 = vmax.f32 %v5344_v50, 0.0 }
 0xa1c   : > { %5480 = vmatpush.msrb.mxu3 %v5427_v2 }
 0xa1d   : > { %5700 = vmatmul.msk.f32.vlgmr.msrb.gmra.mxu3 %vm5441_vm7, %v5430_v6 }
 0xa2d   : > { %v5423_v30 = vpop.f32.mrf.mxu3 }
 0xa45   : > { %v5403_v7 = vpop.f32.mrf.mxu0 }
 0xa46   : > { %v5424_v54 = vadd.f32 %v5423_v30, %v5403_v7 }
 0xa48   : > { %v5429_v47 = vmax.f32 %v5424_v54, 0.0 }
 0xa4a   : > { %5520 = vmatpush.msra.mxu3 %v5429_v47 }
 0xa4b   : > { %v5363_v4 = vpop.f32.mrf.mxu2  ;;  %5702 = vmatmul.msk.f32.vlgmr.msra.gmra.mxu3 %vm5441_vm7, %v5430_v6 }
 0xa4c   : > { %v5384_v44 = vadd.f32 %v5383_v42, %v5363_v4 }
 0xa4e   : > { %v5428_v43 = vmax.f32 %v5384_v44, 0.0 }
 0xa50   : > { %5500 = vmatpush.msrb.mxu1 %v5428_v43 }
 0xa51   : > { %5701 = vmatmul.msk.f32.vlgmr.msrb.gmra.mxu1 %vm5441_vm7, %v5430_v6 }
 0xa76   : > { %v5462_v56 = vpop.f32.mrf.mxu1 }
 0xa77   : > { %v5463_v1 = vadd.f32 %v5462_v56, %v5433_v27 }
 0xaa0   : > { %v5482_v20 = vpop.f32.mrf.mxu3 }
 0xaa1   : > { %v5483_v16 = vadd.f32 %v5482_v20, %v5434_v8 }
 0xaa3   : > { %v5529_v40 = vrot.slane %v5483_v16, 7 }
 0xaa5   : > { %v5532_v0 = vsel %vm4225_vm10, %v5463_v1, %v5529_v40 }
 0xace   : > { %v5502_v35 = vpop.f32.mrf.mxu1  ;;  %v5522_v61 = vpop.f32.mrf.mxu3 }
 0xacf   : > { %v5503_v24 = vadd.f32 %v5502_v35, %v5435_v46  ;;  %v5523_v25 = vadd.f32 %v5522_v61, %v5436_v52 }
 0xad1   : > { %v5530_v34 = vrot.slane %v5503_v24, 6  ;;  %v5531_v32 = vrot.slane %v5523_v25, 5 }
 0xad3   : > { %v5534_v12 = vsel %vm5533_vm8, %v5530_v34, %v5531_v32 }
 0xad4   : > { %v5536_v58 = vsel %vm5535_vm9, %v5532_v0, %v5534_v12 }
 0xad5   : > { %5538 = vst.msk [vmem:[%s359_s17] sm:$0xf] %vm9591_vm11, %v5536_v58 }
 0xad6   : > { %6239 = shalt.err (!%p6236_p9)
}
 0xad7   : > { %5725 = dma.vmem_to_hbm [thread:$0]  (%p6476_p4), %s5553_s20, 64, %s5555_s8, %s5540_s18  }
 0xad8 PF: > { %s5566_s28 = sand.u32 1, %s6274_s24   ;;  %p11856_p10 = scmp.ge.s32.totalorder %s6286_s27, 2 }
 0xad9   : > { %s5567_s23 = scalar_lea.sflag [#allocation8], %s5566_s28 }
 0xada   : > { %p5745_p13 = pnand %p11856_p10, %p6480_p6 }
 0xadc   : > { %p5746_p11 = pneg %p5745_p13 }
 0xade   : > { %6269 = dma.done.wait (%p5746_p11), %s5567_s23, 64  }
 0xadf   : > { %6271 = vsyncadd (%p5746_p11), %s5567_s23, 4294967232  ;;  %p22_p0 = scmp.ge.s32.totalorder %s6450_s19, 4   ;;  %s11857_s24 = smov %s6278_s25 }
 0xae0   : > { %s11858_s25 = smov %s6282_s26  ;;  %s11859_s26 = smov %s6461_s22 }
 0xae1   : > { %s11860_s27 = smov %s6450_s19  ;;  %24 = sbr.rel (!%p22_p0) target bundleno = 10 (0xa), region = 114 }
 0xae6   :  { %5573 = vsyncpa [#allocation7], 1 }
 0xae7   :  { %5575 = vsyncpa [#allocation7 + $0x1], 1 }
 0xae8   :  { %5576 = vsyncpa [#allocation10], 1 }
 0xae9   :  { %5577 = vsyncpa [#allocation13], 1 }
 0xaea   :  { %5578 = vsyncpa [#allocation8], 1 }
 0xaeb   :  { %5580 = vsyncpa [#allocation8 + $0x1], 1 }

</bundles_post_ra>
